<compile_context>
chip_gen: v7x
topology: tpu7x:2x2x1
jax: 0.10.0
libtpu: 0.0.40
codegen_flags: <defaults>
</compile_context>

<pallas_src>
import functools
import math

import jax
import jax.numpy as jnp
from jax.experimental import pallas as pl
from jax.experimental.pallas import tpu as pltpu

NEG_INF = -1e30
# Explicit scoped-VMEM budget; leaves headroom on v7x (64 MiB physical VMEM).
VMEM_LIMIT_BYTES = 48 * 1024 * 1024

# Tile preferences: 256-multiples preferred (v6e 2x256 MXU), 128-aligned
# fallbacks (v5e 4x128 MXU), full-dim fallback for small/odd dims.
_M_TILES = (256, 128, 64, 32, 16, 8)
_N_TILES = (512, 256, 128)
_K_TILES = (1024, 512, 256, 128)


def _pick_tile(dim, preferred):
    for t in preferred:
        if t <= dim and dim % t == 0:
            return t
    return dim  # full-extent block (always legal)


# --------------------------------------------------------------------------
# Fused RMSNorm -> matmul   (used for W_pack and the final-norm + lm_head)
# --------------------------------------------------------------------------
def _rmsnorm_matmul_kernel(eps, x_ref, g_ref, w_ref, o_ref):
    x = x_ref[...].astype(jnp.float32)
    var = jnp.mean(x * x, axis=-1, keepdims=True)
    xn = x * jax.lax.rsqrt(var + eps) * g_ref[...].astype(jnp.float32)
    o_ref[...] = jnp.dot(
        xn.astype(w_ref.dtype), w_ref[...], preferred_element_type=jnp.float32
    ).astype(o_ref.dtype)


def rmsnorm_matmul(x, gamma, w, eps, out_dtype=jnp.bfloat16):
    """out = RMSNorm(x; gamma, eps) @ w, tiled over (M, N); x tile keeps full K."""
    M, K = x.shape
    K2, N = w.shape
    assert K == K2
    tm = _pick_tile(M, _M_TILES)
    tn = _pick_tile(N, _N_TILES)
    return pl.pallas_call(
        functools.partial(_rmsnorm_matmul_kernel, eps),
        out_shape=jax.ShapeDtypeStruct((M, N), out_dtype),
        grid=(M // tm, N // tn),
        in_specs=[
            pl.BlockSpec((tm, K), lambda i, j: (i, 0)),
            pl.BlockSpec((1, K), lambda i, j: (0, 0)),
            pl.BlockSpec((K, tn), lambda i, j: (0, j)),
        ],
        out_specs=pl.BlockSpec((tm, tn), lambda i, j: (i, j)),
        compiler_params=pltpu.CompilerParams(
            dimension_semantics=("parallel", "parallel"),
            vmem_limit_bytes=VMEM_LIMIT_BYTES),
    )(x, gamma.reshape(1, K), w)


# --------------------------------------------------------------------------
# Canonical tiled matmul (3-D grid + f32 accumulator), optional fused residual
# --------------------------------------------------------------------------
def _matmul_kernel(x_ref, w_ref, o_ref, acc_ref):
    @pl.when(pl.program_id(2) == 0)
    def _():
        acc_ref[...] = jnp.zeros_like(acc_ref)

    acc_ref[...] += jnp.dot(x_ref[...], w_ref[...],
                            preferred_element_type=jnp.float32)

    @pl.when(pl.program_id(2) == pl.num_programs(2) - 1)
    def _():
        o_ref[...] = acc_ref[...].astype(o_ref.dtype)


def _matmul_residual_kernel(x_ref, w_ref, r_ref, o_ref, acc_ref):
    @pl.when(pl.program_id(2) == 0)
    def _():
        acc_ref[...] = jnp.zeros_like(acc_ref)

    acc_ref[...] += jnp.dot(x_ref[...], w_ref[...],
                            preferred_element_type=jnp.float32)

    @pl.when(pl.program_id(2) == pl.num_programs(2) - 1)
    def _():
        o_ref[...] = (acc_ref[...] + r_ref[...].astype(jnp.float32)
                      ).astype(o_ref.dtype)


def tiled_matmul(x, w, residual=None, out_dtype=jnp.bfloat16):
    """out = x @ w (+ residual), tiled over (M, N, K) with double buffering."""
    M, K = x.shape
    _, N = w.shape
    tm = _pick_tile(M, _M_TILES)
    tn = _pick_tile(N, _N_TILES)
    tk = _pick_tile(K, _K_TILES)
    in_specs = [
        pl.BlockSpec((tm, tk), lambda i, j, k: (i, k)),
        pl.BlockSpec((tk, tn), lambda i, j, k: (k, j)),
    ]
    args = [x, w]
    kernel = _matmul_kernel
    if residual is not None:
        in_specs.append(pl.BlockSpec((tm, tn), lambda i, j, k: (i, j)))
        args.append(residual)
        kernel = _matmul_residual_kernel
    return pl.pallas_call(
        kernel,
        out_shape=jax.ShapeDtypeStruct((M, N), out_dtype),
        grid=(M // tm, N // tn, K // tk),
        in_specs=in_specs,
        out_specs=pl.BlockSpec((tm, tn), lambda i, j, k: (i, j)),
        scratch_shapes=[pltpu.VMEM((tm, tn), jnp.float32)],
        compiler_params=pltpu.CompilerParams(
            dimension_semantics=("parallel", "parallel", "arbitrary"),
            vmem_limit_bytes=VMEM_LIMIT_BYTES),
    )(*args)


# --------------------------------------------------------------------------
# Fused RMSNorm -> SwiGLU MLP -> down_proj -> +residual, tiled over I
# --------------------------------------------------------------------------
def _mlp_kernel(eps, x_ref, g_ref, wg_ref, wu_ref, wd_ref, r_ref, o_ref,
                xn_ref, acc_ref):
    l = pl.program_id(1)

    @pl.when(l == 0)
    def _():
        x = x_ref[...].astype(jnp.float32)
        var = jnp.mean(x * x, axis=-1, keepdims=True)
        xn = x * jax.lax.rsqrt(var + eps) * g_ref[...].astype(jnp.float32)
        xn_ref[...] = xn.astype(xn_ref.dtype)
        acc_ref[...] = jnp.zeros_like(acc_ref)

    xn = xn_ref[...]
    g = jnp.dot(xn, wg_ref[...], preferred_element_type=jnp.float32)
    u = jnp.dot(xn, wu_ref[...], preferred_element_type=jnp.float32)
    h = (g * jax.nn.sigmoid(g)) * u                     # SiLU(gate) * up
    acc_ref[...] += jnp.dot(h.astype(wd_ref.dtype), wd_ref[...],
                            preferred_element_type=jnp.float32)

    @pl.when(l == pl.num_programs(1) - 1)
    def _():
        o_ref[...] = (acc_ref[...] + r_ref[...].astype(jnp.float32)
                      ).astype(o_ref.dtype)


def rmsnorm_mlp(x, gamma, wg, wu, wd, residual, eps, out_dtype=jnp.bfloat16):
    M, D = x.shape
    I = wg.shape[1]
    tm = _pick_tile(M, _M_TILES)
    ti = _pick_tile(I, _N_TILES)
    return pl.pallas_call(
        functools.partial(_mlp_kernel, eps),
        out_shape=jax.ShapeDtypeStruct((M, D), out_dtype),
        grid=(M // tm, I // ti),
        in_specs=[
            pl.BlockSpec((tm, D), lambda i, l: (i, 0)),   # x
            pl.BlockSpec((1, D), lambda i, l: (0, 0)),    # gamma
            pl.BlockSpec((D, ti), lambda i, l: (0, l)),   # gate_proj
            pl.BlockSpec((D, ti), lambda i, l: (0, l)),   # up_proj
            pl.BlockSpec((ti, D), lambda i, l: (l, 0)),   # down_proj
            pl.BlockSpec((tm, D), lambda i, l: (i, 0)),   # residual
        ],
        out_specs=pl.BlockSpec((tm, D), lambda i, l: (i, 0)),
        scratch_shapes=[
            pltpu.VMEM((tm, D), jnp.bfloat16),            # normalized x (reused per l)
            pltpu.VMEM((tm, D), jnp.float32),             # down-proj accumulator
        ],
        compiler_params=pltpu.CompilerParams(
            dimension_semantics=("parallel", "arbitrary"),
            vmem_limit_bytes=VMEM_LIMIT_BYTES),
    )(x, gamma.reshape(1, D), wg, wu, wd, residual)


# --------------------------------------------------------------------------
# Flash-attention style kernel over (head, q_tile, kv_tile).
# Reads q/k/v head slices straight out of packed qkv; RoPE and causal/ALiBi
# bias are applied in-kernel.
# --------------------------------------------------------------------------
def _flash_attn_kernel(scale, half, blk_q, blk_kv, use_rope,
                       slopes_ref, q_ref, k_ref, v_ref,
                       cq_ref, sq_ref, ck_ref, sk_ref,
                       o_ref, m_ref, l_ref, acc_ref):
    h = pl.program_id(0)
    qi = pl.program_id(1)
    ki = pl.program_id(2)

    @pl.when(ki == 0)
    def _():
        m_ref[...] = jnp.full_like(m_ref, NEG_INF)
        l_ref[...] = jnp.zeros_like(l_ref)
        acc_ref[...] = jnp.zeros_like(acc_ref)

    # Skip fully-masked (causal) kv blocks: halves attention FLOPs for prefill.
    @pl.when(ki * blk_kv <= qi * blk_q + blk_q - 1)
    def _():
        q = q_ref[...].astype(jnp.float32) * scale      # fold softmax scale into q
        k = k_ref[...].astype(jnp.float32)
        if use_rope:  # static flag; NeoX rotate-half rotary via lane roll (XLU)
            q = q * cq_ref[...] + pltpu.roll(q, shift=half, axis=1) * sq_ref[...]
            k = k * ck_ref[...] + pltpu.roll(k, shift=half, axis=1) * sk_ref[...]

        s = jax.lax.dot_general(
            q.astype(jnp.bfloat16), k.astype(jnp.bfloat16),
            (((1,), (1,)), ((), ())), preferred_element_type=jnp.float32)

        row = qi * blk_q + jax.lax.broadcasted_iota(jnp.int32, (blk_q, blk_kv), 0)
        col = ki * blk_kv + jax.lax.broadcasted_iota(jnp.int32, (blk_q, blk_kv), 1)
        slope = slopes_ref[h]                            # 0.0 for the RoPE variant
        bias = jnp.where(col <= row,
                         slope * (col - row).astype(jnp.float32), NEG_INF)
        s = s + bias

        m_prev = m_ref[...]
        m_new = jnp.maximum(m_prev, jnp.max(s, axis=-1, keepdims=True))
        alpha = jnp.exp(m_prev - m_new)
        p = jnp.exp(s - m_new)
        l_ref[...] = alpha * l_ref[...] + jnp.sum(p, axis=-1, keepdims=True)
        acc_ref[...] = alpha * acc_ref[...] + jnp.dot(
            p.astype(jnp.bfloat16), v_ref[...], preferred_element_type=jnp.float32)
        m_ref[...] = m_new

    @pl.when(ki == pl.num_programs(2) - 1)
    def _():
        inv_l = pl.reciprocal(l_ref[...], approx=True)
        o_ref[...] = (acc_ref[...] * inv_l).astype(o_ref.dtype)


def flash_attention(qkv, cos, sin, slopes, num_heads, head_dim, scale, use_rope,
                    out_dtype=jnp.bfloat16):
    """qkv: (T, 3*H*Dh) packed; returns attention output in (T, H*Dh) layout."""
    T = qkv.shape[0]
    D = num_heads * head_dim
    H = num_heads
    blk_q = _pick_tile(T, _M_TILES)
    blk_kv = _pick_tile(T, _M_TILES)
    kernel = functools.partial(_flash_attn_kernel, scale, head_dim // 2,
                               blk_q, blk_kv, use_rope)
    return pl.pallas_call(
        kernel,
        out_shape=jax.ShapeDtypeStruct((T, D), out_dtype),
        grid=(H, T // blk_q, T // blk_kv),
        in_specs=[
            pl.BlockSpec(memory_space=pltpu.MemorySpace.SMEM),                    # ALiBi slopes (H,)
            pl.BlockSpec((blk_q, head_dim), lambda h, qi, ki: (qi, h)),           # q slice
            pl.BlockSpec((blk_kv, head_dim), lambda h, qi, ki: (ki, H + h)),      # k slice
            pl.BlockSpec((blk_kv, head_dim), lambda h, qi, ki: (ki, 2 * H + h)),  # v slice
            pl.BlockSpec((blk_q, head_dim), lambda h, qi, ki: (qi, 0)),           # cos (q rows)
            pl.BlockSpec((blk_q, head_dim), lambda h, qi, ki: (qi, 0)),           # sin (q rows)
            pl.BlockSpec((blk_kv, head_dim), lambda h, qi, ki: (ki, 0)),          # cos (k rows)
            pl.BlockSpec((blk_kv, head_dim), lambda h, qi, ki: (ki, 0)),          # sin (k rows)
        ],
        out_specs=pl.BlockSpec((blk_q, head_dim), lambda h, qi, ki: (qi, h)),
        scratch_shapes=[
            pltpu.VMEM((blk_q, 1), jnp.float32),          # running max
            pltpu.VMEM((blk_q, 1), jnp.float32),          # running denom
            pltpu.VMEM((blk_q, head_dim), jnp.float32),   # output accumulator
        ],
        compiler_params=pltpu.CompilerParams(
            dimension_semantics=("parallel", "parallel", "arbitrary"),
            vmem_limit_bytes=VMEM_LIMIT_BYTES),
    )(slopes, qkv, qkv, qkv, cos, sin, cos, sin)


# --------------------------------------------------------------------------
# Glue (plain JAX): ALiBi slopes, RoPE tables, embedding gather, params.
# --------------------------------------------------------------------------
def get_alibi_slopes(total_num_heads: int) -> jnp.ndarray:
    closest_power_of_2 = 2 ** math.floor(math.log2(total_num_heads))
    base = 2 ** (-(2 ** (-(math.log2(closest_power_of_2) - 3))))
    powers = jnp.arange(1, 1 + closest_power_of_2, dtype=jnp.float32)
    slopes = jnp.power(jnp.float32(base), powers)
    if closest_power_of_2 != total_num_heads:
        extra_base = 2 ** (-(2 ** (-(math.log2(2 * closest_power_of_2) - 3))))
        num_remaining = min(closest_power_of_2, total_num_heads - closest_power_of_2)
        extra_powers = jnp.arange(1, 1 + 2 * num_remaining, 2, dtype=jnp.float32)
        slopes = jnp.concatenate(
            [slopes, jnp.power(jnp.float32(extra_base), extra_powers)])
    return slopes.astype(jnp.float32)


def rope_tables(positions, head_dim, theta):
    """NeoX rotate-half tables: rope(x) = x*cos_full + roll(x, Dh/2)*sin_signed."""
    half = head_dim // 2
    inv_freq = 1.0 / (theta ** (jnp.arange(half, dtype=jnp.float32) * 2.0 / head_dim))
    freqs = positions.astype(jnp.float32)[:, None] * inv_freq[None, :]   # (T, half)
    cos = jnp.cos(freqs)
    sin = jnp.sin(freqs)
    cos_full = jnp.concatenate([cos, cos], axis=-1)          # (T, Dh)
    sin_signed = jnp.concatenate([-sin, sin], axis=-1)       # (T, Dh)
    return cos_full, sin_signed


def init_params(key, cfg):
    D, I, V, L = cfg["hidden"], cfg["intermediate"], cfg["vocab"], cfg["num_layers"]
    keys = jax.random.split(key, 2 + 5 * L)
    scale = 0.02

    def w(k, shape):  # bf16 weights: native MXU input dtype, halves HBM traffic
        return (jax.random.normal(k, shape, dtype=jnp.float32) * scale
                ).astype(jnp.bfloat16)

    params = {
        "embed": w(keys[0], (V, D)),
        "lm_head": w(keys[1], (D, V)),   # pre-transposed to (in, out): no runtime .T
        "final_norm": jnp.ones((D,), jnp.float32),
        "layers": [],
    }
    for l in range(L):
        k = keys[2 + 5 * l: 2 + 5 * (l + 1)]
        params["layers"].append({
            "input_ln": jnp.ones((D,), jnp.float32),
            "post_ln": jnp.ones((D,), jnp.float32),
            "w_pack": w(k[0], (D, 3 * D)),
            "o_proj": w(k[1], (D, D)),
            "gate": w(k[2], (D, I)),
            "up": w(k[3], (D, I)),
            "down": w(k[4], (I, D)),
        })
    return params


# --------------------------------------------------------------------------
# Model forward
# --------------------------------------------------------------------------
def layer_forward(lp, h, cos, sin, slopes, cfg, use_rope):
    H = cfg["num_heads"]
    Dh = cfg["hidden"] // H
    scale = Dh ** -0.5
    # attention block: fused RMSNorm->W_pack, flash attention, o_proj + residual
    qkv = rmsnorm_matmul(h, lp["input_ln"], lp["w_pack"], cfg["rms_eps"])
    attn = flash_attention(qkv, cos, sin, slopes, H, Dh, scale, use_rope)
    h = tiled_matmul(attn, lp["o_proj"], residual=h)
    # MLP block: fused RMSNorm -> SwiGLU -> down_proj -> +residual, tiled over I
    h = rmsnorm_mlp(h, lp["post_ln"], lp["gate"], lp["up"], lp["down"], h,
                    cfg["rms_eps"])
    return h


def baichuan_forward(params, input_ids, positions, kv_caches, cfg,
                     position_embedding="ROPE"):
    """Prefill forward.  Returns (next_token, last_token_logits)."""
    # TODO(synk): paged KV-cache read/write + cache_events (CUDA events) and the
    # stochastic Sampler have no clean Pallas equivalent; greedy argmax instead.
    del kv_caches
    T = input_ids.shape[0]
    H = cfg["num_heads"]
    Dh = cfg["hidden"] // H

    h = params["embed"][input_ids]                       # (T, D) bf16 gather (glue)

    if position_embedding == "ALIBI":
        slopes = get_alibi_slopes(H)
        cos = jnp.ones((T, Dh), jnp.float32)             # unused (use_rope=False)
        sin = jnp.zeros((T, Dh), jnp.float32)
        use_rope = False
    else:
        slopes = jnp.zeros((H,), jnp.float32)            # zero slope == pure causal
        cos, sin = rope_tables(positions, Dh, cfg["rope_theta"])
        use_rope = True

    for lp in params["layers"]:
        h = layer_forward(lp, h, cos, sin, slopes, cfg, use_rope)

    # Sampler needs only the last token: fuse final RMSNorm into lm_head and
    # evaluate a single row -> cost independent of prompt length.
    h_last = h[-1:, :]
    logits = rmsnorm_matmul(h_last, params["final_norm"], params["lm_head"],
                            cfg["rms_eps"], out_dtype=jnp.float32)    # (1, V)
    next_token = jnp.argmax(logits[0], axis=-1)
    return next_token, logits


# --------------------------------------------------------------------------
# Main
# --------------------------------------------------------------------------
if __name__ == "__main__":
    cfg = dict(
        hidden=256,        # 2 heads x head_dim 128 (real Baichuan head_dim is 128)
        num_heads=2,
        intermediate=512,
        num_layers=2,
        vocab=1024,
        rms_eps=1e-6,
        rope_theta=10000.0,
    )
    T = 128

    key = jax.random.PRNGKey(0)
    pkey, ikey = jax.random.split(key)
    params = init_params(pkey, cfg)

    input_ids = jax.random.randint(ikey, (T,), 0, cfg["vocab"], dtype=jnp.int32)
    positions = jnp.arange(T, dtype=jnp.int32)
    kv_caches = [None] * cfg["num_layers"]

    # RoPE variant (Baichuan-7B style)
    fwd = jax.jit(functools.partial(baichuan_forward, cfg=cfg,
                                    position_embedding="ROPE"))
    next_tok, logits = fwd(params, input_ids, positions, kv_caches)
    jax.block_until_ready((next_tok, logits))
    assert logits.shape == (1, cfg["vocab"])
    assert bool(jnp.isfinite(logits).all())

    # ALiBi variant (Baichuan-13B style)
    fwd_alibi = jax.jit(functools.partial(baichuan_forward, cfg=cfg,
                                          position_embedding="ALIBI"))
    next_tok_a, logits_a = fwd_alibi(params, input_ids, positions, kv_caches)
    jax.block_until_ready((next_tok_a, logits_a))
    assert logits_a.shape == (1, cfg["vocab"])
    assert bool(jnp.isfinite(logits_a).all())

    print("KERNEL_OK")
</pallas_src>

<mosaic_0001>
module attributes {stable_mosaic.version = 11 : i64} {
  func.func @_matmul_residual_kernel(%arg0: i32, %arg1: i32, %arg2: i32, %arg3: memref<128x256xbf16, #tpu.memory_space<vmem>>, %arg4: memref<256x256xbf16, #tpu.memory_space<vmem>>, %arg5: memref<128x256xbf16, #tpu.memory_space<vmem>>, %arg6: memref<128x256xbf16, #tpu.memory_space<vmem>>, %arg7: memref<128x256xf32, #tpu.memory_space<vmem>>) attributes {dimension_semantics = [#tpu.dimension_semantics<parallel>, #tpu.dimension_semantics<parallel>, #tpu.dimension_semantics<arbitrary>], iteration_bounds = array<i64: 1, 1, 1>, scalar_prefetch = 0 : i64, scratch_operands = 1 : i64, tpu.core_type = #tpu.core_type<tc>, window_params = [{transform_indices = @transform_0, window_bounds = array<i64: 128, 256>}, {transform_indices = @transform_1, window_bounds = array<i64: 256, 256>}, {transform_indices = @transform_2, window_bounds = array<i64: 128, 256>}, {transform_indices = @transform_3, window_bounds = array<i64: 128, 256>}]} {
    %c0_i32 = arith.constant 0 : i32
    %0 = arith.cmpi eq, %arg2, %c0_i32 : i32
    %1 = arith.extui %0 : i1 to i32
    %c0_i32_0 = arith.constant 0 : i32
    %2 = arith.cmpi ne, %1, %c0_i32_0 : i32
    scf.if %2 {
      %cst_10 = arith.constant 0.000000e+00 : f32
      %12 = vector.broadcast %cst_10 : f32 to vector<128x256xf32>
      %c0_11 = arith.constant 0 : index
      %c0_12 = arith.constant 0 : index
      %13 = vector.load %arg7[%c0_11, %c0_12] : memref<128x256xf32, #tpu.memory_space<vmem>>, vector<128x256xf32>
      tpu.vector_store %arg7[%c0_11, %c0_12], %12 {strides = array<i32>} : memref<128x256xf32, #tpu.memory_space<vmem>>, vector<128x256xf32>,
    } else {
    }
    %c0 = arith.constant 0 : index
    %c0_1 = arith.constant 0 : index
    %3 = vector.load %arg7[%c0, %c0_1] : memref<128x256xf32, #tpu.memory_space<vmem>>, vector<128x256xf32>
    %c0_2 = arith.constant 0 : index
    %c0_3 = arith.constant 0 : index
    %4 = vector.load %arg3[%c0_2, %c0_3] : memref<128x256xbf16, #tpu.memory_space<vmem>>, vector<128x256xbf16>
    %c0_4 = arith.constant 0 : index
    %c0_5 = arith.constant 0 : index
    %5 = vector.load %arg4[%c0_4, %c0_5] : memref<256x256xbf16, #tpu.memory_space<vmem>>, vector<256x256xbf16>
    %cst = arith.constant dense<0.000000e+00> : vector<128x256xf32>
    %6 = tpu.matmul %4, %5, %cst {dimension_numbers = #tpu.dot_dimension_numbers<[1], [0], [0], [1], [0, 0, 1, 1], [], []>} : vector<128x256xbf16>, vector<256x256xbf16>, vector<128x256xf32> -> vector<128x256xf32>
    %7 = arith.addf %3, %6 : vector<128x256xf32>
    %c0_6 = arith.constant 0 : index
    %c0_7 = arith.constant 0 : index
    %8 = vector.load %arg7[%c0_6, %c0_7] : memref<128x256xf32, #tpu.memory_space<vmem>>, vector<128x256xf32>
    tpu.vector_store %arg7[%c0_6, %c0_7], %7 {strides = array<i32>} : memref<128x256xf32, #tpu.memory_space<vmem>>, vector<128x256xf32>,
    %c0_i32_8 = arith.constant 0 : i32
    %9 = arith.cmpi eq, %arg2, %c0_i32_8 : i32
    %10 = arith.extui %9 : i1 to i32
    %c0_i32_9 = arith.constant 0 : i32
    %11 = arith.cmpi ne, %10, %c0_i32_9 : i32
    scf.if %11 {
      %c0_10 = arith.constant 0 : index
      %c0_11 = arith.constant 0 : index
      %12 = vector.load %arg7[%c0_10, %c0_11] : memref<128x256xf32, #tpu.memory_space<vmem>>, vector<128x256xf32>
      %c0_12 = arith.constant 0 : index
      %c0_13 = arith.constant 0 : index
      %13 = vector.load %arg5[%c0_12, %c0_13] : memref<128x256xbf16, #tpu.memory_space<vmem>>, vector<128x256xbf16>
      %14 = arith.extf %13 : vector<128x256xbf16> to vector<128x256xf32>
      %15 = arith.addf %12, %14 : vector<128x256xf32>
      %16 = arith.truncf %15 : vector<128x256xf32> to vector<128x256xbf16>
      %c0_14 = arith.constant 0 : index
      %c0_15 = arith.constant 0 : index
      %17 = vector.load %arg6[%c0_14, %c0_15] : memref<128x256xbf16, #tpu.memory_space<vmem>>, vector<128x256xbf16>
      tpu.vector_store %arg6[%c0_14, %c0_15], %16 {strides = array<i32>} : memref<128x256xbf16, #tpu.memory_space<vmem>>, vector<128x256xbf16>,
    } else {
    }
    return
  }
  func.func @transform_0(%arg0: i32, %arg1: i32, %arg2: i32) -> (i32, i32) {
    %c0_i32 = arith.constant 0 : i32
    return %arg0, %arg2 : i32, i32
  }
  func.func @transform_1(%arg0: i32, %arg1: i32, %arg2: i32) -> (i32, i32) {
    %c0_i32 = arith.constant 0 : i32
    return %arg2, %arg1 : i32, i32
  }
  func.func @transform_2(%arg0: i32, %arg1: i32, %arg2: i32) -> (i32, i32) {
    %c0_i32 = arith.constant 0 : i32
    return %arg0, %arg1 : i32, i32
  }
  func.func @transform_3(%arg0: i32, %arg1: i32, %arg2: i32) -> (i32, i32) {
    %c0_i32 = arith.constant 0 : i32
    return %arg0, %arg1 : i32, i32
  }
}

module attributes {stable_mosaic.version = 11 : i64} {
  func.func @_rmsnorm_matmul_kernel(%arg0: i32, %arg1: i32, %arg2: memref<128x256xbf16, #tpu.memory_space<vmem>>, %arg3: memref<1x256xf32, #tpu.memory_space<vmem>>, %arg4: memref<256x256xbf16, #tpu.memory_space<vmem>>, %arg5: memref<128x256xbf16, #tpu.memory_space<vmem>>) attributes {dimension_semantics = [#tpu.dimension_semantics<parallel>, #tpu.dimension_semantics<parallel>], iteration_bounds = array<i64: 1, 3>, scalar_prefetch = 0 : i64, scratch_operands = 0 : i64, tpu.core_type = #tpu.core_type<tc>, window_params = [{transform_indices = @transform_0, window_bounds = array<i64: 128, 256>}, {pipeline_mode = #tpu.pipeline_mode<synchronous>, transform_indices = @transform_1, window_bounds = array<i64: 1, 256>}, {transform_indices = @transform_2, window_bounds = array<i64: 256, 256>}, {transform_indices = @transform_3, window_bounds = array<i64: 128, 256>}]} {
    %c0 = arith.constant 0 : index
    %c0_0 = arith.constant 0 : index
    %0 = vector.load %arg2[%c0, %c0_0] : memref<128x256xbf16, #tpu.memory_space<vmem>>, vector<128x256xbf16>
    %1 = arith.extf %0 : vector<128x256xbf16> to vector<128x256xf32>
    %2 = arith.mulf %1, %1 : vector<128x256xf32>
    %cst = arith.constant dense<0.000000e+00> : vector<128xf32>
    %3 = vector.multi_reduction <add>, %2, %cst [1] : vector<128x256xf32> to vector<128xf32>
    %4 = vector.shape_cast %3 : vector<128xf32> to vector<128x1xf32>
    %cst_1 = arith.constant 2.560000e+02 : f32
    %5 = vector.broadcast %cst_1 : f32 to vector<128x1xf32>
    %6 = arith.divf %4, %5 : vector<128x1xf32>
    %cst_2 = arith.constant 9.99999997E-7 : f32
    %7 = vector.broadcast %cst_2 : f32 to vector<128x1xf32>
    %8 = arith.addf %6, %7 : vector<128x1xf32>
    %9 = math.rsqrt %8 : vector<128x1xf32>
    %10 = vector.broadcast %9 : vector<128x1xf32> to vector<128x256xf32>
    %11 = arith.mulf %1, %10 : vector<128x256xf32>
    %c0_3 = arith.constant 0 : index
    %c0_4 = arith.constant 0 : index
    %12 = vector.load %arg3[%c0_3, %c0_4] : memref<1x256xf32, #tpu.memory_space<vmem>>, vector<1x256xf32>
    %13 = vector.broadcast %12 : vector<1x256xf32> to vector<128x256xf32>
    %14 = arith.mulf %11, %13 : vector<128x256xf32>
    %15 = arith.truncf %14 : vector<128x256xf32> to vector<128x256xbf16>
    %c0_5 = arith.constant 0 : index
    %c0_6 = arith.constant 0 : index
    %16 = vector.load %arg4[%c0_5, %c0_6] : memref<256x256xbf16, #tpu.memory_space<vmem>>, vector<256x256xbf16>
    %cst_7 = arith.constant dense<0.000000e+00> : vector<128x256xf32>
    %17 = tpu.matmul %15, %16, %cst_7 {dimension_numbers = #tpu.dot_dimension_numbers<[1], [0], [0], [1], [0, 0, 1, 1], [], []>} : vector<128x256xbf16>, vector<256x256xbf16>, vector<128x256xf32> -> vector<128x256xf32>
    %18 = arith.truncf %17 : vector<128x256xf32> to vector<128x256xbf16>
    %c0_8 = arith.constant 0 : index
    %c0_9 = arith.constant 0 : index
    %19 = vector.load %arg5[%c0_8, %c0_9] : memref<128x256xbf16, #tpu.memory_space<vmem>>, vector<128x256xbf16>
    tpu.vector_store %arg5[%c0_8, %c0_9], %18 {strides = array<i32>} : memref<128x256xbf16, #tpu.memory_space<vmem>>, vector<128x256xbf16>,
    return
  }
  func.func @transform_0(%arg0: i32, %arg1: i32) -> (i32, i32) {
    %c0_i32 = arith.constant 0 : i32
    %c0_i32_0 = arith.constant 0 : i32
    return %arg0, %c0_i32 : i32, i32
  }
  func.func @transform_1(%arg0: i32, %arg1: i32) -> (i32, i32) {
    %c0_i32 = arith.constant 0 : i32
    %c0_i32_0 = arith.constant 0 : i32
    %c0_i32_1 = arith.constant 0 : i32
    return %c0_i32, %c0_i32_0 : i32, i32
  }
  func.func @transform_2(%arg0: i32, %arg1: i32) -> (i32, i32) {
    %c0_i32 = arith.constant 0 : i32
    %c0_i32_0 = arith.constant 0 : i32
    return %c0_i32, %arg1 : i32, i32
  }
  func.func @transform_3(%arg0: i32, %arg1: i32) -> (i32, i32) {
    %c0_i32 = arith.constant 0 : i32
    return %arg0, %arg1 : i32, i32
  }
}

module attributes {stable_mosaic.version = 11 : i64} {
  func.func @_flash_attn_kernel(%arg0: i32, %arg1: i32, %arg2: i32, %arg3: memref<2xf32, #tpu.memory_space<smem>>, %arg4: memref<128x128xbf16, #tpu.memory_space<vmem>>, %arg5: memref<128x128xbf16, #tpu.memory_space<vmem>>, %arg6: memref<128x128xbf16, #tpu.memory_space<vmem>>, %arg7: memref<128x128xf32, #tpu.memory_space<vmem>>, %arg8: memref<128x128xf32, #tpu.memory_space<vmem>>, %arg9: memref<128x128xf32, #tpu.memory_space<vmem>>, %arg10: memref<128x128xf32, #tpu.memory_space<vmem>>, %arg11: memref<128x128xbf16, #tpu.memory_space<vmem>>, %arg12: memref<128x1xf32, #tpu.memory_space<vmem>>, %arg13: memref<128x1xf32, #tpu.memory_space<vmem>>, %arg14: memref<128x128xf32, #tpu.memory_space<vmem>>) attributes {dimension_semantics = [#tpu.dimension_semantics<parallel>, #tpu.dimension_semantics<parallel>, #tpu.dimension_semantics<arbitrary>], iteration_bounds = array<i64: 2, 1, 1>, scalar_prefetch = 0 : i64, scratch_operands = 3 : i64, tpu.core_type = #tpu.core_type<tc>, window_params = [{transform_indices = @transform_0, window_bounds = array<i64: 2>}, {transform_indices = @transform_1, window_bounds = array<i64: 128, 128>}, {transform_indices = @transform_2, window_bounds = array<i64: 128, 128>}, {transform_indices = @transform_3, window_bounds = array<i64: 128, 128>}, {transform_indices = @transform_4, window_bounds = array<i64: 128, 128>}, {transform_indices = @transform_5, window_bounds = array<i64: 128, 128>}, {transform_indices = @transform_6, window_bounds = array<i64: 128, 128>}, {transform_indices = @transform_7, window_bounds = array<i64: 128, 128>}, {transform_indices = @transform_8, window_bounds = array<i64: 128, 128>}]} {
    %c0_i32 = arith.constant 0 : i32
    %0 = arith.cmpi eq, %arg2, %c0_i32 : i32
    %1 = arith.extui %0 : i1 to i32
    %c0_i32_0 = arith.constant 0 : i32
    %2 = arith.cmpi ne, %1, %c0_i32_0 : i32
    scf.if %2 {
      %cst = arith.constant -1.000000e+30 : f32
      %13 = vector.broadcast %cst : f32 to vector<128x1xf32>
      %c0 = arith.constant 0 : index
      %c0_6 = arith.constant 0 : index
      %14 = vector.load %arg12[%c0, %c0_6] : memref<128x1xf32, #tpu.memory_space<vmem>>, vector<128x1xf32>
      tpu.vector_store %arg12[%c0, %c0_6], %13 {strides = array<i32>} : memref<128x1xf32, #tpu.memory_space<vmem>>, vector<128x1xf32>,
      %cst_7 = arith.constant 0.000000e+00 : f32
      %15 = vector.broadcast %cst_7 : f32 to vector<128x1xf32>
      %c0_8 = arith.constant 0 : index
      %c0_9 = arith.constant 0 : index
      %16 = vector.load %arg13[%c0_8, %c0_9] : memref<128x1xf32, #tpu.memory_space<vmem>>, vector<128x1xf32>
      tpu.vector_store %arg13[%c0_8, %c0_9], %15 {strides = array<i32>} : memref<128x1xf32, #tpu.memory_space<vmem>>, vector<128x1xf32>,
      %cst_10 = arith.constant 0.000000e+00 : f32
      %17 = vector.broadcast %cst_10 : f32 to vector<128x128xf32>
      %c0_11 = arith.constant 0 : index
      %c0_12 = arith.constant 0 : index
      %18 = vector.load %arg14[%c0_11, %c0_12] : memref<128x128xf32, #tpu.memory_space<vmem>>, vector<128x128xf32>
      tpu.vector_store %arg14[%c0_11, %c0_12], %17 {strides = array<i32>} : memref<128x128xf32, #tpu.memory_space<vmem>>, vector<128x128xf32>,
    } else {
    }
    %c128_i32 = arith.constant 128 : i32
    %3 = arith.muli %arg2, %c128_i32 : i32
    %c128_i32_1 = arith.constant 128 : i32
    %4 = arith.muli %arg1, %c128_i32_1 : i32
    %c128_i32_2 = arith.constant 128 : i32
    %5 = arith.addi %4, %c128_i32_2 : i32
    %c1_i32 = arith.constant 1 : i32
    %6 = arith.subi %5, %c1_i32 : i32
    %7 = arith.cmpi sle, %3, %6 : i32
    %8 = arith.extui %7 : i1 to i32
    %c0_i32_3 = arith.constant 0 : i32
    %9 = arith.cmpi ne, %8, %c0_i32_3 : i32
    scf.if %9 {
      %c0 = arith.constant 0 : index
      %c0_6 = arith.constant 0 : index
      %13 = vector.load %arg4[%c0, %c0_6] : memref<128x128xbf16, #tpu.memory_space<vmem>>, vector<128x128xbf16>
      %14 = arith.extf %13 : vector<128x128xbf16> to vector<128x128xf32>
      %cst = arith.constant 0.0883883461 : f32
      %15 = vector.broadcast %cst : f32 to vector<128x128xf32>
      %16 = arith.mulf %14, %15 : vector<128x128xf32>
      %c0_7 = arith.constant 0 : index
      %c0_8 = arith.constant 0 : index
      %17 = vector.load %arg5[%c0_7, %c0_8] : memref<128x128xbf16, #tpu.memory_space<vmem>>, vector<128x128xbf16>
      %18 = arith.extf %17 : vector<128x128xbf16> to vector<128x128xf32>
      %c0_9 = arith.constant 0 : index
      %c0_10 = arith.constant 0 : index
      %19 = vector.load %arg7[%c0_9, %c0_10] : memref<128x128xf32, #tpu.memory_space<vmem>>, vector<128x128xf32>
      %20 = arith.mulf %16, %19 : vector<128x128xf32>
      %c64_i32 = arith.constant 64 : i32
      %21 = tpu.dynamic_rotate %16 by %c64_i32 dim 1 : vector<128x128xf32>, i32 -> vector<128x128xf32>
      %c0_11 = arith.constant 0 : index
      %c0_12 = arith.constant 0 : index
      %22 = vector.load %arg8[%c0_11, %c0_12] : memref<128x128xf32, #tpu.memory_space<vmem>>, vector<128x128xf32>
      %23 = arith.mulf %21, %22 : vector<128x128xf32>
      %24 = arith.addf %20, %23 : vector<128x128xf32>
      %c0_13 = arith.constant 0 : index
      %c0_14 = arith.constant 0 : index
      %25 = vector.load %arg9[%c0_13, %c0_14] : memref<128x128xf32, #tpu.memory_space<vmem>>, vector<128x128xf32>
      %26 = arith.mulf %18, %25 : vector<128x128xf32>
      %c64_i32_15 = arith.constant 64 : i32
      %27 = tpu.dynamic_rotate %18 by %c64_i32_15 dim 1 : vector<128x128xf32>, i32 -> vector<128x128xf32>
      %c0_16 = arith.constant 0 : index
      %c0_17 = arith.constant 0 : index
      %28 = vector.load %arg10[%c0_16, %c0_17] : memref<128x128xf32, #tpu.memory_space<vmem>>, vector<128x128xf32>
      %29 = arith.mulf %27, %28 : vector<128x128xf32>
      %30 = arith.addf %26, %29 : vector<128x128xf32>
      %31 = arith.truncf %24 : vector<128x128xf32> to vector<128x128xbf16>
      %32 = arith.truncf %30 : vector<128x128xf32> to vector<128x128xbf16>
      %cst_18 = arith.constant dense<0.000000e+00> : vector<128x128xf32>
      %33 = tpu.matmul %31, %32, %cst_18 {dimension_numbers = #tpu.dot_dimension_numbers<[1], [1], [0], [0], [0, 0, 1, 0], [], []>} : vector<128x128xbf16>, vector<128x128xbf16>, vector<128x128xf32> -> vector<128x128xf32>
      %c128_i32_19 = arith.constant 128 : i32
      %34 = arith.muli %arg1, %c128_i32_19 : i32
      %35 = tpu.iota {dimensions = array<i32: 0>} : vector<128x128xi32>
      %36 = vector.broadcast %34 : i32 to vector<128x128xi32>
      %37 = arith.addi %36, %35 : vector<128x128xi32>
      %c128_i32_20 = arith.constant 128 : i32
      %38 = arith.muli %arg2, %c128_i32_20 : i32
      %39 = tpu.iota {dimensions = array<i32: 1>} : vector<128x128xi32>
      %40 = vector.broadcast %38 : i32 to vector<128x128xi32>
      %41 = arith.addi %40, %39 : vector<128x128xi32>
      %42 = arith.index_cast %arg0 : i32 to index
      %43 = memref.load %arg3[%42] : memref<2xf32, #tpu.memory_space<smem>>
      %44 = arith.cmpi sle, %41, %37 : vector<128x128xi32>
      %45 = arith.subi %41, %37 : vector<128x128xi32>
      %46 = arith.sitofp %45 : vector<128x128xi32> to vector<128x128xf32>
      %47 = vector.broadcast %43 : f32 to vector<128x128xf32>
      %48 = arith.mulf %47, %46 : vector<128x128xf32>
      %cst_21 = arith.constant -1.000000e+30 : f32
      %49 = vector.broadcast %cst_21 : f32 to vector<128x128xf32>
      %50 = arith.select %44, %48, %49 : vector<128x128xi1>, vector<128x128xf32>
      %51 = arith.addf %33, %50 : vector<128x128xf32>
      %c0_22 = arith.constant 0 : index
      %c0_23 = arith.constant 0 : index
      %52 = vector.load %arg12[%c0_22, %c0_23] : memref<128x1xf32, #tpu.memory_space<vmem>>, vector<128x1xf32>
      %cst_24 = arith.constant dense<0xFF800000> : vector<128xf32>
      %53 = vector.multi_reduction <maximumf>, %51, %cst_24 [1] : vector<128x128xf32> to vector<128xf32>
      %54 = vector.shape_cast %53 : vector<128xf32> to vector<128x1xf32>
      %55 = arith.maximumf %52, %54 : vector<128x1xf32>
      %56 = arith.subf %52, %55 : vector<128x1xf32>
      %57 = math.exp %56 : vector<128x1xf32>
      %58 = vector.broadcast %55 : vector<128x1xf32> to vector<128x128xf32>
      %59 = arith.subf %51, %58 : vector<128x128xf32>
      %60 = math.exp %59 : vector<128x128xf32>
      %c0_25 = arith.constant 0 : index
      %c0_26 = arith.constant 0 : index
      %61 = vector.load %arg13[%c0_25, %c0_26] : memref<128x1xf32, #tpu.memory_space<vmem>>, vector<128x1xf32>
      %62 = arith.mulf %57, %61 : vector<128x1xf32>
      %cst_27 = arith.constant dense<0.000000e+00> : vector<128xf32>
      %63 = vector.multi_reduction <add>, %60, %cst_27 [1] : vector<128x128xf32> to vector<128xf32>
      %64 = vector.shape_cast %63 : vector<128xf32> to vector<128x1xf32>
      %65 = arith.addf %62, %64 : vector<128x1xf32>
      %c0_28 = arith.constant 0 : index
      %c0_29 = arith.constant 0 : index
      %66 = vector.load %arg13[%c0_28, %c0_29] : memref<128x1xf32, #tpu.memory_space<vmem>>, vector<128x1xf32>
      tpu.vector_store %arg13[%c0_28, %c0_29], %65 {strides = array<i32>} : memref<128x1xf32, #tpu.memory_space<vmem>>, vector<128x1xf32>,
      %c0_30 = arith.constant 0 : index
      %c0_31 = arith.constant 0 : index
      %67 = vector.load %arg14[%c0_30, %c0_31] : memref<128x128xf32, #tpu.memory_space<vmem>>, vector<128x128xf32>
      %68 = vector.broadcast %57 : vector<128x1xf32> to vector<128x128xf32>
      %69 = arith.mulf %68, %67 : vector<128x128xf32>
      %70 = arith.truncf %60 : vector<128x128xf32> to vector<128x128xbf16>
      %c0_32 = arith.constant 0 : index
      %c0_33 = arith.constant 0 : index
      %71 = vector.load %arg6[%c0_32, %c0_33] : memref<128x128xbf16, #tpu.memory_space<vmem>>, vector<128x128xbf16>
      %cst_34 = arith.constant dense<0.000000e+00> : vector<128x128xf32>
      %72 = tpu.matmul %70, %71, %cst_34 {dimension_numbers = #tpu.dot_dimension_numbers<[1], [0], [0], [1], [0, 0, 1, 1], [], []>} : vector<128x128xbf16>, vector<128x128xbf16>, vector<128x128xf32> -> vector<128x128xf32>
      %73 = arith.addf %69, %72 : vector<128x128xf32>
      %c0_35 = arith.constant 0 : index
      %c0_36 = arith.constant 0 : index
      %74 = vector.load %arg14[%c0_35, %c0_36] : memref<128x128xf32, #tpu.memory_space<vmem>>, vector<128x128xf32>
      tpu.vector_store %arg14[%c0_35, %c0_36], %73 {strides = array<i32>} : memref<128x128xf32, #tpu.memory_space<vmem>>, vector<128x128xf32>,
      %c0_37 = arith.constant 0 : index
      %c0_38 = arith.constant 0 : index
      %75 = vector.load %arg12[%c0_37, %c0_38] : memref<128x1xf32, #tpu.memory_space<vmem>>, vector<128x1xf32>
      tpu.vector_store %arg12[%c0_37, %c0_38], %55 {strides = array<i32>} : memref<128x1xf32, #tpu.memory_space<vmem>>, vector<128x1xf32>,
    } else {
    }
    %c0_i32_4 = arith.constant 0 : i32
    %10 = arith.cmpi eq, %arg2, %c0_i32_4 : i32
    %11 = arith.extui %10 : i1 to i32
    %c0_i32_5 = arith.constant 0 : i32
    %12 = arith.cmpi ne, %11, %c0_i32_5 : i32
    scf.if %12 {
      %c0 = arith.constant 0 : index
      %c0_6 = arith.constant 0 : index
      %13 = vector.load %arg13[%c0, %c0_6] : memref<128x1xf32, #tpu.memory_space<vmem>>, vector<128x1xf32>
      %14 = tpu.reciprocal %13 {approx = true} : vector<128x1xf32> -> vector<128x1xf32>
      %c0_7 = arith.constant 0 : index
      %c0_8 = arith.constant 0 : index
      %15 = vector.load %arg14[%c0_7, %c0_8] : memref<128x128xf32, #tpu.memory_space<vmem>>, vector<128x128xf32>
      %16 = vector.broadcast %14 : vector<128x1xf32> to vector<128x128xf32>
      %17 = arith.mulf %15, %16 : vector<128x128xf32>
      %18 = arith.truncf %17 : vector<128x128xf32> to vector<128x128xbf16>
      %c0_9 = arith.constant 0 : index
      %c0_10 = arith.constant 0 : index
      %19 = vector.load %arg11[%c0_9, %c0_10] : memref<128x128xbf16, #tpu.memory_space<vmem>>, vector<128x128xbf16>
      tpu.vector_store %arg11[%c0_9, %c0_10], %18 {strides = array<i32>} : memref<128x128xbf16, #tpu.memory_space<vmem>>, vector<128x128xbf16>,
    } else {
    }
    return
  }
  func.func @transform_0(%arg0: i32, %arg1: i32, %arg2: i32) -> i32 {
    %c0_i32 = arith.constant 0 : i32
    %c0_i32_0 = arith.constant 0 : i32
    return %c0_i32 : i32
  }
  func.func @transform_1(%arg0: i32, %arg1: i32, %arg2: i32) -> (i32, i32) {
    %c0_i32 = arith.constant 0 : i32
    return %arg1, %arg0 : i32, i32
  }
  func.func @transform_2(%arg0: i32, %arg1: i32, %arg2: i32) -> (i32, i32) {
    %c2_i32 = arith.constant 2 : i32
    %0 = arith.addi %c2_i32, %arg0 : i32
    %c0_i32 = arith.constant 0 : i32
    return %arg2, %0 : i32, i32
  }
  func.func @transform_3(%arg0: i32, %arg1: i32, %arg2: i32) -> (i32, i32) {
    %c4_i32 = arith.constant 4 : i32
    %0 = arith.addi %c4_i32, %arg0 : i32
    %c0_i32 = arith.constant 0 : i32
    return %arg2, %0 : i32, i32
  }
  func.func @transform_4(%arg0: i32, %arg1: i32, %arg2: i32) -> (i32, i32) {
    %c0_i32 = arith.constant 0 : i32
    %c0_i32_0 = arith.constant 0 : i32
    return %arg1, %c0_i32 : i32, i32
  }
  func.func @transform_5(%arg0: i32, %arg1: i32, %arg2: i32) -> (i32, i32) {
    %c0_i32 = arith.constant 0 : i32
    %c0_i32_0 = arith.constant 0 : i32
    return %arg1, %c0_i32 : i32, i32
  }
  func.func @transform_6(%arg0: i32, %arg1: i32, %arg2: i32) -> (i32, i32) {
    %c0_i32 = arith.constant 0 : i32
    %c0_i32_0 = arith.constant 0 : i32
    return %arg2, %c0_i32 : i32, i32
  }
  func.func @transform_7(%arg0: i32, %arg1: i32, %arg2: i32) -> (i32, i32) {
    %c0_i32 = arith.constant 0 : i32
    %c0_i32_0 = arith.constant 0 : i32
    return %arg2, %c0_i32 : i32, i32
  }
  func.func @transform_8(%arg0: i32, %arg1: i32, %arg2: i32) -> (i32, i32) {
    %c0_i32 = arith.constant 0 : i32
    return %arg1, %arg0 : i32, i32
  }
}

module attributes {stable_mosaic.version = 11 : i64} {
  func.func @_mlp_kernel(%arg0: i32, %arg1: i32, %arg2: memref<128x256xbf16, #tpu.memory_space<vmem>>, %arg3: memref<1x256xf32, #tpu.memory_space<vmem>>, %arg4: memref<256x512xbf16, #tpu.memory_space<vmem>>, %arg5: memref<256x512xbf16, #tpu.memory_space<vmem>>, %arg6: memref<512x256xbf16, #tpu.memory_space<vmem>>, %arg7: memref<128x256xbf16, #tpu.memory_space<vmem>>, %arg8: memref<128x256xbf16, #tpu.memory_space<vmem>>, %arg9: memref<128x256xbf16, #tpu.memory_space<vmem>>, %arg10: memref<128x256xf32, #tpu.memory_space<vmem>>) attributes {dimension_semantics = [#tpu.dimension_semantics<parallel>, #tpu.dimension_semantics<arbitrary>], iteration_bounds = array<i64: 1, 1>, scalar_prefetch = 0 : i64, scratch_operands = 2 : i64, tpu.core_type = #tpu.core_type<tc>, window_params = [{transform_indices = @transform_0, window_bounds = array<i64: 128, 256>}, {pipeline_mode = #tpu.pipeline_mode<synchronous>, transform_indices = @transform_1, window_bounds = array<i64: 1, 256>}, {transform_indices = @transform_2, window_bounds = array<i64: 256, 512>}, {transform_indices = @transform_3, window_bounds = array<i64: 256, 512>}, {transform_indices = @transform_4, window_bounds = array<i64: 512, 256>}, {transform_indices = @transform_5, window_bounds = array<i64: 128, 256>}, {transform_indices = @transform_6, window_bounds = array<i64: 128, 256>}]} {
    %c0_i32 = arith.constant 0 : i32
    %0 = arith.cmpi eq, %arg1, %c0_i32 : i32
    %1 = arith.extui %0 : i1 to i32
    %c0_i32_0 = arith.constant 0 : i32
    %2 = arith.cmpi ne, %1, %c0_i32_0 : i32
    scf.if %2 {
      %c0_17 = arith.constant 0 : index
      %c0_18 = arith.constant 0 : index
      %24 = vector.load %arg2[%c0_17, %c0_18] : memref<128x256xbf16, #tpu.memory_space<vmem>>, vector<128x256xbf16>
      %25 = arith.extf %24 : vector<128x256xbf16> to vector<128x256xf32>
      %26 = arith.mulf %25, %25 : vector<128x256xf32>
      %cst_19 = arith.constant dense<0.000000e+00> : vector<128xf32>
      %27 = vector.multi_reduction <add>, %26, %cst_19 [1] : vector<128x256xf32> to vector<128xf32>
      %28 = vector.shape_cast %27 : vector<128xf32> to vector<128x1xf32>
      %cst_20 = arith.constant 2.560000e+02 : f32
      %29 = vector.broadcast %cst_20 : f32 to vector<128x1xf32>
      %30 = arith.divf %28, %29 : vector<128x1xf32>
      %cst_21 = arith.constant 9.99999997E-7 : f32
      %31 = vector.broadcast %cst_21 : f32 to vector<128x1xf32>
      %32 = arith.addf %30, %31 : vector<128x1xf32>
      %33 = math.rsqrt %32 : vector<128x1xf32>
      %34 = vector.broadcast %33 : vector<128x1xf32> to vector<128x256xf32>
      %35 = arith.mulf %25, %34 : vector<128x256xf32>
      %c0_22 = arith.constant 0 : index
      %c0_23 = arith.constant 0 : index
      %36 = vector.load %arg3[%c0_22, %c0_23] : memref<1x256xf32, #tpu.memory_space<vmem>>, vector<1x256xf32>
      %37 = vector.broadcast %36 : vector<1x256xf32> to vector<128x256xf32>
      %38 = arith.mulf %35, %37 : vector<128x256xf32>
      %39 = arith.truncf %38 : vector<128x256xf32> to vector<128x256xbf16>
      %c0_24 = arith.constant 0 : index
      %c0_25 = arith.constant 0 : index
      %40 = vector.load %arg9[%c0_24, %c0_25] : memref<128x256xbf16, #tpu.memory_space<vmem>>, vector<128x256xbf16>
      tpu.vector_store %arg9[%c0_24, %c0_25], %39 {strides = array<i32>} : memref<128x256xbf16, #tpu.memory_space<vmem>>, vector<128x256xbf16>,
      %cst_26 = arith.constant 0.000000e+00 : f32
      %41 = vector.broadcast %cst_26 : f32 to vector<128x256xf32>
      %c0_27 = arith.constant 0 : index
      %c0_28 = arith.constant 0 : index
      %42 = vector.load %arg10[%c0_27, %c0_28] : memref<128x256xf32, #tpu.memory_space<vmem>>, vector<128x256xf32>
      tpu.vector_store %arg10[%c0_27, %c0_28], %41 {strides = array<i32>} : memref<128x256xf32, #tpu.memory_space<vmem>>, vector<128x256xf32>,
    } else {
    }
    %c0 = arith.constant 0 : index
    %c0_1 = arith.constant 0 : index
    %3 = vector.load %arg9[%c0, %c0_1] : memref<128x256xbf16, #tpu.memory_space<vmem>>, vector<128x256xbf16>
    %c0_2 = arith.constant 0 : index
    %c0_3 = arith.constant 0 : index
    %4 = vector.load %arg4[%c0_2, %c0_3] : memref<256x512xbf16, #tpu.memory_space<vmem>>, vector<256x512xbf16>
    %cst = arith.constant dense<0.000000e+00> : vector<128x512xf32>
    %5 = tpu.matmul %3, %4, %cst {dimension_numbers = #tpu.dot_dimension_numbers<[1], [0], [0], [1], [0, 0, 1, 1], [], []>} : vector<128x256xbf16>, vector<256x512xbf16>, vector<128x512xf32> -> vector<128x512xf32>
    %c0_4 = arith.constant 0 : index
    %c0_5 = arith.constant 0 : index
    %6 = vector.load %arg5[%c0_4, %c0_5] : memref<256x512xbf16, #tpu.memory_space<vmem>>, vector<256x512xbf16>
    %cst_6 = arith.constant dense<0.000000e+00> : vector<128x512xf32>
    %7 = tpu.matmul %3, %6, %cst_6 {dimension_numbers = #tpu.dot_dimension_numbers<[1], [0], [0], [1], [0, 0, 1, 1], [], []>} : vector<128x256xbf16>, vector<256x512xbf16>, vector<128x512xf32> -> vector<128x512xf32>
    %8 = arith.negf %5 : vector<128x512xf32>
    %9 = math.exp %8 : vector<128x512xf32>
    %cst_7 = arith.constant 1.000000e+00 : f32
    %10 = vector.broadcast %cst_7 : f32 to vector<128x512xf32>
    %11 = arith.addf %10, %9 : vector<128x512xf32>
    %12 = arith.divf %10, %11 : vector<128x512xf32>
    %13 = arith.mulf %5, %12 : vector<128x512xf32>
    %14 = arith.mulf %13, %7 : vector<128x512xf32>
    %c0_8 = arith.constant 0 : index
    %c0_9 = arith.constant 0 : index
    %15 = vector.load %arg10[%c0_8, %c0_9] : memref<128x256xf32, #tpu.memory_space<vmem>>, vector<128x256xf32>
    %16 = arith.truncf %14 : vector<128x512xf32> to vector<128x512xbf16>
    %c0_10 = arith.constant 0 : index
    %c0_11 = arith.constant 0 : index
    %17 = vector.load %arg6[%c0_10, %c0_11] : memref<512x256xbf16, #tpu.memory_space<vmem>>, vector<512x256xbf16>
    %cst_12 = arith.constant dense<0.000000e+00> : vector<128x256xf32>
    %18 = tpu.matmul %16, %17, %cst_12 {dimension_numbers = #tpu.dot_dimension_numbers<[1], [0], [0], [1], [0, 0, 1, 1], [], []>} : vector<128x512xbf16>, vector<512x256xbf16>, vector<128x256xf32> -> vector<128x256xf32>
    %19 = arith.addf %15, %18 : vector<128x256xf32>
    %c0_13 = arith.constant 0 : index
    %c0_14 = arith.constant 0 : index
    %20 = vector.load %arg10[%c0_13, %c0_14] : memref<128x256xf32, #tpu.memory_space<vmem>>, vector<128x256xf32>
    tpu.vector_store %arg10[%c0_13, %c0_14], %19 {strides = array<i32>} : memref<128x256xf32, #tpu.memory_space<vmem>>, vector<128x256xf32>,
    %c0_i32_15 = arith.constant 0 : i32
    %21 = arith.cmpi eq, %arg1, %c0_i32_15 : i32
    %22 = arith.extui %21 : i1 to i32
    %c0_i32_16 = arith.constant 0 : i32
    %23 = arith.cmpi ne, %22, %c0_i32_16 : i32
    scf.if %23 {
      %c0_17 = arith.constant 0 : index
      %c0_18 = arith.constant 0 : index
      %24 = vector.load %arg10[%c0_17, %c0_18] : memref<128x256xf32, #tpu.memory_space<vmem>>, vector<128x256xf32>
      %c0_19 = arith.constant 0 : index
      %c0_20 = arith.constant 0 : index
      %25 = vector.load %arg7[%c0_19, %c0_20] : memref<128x256xbf16, #tpu.memory_space<vmem>>, vector<128x256xbf16>
      %26 = arith.extf %25 : vector<128x256xbf16> to vector<128x256xf32>
      %27 = arith.addf %24, %26 : vector<128x256xf32>
      %28 = arith.truncf %27 : vector<128x256xf32> to vector<128x256xbf16>
      %c0_21 = arith.constant 0 : index
      %c0_22 = arith.constant 0 : index
      %29 = vector.load %arg8[%c0_21, %c0_22] : memref<128x256xbf16, #tpu.memory_space<vmem>>, vector<128x256xbf16>
      tpu.vector_store %arg8[%c0_21, %c0_22], %28 {strides = array<i32>} : memref<128x256xbf16, #tpu.memory_space<vmem>>, vector<128x256xbf16>,
    } else {
    }
    return
  }
  func.func @transform_0(%arg0: i32, %arg1: i32) -> (i32, i32) {
    %c0_i32 = arith.constant 0 : i32
    %c0_i32_0 = arith.constant 0 : i32
    return %arg0, %c0_i32 : i32, i32
  }
  func.func @transform_1(%arg0: i32, %arg1: i32) -> (i32, i32) {
    %c0_i32 = arith.constant 0 : i32
    %c0_i32_0 = arith.constant 0 : i32
    %c0_i32_1 = arith.constant 0 : i32
    return %c0_i32, %c0_i32_0 : i32, i32
  }
  func.func @transform_2(%arg0: i32, %arg1: i32) -> (i32, i32) {
    %c0_i32 = arith.constant 0 : i32
    %c0_i32_0 = arith.constant 0 : i32
    return %c0_i32, %arg1 : i32, i32
  }
  func.func @transform_3(%arg0: i32, %arg1: i32) -> (i32, i32) {
    %c0_i32 = arith.constant 0 : i32
    %c0_i32_0 = arith.constant 0 : i32
    return %c0_i32, %arg1 : i32, i32
  }
  func.func @transform_4(%arg0: i32, %arg1: i32) -> (i32, i32) {
    %c0_i32 = arith.constant 0 : i32
    %c0_i32_0 = arith.constant 0 : i32
    return %arg1, %c0_i32 : i32, i32
  }
  func.func @transform_5(%arg0: i32, %arg1: i32) -> (i32, i32) {
    %c0_i32 = arith.constant 0 : i32
    %c0_i32_0 = arith.constant 0 : i32
    return %arg0, %c0_i32 : i32, i32
  }
  func.func @transform_6(%arg0: i32, %arg1: i32) -> (i32, i32) {
    %c0_i32 = arith.constant 0 : i32
    %c0_i32_0 = arith.constant 0 : i32
    return %arg0, %c0_i32 : i32, i32
  }
}

module attributes {stable_mosaic.version = 11 : i64} {
  func.func @_rmsnorm_matmul_kernel(%arg0: i32, %arg1: i32, %arg2: memref<1x256xbf16, #tpu.memory_space<vmem>>, %arg3: memref<1x256xf32, #tpu.memory_space<vmem>>, %arg4: memref<256x512xbf16, #tpu.memory_space<vmem>>, %arg5: memref<1x512xf32, #tpu.memory_space<vmem>>) attributes {dimension_semantics = [#tpu.dimension_semantics<parallel>, #tpu.dimension_semantics<parallel>], iteration_bounds = array<i64: 1, 2>, scalar_prefetch = 0 : i64, scratch_operands = 0 : i64, tpu.core_type = #tpu.core_type<tc>, window_params = [{transform_indices = @transform_0, window_bounds = array<i64: 1, 256>}, {pipeline_mode = #tpu.pipeline_mode<synchronous>, transform_indices = @transform_1, window_bounds = array<i64: 1, 256>}, {transform_indices = @transform_2, window_bounds = array<i64: 256, 512>}, {transform_indices = @transform_3, window_bounds = array<i64: 1, 512>}]} {
    %c0 = arith.constant 0 : index
    %c0_0 = arith.constant 0 : index
    %0 = vector.load %arg2[%c0, %c0_0] : memref<1x256xbf16, #tpu.memory_space<vmem>>, vector<1x256xbf16>
    %1 = arith.extf %0 : vector<1x256xbf16> to vector<1x256xf32>
    %2 = arith.mulf %1, %1 : vector<1x256xf32>
    %cst = arith.constant dense<0.000000e+00> : vector<1xf32>
    %3 = vector.multi_reduction <add>, %2, %cst [1] : vector<1x256xf32> to vector<1xf32>
    %4 = vector.shape_cast %3 : vector<1xf32> to vector<1x1xf32>
    %cst_1 = arith.constant 2.560000e+02 : f32
    %5 = vector.broadcast %cst_1 : f32 to vector<1x1xf32>
    %6 = arith.divf %4, %5 : vector<1x1xf32>
    %cst_2 = arith.constant 9.99999997E-7 : f32
    %7 = vector.broadcast %cst_2 : f32 to vector<1x1xf32>
    %8 = arith.addf %6, %7 : vector<1x1xf32>
    %9 = math.rsqrt %8 : vector<1x1xf32>
    %10 = vector.broadcast %9 : vector<1x1xf32> to vector<1x256xf32>
    %11 = arith.mulf %1, %10 : vector<1x256xf32>
    %c0_3 = arith.constant 0 : index
    %c0_4 = arith.constant 0 : index
    %12 = vector.load %arg3[%c0_3, %c0_4] : memref<1x256xf32, #tpu.memory_space<vmem>>, vector<1x256xf32>
    %13 = arith.mulf %11, %12 : vector<1x256xf32>
    %14 = arith.truncf %13 : vector<1x256xf32> to vector<1x256xbf16>
    %c0_5 = arith.constant 0 : index
    %c0_6 = arith.constant 0 : index
    %15 = vector.load %arg4[%c0_5, %c0_6] : memref<256x512xbf16, #tpu.memory_space<vmem>>, vector<256x512xbf16>
    %cst_7 = arith.constant dense<0.000000e+00> : vector<1x512xf32>
    %16 = tpu.matmul %14, %15, %cst_7 {dimension_numbers = #tpu.dot_dimension_numbers<[1], [0], [0], [1], [0, 0, 1, 1], [], []>} : vector<1x256xbf16>, vector<256x512xbf16>, vector<1x512xf32> -> vector<1x512xf32>
    %c0_8 = arith.constant 0 : index
    %c0_9 = arith.constant 0 : index
    %17 = vector.load %arg5[%c0_8, %c0_9] : memref<1x512xf32, #tpu.memory_space<vmem>>, vector<1x512xf32>
    tpu.vector_store %arg5[%c0_8, %c0_9], %16 {strides = array<i32>} : memref<1x512xf32, #tpu.memory_space<vmem>>, vector<1x512xf32>,
    return
  }
  func.func @transform_0(%arg0: i32, %arg1: i32) -> (i32, i32) {
    %c0_i32 = arith.constant 0 : i32
    %c0_i32_0 = arith.constant 0 : i32
    return %arg0, %c0_i32 : i32, i32
  }
  func.func @transform_1(%arg0: i32, %arg1: i32) -> (i32, i32) {
    %c0_i32 = arith.constant 0 : i32
    %c0_i32_0 = arith.constant 0 : i32
    %c0_i32_1 = arith.constant 0 : i32
    return %c0_i32, %c0_i32_0 : i32, i32
  }
  func.func @transform_2(%arg0: i32, %arg1: i32) -> (i32, i32) {
    %c0_i32 = arith.constant 0 : i32
    %c0_i32_0 = arith.constant 0 : i32
    return %c0_i32, %arg1 : i32, i32
  }
  func.func @transform_3(%arg0: i32, %arg1: i32) -> (i32, i32) {
    %c0_i32 = arith.constant 0 : i32
    return %arg0, %arg1 : i32, i32
  }
}

</mosaic_0001>

<bundles_post_ra>
// kernel: baichuan_forward.9
= control target key start
LH: loop header
LB: loop body
LE: loop exit
PB: predicated region body
PF: predicated region fallthrough
CT: control target
= control target key end

     0   :  { %s1534_s12 = smov 0   ;;  %s1536_s13 = smov 0   ;;  %s1993_s0 = inlined_call_operand.vmem [shape: bf16[128,256], index: 0, kind: input, shape index: {}]   ;;  %s1994_s1 = inlined_call_operand.vmem [shape: f32[1,256], index: 1, kind: input, shape index: {}]   ;;  %s1995_s2 = inlined_call_operand.vmem [shape: bf16[256,768], index: 2, kind: input, shape index: {}]   ;;  %s1996_s3 = inlined_call_operand.vmem [shape: bf16[128,768], index: 3, kind: output, shape index: {}]  }
   0x1   :  { %s1538_s14 = smov 0   ;;  %s1540_s15 = smov 0  }
   0x2   :  { %s1542_s16 = smov 0  }
   0x3 LB: > { %s22_s17 = sadd.s32 1, %s1508_s15  ;;  %s1240_s18 = sadd.s32 4294967295, %s1512_s16   ;;  %s1512_s16 = sphi %s1542_s16, %s13_s16   ;;  %s1508_s15 = sphi %s1540_s15, %s2001_s15   ;;  %s1504_s14 = sphi %s1538_s14, %s2000_s14   ;;  %s1500_s13 = sphi %s1536_s13, %s1999_s13   ;;  %s1496_s12 = sphi %s1534_s12, %s1998_s12  }
   0x4   : > { %p23_p0 = scmp.ge.s32.totalorder %s22_s17, 3  ;;  %p86_p1 = scmp.ne.s32.totalorder %s1500_s13, %s1496_s12 }
   0x5   : > { %p87_p2 = scmp.eq.s32.totalorder %s1512_s16, 0  ;;  %p118_p4 = scmp.eq.s32.totalorder %s1240_s18, 2 }
   0x6   : > { %s2003_s17 = smov (%p23_p0, %s22_s17), 0  ;;  %s79_s20 = sadd.s32 1, %s1500_s13 }
   0x7   : > { %p88_p3 = por %p87_p2, %p86_p1  ;;  %s76_s19 = ssub.s32 %s1508_s15, %s2003_s17 }
   0x8   : > { %p77_p5 = scmp.eq.s32.totalorder %s76_s19, 0  ;;  %p1569_p6 = por %p118_p4, %p86_p1 }
   0x9   : > { %p1244_p7 = scmp.ge.s32.totalorder %s1512_s16, 3 }
   0xa   : > { %s1574_s22 = scalar_select %p77_p5, %s1500_s13, %s79_s20  }
   0xb   : > { %153 = sbr.rel (%p1244_p7) target bundleno = 38 (0x26), region = 24 }
  0x12   : > { %156 = sbr.rel (!%p88_p3) target bundleno = 38 (0x26), region = 28  ;;  %s158_s23 = sand.u32 (%p88_p3), 1, %s1500_s13  }
  0x13   : > { %s1304_s24 = sshll.u32 (%p88_p3), %s1508_s15, 3  ;;  %s1245_s25 = sshll.u32 (%p88_p3), %s158_s23, 8 }
  0x14   : > { %s1582_s28 = scalar_lea.vmem (%p88_p3), %s1995_s2, %s1304_s24  ;;  %s1587_s29 = scalar_lea.vmem (%p88_p3), [#allocation2], %s1245_s25 }
  0x15   : > { %v253_v0 = vld [vmem:[%s1582_s28] sm:$0xff] (%p88_p3)  ;;  %v255_v1 = vld [vmem:[%s1582_s28 + $0x18] sm:$0xff] (%p88_p3)  ;;  %v257_v2 = vld [vmem:[%s1582_s28 + $0x30] sm:$0xff] (%p88_p3) }
  0x16   : > { %254 = vst [vmem:[%s1587_s29] sm:$0xff] (%p88_p3), %v253_v0  ;;  %256 = vst [vmem:[%s1587_s29 + $0x8] sm:$0xff] (%p88_p3), %v255_v1  ;;  %v259_v3 = vld [vmem:[%s1582_s28 + $0x48] sm:$0xff] (%p88_p3)  ;;  %v261_v4 = vld [vmem:[%s1582_s28 + $0x60] sm:$0xff] (%p88_p3) }
  0x17   : > { %258 = vst [vmem:[%s1587_s29 + $0x10] sm:$0xff] (%p88_p3), %v257_v2  ;;  %v263_v5 = vld [vmem:[%s1582_s28 + $0x78] sm:$0xff] (%p88_p3)  ;;  %260 = vst [vmem:[%s1587_s29 + $0x18] sm:$0xff] (%p88_p3), %v259_v3  ;;  %v265_v6 = vld [vmem:[%s1582_s28 + $0x90] sm:$0xff] (%p88_p3) }
  0x18   : > { %262 = vst [vmem:[%s1587_s29 + $0x20] sm:$0xff] (%p88_p3), %v261_v4  ;;  %264 = vst [vmem:[%s1587_s29 + $0x28] sm:$0xff] (%p88_p3), %v263_v5  ;;  %v267_v7 = vld [vmem:[%s1582_s28 + $0xa8] sm:$0xff] (%p88_p3)  ;;  %v269_v8 = vld [vmem:[%s1582_s28 + $0xc0] sm:$0xff] (%p88_p3) }
  0x19   : > { %266 = vst [vmem:[%s1587_s29 + $0x30] sm:$0xff] %v265_v6  ;;  %268 = vst [vmem:[%s1587_s29 + $0x38] sm:$0xff] %v267_v7  ;;  %v271_v9 = vld [vmem:[%s1582_s28 + $0xd8] sm:$0xff]  ;;  %v273_v10 = vld [vmem:[%s1582_s28 + $0xf0] sm:$0xff] }
  0x1a   : > { %270 = vst [vmem:[%s1587_s29 + $0x40] sm:$0xff] %v269_v8  ;;  %v275_v11 = vld [vmem:[%s1582_s28 + $0x108] sm:$0xff]  ;;  %272 = vst [vmem:[%s1587_s29 + $0x48] sm:$0xff] %v271_v9  ;;  %v277_v12 = vld [vmem:[%s1582_s28 + $0x120] sm:$0xff] }
  0x1b   : > { %274 = vst [vmem:[%s1587_s29 + $0x50] sm:$0xff] %v273_v10  ;;  %276 = vst [vmem:[%s1587_s29 + $0x58] sm:$0xff] %v275_v11  ;;  %v279_v13 = vld [vmem:[%s1582_s28 + $0x138] sm:$0xff]  ;;  %v281_v14 = vld [vmem:[%s1582_s28 + $0x150] sm:$0xff] }
  0x1c   : > { %278 = vst [vmem:[%s1587_s29 + $0x60] sm:$0xff] %v277_v12  ;;  %280 = vst [vmem:[%s1587_s29 + $0x68] sm:$0xff] %v279_v13  ;;  %v283_v15 = vld [vmem:[%s1582_s28 + $0x168] sm:$0xff]  ;;  %v285_v16 = vld [vmem:[%s1582_s28 + $0x180] sm:$0xff] }
  0x1d   : > { %282 = vst [vmem:[%s1587_s29 + $0x70] sm:$0xff] %v281_v14  ;;  %v287_v17 = vld [vmem:[%s1582_s28 + $0x198] sm:$0xff]  ;;  %284 = vst [vmem:[%s1587_s29 + $0x78] sm:$0xff] %v283_v15  ;;  %v289_v18 = vld [vmem:[%s1582_s28 + $0x1b0] sm:$0xff] }
  0x1e   : > { %286 = vst [vmem:[%s1587_s29 + $0x80] sm:$0xff] %v285_v16  ;;  %288 = vst [vmem:[%s1587_s29 + $0x88] sm:$0xff] %v287_v17  ;;  %v291_v19 = vld [vmem:[%s1582_s28 + $0x1c8] sm:$0xff]  ;;  %v293_v20 = vld [vmem:[%s1582_s28 + $0x1e0] sm:$0xff] }
  0x1f   : > { %290 = vst [vmem:[%s1587_s29 + $0x90] sm:$0xff] %v289_v18  ;;  %292 = vst [vmem:[%s1587_s29 + $0x98] sm:$0xff] %v291_v19  ;;  %v295_v21 = vld [vmem:[%s1582_s28 + $0x1f8] sm:$0xff]  ;;  %v297_v22 = vld [vmem:[%s1582_s28 + $0x210] sm:$0xff] }
  0x20   : > { %294 = vst [vmem:[%s1587_s29 + $0xa0] sm:$0xff] %v293_v20  ;;  %v299_v23 = vld [vmem:[%s1582_s28 + $0x228] sm:$0xff]  ;;  %296 = vst [vmem:[%s1587_s29 + $0xa8] sm:$0xff] %v295_v21  ;;  %v301_v24 = vld [vmem:[%s1582_s28 + $0x240] sm:$0xff] }
  0x21   : > { %298 = vst [vmem:[%s1587_s29 + $0xb0] sm:$0xff] %v297_v22  ;;  %300 = vst [vmem:[%s1587_s29 + $0xb8] sm:$0xff] %v299_v23  ;;  %v303_v25 = vld [vmem:[%s1582_s28 + $0x258] sm:$0xff]  ;;  %v305_v26 = vld [vmem:[%s1582_s28 + $0x270] sm:$0xff] }
  0x22   : > { %302 = vst [vmem:[%s1587_s29 + $0xc0] sm:$0xff] %v301_v24  ;;  %304 = vst [vmem:[%s1587_s29 + $0xc8] sm:$0xff] %v303_v25  ;;  %v307_v27 = vld [vmem:[%s1582_s28 + $0x288] sm:$0xff]  ;;  %v309_v28 = vld [vmem:[%s1582_s28 + $0x2a0] sm:$0xff] }
  0x23   : > { %306 = vst [vmem:[%s1587_s29 + $0xd0] sm:$0xff] %v305_v26  ;;  %v311_v29 = vld [vmem:[%s1582_s28 + $0x2b8] sm:$0xff]  ;;  %308 = vst [vmem:[%s1587_s29 + $0xd8] sm:$0xff] %v307_v27  ;;  %v313_v30 = vld [vmem:[%s1582_s28 + $0x2d0] sm:$0xff] }
  0x24   : > { %310 = vst [vmem:[%s1587_s29 + $0xe0] sm:$0xff] %v309_v28  ;;  %312 = vst [vmem:[%s1587_s29 + $0xe8] sm:$0xff] %v311_v29  ;;  %v315_v31 = vld [vmem:[%s1582_s28 + $0x2e8] sm:$0xff] }
  0x25   : > { %314 = vst [vmem:[%s1587_s29 + $0xf0] sm:$0xff] %v313_v30  ;;  %316 = vst [vmem:[%s1587_s29 + $0xf8] sm:$0xff] %v315_v31 }
  0x26 PF: > { %p1248_p8 = scmp.ge.s32.totalorder %s1512_s16, 1  ;;  %p321_p9 = scmp.lt.s32.totalorder %s1512_s16, 4 }
  0x28   : > { %p322_p10 = pnand %p1248_p8, %p321_p9 }
  0x29   : > { %v374_v32 = vld [vmem:[%s1993_s0 + $0x40] sm:$0xff] (!%p322_p10)  ;;  %v375_v34 = vld [vmem:[%s1993_s0 + $0x48] sm:$0xff] (!%p322_p10)  ;;  %s328_s9 = sand.u32 (!%p322_p10), 1, %s1496_s12   ;;  %v369_v44 = vld [vmem:[%s1993_s0 + $0x18] sm:$0xff] (!%p322_p10) }
  0x2a   : > { %325 = sbr.rel (%p322_p10) target bundleno = 469 (0x1d5), region = 66  ;;  %v366_v33 = vld [vmem:[%s1993_s0] sm:$0xff] (!%p322_p10)  ;;  %v1662_v35 = vunpack.c.l.bf16 (!%p322_p10), %v374_v32  ;;  %v1664_v36 = vunpack.c.h.bf16 (!%p322_p10), %v374_v32  ;;  %v367_v39 = vld [vmem:[%s1993_s0 + $0x8] sm:$0xff] (!%p322_p10)  ;;  %s1249_s18 = sshll.u32 (!%p322_p10), %s328_s9, 8  ;;  %v1675_v40 = vunpack.c.l.bf16 (!%p322_p10), %v375_v34  ;;  %v1677_v41 = vunpack.c.h.bf16 (!%p322_p10), %v375_v34  ;;  %v368_v49 = vld [vmem:[%s1993_s0 + $0x10] sm:$0xff] (!%p322_p10) }
  0x2b   : > { %v1666_v37 = vunpack.c.l.bf16 (!%p322_p10), %v366_v33  ;;  %v1668_v38 = vunpack.c.h.bf16 (!%p322_p10), %v366_v33  ;;  %v1679_v42 = vunpack.c.l.bf16 (!%p322_p10), %v367_v39  ;;  %v1681_v43 = vunpack.c.h.bf16 (!%p322_p10), %v367_v39  ;;  %v377_v54 = vld [vmem:[%s1993_s0 + $0x58] sm:$0xff] (!%p322_p10)  ;;  %v376_v59 = vld [vmem:[%s1993_s0 + $0x50] sm:$0xff] (!%p322_p10)  ;;  %s1715_s29 = scalar_lea.vmem (!%p322_p10), [#allocation2], %s1249_s18  ;;  %v371_v6 = vld [vmem:[%s1993_s0 + $0x28] sm:$0xff] (!%p322_p10)  ;;  %s1250_s30 = sshll.u32 (!%p322_p10), %s328_s9, 7 }
  0x2c   : > { %v430_v45 = vmul.f32 (!%p322_p10), %v1662_v35, %v1662_v35  ;;  %v431_v46 = vmul.f32 (!%p322_p10), %v1664_v36, %v1664_v36  ;;  %v432_v50 = vmul.f32 (!%p322_p10), %v1675_v40, %v1675_v40  ;;  %v433_v51 = vmul.f32 (!%p322_p10), %v1677_v41, %v1677_v41  ;;  %v1394_v0 = vld [vmem:[%s1715_s29 + $0x4] ss:$8 sps:$4 sm:$0xff] (!%p322_p10)   ;;  %v1396_v1 = vld [vmem:[%s1715_s29] ss:$8 sps:$4 sm:$0xff] (!%p322_p10)   ;;  %v1397_v7 = vld [vmem:[%s1715_s29 + $0x14] ss:$8 sps:$4 sm:$0xff] (!%p322_p10)  }
  0x2d   : > { %v414_v47 = vmul.f32 (!%p322_p10), %v1666_v37, %v1666_v37  ;;  %v415_v48 = vmul.f32 (!%p322_p10), %v1668_v38, %v1668_v38  ;;  %v416_v52 = vmul.f32 (!%p322_p10), %v1679_v42, %v1679_v42  ;;  %v417_v53 = vmul.f32 (!%p322_p10), %v1681_v43, %v1681_v43  ;;  %v370_v12 = vld [vmem:[%s1993_s0 + $0x20] sm:$0xff] (!%p322_p10)  ;;  %827 = vmatprep.subr.bf16.mxu0 (!%p322_p10), %v1394_v0  ;;  %v1399_v15 = vld [vmem:[%s1715_s29 + $0x10] ss:$8 sps:$4 sm:$0xff] (!%p322_p10)   ;;  %v379_v20 = vld [vmem:[%s1993_s0 + $0x68] sm:$0xff] (!%p322_p10)  ;;  %s1938_s4 = scalar_lea.vmem (!%p322_p10), [#allocation3], %s1250_s30 }
  0x2e   : > { %v470_v55 = vadd.f32 (!%p322_p10), %v431_v46, %v430_v45  ;;  %v1708_v57 = vunpack.c.l.bf16 (!%p322_p10), %v369_v44  ;;  %v1710_v58 = vunpack.c.h.bf16 (!%p322_p10), %v369_v44  ;;  %v473_v60 = vadd.f32 (!%p322_p10), %v433_v51, %v432_v50  ;;  %1322 = vmatprep.subr.bf16.mxu1 (!%p322_p10), %v1394_v0  ;;  %828 = vmatpush1.bf16.msra.mxu0 (!%p322_p10), %v1396_v1  ;;  %v1400_v21 = vld [vmem:[%s1715_s29 + $0x24] ss:$8 sps:$4 sm:$0xff] (!%p322_p10)   ;;  %v1402_v30 = vld [vmem:[%s1715_s29 + $0x20] ss:$8 sps:$4 sm:$0xff] (!%p322_p10)   ;;  %v373_v39 = vld [vmem:[%s1993_s0 + $0x38] sm:$0xff] (!%p322_p10) }
  0x2f   : > { %v446_v56 = vadd.f32 (!%p322_p10), %v415_v48, %v414_v47  ;;  %v449_v61 = vadd.f32 (!%p322_p10), %v417_v53, %v416_v52  ;;  %v1717_v62 = vunpack.c.l.bf16 (!%p322_p10), %v368_v49  ;;  %v1719_v63 = vunpack.c.h.bf16 (!%p322_p10), %v368_v49  ;;  %1338 = vmatpush1.bf16.msra.mxu1 (!%p322_p10), %v1396_v1  ;;  %829 = vmatprep.subr.bf16.mxu0 (!%p322_p10), %v1397_v7  ;;  %v378_v26 = vld [vmem:[%s1993_s0 + $0x60] sm:$0xff] (!%p322_p10)  ;;  %v1403_v44 = vld [vmem:[%s1715_s29 + $0x34] ss:$8 sps:$4 sm:$0xff] (!%p322_p10)   ;;  %v1405_v53 = vld [vmem:[%s1715_s29 + $0x30] ss:$8 sps:$4 sm:$0xff] (!%p322_p10)  }
  0x30   : > { %471 = vadd.xlane.f32.xlu1 (!%p322_p10), %v470_v55  ;;  %v420_v2 = vmul.f32 (!%p322_p10), %v1708_v57, %v1708_v57  ;;  %v421_v3 = vmul.f32 (!%p322_p10), %v1710_v58, %v1710_v58  ;;  %v1727_v4 = vunpack.c.l.bf16 (!%p322_p10), %v377_v54  ;;  %v1729_v5 = vunpack.c.h.bf16 (!%p322_p10), %v377_v54  ;;  %1323 = vmatprep.subr.bf16.mxu1 (!%p322_p10), %v1397_v7  ;;  %v372_v48 = vld [vmem:[%s1993_s0 + $0x30] sm:$0xff] (!%p322_p10)  ;;  %v381_v52 = vld [vmem:[%s1993_s0 + $0x78] sm:$0xff] (!%p322_p10) }
  0x31   : > { %447 = vadd.xlane.f32.xlu0 %v446_v56  ;;  %v418_v8 = vmul.f32 %v1717_v62, %v1717_v62  ;;  %v419_v9 = vmul.f32 %v1719_v63, %v1719_v63  ;;  %v1739_v10 = vunpack.c.l.bf16 %v376_v59  ;;  %v1741_v11 = vunpack.c.h.bf16 %v376_v59  ;;  %v380_v59 = vld [vmem:[%s1993_s0 + $0x70] sm:$0xff]  ;;  %s1321_s12 = sshll.u32 (%p1569_p6), %s1504_s14, 3 }
  0x32   : > { %v436_v13 = vmul.f32 %v1727_v4, %v1727_v4  ;;  %v437_v14 = vmul.f32 %v1729_v5, %v1729_v5  ;;  %v455_v16 = vadd.f32 %v421_v3, %v420_v2  ;;  %v1755_v19 = vunpack.c.l.bf16 %v371_v6  ;;  %830 = vmatpush1.bf16.msra.mxu0 %v1399_v15  ;;  %v1408_v3 = vld [vmem:[%s1715_s29 + $0x40] ss:$8 sps:$4 sm:$0xff]   ;;  %s1064_s6 = scalar_lea.vmem (%p1569_p6), %s1996_s3, %s1321_s12 }
  0x33   : > { %v434_v17 = vmul.f32 %v1739_v10, %v1739_v10  ;;  %v435_v18 = vmul.f32 %v1741_v11, %v1741_v11  ;;  %v452_v22 = vadd.f32 %v419_v9, %v418_v8  ;;  %v1761_v23 = vunpack.c.h.bf16 %v371_v6  ;;  %1339 = vmatpush1.bf16.msra.mxu1 %v1399_v15  ;;  %831 = vmatprep.subr.bf16.mxu0 %v1400_v21 }
  0x34   : > { %474 = vadd.xlane.f32.xlu1 %v473_v60  ;;  %v1763_v24 = vunpack.c.l.bf16 %v370_v12  ;;  %v1765_v25 = vunpack.c.h.bf16 %v370_v12  ;;  %v479_v27 = vadd.f32 %v437_v14, %v436_v13  ;;  %v1770_v28 = vunpack.c.l.bf16 %v379_v20  ;;  %1324 = vmatprep.subr.bf16.mxu1 %v1400_v21  ;;  %v1406_v60 = vld [vmem:[%s1715_s29 + $0x44] ss:$8 sps:$4 sm:$0xff]   ;;  %v1409_v14 = vld [vmem:[%s1715_s29 + $0x54] ss:$8 sps:$4 sm:$0xff]  }
  0x35   : > { %450 = vadd.xlane.f32.xlu0 %v449_v61  ;;  %v1772_v29 = vunpack.c.h.bf16 %v379_v20  ;;  %v476_v31 = vadd.f32 %v435_v18, %v434_v17  ;;  %v424_v32 = vmul.f32 %v1755_v19, %v1755_v19  ;;  %v1777_v33 = vunpack.c.l.bf16 %v378_v26  ;;  %v1411_v20 = vld [vmem:[%s1715_s29 + $0x50] ss:$8 sps:$4 sm:$0xff]  }
  0x36   : > { %v1779_v34 = vunpack.c.h.bf16 %v378_v26  ;;  %v425_v45 = vmul.f32 %v1761_v23, %v1761_v23  ;;  %v422_v46 = vmul.f32 %v1763_v24, %v1763_v24  ;;  %v423_v47 = vmul.f32 %v1765_v25, %v1765_v25  ;;  %832 = vmatpush1.bf16.msra.mxu0 %v1402_v30 }
  0x37   : > { %v440_v49 = vmul.f32 %v1770_v28, %v1770_v28  ;;  %v441_v50 = vmul.f32 %v1772_v29, %v1772_v29  ;;  %v1798_v51 = vunpack.c.l.bf16 %v373_v39  ;;  %1340 = vmatpush1.bf16.msra.mxu1 %v1402_v30  ;;  %v438_v54 = vmul.f32 %v1777_v33, %v1777_v33  ;;  %833 = vmatprep.subr.bf16.mxu0 %v1403_v44 }
  0x38   : > { %456 = vadd.xlane.f32.xlu1 %v455_v16  ;;  %v439_v55 = vmul.f32 %v1779_v34, %v1779_v34  ;;  %v1808_v56 = vunpack.c.h.bf16 %v373_v39  ;;  %1325 = vmatprep.subr.bf16.mxu1 %v1403_v44  ;;  %v461_v61 = vadd.f32 %v425_v45, %v424_v32  ;;  %v458_v0 = vadd.f32 %v423_v47, %v422_v46  ;;  %v1414_v39 = vld [vmem:[%s1715_s29 + $0x60] ss:$8 sps:$4 sm:$0xff]   ;;  %v1415_v44 = vld [vmem:[%s1715_s29 + $0x74] ss:$8 sps:$4 sm:$0xff]   ;;  %v1417_v47 = vld [vmem:[%s1715_s29 + $0x70] ss:$8 sps:$4 sm:$0xff]  }
  0x39   : > { %453 = vadd.xlane.f32.xlu0 %v452_v22  ;;  %v1814_v1 = vunpack.c.l.bf16 %v372_v48  ;;  %v1816_v2 = vunpack.c.h.bf16 %v372_v48  ;;  %v485_v6 = vadd.f32 %v441_v50, %v440_v49  ;;  %v428_v7 = vmul.f32 %v1798_v51, %v1798_v51  ;;  %v1418_v48 = vld [vmem:[%s1715_s29 + $0x84] ss:$8 sps:$4 sm:$0xff]   ;;  %v1420_v49 = vld [vmem:[%s1715_s29 + $0x80] ss:$8 sps:$4 sm:$0xff]   ;;  %v1421_v50 = vld [vmem:[%s1715_s29 + $0x94] ss:$8 sps:$4 sm:$0xff]  }
  0x3a   : > { %834 = vmatpush1.bf16.msra.mxu0 %v1405_v53  ;;  %v482_v8 = vadd.f32 %v439_v55, %v438_v54  ;;  %v429_v9 = vmul.f32 %v1808_v56, %v1808_v56  ;;  %v1823_v12 = vunpack.c.l.bf16 %v381_v52  ;;  %v1825_v13 = vunpack.c.h.bf16 %v381_v52  ;;  %v1423_v52 = vld [vmem:[%s1715_s29 + $0x90] ss:$8 sps:$4 sm:$0xff]   ;;  %v1426_v54 = vld [vmem:[%s1715_s29 + $0xa0] ss:$8 sps:$4 sm:$0xff]   ;;  %v1427_v55 = vld [vmem:[%s1715_s29 + $0xb4] ss:$8 sps:$4 sm:$0xff]  }
  0x3b   : > { %1341 = vmatpush1.bf16.msra.mxu1 %v1405_v53  ;;  %835 = vmatprep.subr.bf16.mxu0 %v1406_v60  ;;  %v426_v15 = vmul.f32 %v1814_v1, %v1814_v1  ;;  %v427_v16 = vmul.f32 %v1816_v2, %v1816_v2  ;;  %v1832_v17 = vunpack.c.l.bf16 %v380_v59  ;;  %v1834_v18 = vunpack.c.h.bf16 %v380_v59  ;;  %v1424_v53 = vld [vmem:[%s1715_s29 + $0xa4] ss:$8 sps:$4 sm:$0xff]   ;;  %v1429_v59 = vld [vmem:[%s1715_s29 + $0xb0] ss:$8 sps:$4 sm:$0xff]  }
  0x3c   : > { %480 = vadd.xlane.f32.xlu1 %v479_v27  ;;  %1326 = vmatprep.subr.bf16.mxu1 %v1406_v60  ;;  %v467_v21 = vadd.f32 %v429_v9, %v428_v7  ;;  %v444_v22 = vmul.f32 %v1823_v12, %v1823_v12  ;;  %v445_v26 = vmul.f32 %v1825_v13, %v1825_v13  ;;  %v1412_v27 = vld [vmem:[%s1715_s29 + $0x64] ss:$8 sps:$4 sm:$0xff]   ;;  %v1438_v7 = vld [vmem:[%s1715_s29 + $0xe0] ss:$8 sps:$4 sm:$0xff]   ;;  %v1441_v9 = vld [vmem:[%s1715_s29 + $0xf0] ss:$8 sps:$4 sm:$0xff]  }
  0x3d   : > { %477 = vadd.xlane.f32.xlu0 %v476_v31  ;;  %v464_v30 = vadd.f32 %v427_v16, %v426_v15  ;;  %v442_v31 = vmul.f32 %v1832_v17, %v1832_v17  ;;  %v443_v32 = vmul.f32 %v1834_v18, %v1834_v18  ;;  %v1430_v60 = vld [vmem:[%s1715_s29 + $0xc4] ss:$8 sps:$4 sm:$0xff]  }
  0x3e   : > { %836 = vmatpush1.bf16.msra.mxu0 %v1408_v3  ;;  %v491_v45 = vadd.f32 %v445_v26, %v444_v22  ;;  %v577_v26 = vlaneseq }
  0x3f   : > { %1342 = vmatpush1.bf16.msra.mxu1 %v1408_v3  ;;  %837 = vmatprep.subr.bf16.mxu0 %v1409_v14  ;;  %v488_v46 = vadd.f32 %v443_v32, %v442_v31  ;;  %v1435_v3 = vld [vmem:[%s1715_s29 + $0xd0] ss:$8 sps:$4 sm:$0xff]  }
  0x40   : > { %462 = vadd.xlane.f32.xlu1 %v461_v61  ;;  %1327 = vmatprep.subr.bf16.mxu1 %v1409_v14  ;;  %v1432_v61 = vld [vmem:[%s1715_s29 + $0xc0] ss:$8 sps:$4 sm:$0xff]  }
  0x41   : > { %459 = vadd.xlane.f32.xlu0 %v458_v0  ;;  %v1433_v0 = vld [vmem:[%s1715_s29 + $0xd4] ss:$8 sps:$4 sm:$0xff]  }
  0x42   : > { %838 = vmatpush1.bf16.msra.mxu0 %v1411_v20 }
  0x43   : > { %1343 = vmatpush1.bf16.msra.mxu1 %v1411_v20  ;;  %839 = vmatprep.subr.bf16.mxu0 %v1412_v27 }
  0x44   : > { %486 = vadd.xlane.f32.xlu1 %v485_v6  ;;  %1328 = vmatprep.subr.bf16.mxu1 %v1412_v27  ;;  %v1436_v6 = vld [vmem:[%s1715_s29 + $0xe4] ss:$8 sps:$4 sm:$0xff]  }
  0x45   : > { %483 = vadd.xlane.f32.xlu0 %v482_v8  ;;  %v1439_v8 = vld [vmem:[%s1715_s29 + $0xf4] ss:$8 sps:$4 sm:$0xff]  }
  0x46   : > { %840 = vmatpush1.bf16.msra.mxu0 %v1414_v39 }
  0x47   : > { %1344 = vmatpush1.bf16.msra.mxu1 %v1414_v39  ;;  %841 = vmatprep.subr.bf16.mxu0 %v1415_v44 }
  0x48   : > { %468 = vadd.xlane.f32.xlu1 %v467_v21  ;;  %1329 = vmatprep.subr.bf16.mxu1 %v1415_v44 }
  0x49   : > { %465 = vadd.xlane.f32.xlu0 %v464_v30 }
  0x4a   : > { %842 = vmatpush1.bf16.msra.mxu0 %v1417_v47 }
  0x4b   : > { %1345 = vmatpush1.bf16.msra.mxu1 %v1417_v47  ;;  %843 = vmatprep.subr.bf16.mxu0 %v1418_v48 }
  0x4c   : > { %492 = vadd.xlane.f32.xlu1 %v491_v45  ;;  %1330 = vmatprep.subr.bf16.mxu1 %v1418_v48  ;;  %v578_v45 = vshrl.u32 %v577_v26, 7 }
  0x4d   : > { %489 = vadd.xlane.f32.xlu0 %v488_v46 }
  0x4e   : > { %844 = vmatpush1.bf16.msra.mxu0 %v1420_v49 }
  0x4f   : > { %1346 = vmatpush1.bf16.msra.mxu1 %v1420_v49  ;;  %845 = vmatprep.subr.bf16.mxu0 %v1421_v50 }
  0x50   : > { %1331 = vmatprep.subr.bf16.mxu1 %v1421_v50 }
  0x52   : > { %846 = vmatpush1.bf16.msra.mxu0 %v1423_v52 }
  0x53   : > { %1347 = vmatpush1.bf16.msra.mxu1 %v1423_v52  ;;  %847 = vmatprep.subr.bf16.mxu0 %v1424_v53 }
  0x54   : > { %1332 = vmatprep.subr.bf16.mxu1 %v1424_v53  ;;  %v583_v53 = vsub.s32 1, %v578_v45 }
  0x56   : > { %848 = vmatpush1.bf16.msra.mxu0 %v1426_v54 }
  0x57   : > { %1348 = vmatpush1.bf16.msra.mxu1 %v1426_v54  ;;  %849 = vmatprep.subr.bf16.mxu0 %v1427_v55 }
  0x58   : > { %1333 = vmatprep.subr.bf16.mxu1 %v1427_v55 }
  0x5a   : > { %850 = vmatpush1.bf16.msra.mxu0 %v1429_v59 }
  0x5b   : > { %1349 = vmatpush1.bf16.msra.mxu1 %v1429_v59  ;;  %851 = vmatprep.subr.bf16.mxu0 %v1430_v60  ;;  %v575_v59 = vld [vmem:[%s1994_s1] sm:$0x3] }
  0x5c   : > { %1334 = vmatprep.subr.bf16.mxu1 %v1430_v60  ;;  %v579_v60 = vsub.s32 0, %v578_v45 }
  0x5e   : > { %852 = vmatpush1.bf16.msra.mxu0 %v1432_v61 }
  0x5f   : > { %1350 = vmatpush1.bf16.msra.mxu1 %v1432_v61  ;;  %853 = vmatprep.subr.bf16.mxu0 %v1433_v0 }
  0x60   : > { %1335 = vmatprep.subr.bf16.mxu1 %v1433_v0 }
  0x62   : > { %854 = vmatpush1.bf16.msra.mxu0 %v1435_v3 }
  0x63   : > { %1351 = vmatpush1.bf16.msra.mxu1 %v1435_v3  ;;  %855 = vmatprep.subr.bf16.mxu0 %v1436_v6 }
  0x64   : > { %1336 = vmatprep.subr.bf16.mxu1 %v1436_v6 }
  0x66   : > { %856 = vmatpush1.bf16.msra.mxu0 %v1438_v7 }
  0x67   : > { %1352 = vmatpush1.bf16.msra.mxu1 %v1438_v7  ;;  %857 = vmatprep.subr.bf16.mxu0 %v1439_v8 }
  0x68   : > { %1337 = vmatprep.subr.bf16.mxu1 %v1439_v8  ;;  %v1868_v8 = vrot.slane %v575_v59, %v583_v53 }
  0x6a   : > { %858 = vmatpush1.bf16.msra.mxu0 %v1441_v9 }
  0x6b   : > { %1353 = vmatpush1.bf16.msra.mxu1 %v1441_v9 }
  0xbd   : > { %v472_v14 = vpop.xlane.xlu1 %471 }
  0xbe   : > { %v448_v15 = vpop.xlane.xlu0 %447  ;;  %v503_v16 = vmul.f32 0.00390625, %v472_v14 }
  0xbf   : > { %v495_v20 = vmul.f32 0.00390625, %v448_v15 }
  0xc0   : > { %v519_v21 = vadd.f32 1e-06, %v503_v16  ;;  %v1870_v16 = vrot.slane %v575_v59, %v579_v60 }
  0xc1   : > { %v511_v22 = vadd.f32 1e-06, %v495_v20  ;;  %v475_v27 = vpop.xlane.xlu1 %474 }
  0xc2   : > { %v451_v30 = vpop.xlane.xlu0 %450  ;;  %1442 = vrsqrt.f32 %v519_v21  ;;  %v504_v31 = vmul.f32 0.00390625, %v475_v27 }
  0xc3   : > { %v496_v32 = vmul.f32 0.00390625, %v451_v30  ;;  %1444 = vrsqrt.f32 %v511_v22 }
  0xc4   : > { %v520_v39 = vadd.f32 1e-06, %v504_v31 }
  0xc5   : > { %v512_v44 = vadd.f32 1e-06, %v496_v32  ;;  %v457_v46 = vpop.xlane.xlu1 %456 }
  0xc6   : > { %v454_v47 = vpop.xlane.xlu0 %453  ;;  %1446 = vrsqrt.f32 %v520_v39  ;;  %v498_v48 = vmul.f32 0.00390625, %v457_v46 }
  0xc7   : > { %v497_v49 = vmul.f32 0.00390625, %v454_v47  ;;  %1448 = vrsqrt.f32 %v512_v44 }
  0xc8   : > { %v514_v50 = vadd.f32 1e-06, %v498_v48 }
  0xc9   : > { %v513_v52 = vadd.f32 1e-06, %v497_v49  ;;  %v481_v54 = vpop.xlane.xlu1 %480 }
  0xca   : > { %v478_v55 = vpop.xlane.xlu0 %477  ;;  %1450 = vrsqrt.f32 %v514_v50  ;;  %v506_v61 = vmul.f32 0.00390625, %v481_v54 }
  0xcb   : > { %v505_v0 = vmul.f32 0.00390625, %v478_v55  ;;  %1452 = vrsqrt.f32 %v513_v52 }
  0xcc   : > { %v1443_v3 = vpop.eup %1442  ;;  %v522_v6 = vadd.f32 1e-06, %v506_v61 }
  0xcd   : > { %v521_v7 = vadd.f32 1e-06, %v505_v0  ;;  %v1445_v9 = vpop.eup %1444  ;;  %v463_v14 = vpop.xlane.xlu1 %462  ;;  %v560_v20 = vmul.f32 %v1443_v3, %v1664_v36  ;;  %v559_v21 = vmul.f32 %v1443_v3, %v1662_v35 }
  0xce   : > { %v460_v15 = vpop.xlane.xlu0 %459  ;;  %1454 = vrsqrt.f32 %v522_v6  ;;  %v500_v22 = vmul.f32 0.00390625, %v463_v14  ;;  %v544_v27 = vmul.f32 %v1445_v9, %v1668_v38  ;;  %v543_v44 = vmul.f32 %v1445_v9, %v1666_v37 }
  0xcf   : > { %v499_v26 = vmul.f32 0.00390625, %v460_v15  ;;  %1456 = vrsqrt.f32 %v521_v7  ;;  %v604_v39 = vmul.f32 %v1868_v8, %v560_v20  ;;  %v603_v49 = vmul.f32 %v1870_v16, %v559_v21 }
  0xd0   : > { %v1447_v30 = vpop.eup %1446  ;;  %v516_v31 = vadd.f32 1e-06, %v500_v22  ;;  %v588_v36 = vmul.f32 %v1868_v8, %v544_v27 }
  0xd1   : > { %v515_v32 = vadd.f32 1e-06, %v499_v26  ;;  %v1449_v45 = vpop.eup %1448  ;;  %v487_v46 = vpop.xlane.xlu1 %486  ;;  %v562_v35 = vmul.f32 %v1447_v30, %v1677_v41  ;;  %v561_v48 = vmul.f32 %v1447_v30, %v1675_v40  ;;  %v587_v40 = vmul.f32 %v1870_v16, %v543_v44 }
  0xd2   : > { %v484_v47 = vpop.xlane.xlu0 %483  ;;  %1458 = vrsqrt.f32 %v516_v31  ;;  %v508_v38 = vmul.f32 0.00390625, %v487_v46  ;;  %v546_v52 = vmul.f32 %v1449_v45, %v1681_v43  ;;  %v545_v37 = vmul.f32 %v1449_v45, %v1679_v42 }
  0xd3   : > { %v507_v50 = vmul.f32 0.00390625, %v484_v47  ;;  %1460 = vrsqrt.f32 %v515_v32  ;;  %v606_v53 = vmul.f32 %v1868_v8, %v562_v35  ;;  %v605_v54 = vmul.f32 %v1870_v16, %v561_v48 }
  0xd4   : > { %v1451_v55 = vpop.eup %1450  ;;  %v524_v59 = vadd.f32 1e-06, %v508_v38  ;;  %v590_v41 = vmul.f32 %v1868_v8, %v546_v52  ;;  %v589_v43 = vmul.f32 %v1870_v16, %v545_v37 }
  0xd5   : > { %v523_v60 = vadd.f32 1e-06, %v507_v50  ;;  %v1453_v61 = vpop.eup %1452  ;;  %v469_v0 = vpop.xlane.xlu1 %468  ;;  %v628_v6 = vpack.c.bf16 %v606_v53, %v604_v39  ;;  %v627_v7 = vpack.c.bf16 %v605_v54, %v603_v49  ;;  %v550_v9 = vmul.f32 %v1451_v55, %v1710_v58 }
  0xd6   : > { %v466_v3 = vpop.xlane.xlu0 %465  ;;  %1462 = vrsqrt.f32 %v524_v59  ;;  %v502_v42 = vmul.f32 0.00390625, %v469_v0  ;;  %v620_v15 = vpack.c.bf16 %v590_v41, %v588_v36  ;;  %v619_v20 = vpack.c.bf16 %v589_v43, %v587_v40 }
  0xd7   : > { %v501_v14 = vmul.f32 0.00390625, %v466_v3  ;;  %1464 = vrsqrt.f32 %v523_v60  ;;  %899 = vmatprep.mubr.bf16.mxu1 %v628_v6  ;;  %v548_v21 = vmul.f32 %v1453_v61, %v1719_v63  ;;  %v594_v22 = vmul.f32 %v1868_v8, %v550_v9 }
  0xd8   : > { %v1455_v26 = vpop.eup %1454  ;;  %v518_v27 = vadd.f32 1e-06, %v502_v42  ;;  %859 = vmatprep.mubr.bf16.mxu0 %v620_v15  ;;  %900 = vmatmul.mubr.bf16.vlgmr.msra.gmra.mrb[0].mxu1 %v627_v7  ;;  %v547_v31 = vmul.f32 %v1453_v61, %v1717_v62  ;;  %v549_v58 = vmul.f32 %v1451_v55, %v1708_v57 }
  0xd9   : > { %v517_v30 = vadd.f32 1e-06, %v501_v14  ;;  %v1457_v32 = vpop.eup %1456  ;;  %860 = vmatmul.mubr.bf16.vlgmr.msra.gmra.mrb[0].mxu0 %v619_v20  ;;  %v493_v39 = vpop.xlane.xlu1 %492  ;;  %v592_v45 = vmul.f32 %v1868_v8, %v548_v21  ;;  %v566_v46 = vmul.f32 %v1455_v26, %v1729_v5  ;;  %v565_v63 = vmul.f32 %v1455_v26, %v1727_v4 }
  0xda   : > { %v490_v44 = vpop.xlane.xlu0 %489  ;;  %1466 = vrsqrt.f32 %v518_v27  ;;  %v510_v47 = vmul.f32 0.00390625, %v493_v39  ;;  %v564_v35 = vmul.f32 %v1457_v32, %v1741_v11  ;;  %v591_v57 = vmul.f32 %v1870_v16, %v547_v31 }
  0xdb   : > { %v509_v36 = vmul.f32 0.00390625, %v490_v44  ;;  %1468 = vrsqrt.f32 %v517_v30  ;;  %v622_v48 = vpack.c.bf16 %v594_v22, %v592_v45  ;;  %v610_v62 = vmul.f32 %v1868_v8, %v566_v46 }
  0xdc   : > { %v1459_v49 = vpop.eup %1458  ;;  %v526_v38 = vadd.f32 1e-06, %v510_v47  ;;  %v608_v52 = vmul.f32 %v1868_v8, %v564_v35  ;;  %v593_v5 = vmul.f32 %v1870_v16, %v549_v58  ;;  %v563_v4 = vmul.f32 %v1457_v32, %v1739_v10 }
  0xdd   : > { %v525_v50 = vadd.f32 1e-06, %v509_v36  ;;  %v1461_v53 = vpop.eup %1460  ;;  %869 = vmatprep.mubr.bf16.mxu0 %v622_v48  ;;  %v609_v37 = vmul.f32 %v1870_v16, %v565_v63  ;;  %v554_v11 = vmul.f32 %v1459_v49, %v1761_v23  ;;  %v553_v54 = vmul.f32 %v1459_v49, %v1755_v19 }
  0xde   : > { %1470 = vrsqrt.f32 %v526_v38  ;;  %v630_v55 = vpack.c.bf16 %v610_v62, %v608_v52  ;;  %v621_v59 = vpack.c.bf16 %v593_v5, %v591_v57  ;;  %v552_v60 = vmul.f32 %v1461_v53, %v1765_v25 }
  0xdf   : > { %1472 = vrsqrt.f32 %v525_v50  ;;  %v607_v41 = vmul.f32 %v1870_v16, %v563_v4  ;;  %v598_v40 = vmul.f32 %v1868_v8, %v554_v11  ;;  %v551_v61 = vmul.f32 %v1461_v53, %v1763_v24 }
  0xe0   : > { %v1463_v0 = vpop.eup %1462  ;;  %909 = vmatprep.mubr.bf16.mxu1 %v630_v55  ;;  %v596_v10 = vmul.f32 %v1868_v8, %v552_v60  ;;  %v597_v6 = vmul.f32 %v1870_v16, %v553_v54 }
  0xe1   : > { %v1465_v3 = vpop.eup %1464  ;;  %870 = vmatmul.mubr.bf16.gmra.mrb[4].mxu0 %v621_v59  ;;  %v629_v23 = vpack.c.bf16 %v609_v37, %v607_v41  ;;  %v570_v19 = vmul.f32 %v1463_v0, %v1772_v29  ;;  %v569_v25 = vmul.f32 %v1463_v0, %v1770_v28  ;;  %v595_v9 = vmul.f32 %v1870_v16, %v551_v61 }
  0xe2   : > { %v624_v43 = vpack.c.bf16 %v598_v40, %v596_v10  ;;  %v568_v7 = vmul.f32 %v1465_v3, %v1779_v34  ;;  %v567_v24 = vmul.f32 %v1465_v3, %v1777_v33 }
  0xe3   : > { %910 = vmatmul.mubr.bf16.gmra.mrb[4].mxu1 %v629_v23  ;;  %v614_v42 = vmul.f32 %v1868_v8, %v570_v19  ;;  %v613_v14 = vmul.f32 %v1870_v16, %v569_v25  ;;  %v623_v34 = vpack.c.bf16 %v597_v6, %v595_v9 }
  0xe4   : > { %v1467_v15 = vpop.eup %1466  ;;  %879 = vmatprep.mubr.bf16.mxu0 %v624_v43  ;;  %v612_v29 = vmul.f32 %v1868_v8, %v568_v7  ;;  %v611_v20 = vmul.f32 %v1870_v16, %v567_v24 }
  0xe5   : > { %v1469_v21 = vpop.eup %1468  ;;  %v558_v28 = vmul.f32 %v1467_v15, %v1808_v56  ;;  %v557_v31 = vmul.f32 %v1467_v15, %v1798_v51 }
  0xe6   : > { %v632_v22 = vpack.c.bf16 %v614_v42, %v612_v29  ;;  %v556_v26 = vmul.f32 %v1469_v21, %v1816_v2  ;;  %v631_v27 = vpack.c.bf16 %v613_v14, %v611_v20  ;;  %v555_v30 = vmul.f32 %v1469_v21, %v1814_v1 }
  0xe7   : > { %v602_v33 = vmul.f32 %v1868_v8, %v558_v28  ;;  %v601_v63 = vmul.f32 %v1870_v16, %v557_v31 }
  0xe8   : > { %v1471_v58 = vpop.eup %1470  ;;  %919 = vmatprep.mubr.bf16.mxu1 %v632_v22  ;;  %v600_v32 = vmul.f32 %v1868_v8, %v556_v26  ;;  %v599_v51 = vmul.f32 %v1870_v16, %v555_v30 }
  0xe9   : > { %v1473_v39 = vpop.eup %1472  ;;  %880 = vmatmul.mubr.bf16.gmra.mrb[8].mxu0 %v623_v34  ;;  %v574_v44 = vmul.f32 %v1471_v58, %v1825_v13  ;;  %v573_v56 = vmul.f32 %v1471_v58, %v1823_v12 }
  0xea   : > { %v626_v45 = vpack.c.bf16 %v602_v33, %v600_v32  ;;  %v572_v2 = vmul.f32 %v1473_v39, %v1834_v18  ;;  %v571_v46 = vmul.f32 %v1473_v39, %v1832_v17  ;;  %v625_v35 = vpack.c.bf16 %v601_v63, %v599_v51 }
  0xeb   : > { %920 = vmatmul.mubr.bf16.gmra.mrb[8].mxu1 %v631_v27  ;;  %v618_v1 = vmul.f32 %v1868_v8, %v574_v44  ;;  %v617_v47 = vmul.f32 %v1870_v16, %v573_v56 }
  0xec   : > { %889 = vmatprep.mubr.bf16.mxu0 %v626_v45  ;;  %v616_v13 = vmul.f32 %v1868_v8, %v572_v2  ;;  %v615_v12 = vmul.f32 %v1870_v16, %v571_v46 }
  0xee   : > { %v634_v36 = vpack.c.bf16 %v618_v1, %v616_v13  ;;  %v633_v18 = vpack.c.bf16 %v617_v47, %v615_v12 }
  0xf0   : > { %929 = vmatprep.mubr.bf16.mxu1 %v634_v36 }
  0xf1   : > { %890 = vmatmul.mubr.bf16.gmra.mrb[12].mxu0 %v625_v35 }
  0xf3   : > { %930 = vmatmul.mubr.bf16.gmra.mrb[12].mxu1 %v633_v18 }
 0x1ab   : > { %v901_v17 = vpop.f32.mrb[0].mxu1 }
 0x1ac   : > { %v861_v48 = vpop.f32.mrb[0].mxu0  ;;  %v903_v62 = vpop.f32.mrb[1].mxu1 }
 0x1ad   : > { %v863_v57 = vpop.f32.mrb[1].mxu0  ;;  %v1313_v49 = vpack.c.bf16 %v903_v62, %v901_v17  ;;  %v905_v38 = vpop.f32.mrb[2].mxu1 }
 0x1ae   : > { %v1305_v50 = vpack.c.bf16 %v863_v57, %v861_v48  ;;  %v865_v52 = vpop.f32.mrb[2].mxu0  ;;  %v907_v5 = vpop.f32.mrb[3].mxu1 }
 0x1af   : > { %1044 = vst [vmem:[%s1938_s4 + $0x40] sm:$0xff] %v1313_v49  ;;  %v867_v8 = vpop.f32.mrb[3].mxu0  ;;  %v1314_v16 = vpack.c.bf16 %v907_v5, %v905_v38 }
 0x1b0   : > { %1036 = vst [vmem:[%s1938_s4] sm:$0xff] %v1305_v50  ;;  %v1306_v53 = vpack.c.bf16 %v867_v8, %v865_v52 }
 0x1b1   : > { %1045 = vst [vmem:[%s1938_s4 + $0x48] sm:$0xff] %v1314_v16 }
 0x1b2   : > { %1037 = vst [vmem:[%s1938_s4 + $0x8] sm:$0xff] %v1306_v53 }
 0x1b4   : > { %v871_v4 = vpop.f32.mrb[4].mxu0 }
 0x1b5   : > { %v873_v37 = vpop.f32.mrb[5].mxu0 }
 0x1b6   : > { %v911_v11 = vpop.f32.mrb[4].mxu1  ;;  %v1307_v54 = vpack.c.bf16 %v873_v37, %v871_v4  ;;  %v875_v55 = vpop.f32.mrb[6].mxu0  ;;  %v1138_v51 = vld [vmem:[%s1938_s4 + $0x40] sm:$0xff] (%p1569_p6) }
 0x1b7   : > { %v913_v59 = vpop.f32.mrb[5].mxu1  ;;  %v877_v60 = vpop.f32.mrb[7].mxu0  ;;  %v1122_v32 = vld [vmem:[%s1938_s4] sm:$0xff] (%p1569_p6)  ;;  %1139 = vst [vmem:[%s1064_s6 + $0xc0] sm:$0xff] (%p1569_p6), %v1138_v51 }
 0x1b8   : > { %1038 = vst [vmem:[%s1938_s4 + $0x10] sm:$0xff] %v1307_v54  ;;  %v1315_v41 = vpack.c.bf16 %v913_v59, %v911_v11  ;;  %v915_v40 = vpop.f32.mrb[6].mxu1  ;;  %v1308_v61 = vpack.c.bf16 %v877_v60, %v875_v55  ;;  %1123 = vst [vmem:[%s1064_s6] sm:$0xff] (%p1569_p6), %v1122_v32  ;;  %v1140_v63 = vld [vmem:[%s1938_s4 + $0x48] sm:$0xff] (%p1569_p6) }
 0x1b9   : > { %v917_v0 = vpop.f32.mrb[7].mxu1  ;;  %v1124_v39 = vld [vmem:[%s1938_s4 + $0x8] sm:$0xff] (%p1569_p6)  ;;  %1141 = vst [vmem:[%s1064_s6 + $0xd8] sm:$0xff] (%p1569_p6), %v1140_v63 }
 0x1ba   : > { %1046 = vst [vmem:[%s1938_s4 + $0x50] sm:$0xff] %v1315_v41  ;;  %1039 = vst [vmem:[%s1938_s4 + $0x18] sm:$0xff] %v1308_v61  ;;  %v1316_v10 = vpack.c.bf16 %v917_v0, %v915_v40 }
 0x1bb   : > { %1125 = vst [vmem:[%s1064_s6 + $0x18] sm:$0xff] (%p1569_p6), %v1124_v39 }
 0x1bc   : > { %1047 = vst [vmem:[%s1938_s4 + $0x58] sm:$0xff] %v1316_v10  ;;  %v881_v3 = vpop.f32.mrb[8].mxu0 }
 0x1bd   : > { %v883_v23 = vpop.f32.mrb[9].mxu0 }
 0x1be   : > { %v921_v19 = vpop.f32.mrb[8].mxu1  ;;  %v1309_v6 = vpack.c.bf16 %v883_v23, %v881_v3  ;;  %v885_v25 = vpop.f32.mrb[10].mxu0 }
 0x1bf   : > { %v923_v43 = vpop.f32.mrb[9].mxu1  ;;  %v887_v7 = vpop.f32.mrb[11].mxu0  ;;  %v1126_v44 = vld [vmem:[%s1938_s4 + $0x10] sm:$0xff] (%p1569_p6) }
 0x1c0   : > { %1040 = vst [vmem:[%s1938_s4 + $0x20] sm:$0xff] %v1309_v6  ;;  %v1317_v9 = vpack.c.bf16 %v923_v43, %v921_v19  ;;  %v925_v24 = vpop.f32.mrb[10].mxu1  ;;  %v1310_v42 = vpack.c.bf16 %v887_v7, %v885_v25  ;;  %1127 = vst [vmem:[%s1064_s6 + $0x30] sm:$0xff] (%p1569_p6), %v1126_v44 }
 0x1c1   : > { %v927_v14 = vpop.f32.mrb[11].mxu1  ;;  %v1128_v56 = vld [vmem:[%s1938_s4 + $0x18] sm:$0xff] (%p1569_p6)  ;;  %v1142_v47 = vld [vmem:[%s1938_s4 + $0x50] sm:$0xff] (%p1569_p6) }
 0x1c2   : > { %1048 = vst [vmem:[%s1938_s4 + $0x60] sm:$0xff] %v1317_v9  ;;  %1041 = vst [vmem:[%s1938_s4 + $0x28] sm:$0xff] %v1310_v42  ;;  %v1318_v15 = vpack.c.bf16 %v927_v14, %v925_v24 }
 0x1c3   : > { %1129 = vst [vmem:[%s1064_s6 + $0x48] sm:$0xff] (%p1569_p6), %v1128_v56  ;;  %v1144_v13 = vld [vmem:[%s1938_s4 + $0x58] sm:$0xff] (%p1569_p6)  ;;  %1143 = vst [vmem:[%s1064_s6 + $0xf0] sm:$0xff] (%p1569_p6), %v1142_v47 }
 0x1c4   : > { %1049 = vst [vmem:[%s1938_s4 + $0x68] sm:$0xff] %v1318_v15  ;;  %v891_v29 = vpop.f32.mrb[12].mxu0  ;;  %1145 = vst [vmem:[%s1064_s6 + $0x108] sm:$0xff] (%p1569_p6), %v1144_v13 }
 0x1c5   : > { %v893_v20 = vpop.f32.mrb[13].mxu0 }
 0x1c6   : > { %v931_v21 = vpop.f32.mrb[12].mxu1  ;;  %v1311_v28 = vpack.c.bf16 %v893_v20, %v891_v29  ;;  %v895_v22 = vpop.f32.mrb[14].mxu0  ;;  %1058 = sbr.rel (!%p1569_p6) target bundleno = 469 (0x1d5), region = 74 }
 0x1c7   : > { %v933_v34 = vpop.f32.mrb[13].mxu1  ;;  %v897_v26 = vpop.f32.mrb[15].mxu0  ;;  %v1130_v45 = vld [vmem:[%s1938_s4 + $0x20] sm:$0xff] (%p1569_p6) }
 0x1c8   : > { %1042 = vst [vmem:[%s1938_s4 + $0x30] sm:$0xff] %v1311_v28  ;;  %v1319_v27 = vpack.c.bf16 %v933_v34, %v931_v21  ;;  %v935_v33 = vpop.f32.mrb[14].mxu1  ;;  %v1312_v30 = vpack.c.bf16 %v897_v26, %v895_v22  ;;  %1131 = vst [vmem:[%s1064_s6 + $0x60] sm:$0xff] (%p1569_p6), %v1130_v45 }
 0x1c9   : > { %v937_v31 = vpop.f32.mrb[15].mxu1  ;;  %v1132_v2 = vld [vmem:[%s1938_s4 + $0x28] sm:$0xff] (%p1569_p6)  ;;  %v1146_v12 = vld [vmem:[%s1938_s4 + $0x60] sm:$0xff] (%p1569_p6) }
 0x1ca   : > { %1050 = vst [vmem:[%s1938_s4 + $0x70] sm:$0xff] %v1319_v27  ;;  %1043 = vst [vmem:[%s1938_s4 + $0x38] sm:$0xff] %v1312_v30  ;;  %v1320_v58 = vpack.c.bf16 %v937_v31, %v935_v33 }
 0x1cb   : > { %1133 = vst [vmem:[%s1064_s6 + $0x78] sm:$0xff] (%p1569_p6), %v1132_v2  ;;  %v1148_v36 = vld [vmem:[%s1938_s4 + $0x68] sm:$0xff] (%p1569_p6)  ;;  %1147 = vst [vmem:[%s1064_s6 + $0x120] sm:$0xff] (%p1569_p6), %v1146_v12 }
 0x1cc   : > { %1051 = vst [vmem:[%s1938_s4 + $0x78] sm:$0xff] %v1320_v58  ;;  %1149 = vst [vmem:[%s1064_s6 + $0x138] sm:$0xff] (%p1569_p6), %v1148_v36 }
 0x1cf   : > { %v1134_v46 = vld [vmem:[%s1938_s4 + $0x30] sm:$0xff] }
 0x1d0   : > { %1135 = vst [vmem:[%s1064_s6 + $0x90] sm:$0xff] %v1134_v46 }
 0x1d1   : > { %v1136_v1 = vld [vmem:[%s1938_s4 + $0x38] sm:$0xff]  ;;  %v1150_v35 = vld [vmem:[%s1938_s4 + $0x70] sm:$0xff] }
 0x1d2   : > { %1137 = vst [vmem:[%s1064_s6 + $0xa8] sm:$0xff] %v1136_v1  ;;  %1151 = vst [vmem:[%s1064_s6 + $0x150] sm:$0xff] %v1150_v35 }
 0x1d3   : > { %v1152_v18 = vld [vmem:[%s1938_s4 + $0x78] sm:$0xff] }
 0x1d4   : > { %1153 = vst [vmem:[%s1064_s6 + $0x168] sm:$0xff] %v1152_v18 }
 0x1d5 PF: > { %s13_s16 = sadd.s32 1, %s1512_s16   ;;  %s1998_s12 = smov %s1500_s13 }
 0x1d6   : > { %p10_p11 = scmp.ge.s32.totalorder %s13_s16, 5   ;;  %s1999_s13 = smov %s1574_s22 }
 0x1d7   : > { %s2000_s14 = smov %s1508_s15  ;;  %s2001_s15 = smov %s2003_s17 }
 0x1d8   :  { %12 = sbr.rel (!%p10_p11) target bundleno = 3 (0x3), region = 146 }

// kernel: baichuan_forward.11
= control target key start
LH: loop header
LB: loop body
LE: loop exit
PB: predicated region body
PF: predicated region fallthrough
CT: control target
= control target key end

     0   :  { %s1222_s1 = inlined_call_operand.vmem [shape: bf16[256,256], index: 1, kind: input, shape index: {}]   ;;  %s1223_s0 = inlined_call_operand.vmem [shape: bf16[128,256], index: 0, kind: input, shape index: {}]   ;;  %s1224_s2 = inlined_call_operand.vmem [shape: bf16[128,256], index: 2, kind: input, shape index: {}]   ;;  %s1225_s3 = inlined_call_operand.vmem [shape: bf16[128,256], index: 3, kind: output, shape index: {}]  }
   0x1   :  { %v890_v0 = vld [vmem:[%s1222_s1 + $0x4] ss:$8 sps:$4 sm:$0xff]   ;;  %v892_v1 = vld [vmem:[%s1222_s1] ss:$8 sps:$4 sm:$0xff]   ;;  %v893_v2 = vld [vmem:[%s1222_s1 + $0x14] ss:$8 sps:$4 sm:$0xff]  }
   0x2   :  { %370 = vmatprep.subr.bf16.mxu0 %v890_v0  ;;  %858 = vmatprep.subr.bf16.mxu1 %v890_v0  ;;  %v895_v3 = vld [vmem:[%s1222_s1 + $0x10] ss:$8 sps:$4 sm:$0xff]   ;;  %v896_v4 = vld [vmem:[%s1222_s1 + $0x24] ss:$8 sps:$4 sm:$0xff]   ;;  %v898_v5 = vld [vmem:[%s1222_s1 + $0x20] ss:$8 sps:$4 sm:$0xff]  }
   0x3   :  { %371 = vmatpush1.bf16.msra.mxu0 %v892_v1  ;;  %874 = vmatpush1.bf16.msra.mxu1 %v892_v1  ;;  %v899_v6 = vld [vmem:[%s1222_s1 + $0x34] ss:$8 sps:$4 sm:$0xff]   ;;  %v901_v7 = vld [vmem:[%s1222_s1 + $0x30] ss:$8 sps:$4 sm:$0xff]   ;;  %v902_v8 = vld [vmem:[%s1222_s1 + $0x44] ss:$8 sps:$4 sm:$0xff]  }
   0x4   :  { %372 = vmatprep.subr.bf16.mxu0 %v893_v2  ;;  %859 = vmatprep.subr.bf16.mxu1 %v893_v2  ;;  %v904_v9 = vld [vmem:[%s1222_s1 + $0x40] ss:$8 sps:$4 sm:$0xff]   ;;  %v905_v10 = vld [vmem:[%s1222_s1 + $0x54] ss:$8 sps:$4 sm:$0xff]   ;;  %v907_v11 = vld [vmem:[%s1222_s1 + $0x50] ss:$8 sps:$4 sm:$0xff]  }
   0x5   :  { %v908_v12 = vld [vmem:[%s1222_s1 + $0x64] ss:$8 sps:$4 sm:$0xff]   ;;  %v910_v14 = vld [vmem:[%s1222_s1 + $0x60] ss:$8 sps:$4 sm:$0xff]   ;;  %v911_v16 = vld [vmem:[%s1222_s1 + $0x74] ss:$8 sps:$4 sm:$0xff]  }
   0x6   :  { %v940_v13 = vld [vmem:[%s1223_s0 + $0x4] ss:$8 sps:$4 sm:$0xff]   ;;  %v913_v17 = vld [vmem:[%s1222_s1 + $0x70] ss:$8 sps:$4 sm:$0xff]   ;;  %v916_v19 = vld [vmem:[%s1222_s1 + $0x80] ss:$8 sps:$4 sm:$0xff]  }
   0x7   :  { %373 = vmatpush1.bf16.msra.mxu0 %v895_v3  ;;  %875 = vmatpush1.bf16.msra.mxu1 %v895_v3  ;;  %v943_v15 = vld [vmem:[%s1223_s0 + $0x44] ss:$8 sps:$4 sm:$0xff]   ;;  %v917_v20 = vld [vmem:[%s1222_s1 + $0x94] ss:$8 sps:$4 sm:$0xff]   ;;  %v919_v21 = vld [vmem:[%s1222_s1 + $0x90] ss:$8 sps:$4 sm:$0xff]  }
   0x8   :  { %374 = vmatprep.subr.bf16.mxu0 %v896_v4  ;;  %860 = vmatprep.subr.bf16.mxu1 %v896_v4  ;;  %v914_v18 = vld [vmem:[%s1222_s1 + $0x84] ss:$8 sps:$4 sm:$0xff]   ;;  %v922_v23 = vld [vmem:[%s1222_s1 + $0xa0] ss:$8 sps:$4 sm:$0xff]   ;;  %v923_v24 = vld [vmem:[%s1222_s1 + $0xb4] ss:$8 sps:$4 sm:$0xff]  }
   0x9   :  { %402 = vmatprep.mubr.bf16.mxu0 %v940_v13  ;;  %442 = vmatprep.mubr.bf16.mxu1 %v943_v15  ;;  %v920_v22 = vld [vmem:[%s1222_s1 + $0xa4] ss:$8 sps:$4 sm:$0xff]   ;;  %v925_v25 = vld [vmem:[%s1222_s1 + $0xb0] ss:$8 sps:$4 sm:$0xff]   ;;  %v928_v27 = vld [vmem:[%s1222_s1 + $0xc0] ss:$8 sps:$4 sm:$0xff]  }
   0xa   :  { %v926_v26 = vld [vmem:[%s1222_s1 + $0xc4] ss:$8 sps:$4 sm:$0xff]   ;;  %v929_v28 = vld [vmem:[%s1222_s1 + $0xd4] ss:$8 sps:$4 sm:$0xff]   ;;  %v931_v29 = vld [vmem:[%s1222_s1 + $0xd0] ss:$8 sps:$4 sm:$0xff]  }
   0xb   :  { %375 = vmatpush1.bf16.msra.mxu0 %v898_v5  ;;  %876 = vmatpush1.bf16.msra.mxu1 %v898_v5  ;;  %v932_v30 = vld [vmem:[%s1222_s1 + $0xe4] ss:$8 sps:$4 sm:$0xff]   ;;  %v934_v31 = vld [vmem:[%s1222_s1 + $0xe0] ss:$8 sps:$4 sm:$0xff]   ;;  %v935_v32 = vld [vmem:[%s1222_s1 + $0xf4] ss:$8 sps:$4 sm:$0xff]  }
   0xc   :  { %376 = vmatprep.subr.bf16.mxu0 %v899_v6  ;;  %861 = vmatprep.subr.bf16.mxu1 %v899_v6  ;;  %v937_v33 = vld [vmem:[%s1222_s1 + $0xf0] ss:$8 sps:$4 sm:$0xff]   ;;  %v938_v34 = vld [vmem:[%s1223_s0] ss:$8 sps:$4 sm:$0xff]   ;;  %v944_v36 = vld [vmem:[%s1223_s0 + $0x14] ss:$8 sps:$4 sm:$0xff]  }
   0xd   :  { %v941_v35 = vld [vmem:[%s1223_s0 + $0x40] ss:$8 sps:$4 sm:$0xff]   ;;  %v946_v37 = vld [vmem:[%s1223_s0 + $0x54] ss:$8 sps:$4 sm:$0xff]   ;;  %v948_v38 = vld [vmem:[%s1223_s0 + $0x10] ss:$8 sps:$4 sm:$0xff]  }
   0xe   :  { %v949_v39 = vld [vmem:[%s1223_s0 + $0x50] ss:$8 sps:$4 sm:$0xff]   ;;  %v950_v40 = vld [vmem:[%s1223_s0 + $0x24] ss:$8 sps:$4 sm:$0xff]   ;;  %v954_v42 = vld [vmem:[%s1223_s0 + $0x20] ss:$8 sps:$4 sm:$0xff]  }
   0xf   :  { %377 = vmatpush1.bf16.msra.mxu0 %v901_v7  ;;  %877 = vmatpush1.bf16.msra.mxu1 %v901_v7  ;;  %v952_v41 = vld [vmem:[%s1223_s0 + $0x64] ss:$8 sps:$4 sm:$0xff]   ;;  %v955_v43 = vld [vmem:[%s1223_s0 + $0x60] ss:$8 sps:$4 sm:$0xff]   ;;  %v956_v44 = vld [vmem:[%s1223_s0 + $0x34] ss:$8 sps:$4 sm:$0xff]  }
  0x10   :  { %378 = vmatprep.subr.bf16.mxu0 %v902_v8  ;;  %862 = vmatprep.subr.bf16.mxu1 %v902_v8  ;;  %v958_v45 = vld [vmem:[%s1223_s0 + $0x74] ss:$8 sps:$4 sm:$0xff]   ;;  %v960_v46 = vld [vmem:[%s1223_s0 + $0x30] ss:$8 sps:$4 sm:$0xff]   ;;  %v582_v48 = vld [vmem:[%s1224_s2] sm:$0xff] }
  0x11   :  { %v961_v47 = vld [vmem:[%s1223_s0 + $0x70] ss:$8 sps:$4 sm:$0xff]   ;;  %v590_v49 = vld [vmem:[%s1224_s2 + $0x40] sm:$0xff]  ;;  %v583_v50 = vld [vmem:[%s1224_s2 + $0x8] sm:$0xff]  ;;  %v598_v52 = vunpack.c.l.bf16 %v582_v48  ;;  %v599_v54 = vunpack.c.h.bf16 %v582_v48 }
  0x12   :  { %v591_v51 = vld [vmem:[%s1224_s2 + $0x48] sm:$0xff]  ;;  %v614_v53 = vunpack.c.l.bf16 %v590_v49  ;;  %v615_v55 = vunpack.c.h.bf16 %v590_v49  ;;  %v600_v56 = vunpack.c.l.bf16 %v583_v50  ;;  %v601_v60 = vunpack.c.h.bf16 %v583_v50  ;;  %v584_v6 = vld [vmem:[%s1224_s2 + $0x10] sm:$0xff] }
  0x13   :  { %379 = vmatpush1.bf16.msra.mxu0 %v904_v9  ;;  %878 = vmatpush1.bf16.msra.mxu1 %v904_v9  ;;  %v616_v57 = vunpack.c.l.bf16 %v591_v51  ;;  %v617_v61 = vunpack.c.h.bf16 %v591_v51  ;;  %v592_v7 = vld [vmem:[%s1224_s2 + $0x50] sm:$0xff]  ;;  %v587_v48 = vld [vmem:[%s1224_s2 + $0x28] sm:$0xff] }
  0x14   :  { %380 = vmatprep.subr.bf16.mxu0 %v905_v10  ;;  %863 = vmatprep.subr.bf16.mxu1 %v905_v10  ;;  %v595_v49 = vld [vmem:[%s1224_s2 + $0x68] sm:$0xff] }
  0x17   :  { %381 = vmatpush1.bf16.msra.mxu0 %v907_v11  ;;  %879 = vmatpush1.bf16.msra.mxu1 %v907_v11 }
  0x18   :  { %382 = vmatprep.subr.bf16.mxu0 %v908_v12  ;;  %864 = vmatprep.subr.bf16.mxu1 %v908_v12 }
  0x1b   :  { %383 = vmatpush1.bf16.msra.mxu0 %v910_v14  ;;  %880 = vmatpush1.bf16.msra.mxu1 %v910_v14 }
  0x1c   :  { %384 = vmatprep.subr.bf16.mxu0 %v911_v16  ;;  %865 = vmatprep.subr.bf16.mxu1 %v911_v16  ;;  %v585_v16 = vld [vmem:[%s1224_s2 + $0x18] sm:$0xff] }
  0x1f   :  { %385 = vmatpush1.bf16.msra.mxu0 %v913_v17  ;;  %881 = vmatpush1.bf16.msra.mxu1 %v913_v17  ;;  %v593_v17 = vld [vmem:[%s1224_s2 + $0x58] sm:$0xff] }
  0x20   :  { %386 = vmatprep.subr.bf16.mxu0 %v914_v18  ;;  %866 = vmatprep.subr.bf16.mxu1 %v914_v18  ;;  %v602_v18 = vunpack.c.l.bf16 %v584_v6 }
  0x23   :  { %387 = vmatpush1.bf16.msra.mxu0 %v916_v19  ;;  %882 = vmatpush1.bf16.msra.mxu1 %v916_v19  ;;  %v618_v19 = vunpack.c.l.bf16 %v592_v7 }
  0x24   :  { %388 = vmatprep.subr.bf16.mxu0 %v917_v20  ;;  %867 = vmatprep.subr.bf16.mxu1 %v917_v20 }
  0x27   :  { %389 = vmatpush1.bf16.msra.mxu0 %v919_v21  ;;  %883 = vmatpush1.bf16.msra.mxu1 %v919_v21 }
  0x28   :  { %390 = vmatprep.subr.bf16.mxu0 %v920_v22  ;;  %868 = vmatprep.subr.bf16.mxu1 %v920_v22  ;;  %v603_v22 = vunpack.c.h.bf16 %v584_v6  ;;  %v588_v6 = vld [vmem:[%s1224_s2 + $0x30] sm:$0xff] }
  0x2b   :  { %391 = vmatpush1.bf16.msra.mxu0 %v922_v23  ;;  %884 = vmatpush1.bf16.msra.mxu1 %v922_v23  ;;  %v619_v23 = vunpack.c.h.bf16 %v592_v7  ;;  %v596_v7 = vld [vmem:[%s1224_s2 + $0x70] sm:$0xff] }
  0x2c   :  { %392 = vmatprep.subr.bf16.mxu0 %v923_v24  ;;  %869 = vmatprep.subr.bf16.mxu1 %v923_v24  ;;  %v604_v24 = vunpack.c.l.bf16 %v585_v16 }
  0x2f   :  { %393 = vmatpush1.bf16.msra.mxu0 %v925_v25  ;;  %885 = vmatpush1.bf16.msra.mxu1 %v925_v25  ;;  %v620_v25 = vunpack.c.l.bf16 %v593_v17 }
  0x30   :  { %394 = vmatprep.subr.bf16.mxu0 %v926_v26  ;;  %870 = vmatprep.subr.bf16.mxu1 %v926_v26 }
  0x33   :  { %395 = vmatpush1.bf16.msra.mxu0 %v928_v27  ;;  %886 = vmatpush1.bf16.msra.mxu1 %v928_v27 }
  0x34   :  { %396 = vmatprep.subr.bf16.mxu0 %v929_v28  ;;  %871 = vmatprep.subr.bf16.mxu1 %v929_v28  ;;  %v605_v28 = vunpack.c.h.bf16 %v585_v16  ;;  %v589_v16 = vld [vmem:[%s1224_s2 + $0x38] sm:$0xff] }
  0x37   :  { %397 = vmatpush1.bf16.msra.mxu0 %v931_v29  ;;  %887 = vmatpush1.bf16.msra.mxu1 %v931_v29  ;;  %v621_v29 = vunpack.c.h.bf16 %v593_v17  ;;  %v597_v17 = vld [vmem:[%s1224_s2 + $0x78] sm:$0xff] }
  0x38   :  { %398 = vmatprep.subr.bf16.mxu0 %v932_v30  ;;  %872 = vmatprep.subr.bf16.mxu1 %v932_v30 }
  0x3b   :  { %399 = vmatpush1.bf16.msra.mxu0 %v934_v31  ;;  %888 = vmatpush1.bf16.msra.mxu1 %v934_v31 }
  0x3c   :  { %400 = vmatprep.subr.bf16.mxu0 %v935_v32  ;;  %873 = vmatprep.subr.bf16.mxu1 %v935_v32 }
  0x3f   :  { %401 = vmatpush1.bf16.msra.mxu0 %v937_v33  ;;  %889 = vmatpush1.bf16.msra.mxu1 %v937_v33 }
  0x42   :  { %403 = vmatmul.mubr.bf16.vlgmr.msra.gmra.mrb[0].mxu0 %v938_v34  ;;  %443 = vmatmul.mubr.bf16.vlgmr.msra.gmra.mrb[0].mxu1 %v941_v35 }
  0x43   :  { %412 = vmatprep.mubr.bf16.mxu0 %v944_v36  ;;  %452 = vmatprep.mubr.bf16.mxu1 %v946_v37 }
  0x4a   :  { %413 = vmatmul.mubr.bf16.gmra.mrb[4].mxu0 %v948_v38  ;;  %453 = vmatmul.mubr.bf16.gmra.mrb[4].mxu1 %v949_v39  ;;  %v586_v38 = vld [vmem:[%s1224_s2 + $0x20] sm:$0xff] }
  0x4b   :  { %422 = vmatprep.mubr.bf16.mxu0 %v950_v40  ;;  %462 = vmatprep.mubr.bf16.mxu1 %v952_v41  ;;  %v594_v39 = vld [vmem:[%s1224_s2 + $0x60] sm:$0xff]  ;;  %v606_v50 = vunpack.c.l.bf16 %v586_v38 }
  0x4c   :  { %v622_v51 = vunpack.c.l.bf16 %v594_v39 }
  0x52   :  { %423 = vmatmul.mubr.bf16.gmra.mrb[8].mxu0 %v954_v42  ;;  %463 = vmatmul.mubr.bf16.gmra.mrb[8].mxu1 %v955_v43 }
  0x53   :  { %432 = vmatprep.mubr.bf16.mxu0 %v956_v44  ;;  %472 = vmatprep.mubr.bf16.mxu1 %v958_v45 }
  0x5a   :  { %433 = vmatmul.mubr.bf16.gmra.mrb[12].mxu0 %v960_v46  ;;  %473 = vmatmul.mubr.bf16.gmra.mrb[12].mxu1 %v961_v47 }
 0x115   :  { %v404_v58 = vpop.f32.mrb[0].mxu0  ;;  %v444_v59 = vpop.f32.mrb[0].mxu1 }
 0x116   :  { %v630_v62 = vadd.f32 %v598_v52, %v404_v58  ;;  %v646_v63 = vadd.f32 %v614_v53, %v444_v59  ;;  %v406_v0 = vpop.f32.mrb[1].mxu0  ;;  %v446_v1 = vpop.f32.mrb[1].mxu1 }
 0x117   :  { %v631_v2 = vadd.f32 %v599_v54, %v406_v0  ;;  %v647_v3 = vadd.f32 %v615_v55, %v446_v1  ;;  %v408_v4 = vpop.f32.mrb[2].mxu0  ;;  %v448_v5 = vpop.f32.mrb[2].mxu1  ;;  %v607_v54 = vunpack.c.h.bf16 %v586_v38  ;;  %v623_v55 = vunpack.c.h.bf16 %v594_v39 }
 0x118   :  { %v632_v8 = vadd.f32 %v600_v56, %v408_v4  ;;  %v648_v9 = vadd.f32 %v616_v57, %v448_v5  ;;  %v410_v10 = vpop.f32.mrb[3].mxu0  ;;  %v450_v11 = vpop.f32.mrb[3].mxu1  ;;  %v608_v56 = vunpack.c.l.bf16 %v587_v48  ;;  %v624_v57 = vunpack.c.l.bf16 %v595_v49 }
 0x119   :  { %v842_v12 = vpack.c.bf16 %v631_v2, %v630_v62  ;;  %v850_v13 = vpack.c.bf16 %v647_v3, %v646_v63  ;;  %v633_v14 = vadd.f32 %v601_v60, %v410_v10  ;;  %v649_v15 = vadd.f32 %v617_v61, %v450_v11 }
 0x11a   :  { %v609_v60 = vunpack.c.h.bf16 %v587_v48  ;;  %v625_v61 = vunpack.c.h.bf16 %v595_v49 }
 0x11b   :  { %758 = vst [vmem:[%s1225_s3] sm:$0xff] %v842_v12  ;;  %766 = vst [vmem:[%s1225_s3 + $0x40] sm:$0xff] %v850_v13  ;;  %v843_v20 = vpack.c.bf16 %v633_v14, %v632_v8  ;;  %v851_v21 = vpack.c.bf16 %v649_v15, %v648_v9 }
 0x11d   :  { %759 = vst [vmem:[%s1225_s3 + $0x8] sm:$0xff] %v843_v20  ;;  %767 = vst [vmem:[%s1225_s3 + $0x48] sm:$0xff] %v851_v21  ;;  %v414_v26 = vpop.f32.mrb[4].mxu0  ;;  %v454_v27 = vpop.f32.mrb[4].mxu1 }
 0x11e   :  { %v634_v30 = vadd.f32 %v602_v18, %v414_v26  ;;  %v650_v31 = vadd.f32 %v618_v19, %v454_v27  ;;  %v416_v32 = vpop.f32.mrb[5].mxu0  ;;  %v456_v33 = vpop.f32.mrb[5].mxu1  ;;  %v610_v18 = vunpack.c.l.bf16 %v588_v6  ;;  %v626_v19 = vunpack.c.l.bf16 %v596_v7 }
 0x11f   :  { %v635_v34 = vadd.f32 %v603_v22, %v416_v32  ;;  %v651_v35 = vadd.f32 %v619_v23, %v456_v33  ;;  %v418_v36 = vpop.f32.mrb[6].mxu0  ;;  %v458_v37 = vpop.f32.mrb[6].mxu1  ;;  %v611_v22 = vunpack.c.h.bf16 %v588_v6  ;;  %v627_v23 = vunpack.c.h.bf16 %v596_v7 }
 0x120   :  { %v636_v40 = vadd.f32 %v604_v24, %v418_v36  ;;  %v652_v41 = vadd.f32 %v620_v25, %v458_v37  ;;  %v420_v42 = vpop.f32.mrb[7].mxu0  ;;  %v460_v43 = vpop.f32.mrb[7].mxu1  ;;  %v612_v24 = vunpack.c.l.bf16 %v589_v16  ;;  %v628_v25 = vunpack.c.l.bf16 %v597_v17 }
 0x121   :  { %v844_v44 = vpack.c.bf16 %v635_v34, %v634_v30  ;;  %v852_v45 = vpack.c.bf16 %v651_v35, %v650_v31  ;;  %v637_v46 = vadd.f32 %v605_v28, %v420_v42  ;;  %v653_v47 = vadd.f32 %v621_v29, %v460_v43 }
 0x122   :  { %v613_v28 = vunpack.c.h.bf16 %v589_v16  ;;  %v629_v29 = vunpack.c.h.bf16 %v597_v17 }
 0x123   :  { %760 = vst [vmem:[%s1225_s3 + $0x10] sm:$0xff] %v844_v44  ;;  %768 = vst [vmem:[%s1225_s3 + $0x50] sm:$0xff] %v852_v45  ;;  %v845_v52 = vpack.c.bf16 %v637_v46, %v636_v40  ;;  %v853_v53 = vpack.c.bf16 %v653_v47, %v652_v41 }
 0x125   :  { %761 = vst [vmem:[%s1225_s3 + $0x18] sm:$0xff] %v845_v52  ;;  %769 = vst [vmem:[%s1225_s3 + $0x58] sm:$0xff] %v853_v53  ;;  %v424_v58 = vpop.f32.mrb[8].mxu0  ;;  %v464_v59 = vpop.f32.mrb[8].mxu1 }
 0x126   :  { %v638_v62 = vadd.f32 %v606_v50, %v424_v58  ;;  %v654_v63 = vadd.f32 %v622_v51, %v464_v59  ;;  %v426_v0 = vpop.f32.mrb[9].mxu0  ;;  %v466_v1 = vpop.f32.mrb[9].mxu1 }
 0x127   :  { %v639_v2 = vadd.f32 %v607_v54, %v426_v0  ;;  %v655_v3 = vadd.f32 %v623_v55, %v466_v1  ;;  %v428_v4 = vpop.f32.mrb[10].mxu0  ;;  %v468_v5 = vpop.f32.mrb[10].mxu1 }
 0x128   :  { %v640_v8 = vadd.f32 %v608_v56, %v428_v4  ;;  %v656_v9 = vadd.f32 %v624_v57, %v468_v5  ;;  %v430_v10 = vpop.f32.mrb[11].mxu0  ;;  %v470_v11 = vpop.f32.mrb[11].mxu1 }
 0x129   :  { %v846_v12 = vpack.c.bf16 %v639_v2, %v638_v62  ;;  %v854_v13 = vpack.c.bf16 %v655_v3, %v654_v63  ;;  %v641_v14 = vadd.f32 %v609_v60, %v430_v10  ;;  %v657_v15 = vadd.f32 %v625_v61, %v470_v11 }
 0x12b   :  { %762 = vst [vmem:[%s1225_s3 + $0x20] sm:$0xff] %v846_v12  ;;  %770 = vst [vmem:[%s1225_s3 + $0x60] sm:$0xff] %v854_v13  ;;  %v847_v20 = vpack.c.bf16 %v641_v14, %v640_v8  ;;  %v855_v21 = vpack.c.bf16 %v657_v15, %v656_v9 }
 0x12d   :  { %763 = vst [vmem:[%s1225_s3 + $0x28] sm:$0xff] %v847_v20  ;;  %771 = vst [vmem:[%s1225_s3 + $0x68] sm:$0xff] %v855_v21  ;;  %v434_v26 = vpop.f32.mrb[12].mxu0  ;;  %v474_v27 = vpop.f32.mrb[12].mxu1 }
 0x12e   :  { %v642_v30 = vadd.f32 %v610_v18, %v434_v26  ;;  %v658_v31 = vadd.f32 %v626_v19, %v474_v27  ;;  %v436_v32 = vpop.f32.mrb[13].mxu0  ;;  %v476_v33 = vpop.f32.mrb[13].mxu1 }
 0x12f   :  { %v643_v34 = vadd.f32 %v611_v22, %v436_v32  ;;  %v659_v35 = vadd.f32 %v627_v23, %v476_v33  ;;  %v438_v36 = vpop.f32.mrb[14].mxu0  ;;  %v478_v37 = vpop.f32.mrb[14].mxu1 }
 0x130   :  { %v644_v38 = vadd.f32 %v612_v24, %v438_v36  ;;  %v660_v39 = vadd.f32 %v628_v25, %v478_v37  ;;  %v440_v40 = vpop.f32.mrb[15].mxu0  ;;  %v480_v41 = vpop.f32.mrb[15].mxu1 }
 0x131   :  { %v848_v42 = vpack.c.bf16 %v643_v34, %v642_v30  ;;  %v856_v43 = vpack.c.bf16 %v659_v35, %v658_v31  ;;  %v645_v44 = vadd.f32 %v613_v28, %v440_v40  ;;  %v661_v45 = vadd.f32 %v629_v29, %v480_v41 }
 0x133   :  { %764 = vst [vmem:[%s1225_s3 + $0x30] sm:$0xff] %v848_v42  ;;  %772 = vst [vmem:[%s1225_s3 + $0x70] sm:$0xff] %v856_v43  ;;  %v849_v46 = vpack.c.bf16 %v645_v44, %v644_v38  ;;  %v857_v47 = vpack.c.bf16 %v661_v45, %v660_v39 }
 0x135   :  { %765 = vst [vmem:[%s1225_s3 + $0x38] sm:$0xff] %v849_v46  ;;  %773 = vst [vmem:[%s1225_s3 + $0x78] sm:$0xff] %v857_v47 }

// kernel: baichuan_forward.10
= control target key start
LH: loop header
LB: loop body
LE: loop exit
PB: predicated region body
PF: predicated region fallthrough
CT: control target
= control target key end

     0   :  { %s4508_s0 = inlined_call_operand.vmem [shape: f32[2], index: 0, kind: input, shape index: {}]   ;;  %s4509_s1 = inlined_call_operand.vmem [shape: bf16[128,768], index: 1, kind: input, shape index: {}, may-alias: {1,2,3}]   ;;  %s4510_s2 = inlined_call_operand.vmem [shape: bf16[128,768], index: 2, kind: input, shape index: {}, may-alias: {1,2,3}]   ;;  %s4511_s3 = inlined_call_operand.vmem [shape: bf16[128,768], index: 3, kind: input, shape index: {}, may-alias: {1,2,3}]   ;;  %s4512_s4 = inlined_call_operand.vmem [shape: f32[128,128], index: 4, kind: input, shape index: {}, may-alias: {4,6}]   ;;  %s4513_s5 = inlined_call_operand.vmem [shape: f32[128,128], index: 5, kind: input, shape index: {}, may-alias: {5,7}]   ;;  %s4514_s6 = inlined_call_operand.vmem [shape: f32[128,128], index: 6, kind: input, shape index: {}, may-alias: {4,6}]   ;;  %s4515_s7 = inlined_call_operand.vmem [shape: f32[128,128], index: 7, kind: input, shape index: {}, may-alias: {5,7}]   ;;  %s4516_s8 = inlined_call_operand.vmem [shape: bf16[128,256], index: 8, kind: output, shape index: {}]  }
   0x1   :  { %4518 = sst [smem:[#allocation16_spill]] %s4508_s0 }
   0x2   :  { %13 = vsyncpa [#allocation6], 0  ;;  %s3273_s27 = smov 0   ;;  %s3275_s28 = smov 0  }
   0x3   :  { %s3277_s29 = smov 0   ;;  %s3279_s30 = smov 0  }
   0x4   :  { %s3281_s9 = smov 0   ;;  %s3283_s10 = smov 0  }
   0x5   :  { %s3285_s11 = smov 0   ;;  %s3287_s12 = smov 0  }
   0x6   :  { %s3289_s13 = smov 0  }
   0x7 LB: > { %s38_s15 = sadd.s32 1, %s3217_s12  ;;  %s68_s16 = sadd.s32 1, %s3209_s10  ;;  %s3221_s13 = sphi %s3289_s13, %s19_s13   ;;  %s3217_s12 = sphi %s3287_s12, %s4560_s12   ;;  %s3213_s11 = sphi %s3285_s11, %s4559_s11   ;;  %s3209_s10 = sphi %s3283_s10, %s4558_s10   ;;  %s3205_s9 = sphi %s3281_s9, %s4557_s9   ;;  %s3201_s30 = sphi %s3279_s30, %s4556_s30   ;;  %s3197_s29 = sphi %s3277_s29, %s4555_s29   ;;  %s3193_s28 = sphi %s3275_s28, %s4554_s28   ;;  %s3189_s27 = sphi %s3273_s27, %s4553_s27  }
   0x8   : > { %p40_p0 = scmp.ge.s32.totalorder %s38_s15, 2  ;;  %p75_p1 = scmp.ne.s32.totalorder %s3209_s10, %s3205_s9 }
   0x9   : > { %p76_p2 = scmp.eq.s32.totalorder %s3221_s13, 0  ;;  %s91_s18 = sadd.s32 2, %s3217_s12 }
   0xa   : > { %s4562_s15 = smov (%p40_p0, %s38_s15), 0  ;;  %s98_s22 = sadd.s32 1, %s3201_s30 }
   0xb   : > { %4519 = sst [smem:[#allocation12_spill]] %s4562_s15  ;;  %p3331_p3 = por %p76_p2, %p75_p1 }
   0xc   : > { %s64_s19 = ssub.s32 %s3217_s12, %s4562_s15  ;;  %s92_s20 = sadd.s32 2, %s4562_s15 }
   0xd   : > { %p66_p4 = scmp.eq.s32.totalorder %s64_s19, 0  ;;  %s94_s21 = ssub.s32 %s91_s18, %s92_s20 }
   0xe   : > { %p96_p5 = scmp.eq.s32.totalorder %s94_s21, 0  ;;  %p105_p6 = scmp.ne.s32.totalorder %s3201_s30, %s3197_s29 }
   0xf   : > { %s3341_s23 = scalar_select %p66_p4, %s3209_s10, %s68_s16  }
  0x10   : > { %s3344_s24 = scalar_select %p96_p5, %s3201_s30, %s98_s22  }
  0x11   : > { %4521 = sst [smem:[#allocation13_spill]] %s3341_s23  ;;  %s121_s25 = sadd.s32 4, %s3217_s12 }
  0x12   : > { %4522 = sst [smem:[#allocation14_spill]] %s3344_s24  ;;  %s122_s26 = sadd.s32 4, %s4562_s15 }
  0x13   : > { %s128_s14 = sadd.s32 1, %s3193_s28  ;;  %p3353_p7 = por %p105_p6, %p76_p2 }
  0x14   : > { %s124_s18 = ssub.s32 %s121_s25, %s122_s26  ;;  %p135_p9 = scmp.ne.s32.totalorder %s3193_s28, %s3189_s27 }
  0x15   : > { %s4523_s19 = scalar_select %p3353_p7, 1, 0 }
  0x16   : > { %p126_p8 = scmp.eq.s32.totalorder %s124_s18, 0  ;;  %s4524_s20 = sadd.s32 4294967295, %s3221_s13  }
  0x17   : > { %p271_p10 = scmp.eq.s32.totalorder %s4524_s20, 1  ;;  %p2583_p11 = scmp.ge.s32.totalorder %s3221_s13, 1 }
  0x18   : > { %s3363_s16 = scalar_select %p126_p8, %s3193_s28, %s128_s14  }
  0x19   : > { %p3367_p12 = por %p135_p9, %p76_p2  ;;  %p3374_p13 = por %p271_p10, %p75_p1 }
  0x1a   : > { %4525 = sst [smem:[#allocation15_spill]] %s3363_s16  ;;  %p284_p0 = scmp.lt.s32.totalorder %s3221_s13, 3 }
  0x1b   : > { %s4526_s21 = scalar_select %p3367_p12, 1, 0 }
  0x1c   : > { %s4527_s22 = scalar_select %p3374_p13, 1, 0 }
  0x1d   : > { %s4528_s15 = smov %s4524_s20  ;;  %p3385_p5 = pnand %p2583_p11, %p284_p0 }
  0x1e   : > { %p3381_p4 = scmp.eq.s32.totalorder %s4528_s15, 0  ;;  %s4531_s0 = sld [smem:[#allocation16_spill]] }
  0x1f   : > { %p2903_p1 = pneg %p3385_p5 }
  0x21   : > { %p2904_p2 = pnand %p3381_p4, %p2903_p1 }
  0x23   : > { %p3134_p8 = pneg %p2904_p2 }
  0x24   : > { %s297_s20 = sshll.u32 %s4531_s0, 4  ;;  %s298_s20 = int_to_ptr.vmem [resolvable:$true] %s297_s20 }
  0x25   : > { %s3132_s23 = scalar_lea.vmem %s298_s20, 16  ;;  %p3140_p13 = scmp.lt.s32.totalorder %s298_s20, %s298_s20 }
  0x26   : > { %p3133_p6 = scmp.ne.s32.totalorder %s298_s20, %s3132_s23  ;;  %p3141_p11 = scmp.lt.s32.totalorder %s3132_s23, %s3132_s23 }
  0x28   : > { %p3135_p9 = pnand %p3134_p8, %p3133_p6  ;;  %p3142_p0 = por %p3141_p11, %p3140_p13 }
  0x2a   : > { %p3136_p10 = pneg %p3135_p9 }
  0x2c   : > { %p3143_p12 = pnand %p3142_p0, %p3136_p10 }
  0x2e   : > { %3146 = shalt.err (!%p3143_p12)
}
  0x2f   : > { %s3223_s15 = smov [#allocation5]   ;;  %p2589_p7 = scmp.ge.s32.totalorder %s3221_s13, 2 }
  0x30   : > { %2906 = dma.vmem_to_smem (!%p2904_p2), %s298_s20, 16, %s3223_s15, [#allocation6]  }
  0x31   : > { %340 = sbr.rel (%p2589_p7) target bundleno = 100 (0x64), region = 36 }
  0x38   : > { %343 = sbr.rel (!%p3331_p3) target bundleno = 70 (0x46), region = 40  ;;  %s345_s26 = sand.u32 (%p3331_p3), 1, %s3209_s10  }
  0x39   : > { %s2591_s18 = sshll.u32 (%p3331_p3), %s3217_s12, 2  ;;  %s2590_s0 = sshll.u32 (%p3331_p3), %s345_s26, 6 }
  0x3a   : > { %s3404_s23 = scalar_lea.vmem (%p3331_p3), %s4509_s1, %s2591_s18  ;;  %s347_s17 = scalar_lea.vmem (%p3331_p3), [#allocation7], %s2590_s0 }
  0x3b   : > { %v368_v0 = vld [vmem:[%s3404_s23] sm:$0xf] (%p3331_p3)  ;;  %v370_v1 = vld [vmem:[%s3404_s23 + $0x18] sm:$0xf] (%p3331_p3)  ;;  %v372_v2 = vld [vmem:[%s3404_s23 + $0x30] sm:$0xf] (%p3331_p3) }
  0x3c   : > { %369 = vst [vmem:[%s347_s17] sm:$0xf] (%p3331_p3), %v368_v0  ;;  %371 = vst [vmem:[%s347_s17 + $0x4] sm:$0xf] (%p3331_p3), %v370_v1  ;;  %v374_v3 = vld [vmem:[%s3404_s23 + $0x48] sm:$0xf] (%p3331_p3) }
  0x3d   : > { %v376_v4 = vld [vmem:[%s3404_s23 + $0x60] sm:$0xf] (%p3331_p3)  ;;  %373 = vst [vmem:[%s347_s17 + $0x8] sm:$0xf] (%p3331_p3), %v372_v2  ;;  %375 = vst [vmem:[%s347_s17 + $0xc] sm:$0xf] (%p3331_p3), %v374_v3 }
  0x3e   : > { %377 = vst [vmem:[%s347_s17 + $0x10] sm:$0xf] (%p3331_p3), %v376_v4  ;;  %v378_v5 = vld [vmem:[%s3404_s23 + $0x78] sm:$0xf] (%p3331_p3)  ;;  %v380_v6 = vld [vmem:[%s3404_s23 + $0x90] sm:$0xf] (%p3331_p3) }
  0x3f   : > { %v382_v7 = vld [vmem:[%s3404_s23 + $0xa8] sm:$0xf]  ;;  %379 = vst [vmem:[%s347_s17 + $0x14] sm:$0xf] %v378_v5  ;;  %381 = vst [vmem:[%s347_s17 + $0x18] sm:$0xf] %v380_v6 }
  0x40   : > { %383 = vst [vmem:[%s347_s17 + $0x1c] sm:$0xf] %v382_v7  ;;  %v384_v8 = vld [vmem:[%s3404_s23 + $0xc0] sm:$0xf]  ;;  %v386_v9 = vld [vmem:[%s3404_s23 + $0xd8] sm:$0xf] }
  0x41   : > { %v388_v10 = vld [vmem:[%s3404_s23 + $0xf0] sm:$0xf]  ;;  %385 = vst [vmem:[%s347_s17 + $0x20] sm:$0xf] %v384_v8  ;;  %387 = vst [vmem:[%s347_s17 + $0x24] sm:$0xf] %v386_v9 }
  0x42   : > { %389 = vst [vmem:[%s347_s17 + $0x28] sm:$0xf] %v388_v10  ;;  %v390_v11 = vld [vmem:[%s3404_s23 + $0x108] sm:$0xf]  ;;  %v392_v12 = vld [vmem:[%s3404_s23 + $0x120] sm:$0xf] }
  0x43   : > { %v394_v13 = vld [vmem:[%s3404_s23 + $0x138] sm:$0xf]  ;;  %391 = vst [vmem:[%s347_s17 + $0x2c] sm:$0xf] %v390_v11  ;;  %393 = vst [vmem:[%s347_s17 + $0x30] sm:$0xf] %v392_v12 }
  0x44   : > { %395 = vst [vmem:[%s347_s17 + $0x34] sm:$0xf] %v394_v13  ;;  %v396_v14 = vld [vmem:[%s3404_s23 + $0x150] sm:$0xf]  ;;  %v398_v15 = vld [vmem:[%s3404_s23 + $0x168] sm:$0xf] }
  0x45   : > { %397 = vst [vmem:[%s347_s17 + $0x38] sm:$0xf] %v396_v14  ;;  %399 = vst [vmem:[%s347_s17 + $0x3c] sm:$0xf] %v398_v15 }
  0x46 PF: > { %p4532_p3 = scmp.ne.s32.totalorder %s4523_s19, 0 }
  0x47   : > { %s456_s0 = sand.u32 (%p4532_p3), 1, %s3201_s30   ;;  %s2593_s24 = sshll.u32 (%p4532_p3), %s3217_s12, 2 }
  0x48   : > { %454 = sbr.rel (!%p4532_p3) target bundleno = 85 (0x55), region = 81  ;;  %s2592_s16 = sshll.u32 (%p4532_p3), %s456_s0, 6 }
  0x49   : > { %s3429_s26 = scalar_lea.vmem (%p4532_p3), %s4510_s2, %s2593_s24  ;;  %s458_s19 = scalar_lea.vmem (%p4532_p3), [#allocation8], %s2592_s16 }
  0x4a   : > { %v2594_v16 = vld [vmem:[%s3429_s26 + $0x8] sm:$0xf] (%p4532_p3)  ;;  %v2595_v17 = vld [vmem:[%s3429_s26 + $0x20] sm:$0xf] (%p4532_p3)  ;;  %v2596_v18 = vld [vmem:[%s3429_s26 + $0x38] sm:$0xf] (%p4532_p3) }
  0x4b   : > { %481 = vst [vmem:[%s458_s19] sm:$0xf] (%p4532_p3), %v2594_v16  ;;  %483 = vst [vmem:[%s458_s19 + $0x4] sm:$0xf] (%p4532_p3), %v2595_v17  ;;  %v2597_v19 = vld [vmem:[%s3429_s26 + $0x50] sm:$0xf] (%p4532_p3) }
  0x4c   : > { %v2598_v20 = vld [vmem:[%s3429_s26 + $0x68] sm:$0xf] (%p4532_p3)  ;;  %485 = vst [vmem:[%s458_s19 + $0x8] sm:$0xf] (%p4532_p3), %v2596_v18  ;;  %487 = vst [vmem:[%s458_s19 + $0xc] sm:$0xf] (%p4532_p3), %v2597_v19 }
  0x4d   : > { %489 = vst [vmem:[%s458_s19 + $0x10] sm:$0xf] (%p4532_p3), %v2598_v20  ;;  %v2599_v21 = vld [vmem:[%s3429_s26 + $0x80] sm:$0xf] (%p4532_p3)  ;;  %v2600_v22 = vld [vmem:[%s3429_s26 + $0x98] sm:$0xf] (%p4532_p3) }
  0x4e   : > { %v2601_v23 = vld [vmem:[%s3429_s26 + $0xb0] sm:$0xf] (%p4532_p3)  ;;  %491 = vst [vmem:[%s458_s19 + $0x14] sm:$0xf] (%p4532_p3), %v2599_v21  ;;  %493 = vst [vmem:[%s458_s19 + $0x18] sm:$0xf] (%p4532_p3), %v2600_v22 }
  0x4f   : > { %495 = vst [vmem:[%s458_s19 + $0x1c] sm:$0xf] %v2601_v23  ;;  %v2602_v24 = vld [vmem:[%s3429_s26 + $0xc8] sm:$0xf]  ;;  %v2603_v25 = vld [vmem:[%s3429_s26 + $0xe0] sm:$0xf] }
  0x50   : > { %v2604_v26 = vld [vmem:[%s3429_s26 + $0xf8] sm:$0xf]  ;;  %497 = vst [vmem:[%s458_s19 + $0x20] sm:$0xf] %v2602_v24  ;;  %499 = vst [vmem:[%s458_s19 + $0x24] sm:$0xf] %v2603_v25 }
  0x51   : > { %501 = vst [vmem:[%s458_s19 + $0x28] sm:$0xf] %v2604_v26  ;;  %v2605_v27 = vld [vmem:[%s3429_s26 + $0x110] sm:$0xf]  ;;  %v2606_v28 = vld [vmem:[%s3429_s26 + $0x128] sm:$0xf] }
  0x52   : > { %v2607_v29 = vld [vmem:[%s3429_s26 + $0x140] sm:$0xf]  ;;  %503 = vst [vmem:[%s458_s19 + $0x2c] sm:$0xf] %v2605_v27  ;;  %505 = vst [vmem:[%s458_s19 + $0x30] sm:$0xf] %v2606_v28 }
  0x53   : > { %507 = vst [vmem:[%s458_s19 + $0x34] sm:$0xf] %v2607_v29  ;;  %v2608_v30 = vld [vmem:[%s3429_s26 + $0x158] sm:$0xf]  ;;  %v2609_v31 = vld [vmem:[%s3429_s26 + $0x170] sm:$0xf] }
  0x54   : > { %509 = vst [vmem:[%s458_s19 + $0x38] sm:$0xf] %v2608_v30  ;;  %511 = vst [vmem:[%s458_s19 + $0x3c] sm:$0xf] %v2609_v31 }
  0x55 PF: > { %p4533_p7 = scmp.ne.s32.totalorder %s4526_s21, 0 }
  0x56   : > { %s568_s18 = sand.u32 (%p4533_p7), 1, %s3193_s28   ;;  %s2611_s23 = sshll.u32 (%p4533_p7), %s3217_s12, 2 }
  0x57   : > { %566 = sbr.rel (!%p4533_p7) target bundleno = 100 (0x64), region = 122  ;;  %s2610_s17 = sshll.u32 (%p4533_p7), %s568_s18, 6 }
  0x58   : > { %s3454_s16 = scalar_lea.vmem (%p4533_p7), %s4511_s3, %s2611_s23  ;;  %s570_s21 = scalar_lea.vmem (%p4533_p7), [#allocation9], %s2610_s17 }
  0x59   : > { %v2612_v32 = vld [vmem:[%s3454_s16 + $0x10] sm:$0xf] (%p4533_p7)  ;;  %v2613_v33 = vld [vmem:[%s3454_s16 + $0x28] sm:$0xf] (%p4533_p7)  ;;  %v2614_v34 = vld [vmem:[%s3454_s16 + $0x40] sm:$0xf] (%p4533_p7) }
  0x5a   : > { %593 = vst [vmem:[%s570_s21] sm:$0xf] (%p4533_p7), %v2612_v32  ;;  %595 = vst [vmem:[%s570_s21 + $0x4] sm:$0xf] (%p4533_p7), %v2613_v33  ;;  %v2615_v35 = vld [vmem:[%s3454_s16 + $0x58] sm:$0xf] (%p4533_p7) }
  0x5b   : > { %v2616_v36 = vld [vmem:[%s3454_s16 + $0x70] sm:$0xf] (%p4533_p7)  ;;  %597 = vst [vmem:[%s570_s21 + $0x8] sm:$0xf] (%p4533_p7), %v2614_v34  ;;  %599 = vst [vmem:[%s570_s21 + $0xc] sm:$0xf] (%p4533_p7), %v2615_v35 }
  0x5c   : > { %601 = vst [vmem:[%s570_s21 + $0x10] sm:$0xf] (%p4533_p7), %v2616_v36  ;;  %v2617_v37 = vld [vmem:[%s3454_s16 + $0x88] sm:$0xf] (%p4533_p7)  ;;  %v2618_v38 = vld [vmem:[%s3454_s16 + $0xa0] sm:$0xf] (%p4533_p7) }
  0x5d   : > { %v2619_v39 = vld [vmem:[%s3454_s16 + $0xb8] sm:$0xf] (%p4533_p7)  ;;  %603 = vst [vmem:[%s570_s21 + $0x14] sm:$0xf] (%p4533_p7), %v2617_v37  ;;  %605 = vst [vmem:[%s570_s21 + $0x18] sm:$0xf] (%p4533_p7), %v2618_v38 }
  0x5e   : > { %607 = vst [vmem:[%s570_s21 + $0x1c] sm:$0xf] %v2619_v39  ;;  %v2620_v40 = vld [vmem:[%s3454_s16 + $0xd0] sm:$0xf]  ;;  %v2621_v41 = vld [vmem:[%s3454_s16 + $0xe8] sm:$0xf] }
  0x5f   : > { %v2622_v42 = vld [vmem:[%s3454_s16 + $0x100] sm:$0xf]  ;;  %609 = vst [vmem:[%s570_s21 + $0x20] sm:$0xf] %v2620_v40  ;;  %611 = vst [vmem:[%s570_s21 + $0x24] sm:$0xf] %v2621_v41 }
  0x60   : > { %613 = vst [vmem:[%s570_s21 + $0x28] sm:$0xf] %v2622_v42  ;;  %v2623_v43 = vld [vmem:[%s3454_s16 + $0x118] sm:$0xf]  ;;  %v2624_v44 = vld [vmem:[%s3454_s16 + $0x130] sm:$0xf] }
  0x61   : > { %v2625_v45 = vld [vmem:[%s3454_s16 + $0x148] sm:$0xf]  ;;  %615 = vst [vmem:[%s570_s21 + $0x2c] sm:$0xf] %v2623_v43  ;;  %617 = vst [vmem:[%s570_s21 + $0x30] sm:$0xf] %v2624_v44 }
  0x62   : > { %619 = vst [vmem:[%s570_s21 + $0x34] sm:$0xf] %v2625_v45  ;;  %v2626_v46 = vld [vmem:[%s3454_s16 + $0x160] sm:$0xf]  ;;  %v2627_v47 = vld [vmem:[%s3454_s16 + $0x178] sm:$0xf] }
  0x63   : > { %621 = vst [vmem:[%s570_s21 + $0x38] sm:$0xf] %v2626_v46  ;;  %623 = vst [vmem:[%s570_s21 + $0x3c] sm:$0xf] %v2627_v47 }
  0x64 PF: > { %681 = sbr.rel (%p3385_p5) target bundleno = 1163 (0x48b), region = 163 }
  0x6b   : > { %3184 = dma.done.wait (%p3381_p4), [#allocation6], 16  }
  0x6c   : > { %3186 = vsyncadd (%p3381_p4), [#allocation6], 4294967280  ;;  %s688_s20 = sand.u32 1, %s3205_s9   ;;  %s695_s15 = sand.u32 1, %s3197_s29  }
  0x6d   : > { %s3480_s26 = sshll.u32 %s688_s20, 6  ;;  %s2631_s19 = sshll.u32 %s695_s15, 6 }
  0x6e   : > { %s702_s18 = sand.u32 1, %s3189_s27   ;;  %s3484_s17 = scalar_lea.vmem [#allocation7], %s3480_s26 }
  0x6f   : > { %s2632_s23 = sshll.u32 %s702_s18, 6  ;;  %s697_s14 = scalar_lea.vmem [#allocation8], %s2631_s19 }
  0x70   : > { %s3486_s0 = scalar_lea.vmem [#allocation9], %s2632_s23 }
  0x71   : > { %708 = sfence }
  0x72   : > { %v3488_v48 = vld [vmem:[%s697_s14] sm:$0xff]   ;;  %v3490_v49 = vld [vmem:[%s697_s14 + $0x8] sm:$0xff]   ;;  %v3492_v50 = vld [vmem:[%s697_s14 + $0x10] sm:$0xff]   ;;  %s3224_s27 = smov 64   ;;  %s1212_s25 = sld [smem:[#allocation5 + %s3213_s11]]  ;;  %vm798_vm8 = vcmask 7168  }
  0x73   : > { %v2712_v51 = vunpack.c.l.bf16 %v3488_v48  ;;  %v2713_v52 = vunpack.c.h.bf16 %v3488_v48  ;;  %v2716_v53 = vunpack.c.l.bf16 %v3490_v49  ;;  %v2717_v54 = vunpack.c.h.bf16 %v3490_v49  ;;  %v3498_v55 = vld [vmem:[%s697_s14 + $0x18] sm:$0xff]   ;;  %v3504_v60 = vld [vmem:[%s697_s14 + $0x20] sm:$0xff]   ;;  %v3510_v62 = vld [vmem:[%s697_s14 + $0x28] sm:$0xff]   ;;  %p4548_p12 = scmp.ne.s32.totalorder %s4527_s22, 0 }
  0x74   : > { %v2720_v56 = vunpack.c.l.bf16 %v3492_v50  ;;  %v2721_v57 = vunpack.c.h.bf16 %v3492_v50  ;;  %v2724_v58 = vunpack.c.l.bf16 %v3498_v55  ;;  %v2725_v59 = vunpack.c.h.bf16 %v3498_v55  ;;  %v3530_v6 = vld [vmem:[%s697_s14 + $0x30] sm:$0xff]   ;;  %v3532_v7 = vld [vmem:[%s697_s14 + $0x38] sm:$0xff]   ;;  %v2679_v14 = vld [vmem:[%s3484_s17] sm:$0xff]  }
  0x75   : > { %v2986_v61 = vpack.i.bf16 %v2713_v52, %v2712_v51  ;;  %v2991_v0 = vpack.i.bf16 %v2717_v54, %v2716_v53  ;;  %v2728_v1 = vunpack.c.l.bf16 %v3504_v60  ;;  %v2729_v2 = vunpack.c.h.bf16 %v3504_v60  ;;  %v2782_v15 = vld [vmem:[%s3484_s17 + $0x8] sm:$0xff]   ;;  %v2783_v25 = vld [vmem:[%s3484_s17 + $0x10] sm:$0xff]   ;;  %v2784_v29 = vld [vmem:[%s3484_s17 + $0x18] sm:$0xff]  }
  0x76   : > { %v2996_v63 = vpack.i.bf16 %v2721_v57, %v2720_v56  ;;  %v3001_v3 = vpack.i.bf16 %v2725_v59, %v2724_v58  ;;  %v2732_v4 = vunpack.c.l.bf16 %v3510_v62  ;;  %v2733_v5 = vunpack.c.h.bf16 %v3510_v62  ;;  %v2785_v34 = vld [vmem:[%s3484_s17 + $0x20] sm:$0xff]   ;;  %v2786_v39 = vld [vmem:[%s3484_s17 + $0x28] sm:$0xff]   ;;  %v2787_v44 = vld [vmem:[%s3484_s17 + $0x30] sm:$0xff]  }
  0x77   : > { %2987 = vrot.lane.b32.xlu0 %v2986_v61, %s3224_s27  ;;  %v3006_v8 = vpack.i.bf16 %v2729_v2, %v2728_v1  ;;  %v2736_v9 = vunpack.c.l.bf16 %v3530_v6  ;;  %v2737_v10 = vunpack.c.h.bf16 %v3530_v6  ;;  %v2740_v12 = vunpack.c.l.bf16 %v3532_v7  ;;  %v1053_v50 = vld [vmem:[%s4514_s6 + $0x38] sm:$0xff]  ;;  %v1056_v55 = vld [vmem:[%s4514_s6 + $0x50] sm:$0xff] }
  0x78   : > { %2997 = vrot.lane.b32.xlu1 %v2996_v63, %s3224_s27  ;;  %v3011_v11 = vpack.i.bf16 %v2733_v5, %v2732_v4  ;;  %v2741_v13 = vunpack.c.h.bf16 %v3532_v7  ;;  %v2680_v17 = vunpack.c.l.bf16 %v2679_v14  ;;  %v2681_v19 = vunpack.c.h.bf16 %v2679_v14  ;;  %v2788_v63 = vld [vmem:[%s3484_s17 + $0x38] sm:$0xff]  }
  0x79   : > { %v3016_v16 = vpack.i.bf16 %v2737_v10, %v2736_v9  ;;  %v2684_v20 = vunpack.c.l.bf16 %v2782_v15  ;;  %v2685_v23 = vunpack.c.h.bf16 %v2782_v15  ;;  %v2688_v26 = vunpack.c.l.bf16 %v2783_v25  ;;  %v1057_v6 = vld [vmem:[%s4514_s6 + $0x58] sm:$0xff] }
  0x7a   : > { %v3021_v18 = vpack.i.bf16 %v2741_v13, %v2740_v12  ;;  %v3561_v21 = vmul.f32 0.088388346, %v2680_v17  ;;  %v3564_v22 = vmul.f32 0.088388346, %v2681_v19  ;;  %v2689_v28 = vunpack.c.h.bf16 %v2783_v25  ;;  %v1051_v17 = vld [vmem:[%s4514_s6 + $0x28] sm:$0xff]  ;;  %v1049_v19 = vld [vmem:[%s4514_s6 + $0x18] sm:$0xff] }
  0x7b   : > { %2992 = vrot.lane.b32.xlu0 %v2991_v0, %s3224_s27  ;;  %v3566_v24 = vmul.f32 0.088388346, %v2684_v20  ;;  %v3573_v27 = vmul.f32 0.088388346, %v2685_v23  ;;  %v3578_v30 = vmul.f32 0.088388346, %v2688_v26  ;;  %v2692_v31 = vunpack.c.l.bf16 %v2784_v29 }
  0x7c   : > { %3002 = vrot.lane.b32.xlu1 %v3001_v3, %s3224_s27  ;;  %v3582_v32 = vmul.f32 0.088388346, %v2689_v28  ;;  %v2693_v33 = vunpack.c.h.bf16 %v2784_v29  ;;  %v2696_v36 = vunpack.c.l.bf16 %v2785_v34  ;;  %v2697_v38 = vunpack.c.h.bf16 %v2785_v34  ;;  %v1110_v20 = vld [vmem:[%s4515_s7] sm:$0xff]  ;;  %v1047_v25 = vld [vmem:[%s4514_s6 + $0x8] sm:$0xff]  ;;  %v1061_v62 = vld [vmem:[%s4514_s6 + $0x78] sm:$0xff] }
  0x7d   : > { %v3587_v35 = vmul.f32 0.088388346, %v2692_v31  ;;  %v2700_v41 = vunpack.c.l.bf16 %v2786_v39  ;;  %v2701_v43 = vunpack.c.h.bf16 %v2786_v39  ;;  %v2704_v46 = vunpack.c.l.bf16 %v2787_v44  ;;  %v1046_v23 = vld [vmem:[%s4514_s6] sm:$0xff]  ;;  %v1111_v26 = vld [vmem:[%s4515_s7 + $0x8] sm:$0xff]  ;;  %v1125_v7 = vld [vmem:[%s4515_s7 + $0x78] sm:$0xff] }
  0x7e   : > { %v3591_v37 = vmul.f32 0.088388346, %v2693_v33  ;;  %v3596_v40 = vmul.f32 0.088388346, %v2696_v36  ;;  %v3600_v42 = vmul.f32 0.088388346, %v2697_v38  ;;  %v2705_v61 = vunpack.c.h.bf16 %v2787_v44 }
  0x7f   : > { %3007 = vrot.lane.b32.xlu0 %v3006_v8, %s3224_s27  ;;  %v3605_v45 = vmul.f32 0.088388346, %v2700_v41  ;;  %v3609_v47 = vmul.f32 0.088388346, %v2701_v43  ;;  %v3614_v0 = vmul.f32 0.088388346, %v2704_v46  ;;  %v2708_v3 = vunpack.c.l.bf16 %v2788_v63 }
  0x80   : > { %3012 = vrot.lane.b32.xlu1 %v3011_v11, %s3224_s27  ;;  %v3618_v8 = vmul.f32 0.088388346, %v2705_v61  ;;  %v2709_v11 = vunpack.c.h.bf16 %v2788_v63  ;;  %v1054_v28 = vld [vmem:[%s4514_s6 + $0x40] sm:$0xff]  ;;  %v1055_v29 = vld [vmem:[%s4514_s6 + $0x48] sm:$0xff]  ;;  %v1067_v31 = vmul.f32 %v2721_v57, %v1051_v17  ;;  %v1065_v38 = vmul.f32 %v2717_v54, %v1049_v19  ;;  %v1052_v41 = vld [vmem:[%s4514_s6 + $0x30] sm:$0xff] }
  0x81   : > { %v3622_v14 = vmul.f32 0.088388346, %v2708_v3  ;;  %v1114_v39 = vld [vmem:[%s4515_s7 + $0x20] sm:$0xff]  ;;  %v1063_v49 = vmul.f32 %v2713_v52, %v1047_v25  ;;  %v1115_v54 = vld [vmem:[%s4515_s7 + $0x28] sm:$0xff]  ;;  %v3698_v48 = vmul.f32 %v2729_v2, %v1055_v29  ;;  %v1112_v17 = vld [vmem:[%s4515_s7 + $0x10] sm:$0xff] }
  0x82   : > { %v3626_v15 = vmul.f32 0.088388346, %v2709_v11  ;;  %v1058_v44 = vld [vmem:[%s4514_s6 + $0x60] sm:$0xff]  ;;  %v1059_v46 = vld [vmem:[%s4514_s6 + $0x68] sm:$0xff]  ;;  %v1068_v11 = vmul.f32 %v2724_v58, %v1052_v41 }
  0x83   : > { %3017 = vrot.lane.b32.xlu0 %v3016_v16, %s3224_s27  ;;  %v1050_v16 = vld [vmem:[%s4514_s6 + $0x20] sm:$0xff]  ;;  %v3712_v19 = vmul.f32 %v2736_v9, %v1058_v44  ;;  %v3716_v58 = vmul.f32 %v2737_v10, %v1059_v46  ;;  %v1117_v9 = vld [vmem:[%s4515_s7 + $0x38] sm:$0xff]  ;;  %v1119_v44 = vld [vmem:[%s4515_s7 + $0x48] sm:$0xff] }
  0x84   : > { %3022 = vrot.lane.b32.xlu1 %v3021_v18, %s3224_s27  ;;  %v1048_v18 = vld [vmem:[%s4514_s6 + $0x10] sm:$0xff]  ;;  %v1066_v33 = vmul.f32 %v2720_v56, %v1050_v16  ;;  %v1069_v16 = vmul.f32 %v2725_v59, %v1053_v50 }
  0x85   : > { %v1064_v36 = vmul.f32 %v2716_v53, %v1048_v18  ;;  %v1062_v53 = vmul.f32 %v2712_v51, %v1046_v23  ;;  %v3694_v51 = vmul.f32 %v2728_v1, %v1054_v28  ;;  %v1113_v1 = vld [vmem:[%s4515_s7 + $0x18] sm:$0xff] }
  0x87   : > { %966 = vrot.lane.b32.xlu0 %v3561_v21, %s3224_s27 }
  0x88   : > { %968 = vrot.lane.b32.xlu1 %v3564_v22, %s3224_s27 }
  0x8b   : > { %970 = vrot.lane.b32.xlu0 %v3566_v24, %s3224_s27 }
  0x8c   : > { %972 = vrot.lane.b32.xlu1 %v3573_v27, %s3224_s27 }
  0x8f   : > { %974 = vrot.lane.b32.xlu0 %v3578_v30, %s3224_s27 }
  0x90   : > { %976 = vrot.lane.b32.xlu1 %v3582_v32, %s3224_s27 }
  0x93   : > { %978 = vrot.lane.b32.xlu0 %v3587_v35, %s3224_s27 }
  0x94   : > { %980 = vrot.lane.b32.xlu1 %v3591_v37, %s3224_s27 }
  0x97   : > { %982 = vrot.lane.b32.xlu0 %v3596_v40, %s3224_s27 }
  0x98   : > { %984 = vrot.lane.b32.xlu1 %v3600_v42, %s3224_s27 }
  0x9b   : > { %986 = vrot.lane.b32.xlu0 %v3605_v45, %s3224_s27 }
  0x9c   : > { %988 = vrot.lane.b32.xlu1 %v3609_v47, %s3224_s27 }
  0x9f   : > { %990 = vrot.lane.b32.xlu0 %v3614_v0, %s3224_s27 }
  0xa0   : > { %992 = vrot.lane.b32.xlu1 %v3618_v8, %s3224_s27 }
  0xa3   : > { %994 = vrot.lane.b32.xlu0 %v3622_v14, %s3224_s27 }
  0xa4   : > { %996 = vrot.lane.b32.xlu1 %v3626_v15, %s3224_s27 }
  0xe9   : > { %v2988_v34 = vpop.permute.xlu0 %2987 }
  0xea   : > { %v2990_v56 = vunpack.i.h.bf16 %v2988_v34  ;;  %v2989_v57 = vunpack.i.l.bf16 %v2988_v34  ;;  %v2998_v43 = vpop.permute.xlu1 %2997 }
  0xeb   : > { %v3000_v61 = vunpack.i.h.bf16 %v2998_v43  ;;  %v2999_v63 = vunpack.i.l.bf16 %v2998_v43  ;;  %v1118_v43 = vld [vmem:[%s4515_s7 + $0x40] sm:$0xff] }
  0xec   : > { %v1127_v52 = vmul.f32 %v2990_v56, %v1111_v26  ;;  %v1126_v3 = vmul.f32 %v2989_v57, %v1110_v20  ;;  %v1116_v26 = vld [vmem:[%s4515_s7 + $0x30] sm:$0xff]  ;;  %v1072_v57 = vmul.f32 %v2732_v4, %v1056_v55 }
  0xed   : > { %v2993_v18 = vpop.permute.xlu0 %2992  ;;  %v1131_v60 = vmul.f32 %v3000_v61, %v1115_v54  ;;  %v1130_v2 = vmul.f32 %v2999_v63, %v1114_v39  ;;  %v1060_v4 = vld [vmem:[%s4514_s6 + $0x70] sm:$0xff] }
  0xee   : > { %v2995_v59 = vunpack.i.h.bf16 %v2993_v18  ;;  %v2994_v20 = vunpack.i.l.bf16 %v2993_v18  ;;  %v1142_v23 = vadd.f32 %v1126_v3, %v1062_v53  ;;  %v1143_v25 = vadd.f32 %v1127_v52, %v1063_v49  ;;  %v3003_v28 = vpop.permute.xlu1 %3002  ;;  %v1120_v3 = vld [vmem:[%s4515_s7 + $0x50] sm:$0xff] }
  0xef   : > { %v3005_v10 = vunpack.i.h.bf16 %v3003_v28  ;;  %v3004_v29 = vunpack.i.l.bf16 %v3003_v28  ;;  %v1146_v34 = vadd.f32 %v1130_v2, %v1066_v33  ;;  %v1147_v39 = vadd.f32 %v1131_v60, %v1067_v31 }
  0xf0   : > { %v1129_v41 = vmul.f32 %v2995_v59, %v1113_v1  ;;  %v1128_v50 = vmul.f32 %v2994_v20, %v1112_v17  ;;  %v1166_v56 = vpack.c.bf16 %v1143_v25, %v1142_v23  ;;  %v1073_v31 = vmul.f32 %v2733_v5, %v1057_v6  ;;  %v1121_v17 = vld [vmem:[%s4515_s7 + $0x58] sm:$0xff] }
  0xf1   : > { %v1133_v53 = vmul.f32 %v3005_v10, %v1117_v9  ;;  %v1132_v49 = vmul.f32 %v3004_v29, %v1116_v26  ;;  %v3732_v54 = vpack.c.bf16 %v1147_v39, %v1146_v34  ;;  %v3008_v33 = vpop.permute.xlu0 %3007  ;;  %v1076_v59 = vmul.f32 %v2740_v12, %v1060_v4  ;;  %v1122_v26 = vld [vmem:[%s4515_s7 + $0x60] sm:$0xff]  ;;  %v1124_v34 = vld [vmem:[%s4515_s7 + $0x70] sm:$0xff]  ;;  %v935_v39 = vld [vmem:[%s4512_s4 + $0x8] sm:$0xff] }
  0xf2   : > { %v1145_v46 = vadd.f32 %v1129_v41, %v1065_v38  ;;  %v1144_v61 = vadd.f32 %v1128_v50, %v1064_v36  ;;  %2835 = vmatprep.subr.bf16.mxu0 %v1166_v56  ;;  %v3010_v63 = vunpack.i.h.bf16 %v3008_v33  ;;  %v3009_v52 = vunpack.i.l.bf16 %v3008_v33  ;;  %v3013_v1 = vpop.permute.xlu1 %3012  ;;  %v934_v12 = vld [vmem:[%s4512_s4] sm:$0xff] }
  0xf3   : > { %2836 = vmatpush3.bf16.xpose.msra.mxu0 %v1166_v56  ;;  %v1148_v5 = vadd.f32 %v1132_v49, %v1068_v11  ;;  %v1149_v38 = vadd.f32 %v1133_v53, %v1069_v16  ;;  %v3015_v36 = vunpack.i.h.bf16 %v3013_v1  ;;  %v3014_v18 = vunpack.i.l.bf16 %v3013_v1  ;;  %v1123_v11 = vld [vmem:[%s4515_s7 + $0x68] sm:$0xff] }
  0xf4   : > { %v1167_v60 = vpack.c.bf16 %v1145_v46, %v1144_v61  ;;  %v1135_v2 = vmul.f32 %v3010_v63, %v1119_v44  ;;  %v1134_v55 = vmul.f32 %v3009_v52, %v1118_v43  ;;  %v1077_v9 = vmul.f32 %v2741_v13, %v1061_v62  ;;  %v999_v44 = vld [vmem:[%s4513_s5 + $0x8] sm:$0xff]  ;;  %v936_v61 = vld [vmem:[%s4512_s4 + $0x10] sm:$0xff] }
  0xf5   : > { %v3756_v20 = vpack.c.bf16 %v1149_v38, %v1148_v5  ;;  %v1137_v23 = vmul.f32 %v3015_v36, %v1121_v17  ;;  %v1136_v25 = vmul.f32 %v3014_v18, %v1120_v3  ;;  %v3018_v16 = vpop.permute.xlu0 %3017  ;;  %v950_v33 = vmul.f32 %v934_v12, %v3561_v21  ;;  %v937_v21 = vld [vmem:[%s4512_s4 + $0x18] sm:$0xff]  ;;  %v1000_v36 = vld [vmem:[%s4513_s5 + $0x10] sm:$0xff] }
  0xf6   : > { %2837 = vmatprep.subr.bf16.mxu0 %v1167_v60  ;;  %v1151_v28 = vadd.f32 %v1135_v2, %v3698_v48  ;;  %v1150_v6 = vadd.f32 %v1134_v55, %v3694_v51  ;;  %v3020_v10 = vunpack.i.h.bf16 %v3018_v16  ;;  %v3019_v29 = vunpack.i.l.bf16 %v3018_v16  ;;  %v3023_v13 = vpop.permute.xlu1 %3022  ;;  %v998_v51 = vld [vmem:[%s4513_s5] sm:$0xff] }
  0xf7   : > { %v1152_v41 = vadd.f32 %v1136_v25, %v1072_v57  ;;  %v1153_v50 = vadd.f32 %v1137_v23, %v1073_v31  ;;  %v3025_v48 = vunpack.i.h.bf16 %v3023_v13  ;;  %v3024_v56 = vunpack.i.l.bf16 %v3023_v13  ;;  %v938_v23 = vld [vmem:[%s4512_s4 + $0x20] sm:$0xff] }
  0xf8   : > { %v3783_v53 = vpack.c.bf16 %v1151_v28, %v1150_v6  ;;  %v1139_v49 = vmul.f32 %v3020_v10, %v1123_v11  ;;  %v1138_v43 = vmul.f32 %v3019_v29, %v1122_v26  ;;  %v951_v63 = vmul.f32 %v935_v39, %v3564_v22  ;;  %v939_v11 = vld [vmem:[%s4512_s4 + $0x28] sm:$0xff]  ;;  %v941_v39 = vld [vmem:[%s4512_s4 + $0x38] sm:$0xff] }
  0xf9   : > { %v3789_v4 = vpack.c.bf16 %v1153_v50, %v1152_v41  ;;  %v1141_v57 = vmul.f32 %v3025_v48, %v1125_v7  ;;  %v1140_v31 = vmul.f32 %v3024_v56, %v1124_v34  ;;  %v967_v46 = vpop.permute.xlu0 %966  ;;  %v954_v28 = vmul.f32 %v938_v23, %v3578_v30  ;;  %v940_v34 = vld [vmem:[%s4512_s4 + $0x30] sm:$0xff]  ;;  %v1005_v48 = vld [vmem:[%s4513_s5 + $0x38] sm:$0xff] }
  0xfa   : > { %v1155_v52 = vadd.f32 %v1139_v49, %v3716_v58  ;;  %v1154_v3 = vadd.f32 %v1138_v43, %v3712_v19  ;;  %v969_v17 = vpop.permute.xlu1 %968  ;;  %v1014_v1 = vmul.f32 %v998_v51, %v967_v46  ;;  %v1001_v19 = vld [vmem:[%s4513_s5 + $0x18] sm:$0xff]  ;;  %v952_v58 = vmul.f32 %v936_v61, %v3566_v24  ;;  %v1002_v24 = vld [vmem:[%s4513_s5 + $0x20] sm:$0xff]  ;;  %v1007_v61 = vld [vmem:[%s4513_s5 + $0x48] sm:$0xff] }
  0xfb   : > { %2838 = vmatpush3.bf16.xpose.msra.mxu0 %v1167_v60  ;;  %v1015_v62 = vmul.f32 %v999_v44, %v969_v17  ;;  %v1156_v5 = vadd.f32 %v1140_v31, %v1076_v59  ;;  %v1157_v38 = vadd.f32 %v1141_v57, %v1077_v9  ;;  %v953_v60 = vmul.f32 %v937_v21, %v3573_v27  ;;  %v1003_v27 = vld [vmem:[%s4513_s5 + $0x28] sm:$0xff]  ;;  %v942_v43 = vld [vmem:[%s4512_s4 + $0x40] sm:$0xff] }
  0xfc   : > { %2839 = vmatprep.subr.bf16.mxu0 %v3732_v54  ;;  %v3804_v22 = vpack.c.bf16 %v1155_v52, %v1154_v3  ;;  %v1030_v18 = vadd.f32 %v1014_v1, %v950_v33  ;;  %v955_v10 = vmul.f32 %v939_v11, %v3582_v32  ;;  %v1004_v32 = vld [vmem:[%s4513_s5 + $0x30] sm:$0xff]  ;;  %v956_v56 = vmul.f32 %v940_v34, %v3587_v35  ;;  %v943_v57 = vld [vmem:[%s4512_s4 + $0x48] sm:$0xff]  ;;  %v1006_v35 = vld [vmem:[%s4513_s5 + $0x40] sm:$0xff] }
  0xfd   : > { %v3810_v2 = vpack.c.bf16 %v1157_v38, %v1156_v5  ;;  %v971_v55 = vpop.permute.xlu0 %970  ;;  %v1031_v59 = vadd.f32 %v1015_v62, %v951_v63  ;;  %v958_v63 = vmul.f32 %v942_v43, %v3596_v40  ;;  %v959_v3 = vmul.f32 %v943_v57, %v3600_v42  ;;  %v944_v1 = vld [vmem:[%s4512_s4 + $0x50] sm:$0xff]  ;;  %v945_v5 = vld [vmem:[%s4512_s4 + $0x58] sm:$0xff]  ;;  %v1010_v11 = vld [vmem:[%s4513_s5 + $0x60] sm:$0xff] }
  0xfe   : > { %v973_v25 = vpop.permute.xlu1 %972  ;;  %v1016_v26 = vmul.f32 %v1000_v36, %v971_v55  ;;  %v1008_v40 = vld [vmem:[%s4513_s5 + $0x50] sm:$0xff]  ;;  %v946_v55 = vld [vmem:[%s4512_s4 + $0x60] sm:$0xff] }
  0xff   : > { %v1017_v16 = vmul.f32 %v1001_v19, %v973_v25  ;;  %v1158_v9 = vpack.c.bf16 %v1031_v59, %v1030_v18  ;;  %v1009_v19 = vld [vmem:[%s4513_s5 + $0x58] sm:$0xff]  ;;  %v947_v25 = vld [vmem:[%s4512_s4 + $0x68] sm:$0xff] }
 0x100   : > { %v3822_v12 = vadd.f32 %v1016_v26, %v952_v58  ;;  %v960_v58 = vmul.f32 %v944_v1, %v3605_v45 }
 0x101   : > { %v3828_v6 = vadd.f32 %v1017_v16, %v953_v60  ;;  %2851 = vmatprep.mubr.bf16.mxu0 %v1158_v9  ;;  %v975_v29 = vpop.permute.xlu0 %974  ;;  %v961_v60 = vmul.f32 %v945_v5, %v3609_v47  ;;  %v1011_v47 = vld [vmem:[%s4513_s5 + $0x68] sm:$0xff]  ;;  %v962_v9 = vmul.f32 %v946_v55, %v3614_v0  ;;  %v1012_v0 = vld [vmem:[%s4513_s5 + $0x70] sm:$0xff] }
 0x102   : > { %v977_v7 = vpop.permute.xlu1 %976  ;;  %v1018_v13 = vmul.f32 %v1002_v24, %v975_v29 }
 0x103   : > { %2840 = vmatpush3.bf16.xpose.msra.mxu0 %v3732_v54  ;;  %v1019_v41 = vmul.f32 %v1003_v27, %v977_v7  ;;  %v1159_v30 = vpack.c.bf16 %v3828_v6, %v3822_v12  ;;  %v957_v54 = vmul.f32 %v941_v39, %v3591_v37  ;;  %v963_v27 = vmul.f32 %v947_v25, %v3618_v8  ;;  %v949_v7 = vld [vmem:[%s4512_s4 + $0x78] sm:$0xff] }
 0x104   : > { %2841 = vmatprep.subr.bf16.mxu0 %v3756_v20  ;;  %v3844_v50 = vadd.f32 %v1018_v13, %v954_v28 }
 0x105   : > { %v3850_v51 = vadd.f32 %v1019_v41, %v955_v10  ;;  %v979_v49 = vpop.permute.xlu0 %978  ;;  %v948_v10 = vld [vmem:[%s4512_s4 + $0x70] sm:$0xff]  ;;  %v1013_v41 = vld [vmem:[%s4513_s5 + $0x78] sm:$0xff] }
 0x106   : > { %v981_v44 = vpop.permute.xlu1 %980  ;;  %v1020_v33 = vmul.f32 %v1004_v32, %v979_v49  ;;  %v964_v32 = vmul.f32 %v948_v10, %v3622_v14  ;;  %v1174_v14 = vlaneseq }
 0x107   : > { %v1021_v31 = vmul.f32 %v1005_v48, %v981_v44  ;;  %v1160_v46 = vpack.c.bf16 %v3850_v51, %v3844_v50  ;;  %v965_v48 = vmul.f32 %v949_v7, %v3626_v15 }
 0x108   : > { %v3864_v37 = vadd.f32 %v1020_v33, %v956_v56  ;;  %v3926_v15 = vshrl.u32 %v1174_v14, 7 }
 0x109   : > { %v1037_v52 = vadd.f32 %v1021_v31, %v957_v54  ;;  %v983_v17 = vpop.permute.xlu0 %982 }
 0x10a   : > { %v985_v21 = vpop.permute.xlu1 %984  ;;  %v1022_v62 = vmul.f32 %v1006_v35, %v983_v17  ;;  %v1176_v57 = vadd.s32 8, %v3926_v15  ;;  %v1178_v12 = vadd.s32 24, %v3926_v15  ;;  %v3938_v35 = vstv %s1212_s25 }
 0x10b   : > { %2842 = vmatpush3.bf16.xpose.msra.mxu0 %v3756_v20  ;;  %v1023_v38 = vmul.f32 %v1007_v61, %v985_v21  ;;  %v1161_v36 = vpack.c.bf16 %v1037_v52, %v3864_v37  ;;  %v1179_v37 = vadd.s32 32, %v3926_v15  ;;  %v1180_v61 = vadd.s32 40, %v3926_v15 }
 0x10c   : > { %2843 = vmatprep.subr.bf16.mxu0 %v3783_v53  ;;  %v1038_v42 = vadd.f32 %v1022_v62, %v958_v63  ;;  %v3949_v62 = vadd.s32 56, %v3926_v15 }
 0x10d   : > { %v1039_v18 = vadd.f32 %v1023_v38, %v959_v3  ;;  %v987_v20 = vpop.permute.xlu0 %986 }
 0x10e   : > { %v989_v59 = vpop.permute.xlu1 %988  ;;  %v1024_v23 = vmul.f32 %v1008_v40, %v987_v20 }
 0x10f   : > { %v1025_v26 = vmul.f32 %v1009_v19, %v989_v59  ;;  %v1162_v45 = vpack.c.bf16 %v1039_v18, %v1038_v42 }
 0x110   : > { %v1040_v16 = vadd.f32 %v1024_v23, %v960_v58  ;;  %v3958_v58 = vadd.s32 80, %v3926_v15  ;;  %v3964_v23 = vadd.s32 64, %v3926_v15 }
 0x111   : > { %v1041_v24 = vadd.f32 %v1025_v26, %v961_v60  ;;  %v991_v28 = vpop.permute.xlu0 %990 }
 0x112   : > { %v993_v29 = vpop.permute.xlu1 %992  ;;  %v1026_v34 = vmul.f32 %v1010_v11, %v991_v28 }
 0x113   : > { %2844 = vmatpush3.bf16.xpose.msra.mxu0 %v3783_v53  ;;  %v1027_v13 = vmul.f32 %v1011_v47, %v993_v29  ;;  %v1163_v39 = vpack.c.bf16 %v1041_v24, %v1040_v16  ;;  %v3969_v16 = vadd.s32 72, %v3926_v15 }
 0x114   : > { %2845 = vmatprep.subr.bf16.mxu0 %v3789_v4  ;;  %v1042_v8 = vadd.f32 %v1026_v34, %v962_v9 }
 0x115   : > { %v1043_v50 = vadd.f32 %v1027_v13, %v963_v27  ;;  %v995_v56 = vpop.permute.xlu0 %994  ;;  %v3986_v13 = vadd.s32 88, %v3926_v15 }
 0x116   : > { %v997_v53 = vpop.permute.xlu1 %996  ;;  %v1028_v51 = vmul.f32 %v1012_v0, %v995_v56 }
 0x117   : > { %v1029_v54 = vmul.f32 %v1013_v41, %v997_v53  ;;  %v1164_v49 = vpack.c.bf16 %v1043_v50, %v1042_v8  ;;  %v4000_v50 = vadd.s32 112, %v3926_v15 }
 0x118   : > { %v1044_v43 = vadd.f32 %v1028_v51, %v964_v32  ;;  %v4007_v51 = vadd.s32 96, %v3926_v15 }
 0x119   : > { %v1045_v44 = vadd.f32 %v1029_v54, %v965_v48 }
 0x11b   : > { %2846 = vmatpush3.bf16.xpose.msra.mxu0 %v3789_v4  ;;  %v1165_v33 = vpack.c.bf16 %v1045_v44, %v1044_v43  ;;  %v1177_v4 = vadd.s32 16, %v3926_v15 }
 0x11c   : > { %2847 = vmatprep.subr.bf16.mxu0 %v3804_v22 }
 0x123   : > { %2848 = vmatpush3.bf16.xpose.msra.mxu0 %v3804_v22  ;;  %v3929_v22 = vand.u32 127, %v1174_v14 }
 0x124   : > { %2849 = vmatprep.subr.bf16.mxu0 %v3810_v2 }
 0x125   : > { %v1230_v31 = vsub.s32 %v3929_v22, %v1176_v57  ;;  %v1232_v63 = vsub.s32 %v3929_v22, %v1178_v12  ;;  %vm1215_vm0 = vcmp.le.s32.totalorder %v3929_v22, %v1177_v4  ;;  %v1233_v21 = vsub.s32 %v3929_v22, %v1179_v37 }
 0x126   : > { %v1234_v5 = vsub.s32 %v3929_v22, %v1180_v61  ;;  %vm1213_vm1 = vcmp.le.s32.totalorder %v3929_v22, %v3926_v15  ;;  %vm1214_vm2 = vcmp.le.s32.totalorder %v3929_v22, %v1176_v57  ;;  %v1236_v60 = vsub.s32 %v3929_v22, %v3949_v62 }
 0x127   : > { %v1246_v17 = vcvt.s32.f32 %v1230_v31  ;;  %v1248_v38 = vcvt.s32.f32 %v1232_v63  ;;  %v1249_v18 = vcvt.s32.f32 %v1233_v21  ;;  %vm1216_vm3 = vcmp.le.s32.totalorder %v3929_v22, %v1178_v12 }
 0x128   : > { %v1250_v20 = vcvt.s32.f32 %v1234_v5  ;;  %v1239_v24 = vsub.s32 %v3929_v22, %v3958_v58  ;;  %vm1217_vm5 = vcmp.le.s32.totalorder %v3929_v22, %v1179_v37  ;;  %v1252_v10 = vcvt.s32.f32 %v1236_v60 }
 0x129   : > { %v1263_v42 = vmul.f32 %v3938_v35, %v1246_v17  ;;  %v1265_v59 = vmul.f32 %v3938_v35, %v1248_v38  ;;  %v1266_v28 = vmul.f32 %v3938_v35, %v1249_v18  ;;  %vm1218_vm6 = vcmp.le.s32.totalorder %v3929_v22, %v1180_v61 }
 0x12a   : > { %v1267_v29 = vmul.f32 %v3938_v35, %v1250_v20  ;;  %v1237_v7 = vsub.s32 %v3929_v22, %v3964_v23  ;;  %v1238_v8 = vsub.s32 %v3929_v22, %v3969_v16  ;;  %vm1220_vm7 = vcmp.le.s32.totalorder %v3929_v22, %v3949_v62 }
 0x12b   : > { %2850 = vmatpush3.bf16.xpose.msra.mxu0 %v3810_v2  ;;  %v1231_v2 = vsub.s32 %v3929_v22, %v1177_v4  ;;  %v1281_v0 = vsel %vm1216_vm3, %v1265_v59, -1e+30  ;;  %v1255_v32 = vcvt.s32.f32 %v1239_v24  ;;  %v1282_v48 = vsel %vm1217_vm5, %v1266_v28, -1e+30 }
 0x12c   : > { %v1269_v56 = vmul.f32 %v3938_v35, %v1252_v10  ;;  %v1283_v53 = vsel %vm1218_vm6, %v1267_v29, -1e+30  ;;  %v1240_v43 = vsub.s32 %v3929_v22, %v3986_v13  ;;  %v1254_v4 = vcvt.s32.f32 %v1238_v8 }
 0x12d   : > { %v1247_v6 = vcvt.s32.f32 %v1231_v2  ;;  %v4016_v2 = vadd.s32 104, %v3926_v15  ;;  %v3225_v57 = vmov -1e+30   ;;  %vm1223_vm9 = vcmp.le.s32.totalorder %v3929_v22, %v3958_v58 }
 0x12e   : > { %801 = vst.msk [vmem:[#allocation2 + $0x10] sm:$0xff] %vm798_vm8, %v3225_v57  ;;  %799 = vst.msk [vmem:[#allocation2] sm:$0xff] %vm798_vm8, %v3225_v57  ;;  %v1241_v61 = vsub.s32 %v3929_v22, %v4007_v51  ;;  %v4052_v17 = vadd.s32 120, %v3926_v15  ;;  %vm1221_vm10 = vcmp.le.s32.totalorder %v3929_v22, %v3964_v23  ;;  %vm1222_vm11 = vcmp.le.s32.totalorder %v3929_v22, %v3969_v16 }
 0x12f   : > { %v1264_v52 = vmul.f32 %v3938_v35, %v1247_v6  ;;  %800 = vst.msk [vmem:[#allocation2 + $0x8] sm:$0xff] %vm798_vm8, %v3225_v57  ;;  %802 = vst.msk [vmem:[#allocation2 + $0x18] sm:$0xff] %vm798_vm8, %v3225_v57  ;;  %v1272_v6 = vmul.f32 %v3938_v35, %v1255_v32  ;;  %v1242_v21 = vsub.s32 %v3929_v22, %v4016_v2  ;;  %v3226_v24 = vmov 0  }
 0x130   : > { %803 = vst.msk [vmem:[#allocation2 + $0x20] sm:$0xff] %vm798_vm8, %v3225_v57  ;;  %804 = vst.msk [vmem:[#allocation2 + $0x28] sm:$0xff] %vm798_vm8, %v3225_v57  ;;  %vm1224_vm12 = vcmp.le.s32.totalorder %v3929_v22, %v3986_v13  ;;  %vm1227_vm13 = vcmp.le.s32.totalorder %v3929_v22, %v4000_v50  ;;  %vm1225_vm14 = vcmp.le.s32.totalorder %v3929_v22, %v4007_v51  ;;  %3027 = vset.pattern.permute.xlu0 %v3226_v24  ;;  %v3028_v51 = vld [vmem:[%s3486_s0] sm:$0xff]  }
 0x131   : > { %805 = vst.msk [vmem:[#allocation2 + $0x30] sm:$0xff] %vm798_vm8, %v3225_v57  ;;  %806 = vst.msk [vmem:[#allocation2 + $0x38] sm:$0xff] %vm798_vm8, %v3225_v57  ;;  %v1288_v62 = vsel %vm1223_vm9, %v1272_v6, -1e+30  ;;  %v1258_v20 = vcvt.s32.f32 %v1242_v21  ;;  %3026 = vset.pattern.permute.xlu1 %v3226_v24  ;;  %vm1226_vm15 = vcmp.le.s32.totalorder %v3929_v22, %v4016_v2  ;;  %2867 = vmatprep.subr.bf16.mxu1 %v3028_v51 }
 0x132   : > { %2852 = vmatmul.mubr.bf16.vlgmr.msra.gmra.mrb[0].mxu0 %v1159_v30  ;;  %v1229_v30 = vsub.s32 %v3929_v22, %v3926_v15  ;;  %807 = vst.msk [vmem:[#allocation2 + $0x40] sm:$0xff] %vm798_vm8, %v3225_v57  ;;  %808 = vst.msk [vmem:[#allocation2 + $0x48] sm:$0xff] %vm798_vm8, %v3225_v57  ;;  %2868 = vmatpush3.bf16.msra.mxu1 %v3028_v51 }
 0x133   : > { %2855 = vmatprep.mubr.bf16.mxu0 %v1160_v46  ;;  %v1181_v46 = vadd.s32 48, %v3926_v15  ;;  %809 = vst.msk [vmem:[#allocation2 + $0x50] sm:$0xff] %vm798_vm8, %v3225_v57  ;;  %810 = vst.msk [vmem:[#allocation2 + $0x58] sm:$0xff] %vm798_vm8, %v3225_v57  ;;  %v1257_v15 = vcvt.s32.f32 %v1241_v61 }
 0x134   : > { %v1245_v3 = vcvt.s32.f32 %v1229_v30  ;;  %811 = vst.msk [vmem:[#allocation2 + $0x60] sm:$0xff] %vm798_vm8, %v3225_v57  ;;  %812 = vst.msk [vmem:[#allocation2 + $0x68] sm:$0xff] %vm798_vm8, %v3225_v57  ;;  %v1243_v30 = vsub.s32 %v3929_v22, %v4000_v50 }
 0x135   : > { %v1235_v1 = vsub.s32 %v3929_v22, %v1181_v46  ;;  %vm1219_vm4 = vcmp.le.s32.totalorder %v3929_v22, %v1181_v46  ;;  %813 = vst.msk [vmem:[#allocation2 + $0x70] sm:$0xff] %vm798_vm8, %v3225_v57  ;;  %814 = vst.msk [vmem:[#allocation2 + $0x78] sm:$0xff] %vm798_vm8, %v3225_v57  ;;  %v1285_v46 = vsel %vm1220_vm7, %v1269_v56, -1e+30 }
 0x136   : > { %v1262_v40 = vmul.f32 %v3938_v35, %v1245_v3  ;;  %v1256_v3 = vcvt.s32.f32 %v1240_v43  ;;  %v1259_v5 = vcvt.s32.f32 %v1243_v30  ;;  %v4154_v61 = vld [vmem:[#allocation2 + $0x18] sm:$0xff] }
 0x137   : > { %v1251_v19 = vcvt.s32.f32 %v1235_v1  ;;  %v1271_v1 = vmul.f32 %v3938_v35, %v1254_v4  ;;  %v4135_v4 = vld [vmem:[#allocation2] sm:$0xff] }
 0x138   : > { %v1278_v26 = vsel %vm1213_vm1, %v1262_v40, -1e+30  ;;  %v1276_v59 = vmul.f32 %v3938_v35, %v1259_v5  ;;  %v4168_v5 = vld [vmem:[#allocation2 + $0x20] sm:$0xff] }
 0x139   : > { %v1268_v9 = vmul.f32 %v3938_v35, %v1251_v19  ;;  %v1244_v19 = vsub.s32 %v3929_v22, %v4052_v17  ;;  %v1287_v60 = vsel %vm1222_vm11, %v1271_v1, -1e+30 }
 0x13a   : > { %2856 = vmatmul.mubr.bf16.gmra.mrb[4].mxu0 %v1161_v36  ;;  %v1280_v36 = vsel %vm1215_vm0, %v1264_v52, -1e+30  ;;  %vm1228_vm0 = vcmp.le.s32.totalorder %v3929_v22, %v4052_v17 }
 0x13b   : > { %2859 = vmatprep.mubr.bf16.mxu0 %v1162_v45  ;;  %v1279_v45 = vsel %vm1214_vm2, %v1263_v42, -1e+30  ;;  %v1284_v41 = vsel %vm1219_vm4, %v1268_v9, -1e+30  ;;  %v1273_v42 = vmul.f32 %v3938_v35, %v1256_v3  ;;  %v1275_v9 = vmul.f32 %v3938_v35, %v1258_v20  ;;  %v3030_v3 = vld [vmem:[%s3486_s0 + $0x10] sm:$0xff]  }
 0x13c   : > { %v4229_v51 = vld [vmem:[#allocation2 + $0x70] sm:$0xff] }
 0x13d   : > { %v1291_v8 = vsel %vm1226_vm15, %v1275_v9, -1e+30 }
 0x142   : > { %2860 = vmatmul.mubr.bf16.gmra.mrb[8].mxu0 %v1163_v39 }
 0x143   : > { %2863 = vmatprep.mubr.bf16.mxu0 %v1164_v49  ;;  %v1253_v49 = vcvt.s32.f32 %v1237_v7 }
 0x145   : > { %v1270_v52 = vmul.f32 %v3938_v35, %v1253_v49  ;;  %v4128_v49 = vld [vmem:[#allocation2 + $0x10] sm:$0xff] }
 0x147   : > { %v1286_v40 = vsel %vm1221_vm10, %v1270_v52, -1e+30 }
 0x14a   : > { %2864 = vmatmul.mubr.bf16.gmra.mrb[12].mxu0 %v1165_v33 }
 0x205   : > { %v2853_v55 = vpop.f32.mrb[0].mxu0 }
 0x206   : > { %v3966_v25 = vadd.f32 %v2853_v55, %v1280_v36  ;;  %v1328_v11 = vpop.f32.mrb[1].mxu0 }
 0x207   : > { %v2854_v47 = vpop.f32.mrb[2].mxu0  ;;  %v3988_v39 = vadd.f32 %v1328_v11, %v1278_v26  ;;  %v1274_v11 = vmul.f32 %v3938_v35, %v1257_v15  ;;  %v4170_v15 = vld [vmem:[#allocation2 + $0x28] sm:$0xff] }
 0x208   : > { %1411 = vmax.xlane.f32.xlu0 %v3966_v25  ;;  %v1331_v27 = vpop.f32.mrb[3].mxu0  ;;  %v4011_v44 = vadd.f32 %v2854_v47, %v1281_v0  ;;  %v1260_v47 = vcvt.s32.f32 %v1244_v19 }
 0x209   : > { %v3980_v34 = vadd.f32 %v1331_v27, %v1279_v45  ;;  %v1289_v45 = vsel %vm1224_vm12, %v1273_v42, -1e+30  ;;  %v1292_v27 = vsel %vm1227_vm13, %v1276_v59, -1e+30  ;;  %v1290_v29 = vsel %vm1225_vm14, %v1274_v11, -1e+30 }
 0x20a   : > { %v1277_v7 = vmul.f32 %v3938_v35, %v1260_v47  ;;  %v3031_v42 = vld [vmem:[%s3486_s0 + $0x18] sm:$0xff]  }
 0x20b   : > { %1409 = vmax.xlane.f32.xlu1 %v3980_v34  ;;  %v4190_v59 = vld [vmem:[#allocation2 + $0x38] sm:$0xff] }
 0x20c   : > { %1407 = vmax.xlane.f32.xlu0 %v3988_v39  ;;  %v1293_v35 = vsel %vm1228_vm0, %v1277_v7, -1e+30 }
 0x20d   : > { %v2857_v54 = vpop.f32.mrb[4].mxu0 }
 0x20e   : > { %v4013_v33 = vadd.f32 %v2857_v54, %v1284_v41  ;;  %v1344_v14 = vpop.f32.mrb[5].mxu0  ;;  %v3029_v54 = vld [vmem:[%s3486_s0 + $0x8] sm:$0xff]  }
 0x20f   : > { %v2858_v12 = vpop.f32.mrb[6].mxu0  ;;  %v4037_v31 = vadd.f32 %v1344_v14, %v1282_v48  ;;  %v3227_v48 = vmov 0.0   ;;  %2869 = vmatprep.subr.bf16.mxu1 %v3029_v54  ;;  %v4133_v14 = vld [vmem:[#allocation2 + $0x8] sm:$0xff] }
 0x210   : > { %1419 = vmax.xlane.f32.xlu1 %v4013_v33  ;;  %1413 = vmax.xlane.f32.xlu0 %v4011_v44  ;;  %v1347_v37 = vpop.f32.mrb[7].mxu0  ;;  %v4061_v38 = vadd.f32 %v2858_v12, %v1285_v46  ;;  %816 = vst.msk [vmem:[#allocation3 + $0x8] sm:$0xff] %vm798_vm8, %v3227_v48  ;;  %815 = vst.msk [vmem:[#allocation3] sm:$0xff] %vm798_vm8, %v3227_v48 }
 0x211   : > { %v4048_v63 = vadd.f32 %v1347_v37, %v1283_v53  ;;  %817 = vst.msk [vmem:[#allocation3 + $0x10] sm:$0xff] %vm798_vm8, %v3227_v48  ;;  %818 = vst.msk [vmem:[#allocation3 + $0x18] sm:$0xff] %vm798_vm8, %v3227_v48  ;;  %2870 = vmatpush3.bf16.msra.mxu1 %v3029_v54  ;;  %v4152_v37 = vld [vmem:[#allocation2 + $0x30] sm:$0xff]  ;;  %v4231_v54 = vld [vmem:[#allocation2 + $0x58] sm:$0xff] }
 0x212   : > { %819 = vst.msk [vmem:[#allocation3 + $0x20] sm:$0xff] %vm798_vm8, %v3227_v48  ;;  %820 = vst.msk [vmem:[#allocation3 + $0x28] sm:$0xff] %vm798_vm8, %v3227_v48  ;;  %2871 = vmatprep.subr.bf16.mxu1 %v3030_v3 }
 0x213   : > { %821 = vst.msk [vmem:[#allocation3 + $0x30] sm:$0xff] %vm798_vm8, %v3227_v48  ;;  %822 = vst.msk [vmem:[#allocation3 + $0x38] sm:$0xff] %vm798_vm8, %v3227_v48 }
 0x214   : > { %1415 = vmax.xlane.f32.xlu1 %v4037_v31  ;;  %1417 = vmax.xlane.f32.xlu0 %v4048_v63  ;;  %823 = vst.msk [vmem:[#allocation3 + $0x40] sm:$0xff] %vm798_vm8, %v3227_v48  ;;  %824 = vst.msk [vmem:[#allocation3 + $0x48] sm:$0xff] %vm798_vm8, %v3227_v48 }
 0x215   : > { %v2861_v36 = vpop.f32.mrb[8].mxu0  ;;  %825 = vst.msk [vmem:[#allocation3 + $0x50] sm:$0xff] %vm798_vm8, %v3227_v48  ;;  %826 = vst.msk [vmem:[#allocation3 + $0x58] sm:$0xff] %vm798_vm8, %v3227_v48  ;;  %2872 = vmatpush3.bf16.msra.mxu1 %v3030_v3 }
 0x216   : > { %v4068_v58 = vadd.f32 %v2861_v36, %v1288_v62  ;;  %v1360_v18 = vpop.f32.mrb[9].mxu0  ;;  %827 = vst.msk [vmem:[#allocation3 + $0x60] sm:$0xff] %vm798_vm8, %v3227_v48  ;;  %828 = vst.msk [vmem:[#allocation3 + $0x68] sm:$0xff] %vm798_vm8, %v3227_v48  ;;  %2873 = vmatprep.subr.bf16.mxu1 %v3031_v42 }
 0x217   : > { %v2862_v55 = vpop.f32.mrb[10].mxu0  ;;  %v4075_v23 = vadd.f32 %v1360_v18, %v1286_v40  ;;  %829 = vst.msk [vmem:[#allocation3 + $0x70] sm:$0xff] %vm798_vm8, %v3227_v48  ;;  %830 = vst.msk [vmem:[#allocation3 + $0x78] sm:$0xff] %vm798_vm8, %v3227_v48 }
 0x218   : > { %1427 = vmax.xlane.f32.xlu1 %v4068_v58  ;;  %1421 = vmax.xlane.f32.xlu0 %v4061_v38  ;;  %v1363_v26 = vpop.f32.mrb[11].mxu0  ;;  %v4087_v28 = vadd.f32 %v2862_v55, %v1289_v45  ;;  %v4188_v55 = vld [vmem:[#allocation2 + $0x50] sm:$0xff]  ;;  %v3032_v45 = vld [vmem:[%s3486_s0 + $0x20] sm:$0xff]  }
 0x219   : > { %v4080_v16 = vadd.f32 %v1363_v26, %v1287_v60  ;;  %2874 = vmatpush3.bf16.msra.mxu1 %v3031_v42 }
 0x21a   : > { %2875 = vmatprep.subr.bf16.mxu1 %v3032_v45 }
 0x21c   : > { %1423 = vmax.xlane.f32.xlu1 %v4075_v23  ;;  %1425 = vmax.xlane.f32.xlu0 %v4080_v16 }
 0x21d   : > { %v2865_v10 = vpop.f32.mrb[12].mxu0  ;;  %2876 = vmatpush3.bf16.msra.mxu1 %v3032_v45 }
 0x21e   : > { %v4092_v13 = vadd.f32 %v2865_v10, %v1292_v27  ;;  %v1376_v0 = vpop.f32.mrb[13].mxu0  ;;  %v4208_v10 = vld [vmem:[#allocation2 + $0x40] sm:$0xff] }
 0x21f   : > { %v2866_v41 = vpop.f32.mrb[14].mxu0  ;;  %v4097_v32 = vadd.f32 %v1376_v0, %v1290_v29  ;;  %v4210_v29 = vld [vmem:[#allocation2 + $0x48] sm:$0xff] }
 0x220   : > { %1435 = vmax.xlane.f32.xlu1 %v4092_v13  ;;  %1429 = vmax.xlane.f32.xlu0 %v4087_v28  ;;  %v1379_v50 = vpop.f32.mrb[15].mxu0  ;;  %v4121_v53 = vadd.f32 %v2866_v41, %v1293_v35 }
 0x221   : > { %v4119_v56 = vadd.f32 %v1379_v50, %v1291_v8  ;;  %v3033_v8 = vld [vmem:[%s3486_s0 + $0x28] sm:$0xff]  }
 0x222   : > { %2877 = vmatprep.subr.bf16.mxu1 %v3033_v8 }
 0x223   : > { %2878 = vmatpush3.bf16.msra.mxu1 %v3033_v8 }
 0x224   : > { %1431 = vmax.xlane.f32.xlu1 %v4097_v32  ;;  %1433 = vmax.xlane.f32.xlu0 %v4119_v56 }
 0x228   : > { %1437 = vmax.xlane.f32.xlu0 %v4121_v53 }
 0x295   : > { %v1412_v22 = vpop.xlane.xlu0 %1411 }
 0x296   : > { %v4131_v43 = vmax.f32 %v4128_v49, %v1412_v22 }
 0x298   : > { %v1457_v2 = vsub.f32 %v4128_v49, %v4131_v43  ;;  %2043 = vst.msk [vmem:[#allocation2 + $0x10] sm:$0xff] %vm798_vm8, %v4131_v43  ;;  %v1410_v57 = vpop.xlane.xlu1 %1409 }
 0x299   : > { %v4142_v12 = vmax.f32 %v4133_v14, %v1410_v57  ;;  %v1408_v6 = vpop.xlane.xlu0 %1407 }
 0x29a   : > { %v4145_v30 = vmax.f32 %v4135_v4, %v1408_v6  ;;  %v3034_v6 = vld [vmem:[%s3486_s0 + $0x30] sm:$0xff]  }
 0x29b   : > { %2042 = vst.msk [vmem:[#allocation2 + $0x8] sm:$0xff] %vm798_vm8, %v4142_v12  ;;  %1510 = vperm.xlu0 %3027, %v4142_v12   ;;  %2879 = vmatprep.subr.bf16.mxu1 %v3034_v6  ;;  %v4536_v49 = vsub.f32 %v4133_v14, %v4142_v12 }
 0x29c   : > { %v1455_v52 = vsub.f32 %v4135_v4, %v4145_v30  ;;  %2041 = vst.msk [vmem:[#allocation2] sm:$0xff] %vm798_vm8, %v4145_v30  ;;  %1505 = vperm.xlu1 %3026, %v4145_v30   ;;  %2880 = vmatpush3.bf16.msra.mxu1 %v3034_v6 }
 0x29d   : > { %v1420_v17 = vpop.xlane.xlu1 %1419  ;;  %v1414_v1 = vpop.xlane.xlu0 %1413 }
 0x29e   : > { %v4163_v21 = vmax.f32 %v4152_v37, %v1420_v17  ;;  %v4166_v62 = vmax.f32 %v4154_v61, %v1414_v1 }
 0x2a0   : > { %2047 = vst.msk [vmem:[#allocation2 + $0x30] sm:$0xff] %vm798_vm8, %v4163_v21  ;;  %2044 = vst.msk [vmem:[#allocation2 + $0x18] sm:$0xff] %vm798_vm8, %v4166_v62  ;;  %1515 = vperm.xlu1 %3026, %v4131_v43   ;;  %v1473_v43 = vmul.f32 1.442695, %v4536_v49  ;;  %v1641_v49 = vld [vmem:[#allocation3 + $0x50] sm:$0xff] }
 0x2a1   : > { %v1416_v19 = vpop.xlane.xlu1 %1415  ;;  %v1418_v18 = vpop.xlane.xlu0 %1417 }
 0x2a2   : > { %v4183_v60 = vmax.f32 %v4168_v5, %v1416_v19  ;;  %v4186_v20 = vmax.f32 %v4170_v15, %v1418_v18  ;;  %v4249_v19 = vld [vmem:[#allocation2 + $0x60] sm:$0xff]  ;;  %v4251_v18 = vld [vmem:[#allocation2 + $0x68] sm:$0xff] }
 0x2a4   : > { %2045 = vst.msk [vmem:[#allocation2 + $0x20] sm:$0xff] %vm798_vm8, %v4183_v60  ;;  %2046 = vst.msk [vmem:[#allocation2 + $0x28] sm:$0xff] %vm798_vm8, %v4186_v20  ;;  %1520 = vperm.xlu1 %3026, %v4166_v62   ;;  %v4535_v4 = vsub.f32 %v4170_v15, %v4186_v20 }
 0x2a5   : > { %v1428_v47 = vpop.xlane.xlu1 %1427  ;;  %v1422_v9 = vpop.xlane.xlu0 %1421 }
 0x2a6   : > { %v4203_v24 = vmax.f32 %v4188_v55, %v1428_v47  ;;  %v4206_v27 = vmax.f32 %v4190_v59, %v1422_v9  ;;  %v3035_v9 = vld [vmem:[%s3486_s0 + $0x38] sm:$0xff]   ;;  %v1481_v30 = vmul.f32 1.442695, %v4535_v4  ;;  %s4439_s0 = scalar_lea.vmem [#allocation10], %s3480_s26  ;;  %s2659_s26 = sshll.u32 (%p4548_p12), %s3213_s11, 2 }
 0x2a7   : > { %2881 = vmatprep.subr.bf16.mxu1 %v3035_v9  ;;  %s2295_s21 = scalar_lea.vmem (%p4548_p12), %s4516_s8, %s2659_s26 }
 0x2a8   : > { %2051 = vst.msk [vmem:[#allocation2 + $0x50] sm:$0xff] %vm798_vm8, %v4203_v24  ;;  %2048 = vst.msk [vmem:[#allocation2 + $0x38] sm:$0xff] %vm798_vm8, %v4206_v27  ;;  %1555 = vperm.xlu0 %3027, %v4203_v24   ;;  %1535 = vperm.xlu1 %3026, %v4163_v21  }
 0x2a9   : > { %v1424_v41 = vpop.xlane.xlu1 %1423  ;;  %v1426_v50 = vpop.xlane.xlu0 %1425  ;;  %2882 = vmatpush3.bf16.msra.mxu1 %v3035_v9 }
 0x2aa   : > { %v4224_v48 = vmax.f32 %v4208_v10, %v1424_v41  ;;  %v4227_v35 = vmax.f32 %v4210_v29, %v1426_v50 }
 0x2ac   : > { %2049 = vst.msk [vmem:[#allocation2 + $0x40] sm:$0xff] %vm798_vm8, %v4224_v48  ;;  %1525 = vperm.xlu1 %3026, %v4183_v60   ;;  %2050 = vst.msk [vmem:[#allocation2 + $0x48] sm:$0xff] %vm798_vm8, %v4227_v35 }
 0x2ad   : > { %v1436_v3 = vpop.xlane.xlu1 %1435  ;;  %v1430_v17 = vpop.xlane.xlu0 %1429 }
 0x2ae   : > { %v4244_v1 = vmax.f32 %v4229_v51, %v1436_v3  ;;  %v4247_v42 = vmax.f32 %v4231_v54, %v1430_v17  ;;  %v4269_v3 = vld [vmem:[#allocation2 + $0x78] sm:$0xff] }
 0x2b0   : > { %2055 = vst.msk [vmem:[#allocation2 + $0x70] sm:$0xff] %vm798_vm8, %v4244_v1  ;;  %1540 = vperm.xlu1 %3026, %v4206_v27   ;;  %2052 = vst.msk [vmem:[#allocation2 + $0x58] sm:$0xff] %vm798_vm8, %v4247_v42 }
 0x2b1   : > { %v1432_v8 = vpop.xlane.xlu1 %1431  ;;  %v1434_v41 = vpop.xlane.xlu0 %1433 }
 0x2b2   : > { %v4264_v50 = vmax.f32 %v4249_v19, %v1432_v8  ;;  %v4267_v6 = vmax.f32 %v4251_v18, %v1434_v41 }
 0x2b4   : > { %2053 = vst.msk [vmem:[#allocation2 + $0x60] sm:$0xff] %vm798_vm8, %v4264_v50  ;;  %1565 = vperm.xlu0 %3027, %v4264_v50   ;;  %1530 = vperm.xlu1 %3026, %v4186_v20   ;;  %2054 = vst.msk [vmem:[#allocation2 + $0x68] sm:$0xff] %vm798_vm8, %v4267_v6  ;;  %v4539_v20 = vsub.f32 %v4210_v29, %v4227_v35 }
 0x2b5   : > { %v1438_v41 = vpop.xlane.xlu0 %1437 }
 0x2b6   : > { %v4282_v45 = vmax.f32 %v4269_v3, %v1438_v41  ;;  %v1489_v14 = vmul.f32 1.442695, %v4539_v20 }
 0x2b8   : > { %1575 = vperm.xlu0 %3027, %v4244_v1   ;;  %1545 = vperm.xlu1 %3026, %v4224_v48   ;;  %2056 = vst.msk [vmem:[#allocation2 + $0x78] sm:$0xff] %vm798_vm8, %v4282_v45 }
 0x2bc   : > { %1550 = vperm.xlu1 %3026, %v4227_v35  }
 0x2c0   : > { %1560 = vperm.xlu1 %3026, %v4247_v42  }
 0x2c4   : > { %1570 = vperm.xlu1 %3026, %v4267_v6  }
 0x2c8   : > { %1580 = vperm.xlu1 %3026, %v4282_v45  }
 0x31a   : > { %v1511_v41 = vpop.permute.xlu0 %1510 }
 0x31b   : > { %v1584_v17 = vsub.f32 %v3980_v34, %v1511_v41  ;;  %v1506_v7 = vpop.permute.xlu1 %1505 }
 0x31c   : > { %v1583_v8 = vsub.f32 %v3988_v39, %v1506_v7 }
 0x31d   : > { %v1601_v22 = vmul.f32 1.442695, %v1584_v17 }
 0x31e   : > { %v1599_v47 = vmul.f32 1.442695, %v1583_v8 }
 0x31f   : > { %3036 = vpow2.f32 %v1601_v22  ;;  %v1516_v9 = vpop.permute.xlu1 %1515 }
 0x320   : > { %3038 = vpow2.f32 %v1599_v47  ;;  %v1585_v36 = vsub.f32 %v3966_v25, %v1516_v9 }
 0x322   : > { %v1603_v57 = vmul.f32 1.442695, %v1585_v36 }
 0x323   : > { %v1521_v26 = vpop.permute.xlu1 %1520 }
 0x324   : > { %3040 = vpow2.f32 %v1603_v57  ;;  %v1586_v0 = vsub.f32 %v4011_v44, %v1521_v26 }
 0x326   : > { %v1605_v46 = vmul.f32 1.442695, %v1586_v0 }
 0x327   : > { %v1536_v11 = vpop.permute.xlu1 %1535  ;;  %v1556_v39 = vpop.permute.xlu0 %1555 }
 0x328   : > { %3042 = vpow2.f32 %v1605_v46  ;;  %v1589_v34 = vsub.f32 %v4013_v33, %v1536_v11  ;;  %v1593_v25 = vsub.f32 %v4068_v58, %v1556_v39 }
 0x329   : > { %v3037_v41 = vpop.eup %3036 }
 0x32a   : > { %v3039_v40 = vpop.eup %3038  ;;  %v1611_v7 = vmul.f32 1.442695, %v1589_v34  ;;  %1665 = vadd.xlane.f32.xlu1 %v3037_v41  ;;  %v1619_v46 = vmul.f32 1.442695, %v1593_v25 }
 0x32b   : > { %v1526_v22 = vpop.permute.xlu1 %1525  ;;  %v1840_v17 = vpack.c.bf16 %v3037_v41, %v3039_v40 }
 0x32c   : > { %v1587_v47 = vsub.f32 %v4037_v31, %v1526_v22  ;;  %3044 = vpow2.f32 %v1611_v7 }
 0x32d   : > { %2883 = vmatprep.mubr.bf16.mxu1 %v1840_v17 }
 0x32e   : > { %v3041_v36 = vpop.eup %3040  ;;  %v1607_v44 = vmul.f32 1.442695, %v1587_v47 }
 0x32f   : > { %1667 = vadd.xlane.f32.xlu0 %v3041_v36  ;;  %v1541_v26 = vpop.permute.xlu1 %1540 }
 0x330   : > { %3046 = vpow2.f32 %v1607_v44  ;;  %v1590_v33 = vsub.f32 %v4061_v38, %v1541_v26 }
 0x332   : > { %v3043_v11 = vpop.eup %3042  ;;  %v1613_v0 = vmul.f32 1.442695, %v1590_v33 }
 0x333   : > { %v1566_v57 = vpop.permute.xlu0 %1565  ;;  %1663 = vadd.xlane.f32.xlu0 %v3039_v40  ;;  %v1531_v8 = vpop.permute.xlu1 %1530  ;;  %v1841_v9 = vpack.c.bf16 %v3043_v11, %v3041_v36 }
 0x334   : > { %3048 = vpow2.f32 %v1613_v0  ;;  %v1588_v31 = vsub.f32 %v4048_v63, %v1531_v8  ;;  %v1595_v63 = vsub.f32 %v4097_v32, %v1566_v57 }
 0x335   : > { %3050 = vpow2.f32 %v1619_v46  ;;  %2884 = vmatmul.mubr.bf16.vlgmr.msra.gmra.mrb[0].mxu1 %v1841_v9 }
 0x336   : > { %v1609_v58 = vmul.f32 1.442695, %v1588_v31  ;;  %v3045_v34 = vpop.eup %3044 }
 0x337   : > { %v1576_v41 = vpop.permute.xlu0 %1575  ;;  %1669 = vadd.xlane.f32.xlu0 %v3043_v11  ;;  %v1546_v39 = vpop.permute.xlu1 %1545  ;;  %1675 = vadd.xlane.f32.xlu1 %v3045_v34 }
 0x338   : > { %v1591_v38 = vsub.f32 %v4075_v23, %v1546_v39  ;;  %3052 = vpow2.f32 %v1609_v58  ;;  %v1597_v7 = vsub.f32 %v4092_v13, %v1576_v41  ;;  %v1623_v13 = vmul.f32 1.442695, %v1595_v63 }
 0x33a   : > { %v3047_v22 = vpop.eup %3046  ;;  %v1615_v40 = vmul.f32 1.442695, %v1591_v38  ;;  %v1627_v25 = vmul.f32 1.442695, %v1597_v7 }
 0x33b   : > { %v1551_v17 = vpop.permute.xlu1 %1550  ;;  %1671 = vadd.xlane.f32.xlu1 %v3047_v22 }
 0x33c   : > { %v1592_v47 = vsub.f32 %v4080_v16, %v1551_v17  ;;  %3054 = vpow2.f32 %v1615_v40  ;;  %v1471_v40 = vmul.f32 1.442695, %v1455_v52 }
 0x33e   : > { %v3049_v36 = vpop.eup %3048  ;;  %v1617_v44 = vmul.f32 1.442695, %v1592_v47  ;;  %v1475_v47 = vmul.f32 1.442695, %v1457_v2  ;;  %v4537_v2 = vsub.f32 %v4190_v59, %v4206_v27  ;;  %v4542_v27 = vsub.f32 %v4208_v10, %v4224_v48 }
 0x33f   : > { %v3051_v26 = vpop.eup %3050  ;;  %1677 = vadd.xlane.f32.xlu0 %v3049_v36  ;;  %v1561_v33 = vpop.permute.xlu1 %1560  ;;  %v1843_v57 = vpack.c.bf16 %v3049_v36, %v3045_v34  ;;  %v4545_v10 = vsub.f32 %v4269_v3, %v4282_v45  ;;  %v4547_v45 = vsub.f32 %v4229_v51, %v4244_v1  ;;  %v1632_v1 = vld [vmem:[#allocation3 + $0x8] sm:$0xff] }
 0x340   : > { %3056 = vpow2.f32 %v1617_v44  ;;  %1683 = vadd.xlane.f32.xlu1 %v3051_v26  ;;  %v1594_v23 = vsub.f32 %v4087_v28, %v1561_v33  ;;  %v4538_v44 = vsub.f32 %v4168_v5, %v4183_v60  ;;  %v4541_v5 = vsub.f32 %v4231_v54, %v4247_v42 }
 0x341   : > { %3058 = vpow2.f32 %v1627_v25  ;;  %v4534_v25 = vsub.f32 %v4154_v61, %v4166_v62  ;;  %v1485_v61 = vmul.f32 1.442695, %v4537_v2  ;;  %v1487_v29 = vmul.f32 1.442695, %v4542_v27 }
 0x342   : > { %v1621_v46 = vmul.f32 1.442695, %v1594_v23  ;;  %v3053_v11 = vpop.eup %3052  ;;  %v1479_v15 = vmul.f32 1.442695, %v4538_v44  ;;  %v1493_v60 = vmul.f32 1.442695, %v4541_v5  ;;  %v4544_v54 = vsub.f32 %v4188_v55, %v4203_v24 }
 0x343   : > { %v1571_v0 = vpop.permute.xlu1 %1570  ;;  %1673 = vadd.xlane.f32.xlu0 %v3053_v11  ;;  %v1842_v32 = vpack.c.bf16 %v3053_v11, %v3047_v22  ;;  %v1477_v36 = vmul.f32 1.442695, %v4534_v25  ;;  %v1501_v48 = vmul.f32 1.442695, %v4545_v10  ;;  %v4546_v55 = vsub.f32 %v4249_v19, %v4264_v50  ;;  %v1645_v10 = vld [vmem:[#allocation3 + $0x70] sm:$0xff] }
 0x344   : > { %3060 = vpow2.f32 %v1621_v46  ;;  %v1596_v16 = vsub.f32 %v4119_v56, %v1571_v0  ;;  %v1491_v42 = vmul.f32 1.442695, %v4544_v54  ;;  %v1499_v3 = vmul.f32 1.442695, %v4547_v45 }
 0x345   : > { %3062 = vpow2.f32 %v1623_v13  ;;  %2887 = vmatprep.mubr.bf16.mxu1 %v1842_v32  ;;  %v1495_v24 = vmul.f32 1.442695, %v4546_v55 }
 0x346   : > { %v1625_v8 = vmul.f32 1.442695, %v1596_v16  ;;  %v3055_v9 = vpop.eup %3054  ;;  %2888 = vmatmul.mubr.bf16.gmra.mrb[4].mxu1 %v1843_v57 }
 0x347   : > { %v1581_v31 = vpop.permute.xlu1 %1580  ;;  %1679 = vadd.xlane.f32.xlu1 %v3055_v9 }
 0x348   : > { %3064 = vpow2.f32 %v1625_v8  ;;  %v1598_v28 = vsub.f32 %v4121_v53, %v1581_v31 }
 0x34a   : > { %v3057_v58 = vpop.eup %3056  ;;  %v1629_v41 = vmul.f32 1.442695, %v1598_v28 }
 0x34b   : > { %v3059_v39 = vpop.eup %3058  ;;  %v1844_v38 = vpack.c.bf16 %v3057_v58, %v3055_v9  ;;  %v1633_v9 = vld [vmem:[#allocation3 + $0x10] sm:$0xff] }
 0x34c   : > { %3066 = vpow2.f32 %v1629_v41  ;;  %1691 = vadd.xlane.f32.xlu1 %v3059_v39 }
 0x34d   : > { %2891 = vmatprep.mubr.bf16.mxu1 %v1844_v38  ;;  %3068 = vpow2.f32 %v1471_v40 }
 0x34e   : > { %v3061_v56 = vpop.eup %3060  ;;  %3070 = vpow2.f32 %v1475_v47 }
 0x34f   : > { %v3063_v7 = vpop.eup %3062  ;;  %1685 = vadd.xlane.f32.xlu0 %v3061_v56  ;;  %v1845_v34 = vpack.c.bf16 %v3061_v56, %v3051_v26  ;;  %3072 = vpow2.f32 %v1477_v36  ;;  %v4540_v26 = vsub.f32 %v4152_v37, %v4163_v21  ;;  %v4543_v37 = vsub.f32 %v4251_v18, %v4267_v6  ;;  %v1634_v56 = vld [vmem:[#allocation3 + $0x18] sm:$0xff] }
 0x350   : > { %1687 = vadd.xlane.f32.xlu1 %v3063_v7  ;;  %3074 = vpow2.f32 %v1481_v30  ;;  %v1638_v30 = vld [vmem:[#allocation3 + $0x38] sm:$0xff] }
 0x351   : > { %2892 = vmatmul.mubr.bf16.gmra.mrb[8].mxu1 %v1845_v34  ;;  %3076 = vpow2.f32 %v1473_v43  ;;  %v1483_v33 = vmul.f32 1.442695, %v4540_v26  ;;  %v1497_v21 = vmul.f32 1.442695, %v4543_v37  ;;  %v1637_v34 = vld [vmem:[#allocation3 + $0x30] sm:$0xff]  ;;  %v1639_v37 = vld [vmem:[#allocation3 + $0x40] sm:$0xff] }
 0x352   : > { %v3065_v22 = vpop.eup %3064  ;;  %3078 = vpow2.f32 %v1485_v61 }
 0x353   : > { %1681 = vadd.xlane.f32.xlu0 %v3057_v58  ;;  %v1846_v53 = vpack.c.bf16 %v3065_v22, %v3063_v7  ;;  %3080 = vpow2.f32 %v1479_v15  ;;  %v1631_v58 = vld [vmem:[#allocation3] sm:$0xff] }
 0x354   : > { %3082 = vpow2.f32 %v1489_v14  ;;  %v1636_v14 = vld [vmem:[#allocation3 + $0x28] sm:$0xff] }
 0x355   : > { %2895 = vmatprep.mubr.bf16.mxu1 %v1846_v53  ;;  %3084 = vpow2.f32 %v1483_v33 }
 0x356   : > { %v3067_v17 = vpop.eup %3066  ;;  %3086 = vpow2.f32 %v1493_v60 }
 0x357   : > { %1689 = vadd.xlane.f32.xlu0 %v3065_v22  ;;  %v1847_v63 = vpack.c.bf16 %v3067_v17, %v3059_v39  ;;  %v4322_v52 = vpop.eup %3068  ;;  %3088 = vpow2.f32 %v1487_v29 }
 0x358   : > { %v3071_v62 = vpop.eup %3070  ;;  %3090 = vpow2.f32 %v1497_v21  ;;  %v1647_v39 = vmul.f32 %v4322_v52, %v1631_v58 }
 0x359   : > { %2896 = vmatmul.mubr.bf16.gmra.mrb[12].mxu1 %v1847_v63  ;;  %v4337_v12 = vpop.eup %3072  ;;  %3092 = vpow2.f32 %v1491_v42  ;;  %v1649_v31 = vmul.f32 %v3071_v62, %v1633_v9  ;;  %v1635_v63 = vld [vmem:[#allocation3 + $0x20] sm:$0xff]  ;;  %v1640_v9 = vld [vmem:[#allocation3 + $0x48] sm:$0xff] }
 0x35a   : > { %v4346_v59 = vpop.eup %3074  ;;  %3094 = vpow2.f32 %v1501_v48  ;;  %v1650_v22 = vmul.f32 %v4337_v12, %v1634_v56  ;;  %v1644_v56 = vld [vmem:[#allocation3 + $0x68] sm:$0xff] }
 0x35b   : > { %1693 = vadd.xlane.f32.xlu0 %v3067_v17  ;;  %v3077_v35 = vpop.eup %3076  ;;  %3096 = vpow2.f32 %v1495_v24  ;;  %v1652_v5 = vmul.f32 %v4346_v59, %v1636_v14  ;;  %v1642_v24 = vld [vmem:[#allocation3 + $0x58] sm:$0xff] }
 0x35c   : > { %v4355_v23 = vpop.eup %3078  ;;  %3098 = vpow2.f32 %v1499_v3  ;;  %v1648_v32 = vmul.f32 %v3077_v35, %v1632_v1  ;;  %v1643_v3 = vld [vmem:[#allocation3 + $0x60] sm:$0xff] }
 0x35d   : > { %v3081_v13 = vpop.eup %3080  ;;  %v1654_v61 = vmul.f32 %v4355_v23, %v1638_v30 }
 0x35e   : > { %v4364_v46 = vpop.eup %3082  ;;  %v1651_v4 = vmul.f32 %v3081_v13, %v1635_v63 }
 0x35f   : > { %v3085_v18 = vpop.eup %3084 }
 0x360   : > { %v4370_v6 = vpop.eup %3086  ;;  %v1653_v53 = vmul.f32 %v3085_v18, %v1637_v34 }
 0x361   : > { %1746 = vperm.xlu1 %3026, %v4322_v52   ;;  %v4376_v11 = vpop.eup %3088 }
 0x362   : > { %v4378_v0 = vpop.eup %3090 }
 0x363   : > { %v3093_v19 = vpop.eup %3092 }
 0x364   : > { %v4382_v50 = vpop.eup %3094  ;;  %v1657_v44 = vmul.f32 %v3093_v19, %v1641_v49 }
 0x365   : > { %1756 = vperm.xlu1 %3026, %v3071_v62   ;;  %v4385_v16 = vpop.eup %3096 }
 0x366   : > { %v4388_v51 = vpop.eup %3098 }
 0x367   : > { %v1661_v55 = vmul.f32 %v4388_v51, %v1645_v10 }
 0x369   : > { %1761 = vperm.xlu1 %3026, %v4337_v12  }
 0x36d   : > { %1771 = vperm.xlu1 %3026, %v4346_v59  }
 0x371   : > { %1781 = vperm.xlu1 %3026, %v4355_v23   ;;  %1751 = vperm.xlu0 %3027, %v3077_v35   ;;  %v1655_v23 = vmul.f32 %v4376_v11, %v1639_v37 }
 0x375   : > { %1791 = vperm.xlu1 %3026, %v4364_v46   ;;  %1766 = vperm.xlu0 %3027, %v3081_v13  }
 0x379   : > { %1801 = vperm.xlu1 %3026, %v4370_v6   ;;  %1776 = vperm.xlu0 %3027, %v3085_v18  }
 0x37d   : > { %1811 = vperm.xlu1 %3026, %v4378_v0   ;;  %1786 = vperm.xlu0 %3027, %v4376_v11  }
 0x381   : > { %1821 = vperm.xlu1 %3026, %v4382_v50   ;;  %1796 = vperm.xlu0 %3027, %v3093_v19  }
 0x385   : > { %1806 = vperm.xlu0 %3027, %v4385_v16  }
 0x389   : > { %1816 = vperm.xlu0 %3027, %v4388_v51  }
 0x3b7   : > { %v1666_v57 = vpop.xlane.xlu1 %1665 }
 0x3b8   : > { %v1696_v8 = vadd.f32 %v1666_v57, %v1648_v32  ;;  %v1658_v32 = vmul.f32 %v4370_v6, %v1642_v24 }
 0x3ba   : > { %1713 = vst.msk [vmem:[#allocation3 + $0x8] sm:$0xff] %vm798_vm8, %v1696_v8  ;;  %v1659_v8 = vmul.f32 %v4385_v16, %v1643_v3 }
 0x3bc   : > { %v1668_v28 = vpop.xlane.xlu0 %1667 }
 0x3bd   : > { %v1697_v41 = vadd.f32 %v1668_v28, %v1649_v31 }
 0x3bf   : > { %1714 = vst.msk [vmem:[#allocation3 + $0x10] sm:$0xff] %vm798_vm8, %v1697_v41 }
 0x3c0   : > { %v1664_v38 = vpop.xlane.xlu0 %1663 }
 0x3c1   : > { %v1695_v7 = vadd.f32 %v1664_v38, %v1647_v39  ;;  %v2061_v60 = vld [vmem:[#allocation3 + $0x8] sm:$0xff]  ;;  %v1656_v39 = vmul.f32 %v4364_v46, %v1640_v9 }
 0x3c3   : > { %1712 = vst.msk [vmem:[#allocation3] sm:$0xff] %vm798_vm8, %v1695_v7 }
 0x3c4   : > { %v1670_v40 = vpop.xlane.xlu0 %1669  ;;  %v1676_v47 = vpop.xlane.xlu1 %1675 }
 0x3c5   : > { %v1698_v17 = vadd.f32 %v1670_v40, %v1650_v22  ;;  %v1701_v25 = vadd.f32 %v1676_v47, %v1653_v53  ;;  %v1660_v22 = vmul.f32 %v4378_v0, %v1644_v56  ;;  %v1646_v53 = vld [vmem:[#allocation3 + $0x78] sm:$0xff] }
 0x3c6   : > { %v2062_v36 = vld [vmem:[#allocation3 + $0x10] sm:$0xff]  ;;  %v1662_v63 = vmul.f32 %v4382_v50, %v1646_v53 }
 0x3c7   : > { %1715 = vst.msk [vmem:[#allocation3 + $0x18] sm:$0xff] %vm798_vm8, %v1698_v17  ;;  %3100 = vrcp.f32 %v2062_v36  ;;  %1718 = vst.msk [vmem:[#allocation3 + $0x30] sm:$0xff] %vm798_vm8, %v1701_v25 }
 0x3c8   : > { %v1672_v52 = vpop.xlane.xlu1 %1671 }
 0x3c9   : > { %v1699_v43 = vadd.f32 %v1672_v52, %v1651_v4 }
 0x3ca   : > { %v2060_v2 = vld [vmem:[#allocation3] sm:$0xff] }
 0x3cb   : > { %3102 = vrcp.f32 %v2060_v2  ;;  %1716 = vst.msk [vmem:[#allocation3 + $0x20] sm:$0xff] %vm798_vm8, %v1699_v43 }
 0x3cc   : > { %v1678_v62 = vpop.xlane.xlu0 %1677 }
 0x3cd   : > { %v1702_v15 = vadd.f32 %v1678_v62, %v1654_v61  ;;  %v1684_v20 = vpop.xlane.xlu1 %1683 }
 0x3ce   : > { %v1705_v12 = vadd.f32 %v1684_v20, %v1657_v44  ;;  %v2063_v26 = vld [vmem:[#allocation3 + $0x18] sm:$0xff]  ;;  %v2066_v33 = vld [vmem:[#allocation3 + $0x30] sm:$0xff] }
 0x3cf   : > { %1719 = vst.msk [vmem:[#allocation3 + $0x38] sm:$0xff] %vm798_vm8, %v1702_v15  ;;  %3104 = vrcp.f32 %v2063_v26 }
 0x3d0   : > { %1722 = vst.msk [vmem:[#allocation3 + $0x50] sm:$0xff] %vm798_vm8, %v1705_v12  ;;  %3106 = vrcp.f32 %v2066_v33  ;;  %v1674_v29 = vpop.xlane.xlu0 %1673 }
 0x3d1   : > { %v3101_v27 = vpop.eup %3100  ;;  %v1700_v21 = vadd.f32 %v1674_v29, %v1652_v5  ;;  %3108 = vrcp.f32 %v2061_v60 }
 0x3d2   : > { %2120 = vperm.xlu0 %3027, %v3101_v27   ;;  %v2064_v35 = vld [vmem:[#allocation3 + $0x20] sm:$0xff] }
 0x3d3   : > { %1717 = vst.msk [vmem:[#allocation3 + $0x28] sm:$0xff] %vm798_vm8, %v1700_v21  ;;  %3110 = vrcp.f32 %v2064_v35 }
 0x3d4   : > { %v1680_v42 = vpop.xlane.xlu1 %1679 }
 0x3d5   : > { %v3103_v54 = vpop.eup %3102  ;;  %v1703_v13 = vadd.f32 %v1680_v42, %v1655_v23 }
 0x3d6   : > { %v2067_v48 = vld [vmem:[#allocation3 + $0x38] sm:$0xff]  ;;  %2110 = vperm.xlu0 %3027, %v3103_v54  }
 0x3d7   : > { %3112 = vrcp.f32 %v2067_v48  ;;  %v2070_v59 = vld [vmem:[#allocation3 + $0x50] sm:$0xff]  ;;  %1720 = vst.msk [vmem:[#allocation3 + $0x40] sm:$0xff] %vm798_vm8, %v1703_v13 }
 0x3d8   : > { %3114 = vrcp.f32 %v2070_v59 }
 0x3d9   : > { %v3105_v18 = vpop.eup %3104  ;;  %v1692_v45 = vpop.xlane.xlu1 %1691 }
 0x3da   : > { %v3107_v19 = vpop.eup %3106  ;;  %v1709_v11 = vadd.f32 %v1692_v45, %v1661_v55  ;;  %2125 = vperm.xlu1 %3026, %v3105_v18   ;;  %v2065_v1 = vld [vmem:[#allocation3 + $0x28] sm:$0xff] }
 0x3db   : > { %2140 = vperm.xlu0 %3027, %v3107_v19   ;;  %3116 = vrcp.f32 %v2065_v1  ;;  %v3109_v51 = vpop.eup %3108 }
 0x3dc   : > { %1726 = vst.msk [vmem:[#allocation3 + $0x70] sm:$0xff] %vm798_vm8, %v1709_v11  ;;  %v1686_v57 = vpop.xlane.xlu0 %1685 }
 0x3dd   : > { %v1706_v31 = vadd.f32 %v1686_v57, %v1658_v32  ;;  %v1688_v28 = vpop.xlane.xlu1 %1687  ;;  %v3111_v58 = vpop.eup %3110 }
 0x3de   : > { %v1707_v41 = vadd.f32 %v1688_v28, %v1659_v8  ;;  %2115 = vperm.xlu1 %3026, %v3109_v51   ;;  %v2068_v38 = vld [vmem:[#allocation3 + $0x40] sm:$0xff] }
 0x3df   : > { %1723 = vst.msk [vmem:[#allocation3 + $0x58] sm:$0xff] %vm798_vm8, %v1706_v31  ;;  %2130 = vperm.xlu0 %3027, %v3111_v58   ;;  %3118 = vrcp.f32 %v2068_v38 }
 0x3e0   : > { %1724 = vst.msk [vmem:[#allocation3 + $0x60] sm:$0xff] %vm798_vm8, %v1707_v41  ;;  %v1682_v6 = vpop.xlane.xlu0 %1681 }
 0x3e1   : > { %v3113_v7 = vpop.eup %3112  ;;  %v1704_v16 = vadd.f32 %v1682_v6, %v1656_v39  ;;  %v1747_v37 = vpop.permute.xlu1 %1746 }
 0x3e2   : > { %v3115_v34 = vpop.eup %3114  ;;  %2145 = vperm.xlu1 %3026, %v3113_v7   ;;  %v1824_v56 = vmul.f32 0.0, %v1747_v37 }
 0x3e3   : > { %1721 = vst.msk [vmem:[#allocation3 + $0x48] sm:$0xff] %vm798_vm8, %v1704_v16  ;;  %2160 = vperm.xlu0 %3027, %v3115_v34   ;;  %v2074_v30 = vld [vmem:[#allocation3 + $0x70] sm:$0xff] }
 0x3e4   : > { %v1690_v40 = vpop.xlane.xlu0 %1689 }
 0x3e5   : > { %v1708_v17 = vadd.f32 %v1690_v40, %v1660_v22  ;;  %v3117_v47 = vpop.eup %3116  ;;  %v1757_v42 = vpop.permute.xlu1 %1756 }
 0x3e6   : > { %v2071_v46 = vld [vmem:[#allocation3 + $0x58] sm:$0xff]  ;;  %2135 = vperm.xlu1 %3026, %v3117_v47   ;;  %v1826_v28 = vmul.f32 0.0, %v1757_v42 }
 0x3e7   : > { %3120 = vrcp.f32 %v2071_v46  ;;  %1725 = vst.msk [vmem:[#allocation3 + $0x68] sm:$0xff] %vm798_vm8, %v1708_v17  ;;  %v2072_v25 = vld [vmem:[#allocation3 + $0x60] sm:$0xff] }
 0x3e8   : > { %v1694_v36 = vpop.xlane.xlu0 %1693  ;;  %3122 = vrcp.f32 %v2072_v25 }
 0x3e9   : > { %v1710_v4 = vadd.f32 %v1694_v36, %v1662_v63  ;;  %v3119_v52 = vpop.eup %3118  ;;  %v1762_v24 = vpop.permute.xlu1 %1761 }
 0x3ea   : > { %v2069_v49 = vld [vmem:[#allocation3 + $0x48] sm:$0xff]  ;;  %2150 = vperm.xlu0 %3027, %v3119_v52   ;;  %v1827_v58 = vmul.f32 0.0, %v1762_v24 }
 0x3eb   : > { %3124 = vrcp.f32 %v2069_v49  ;;  %1727 = vst.msk [vmem:[#allocation3 + $0x78] sm:$0xff] %vm798_vm8, %v1710_v4 }
 0x3ec   : > { %3126 = vrcp.f32 %v2074_v30 }
 0x3ed   : > { %v1772_v45 = vpop.permute.xlu1 %1771 }
 0x3ee   : > { %v2073_v0 = vld [vmem:[#allocation3 + $0x68] sm:$0xff] }
 0x3ef   : > { %3128 = vrcp.f32 %v2073_v0 }
 0x3f0   : > { %v1752_v54 = vpop.permute.xlu0 %1751 }
 0x3f1   : > { %v3121_v43 = vpop.eup %3120  ;;  %v1782_v19 = vpop.permute.xlu1 %1781  ;;  %v1825_v7 = vmul.f32 0.0, %v1752_v54 }
 0x3f2   : > { %v3123_v2 = vpop.eup %3122  ;;  %v2075_v61 = vld [vmem:[#allocation3 + $0x78] sm:$0xff]  ;;  %2165 = vperm.xlu1 %3026, %v3121_v43   ;;  %v1831_v47 = vmul.f32 0.0, %v1782_v19 }
 0x3f3   : > { %3130 = vrcp.f32 %v2075_v61  ;;  %2170 = vperm.xlu0 %3027, %v3123_v2   ;;  %v1829_v2 = vmul.f32 0.0, %v1772_v45 }
 0x3f4   : > { %v1767_v55 = vpop.permute.xlu0 %1766 }
 0x3f5   : > { %v3125_v50 = vpop.eup %3124  ;;  %v1792_v1 = vpop.permute.xlu1 %1791  ;;  %v1828_v61 = vmul.f32 0.0, %v1767_v55 }
 0x3f6   : > { %v3127_v62 = vpop.eup %3126  ;;  %2155 = vperm.xlu1 %3026, %v3125_v50  }
 0x3f7   : > { %2180 = vperm.xlu0 %3027, %v3127_v62  }
 0x3f8   : > { %v1777_v18 = vpop.permute.xlu0 %1776 }
 0x3f9   : > { %v3129_v44 = vpop.eup %3128  ;;  %v1802_v57 = vpop.permute.xlu1 %1801  ;;  %v1830_v46 = vmul.f32 0.0, %v1777_v18  ;;  %v1833_v18 = vmul.f32 0.0, %v1792_v1 }
 0x3fa   : > { %2175 = vperm.xlu1 %3026, %v3129_v44  }
 0x3fc   : > { %v1787_v3 = vpop.permute.xlu0 %1786 }
 0x3fd   : > { %v3131_v15 = vpop.eup %3130  ;;  %v1812_v9 = vpop.permute.xlu1 %1811  ;;  %v1832_v45 = vmul.f32 0.0, %v1787_v3 }
 0x3fe   : > { %2185 = vperm.xlu1 %3026, %v3131_v15  }
 0x400   : > { %v1797_v11 = vpop.permute.xlu0 %1796 }
 0x401   : > { %v4436_v31 = vpop.permute.xlu1 %1821  ;;  %v1834_v37 = vmul.f32 0.0, %v1797_v11  ;;  %v1837_v11 = vmul.f32 0.0, %v1812_v9 }
 0x404   : > { %v1807_v32 = vpop.permute.xlu0 %1806 }
 0x408   : > { %v2885_v20 = vpop.f32.mrb[0].mxu1  ;;  %v4434_v8 = vpop.permute.xlu0 %1816 }
 0x409   : > { %v1946_v14 = vpop.f32.mrb[1].mxu1  ;;  %v2011_v41 = vadd.f32 %v2885_v20, %v1826_v28 }
 0x40a   : > { %v2886_v12 = vpop.f32.mrb[2].mxu1  ;;  %v2009_v22 = vadd.f32 %v1946_v14, %v1824_v56 }
 0x40b   : > { %v1949_v26 = vpop.f32.mrb[3].mxu1  ;;  %v2012_v39 = vadd.f32 %v2886_v12, %v1827_v58 }
 0x40c   : > { %v2010_v40 = vadd.f32 %v1949_v26, %v1825_v7 }
 0x419   : > { %v2889_v33 = vpop.f32.mrb[4].mxu1 }
 0x41a   : > { %v1962_v5 = vpop.f32.mrb[5].mxu1  ;;  %v2015_v4 = vadd.f32 %v2889_v33, %v1830_v46 }
 0x41b   : > { %v2890_v60 = vpop.f32.mrb[6].mxu1  ;;  %v2013_v44 = vadd.f32 %v1962_v5, %v1828_v61 }
 0x41c   : > { %v1965_v27 = vpop.f32.mrb[7].mxu1  ;;  %v2016_v30 = vadd.f32 %v2890_v60, %v1831_v47  ;;  %v1835_v60 = vmul.f32 0.0, %v1802_v57 }
 0x41d   : > { %v2014_v15 = vadd.f32 %v1965_v27, %v1829_v2 }
 0x424   : > { %v4418_v29 = vpop.f32.mrb[8].mxu1 }
 0x425   : > { %v4420_v21 = vpop.f32.mrb[9].mxu1  ;;  %v2019_v54 = vadd.f32 %v4418_v29, %v1834_v37 }
 0x426   : > { %v4422_v35 = vpop.f32.mrb[10].mxu1  ;;  %v2017_v19 = vadd.f32 %v4420_v21, %v1832_v45  ;;  %v1839_v21 = vmul.f32 0.0, %v4436_v31 }
 0x427   : > { %v4424_v23 = vpop.f32.mrb[11].mxu1  ;;  %v2020_v42 = vadd.f32 %v4422_v35, %v1835_v60 }
 0x42c   : > { %v4426_v10 = vpop.f32.mrb[12].mxu1 }
 0x42d   : > { %v4428_v48 = vpop.f32.mrb[13].mxu1 }
 0x42e   : > { %v4430_v13 = vpop.f32.mrb[14].mxu1 }
 0x42f   : > { %v4432_v59 = vpop.f32.mrb[15].mxu1  ;;  %v2024_v7 = vadd.f32 %v4430_v13, %v1839_v21 }
 0x430   : > { %v2022_v3 = vadd.f32 %v4432_v59, %v1837_v11 }
 0x451   : > { %v2121_v51 = vpop.permute.xlu0 %2120 }
 0x452   : > { %v2190_v16 = vmul.f32 %v2121_v51, %v2011_v41  ;;  %v2018_v51 = vadd.f32 %v4424_v23, %v1833_v18  ;;  %v1836_v41 = vmul.f32 0.0, %v1807_v32  ;;  %v1838_v23 = vmul.f32 0.0, %v4434_v8 }
 0x454   : > { %v2021_v35 = vadd.f32 %v4428_v48, %v1836_v41  ;;  %v2023_v32 = vadd.f32 %v4426_v10, %v1838_v23 }
 0x455   : > { %v2111_v38 = vpop.permute.xlu0 %2110 }
 0x456   : > { %v2188_v63 = vmul.f32 %v2111_v38, %v2009_v22 }
 0x459   : > { %v2126_v6 = vpop.permute.xlu1 %2125 }
 0x45a   : > { %v2191_v34 = vmul.f32 %v2126_v6, %v2012_v39  ;;  %v2141_v25 = vpop.permute.xlu0 %2140 }
 0x45b   : > { %v2194_v0 = vmul.f32 %v2141_v25, %v2015_v4 }
 0x45c   : > { %v2750_v53 = vpack.c.bf16 %v2191_v34, %v2190_v16 }
 0x45d   : > { %v2116_v17 = vpop.permute.xlu1 %2115 }
 0x45e   : > { %2796 = vst [vmem:[%s4439_s0 + $0x8] sm:$0xff] %v2750_v53   ;;  %v2189_v36 = vmul.f32 %v2116_v17, %v2010_v40  ;;  %v2131_v50 = vpop.permute.xlu0 %2130 }
 0x45f   : > { %v2192_v14 = vmul.f32 %v2131_v50, %v2013_v44 }
 0x460   : > { %v2745_v52 = vpack.c.bf16 %v2189_v36, %v2188_v63 }
 0x461   : > { %v2146_v49 = vpop.permute.xlu1 %2145 }
 0x462   : > { %2746 = vst [vmem:[%s4439_s0] sm:$0xff] %v2745_v52   ;;  %v2195_v43 = vmul.f32 %v2146_v49, %v2016_v30  ;;  %v2161_v33 = vpop.permute.xlu0 %2160 }
 0x463   : > { %v2198_v5 = vmul.f32 %v2161_v33, %v2019_v54 }
 0x464   : > { %v2760_v62 = vpack.c.bf16 %v2195_v43, %v2194_v0 }
 0x465   : > { %v2136_v20 = vpop.permute.xlu1 %2135  ;;  %v2315_v8 = vld [vmem:[%s4439_s0 + $0x8] sm:$0xf] (%p4548_p12)  ;;  %v2317_v31 = vld [vmem:[%s4439_s0 + $0xc] sm:$0xf] (%p4548_p12) }
 0x466   : > { %2798 = vst [vmem:[%s4439_s0 + $0x18] sm:$0xff] %v2760_v62   ;;  %v2193_v12 = vmul.f32 %v2136_v20, %v2014_v15  ;;  %2316 = vst [vmem:[%s2295_s21 + $0x10] sm:$0xf] (%p4548_p12), %v2315_v8 }
 0x467   : > { %2318 = vst [vmem:[%s2295_s21 + $0x18] sm:$0xf] (%p4548_p12), %v2317_v31 }
 0x468   : > { %v2755_v26 = vpack.c.bf16 %v2193_v12, %v2192_v14 }
 0x469   : > { %v2151_v24 = vpop.permute.xlu0 %2150  ;;  %v2311_v10 = vld [vmem:[%s4439_s0] sm:$0xf] (%p4548_p12)  ;;  %v2313_v13 = vld [vmem:[%s4439_s0 + $0x4] sm:$0xf] (%p4548_p12) }
 0x46a   : > { %2797 = vst [vmem:[%s4439_s0 + $0x10] sm:$0xff] %v2755_v26   ;;  %v2196_v29 = vmul.f32 %v2151_v24, %v2017_v19  ;;  %2312 = vst [vmem:[%s2295_s21] sm:$0xf] (%p4548_p12), %v2311_v10 }
 0x46b   : > { %2314 = vst [vmem:[%s2295_s21 + $0x8] sm:$0xf] (%p4548_p12), %v2313_v13 }
 0x46d   : > { %v2323_v17 = vld [vmem:[%s4439_s0 + $0x18] sm:$0xf] (%p4548_p12)  ;;  %v2325_v47 = vld [vmem:[%s4439_s0 + $0x1c] sm:$0xf] (%p4548_p12) }
 0x46e   : > { %2324 = vst [vmem:[%s2295_s21 + $0x30] sm:$0xf] (%p4548_p12), %v2323_v17  ;;  %2326 = vst [vmem:[%s2295_s21 + $0x38] sm:$0xf] (%p4548_p12), %v2325_v47 }
 0x471   : > { %v2166_v55 = vpop.permute.xlu1 %2165  ;;  %v2319_v40 = vld [vmem:[%s4439_s0 + $0x10] sm:$0xf] (%p4548_p12)  ;;  %v2321_v53 = vld [vmem:[%s4439_s0 + $0x14] sm:$0xf] (%p4548_p12) }
 0x472   : > { %v2199_v27 = vmul.f32 %v2166_v55, %v2020_v42  ;;  %v2171_v58 = vpop.permute.xlu0 %2170  ;;  %2320 = vst [vmem:[%s2295_s21 + $0x20] sm:$0xf] (%p4548_p12), %v2319_v40  ;;  %2322 = vst [vmem:[%s2295_s21 + $0x28] sm:$0xf] (%p4548_p12), %v2321_v53 }
 0x473   : > { %v2200_v6 = vmul.f32 %v2171_v58, %v2021_v35 }
 0x474   : > { %v2770_v28 = vpack.c.bf16 %v2199_v27, %v2198_v5 }
 0x475   : > { %v2156_v57 = vpop.permute.xlu1 %2155 }
 0x476   : > { %2800 = vst [vmem:[%s4439_s0 + $0x28] sm:$0xff] %v2770_v28   ;;  %v2197_v39 = vmul.f32 %v2156_v57, %v2018_v51  ;;  %v2181_v9 = vpop.permute.xlu0 %2180 }
 0x477   : > { %v2202_v48 = vmul.f32 %v2181_v9, %v2023_v32 }
 0x478   : > { %v2765_v1 = vpack.c.bf16 %v2197_v39, %v2196_v29 }
 0x479   : > { %v2176_v38 = vpop.permute.xlu1 %2175 }
 0x47a   : > { %2799 = vst [vmem:[%s4439_s0 + $0x20] sm:$0xff] %v2765_v1   ;;  %v2201_v56 = vmul.f32 %v2176_v38, %v2022_v3 }
 0x47c   : > { %v2775_v16 = vpack.c.bf16 %v2201_v56, %v2200_v6  ;;  %2290 = sbr.rel (!%p4548_p12) target bundleno = 1163 (0x48b), region = 195 }
 0x47d   : > { %v2186_v34 = vpop.permute.xlu1 %2185  ;;  %v2331_v25 = vld [vmem:[%s4439_s0 + $0x28] sm:$0xf] (%p4548_p12)  ;;  %v2333_v36 = vld [vmem:[%s4439_s0 + $0x2c] sm:$0xf] (%p4548_p12) }
 0x47e   : > { %2801 = vst [vmem:[%s4439_s0 + $0x30] sm:$0xff] %v2775_v16   ;;  %v2203_v59 = vmul.f32 %v2186_v34, %v2024_v7  ;;  %2332 = vst [vmem:[%s2295_s21 + $0x50] sm:$0xf] (%p4548_p12), %v2331_v25 }
 0x47f   : > { %2334 = vst [vmem:[%s2295_s21 + $0x58] sm:$0xf] (%p4548_p12), %v2333_v36 }
 0x480   : > { %v2780_v22 = vpack.c.bf16 %v2203_v59, %v2202_v48 }
 0x481   : > { %v2327_v46 = vld [vmem:[%s4439_s0 + $0x20] sm:$0xf] (%p4548_p12)  ;;  %v2329_v63 = vld [vmem:[%s4439_s0 + $0x24] sm:$0xf] (%p4548_p12) }
 0x482   : > { %2802 = vst [vmem:[%s4439_s0 + $0x38] sm:$0xff] %v2780_v22   ;;  %2328 = vst [vmem:[%s2295_s21 + $0x40] sm:$0xf] (%p4548_p12), %v2327_v46 }
 0x483   : > { %2330 = vst [vmem:[%s2295_s21 + $0x48] sm:$0xf] %v2329_v63 }
 0x485   : > { %v2335_v4 = vld [vmem:[%s4439_s0 + $0x30] sm:$0xf]  ;;  %v2337_v30 = vld [vmem:[%s4439_s0 + $0x34] sm:$0xf] }
 0x486   : > { %2336 = vst [vmem:[%s2295_s21 + $0x60] sm:$0xf] %v2335_v4  ;;  %2338 = vst [vmem:[%s2295_s21 + $0x68] sm:$0xf] %v2337_v30 }
 0x489   : > { %v2339_v52 = vld [vmem:[%s4439_s0 + $0x38] sm:$0xf]  ;;  %v2341_v49 = vld [vmem:[%s4439_s0 + $0x3c] sm:$0xf] }
 0x48a   : > { %2340 = vst [vmem:[%s2295_s21 + $0x70] sm:$0xf] %v2339_v52  ;;  %2342 = vst [vmem:[%s2295_s21 + $0x78] sm:$0xf] %v2341_v49 }
 0x48b PF: > { %s19_s13 = sadd.s32 1, %s3221_s13   ;;  %s4549_s11 = sld [smem:[#allocation15_spill]] }
 0x48c   : > { %p16_p13 = scmp.ge.s32.totalorder %s19_s13, 4   ;;  %s4550_s22 = sld [smem:[#allocation14_spill]] }
 0x48d   : > { %s4551_s20 = sld [smem:[#allocation13_spill]]  ;;  %s4552_s15 = sld [smem:[#allocation12_spill]] }
 0x48e   : > { %s4553_s27 = smov %s3193_s28  ;;  %s4555_s29 = smov %s3201_s30 }
 0x48f   : > { %s4557_s9 = smov %s3209_s10  ;;  %18 = sbr.rel (!%p16_p13) target bundleno = 7 (0x7), region = 296 }
 0x491   : > { %s4554_s28 = smov %s4549_s11  ;;  %s4559_s11 = smov %s3217_s12 }
 0x492   : > { %s4556_s30 = smov %s4550_s22 }
 0x493   : > { %s4558_s10 = smov %s4551_s20  ;;  %s4560_s12 = smov %s4552_s15 }
 0x496   :  { %2407 = vsyncpa [#allocation6], 1 }
 0x497   :  { %2409 = vsyncpa [#allocation6 + $0x1], 1 }

// kernel: baichuan_forward.17
= control target key start
LH: loop header
LB: loop body
LE: loop exit
PB: predicated region body
PF: predicated region fallthrough
CT: control target
= control target key end

     0   :  { %s1292_s12 = smov 0   ;;  %s1294_s13 = smov 0   ;;  %s1583_s0 = inlined_call_operand.vmem [shape: bf16[1,256], index: 0, kind: input, shape index: {}]   ;;  %s1584_s1 = inlined_call_operand.vmem [shape: f32[1,256], index: 1, kind: input, shape index: {}]   ;;  %s1585_s2 = inlined_call_operand.vmem [shape: bf16[256,1024], index: 2, kind: input, shape index: {}]   ;;  %s1586_s3 = inlined_call_operand.vmem [shape: f32[1,1024], index: 3, kind: output, shape index: {}]  }
   0x1   :  { %s1296_s14 = smov 0   ;;  %s1298_s15 = smov 0  }
   0x2   :  { %s1300_s16 = smov 0  }
   0x3 LB: > { %s22_s17 = sadd.s32 1, %s1263_s15  ;;  %p86_p1 = scmp.ne.s32.totalorder %s1255_s13, %s1251_s12  ;;  %s1267_s16 = sphi %s1300_s16, %s13_s16   ;;  %s1263_s15 = sphi %s1298_s15, %s1590_s15   ;;  %s1259_s14 = sphi %s1296_s14, %s1589_s14   ;;  %s1255_s13 = sphi %s1294_s13, %s1588_s13   ;;  %s1251_s12 = sphi %s1292_s12, %s1587_s12  }
   0x4   : > { %p23_p0 = scmp.ge.s32.totalorder %s22_s17, 2  ;;  %p87_p2 = scmp.eq.s32.totalorder %s1267_s16, 0 }
   0x5   : > { %s79_s19 = sadd.s32 1, %s1255_s13  ;;  %p1014_p5 = scmp.ge.s32.totalorder %s1267_s16, 2 }
   0x6   : > { %s1592_s17 = smov (%p23_p0, %s22_s17), 0  ;;  %p88_p3 = por %p87_p2, %p86_p1 }
   0x7   : > { %s76_s18 = ssub.s32 %s1263_s15, %s1592_s17  ;;  %150 = sbr.rel (%p1014_p5) target bundleno = 50 (0x32), region = 24 }
   0x8   : > { %p77_p4 = scmp.eq.s32.totalorder %s76_s18, 0 }
   0xa   : > { %s1327_s20 = scalar_select %p77_p4, %s1255_s13, %s79_s19  }
   0xe   : > { %153 = sbr.rel (!%p88_p3) target bundleno = 50 (0x32), region = 28  ;;  %s155_s21 = sand.u32 (%p88_p3), 1, %s1255_s13  }
   0xf   : > { %s1087_s22 = sshll.u32 (%p88_p3), %s1263_s15, 4  ;;  %s1015_s23 = sshll.u32 (%p88_p3), %s155_s21, 9 }
  0x10   : > { %s1335_s26 = scalar_lea.vmem (%p88_p3), %s1585_s2, %s1087_s22  ;;  %s1340_s27 = scalar_lea.vmem (%p88_p3), [#allocation2], %s1015_s23 }
  0x11   : > { %v173_v0 = vld [vmem:[%s1335_s26] sm:$0xff] (%p88_p3)  ;;  %v175_v1 = vld [vmem:[%s1335_s26 + $0x8] sm:$0xff] (%p88_p3) }
  0x12   : > { %v177_v2 = vld [vmem:[%s1335_s26 + $0x20] sm:$0xff] (%p88_p3)  ;;  %174 = vst [vmem:[%s1340_s27] sm:$0xff] (%p88_p3), %v173_v0  ;;  %176 = vst [vmem:[%s1340_s27 + $0x8] sm:$0xff] (%p88_p3), %v175_v1  ;;  %v179_v3 = vld [vmem:[%s1335_s26 + $0x28] sm:$0xff] (%p88_p3) }
  0x13   : > { %178 = vst [vmem:[%s1340_s27 + $0x10] sm:$0xff] (%p88_p3), %v177_v2  ;;  %v181_v4 = vld [vmem:[%s1335_s26 + $0x40] sm:$0xff] (%p88_p3)  ;;  %v183_v5 = vld [vmem:[%s1335_s26 + $0x48] sm:$0xff] (%p88_p3)  ;;  %180 = vst [vmem:[%s1340_s27 + $0x18] sm:$0xff] (%p88_p3), %v179_v3 }
  0x14   : > { %182 = vst [vmem:[%s1340_s27 + $0x20] sm:$0xff] (%p88_p3), %v181_v4  ;;  %184 = vst [vmem:[%s1340_s27 + $0x28] sm:$0xff] (%p88_p3), %v183_v5  ;;  %v185_v6 = vld [vmem:[%s1335_s26 + $0x60] sm:$0xff] (%p88_p3)  ;;  %v187_v7 = vld [vmem:[%s1335_s26 + $0x68] sm:$0xff] (%p88_p3) }
  0x15   : > { %v189_v8 = vld [vmem:[%s1335_s26 + $0x80] sm:$0xff]  ;;  %186 = vst [vmem:[%s1340_s27 + $0x30] sm:$0xff] %v185_v6  ;;  %188 = vst [vmem:[%s1340_s27 + $0x38] sm:$0xff] %v187_v7  ;;  %v191_v9 = vld [vmem:[%s1335_s26 + $0x88] sm:$0xff] }
  0x16   : > { %190 = vst [vmem:[%s1340_s27 + $0x40] sm:$0xff] %v189_v8  ;;  %v193_v10 = vld [vmem:[%s1335_s26 + $0xa0] sm:$0xff]  ;;  %v195_v11 = vld [vmem:[%s1335_s26 + $0xa8] sm:$0xff]  ;;  %192 = vst [vmem:[%s1340_s27 + $0x48] sm:$0xff] %v191_v9 }
  0x17   : > { %194 = vst [vmem:[%s1340_s27 + $0x50] sm:$0xff] %v193_v10  ;;  %196 = vst [vmem:[%s1340_s27 + $0x58] sm:$0xff] %v195_v11  ;;  %v197_v12 = vld [vmem:[%s1335_s26 + $0xc0] sm:$0xff]  ;;  %v199_v13 = vld [vmem:[%s1335_s26 + $0xc8] sm:$0xff] }
  0x18   : > { %v201_v14 = vld [vmem:[%s1335_s26 + $0xe0] sm:$0xff]  ;;  %198 = vst [vmem:[%s1340_s27 + $0x60] sm:$0xff] %v197_v12  ;;  %200 = vst [vmem:[%s1340_s27 + $0x68] sm:$0xff] %v199_v13  ;;  %v203_v15 = vld [vmem:[%s1335_s26 + $0xe8] sm:$0xff] }
  0x19   : > { %202 = vst [vmem:[%s1340_s27 + $0x70] sm:$0xff] %v201_v14  ;;  %v205_v16 = vld [vmem:[%s1335_s26 + $0x100] sm:$0xff]  ;;  %v207_v17 = vld [vmem:[%s1335_s26 + $0x108] sm:$0xff]  ;;  %204 = vst [vmem:[%s1340_s27 + $0x78] sm:$0xff] %v203_v15 }
  0x1a   : > { %206 = vst [vmem:[%s1340_s27 + $0x80] sm:$0xff] %v205_v16  ;;  %208 = vst [vmem:[%s1340_s27 + $0x88] sm:$0xff] %v207_v17  ;;  %v209_v18 = vld [vmem:[%s1335_s26 + $0x120] sm:$0xff]  ;;  %v211_v19 = vld [vmem:[%s1335_s26 + $0x128] sm:$0xff] }
  0x1b   : > { %v213_v20 = vld [vmem:[%s1335_s26 + $0x140] sm:$0xff]  ;;  %210 = vst [vmem:[%s1340_s27 + $0x90] sm:$0xff] %v209_v18  ;;  %212 = vst [vmem:[%s1340_s27 + $0x98] sm:$0xff] %v211_v19  ;;  %v215_v21 = vld [vmem:[%s1335_s26 + $0x148] sm:$0xff] }
  0x1c   : > { %214 = vst [vmem:[%s1340_s27 + $0xa0] sm:$0xff] %v213_v20  ;;  %v217_v22 = vld [vmem:[%s1335_s26 + $0x160] sm:$0xff]  ;;  %v219_v23 = vld [vmem:[%s1335_s26 + $0x168] sm:$0xff]  ;;  %216 = vst [vmem:[%s1340_s27 + $0xa8] sm:$0xff] %v215_v21 }
  0x1d   : > { %218 = vst [vmem:[%s1340_s27 + $0xb0] sm:$0xff] %v217_v22  ;;  %220 = vst [vmem:[%s1340_s27 + $0xb8] sm:$0xff] %v219_v23  ;;  %v221_v24 = vld [vmem:[%s1335_s26 + $0x180] sm:$0xff]  ;;  %v223_v25 = vld [vmem:[%s1335_s26 + $0x188] sm:$0xff] }
  0x1e   : > { %v225_v26 = vld [vmem:[%s1335_s26 + $0x1a0] sm:$0xff]  ;;  %222 = vst [vmem:[%s1340_s27 + $0xc0] sm:$0xff] %v221_v24  ;;  %224 = vst [vmem:[%s1340_s27 + $0xc8] sm:$0xff] %v223_v25  ;;  %v227_v27 = vld [vmem:[%s1335_s26 + $0x1a8] sm:$0xff] }
  0x1f   : > { %226 = vst [vmem:[%s1340_s27 + $0xd0] sm:$0xff] %v225_v26  ;;  %v229_v28 = vld [vmem:[%s1335_s26 + $0x1c0] sm:$0xff]  ;;  %v231_v29 = vld [vmem:[%s1335_s26 + $0x1c8] sm:$0xff]  ;;  %228 = vst [vmem:[%s1340_s27 + $0xd8] sm:$0xff] %v227_v27 }
  0x20   : > { %230 = vst [vmem:[%s1340_s27 + $0xe0] sm:$0xff] %v229_v28  ;;  %232 = vst [vmem:[%s1340_s27 + $0xe8] sm:$0xff] %v231_v29  ;;  %v233_v30 = vld [vmem:[%s1335_s26 + $0x1e0] sm:$0xff]  ;;  %v235_v31 = vld [vmem:[%s1335_s26 + $0x1e8] sm:$0xff] }
  0x21   : > { %v237_v32 = vld [vmem:[%s1335_s26 + $0x200] sm:$0xff]  ;;  %234 = vst [vmem:[%s1340_s27 + $0xf0] sm:$0xff] %v233_v30  ;;  %236 = vst [vmem:[%s1340_s27 + $0xf8] sm:$0xff] %v235_v31  ;;  %v239_v33 = vld [vmem:[%s1335_s26 + $0x208] sm:$0xff] }
  0x22   : > { %238 = vst [vmem:[%s1340_s27 + $0x100] sm:$0xff] %v237_v32  ;;  %v241_v34 = vld [vmem:[%s1335_s26 + $0x220] sm:$0xff]  ;;  %v243_v35 = vld [vmem:[%s1335_s26 + $0x228] sm:$0xff]  ;;  %240 = vst [vmem:[%s1340_s27 + $0x108] sm:$0xff] %v239_v33 }
  0x23   : > { %242 = vst [vmem:[%s1340_s27 + $0x110] sm:$0xff] %v241_v34  ;;  %244 = vst [vmem:[%s1340_s27 + $0x118] sm:$0xff] %v243_v35  ;;  %v245_v36 = vld [vmem:[%s1335_s26 + $0x240] sm:$0xff]  ;;  %v247_v37 = vld [vmem:[%s1335_s26 + $0x248] sm:$0xff] }
  0x24   : > { %v249_v38 = vld [vmem:[%s1335_s26 + $0x260] sm:$0xff]  ;;  %246 = vst [vmem:[%s1340_s27 + $0x120] sm:$0xff] %v245_v36  ;;  %248 = vst [vmem:[%s1340_s27 + $0x128] sm:$0xff] %v247_v37  ;;  %v251_v39 = vld [vmem:[%s1335_s26 + $0x268] sm:$0xff] }
  0x25   : > { %250 = vst [vmem:[%s1340_s27 + $0x130] sm:$0xff] %v249_v38  ;;  %v253_v40 = vld [vmem:[%s1335_s26 + $0x280] sm:$0xff]  ;;  %v255_v41 = vld [vmem:[%s1335_s26 + $0x288] sm:$0xff]  ;;  %252 = vst [vmem:[%s1340_s27 + $0x138] sm:$0xff] %v251_v39 }
  0x26   : > { %254 = vst [vmem:[%s1340_s27 + $0x140] sm:$0xff] %v253_v40  ;;  %256 = vst [vmem:[%s1340_s27 + $0x148] sm:$0xff] %v255_v41  ;;  %v257_v42 = vld [vmem:[%s1335_s26 + $0x2a0] sm:$0xff]  ;;  %v259_v43 = vld [vmem:[%s1335_s26 + $0x2a8] sm:$0xff] }
  0x27   : > { %v261_v44 = vld [vmem:[%s1335_s26 + $0x2c0] sm:$0xff]  ;;  %258 = vst [vmem:[%s1340_s27 + $0x150] sm:$0xff] %v257_v42  ;;  %260 = vst [vmem:[%s1340_s27 + $0x158] sm:$0xff] %v259_v43  ;;  %v263_v45 = vld [vmem:[%s1335_s26 + $0x2c8] sm:$0xff] }
  0x28   : > { %262 = vst [vmem:[%s1340_s27 + $0x160] sm:$0xff] %v261_v44  ;;  %v265_v46 = vld [vmem:[%s1335_s26 + $0x2e0] sm:$0xff]  ;;  %v267_v47 = vld [vmem:[%s1335_s26 + $0x2e8] sm:$0xff]  ;;  %264 = vst [vmem:[%s1340_s27 + $0x168] sm:$0xff] %v263_v45 }
  0x29   : > { %266 = vst [vmem:[%s1340_s27 + $0x170] sm:$0xff] %v265_v46  ;;  %268 = vst [vmem:[%s1340_s27 + $0x178] sm:$0xff] %v267_v47  ;;  %v269_v48 = vld [vmem:[%s1335_s26 + $0x300] sm:$0xff]  ;;  %v271_v49 = vld [vmem:[%s1335_s26 + $0x308] sm:$0xff] }
  0x2a   : > { %v273_v50 = vld [vmem:[%s1335_s26 + $0x320] sm:$0xff]  ;;  %270 = vst [vmem:[%s1340_s27 + $0x180] sm:$0xff] %v269_v48  ;;  %272 = vst [vmem:[%s1340_s27 + $0x188] sm:$0xff] %v271_v49  ;;  %v275_v51 = vld [vmem:[%s1335_s26 + $0x328] sm:$0xff] }
  0x2b   : > { %274 = vst [vmem:[%s1340_s27 + $0x190] sm:$0xff] %v273_v50  ;;  %v277_v52 = vld [vmem:[%s1335_s26 + $0x340] sm:$0xff]  ;;  %v279_v53 = vld [vmem:[%s1335_s26 + $0x348] sm:$0xff]  ;;  %276 = vst [vmem:[%s1340_s27 + $0x198] sm:$0xff] %v275_v51 }
  0x2c   : > { %278 = vst [vmem:[%s1340_s27 + $0x1a0] sm:$0xff] %v277_v52  ;;  %280 = vst [vmem:[%s1340_s27 + $0x1a8] sm:$0xff] %v279_v53  ;;  %v281_v54 = vld [vmem:[%s1335_s26 + $0x360] sm:$0xff]  ;;  %v283_v55 = vld [vmem:[%s1335_s26 + $0x368] sm:$0xff] }
  0x2d   : > { %v285_v56 = vld [vmem:[%s1335_s26 + $0x380] sm:$0xff]  ;;  %282 = vst [vmem:[%s1340_s27 + $0x1b0] sm:$0xff] %v281_v54  ;;  %284 = vst [vmem:[%s1340_s27 + $0x1b8] sm:$0xff] %v283_v55  ;;  %v287_v57 = vld [vmem:[%s1335_s26 + $0x388] sm:$0xff] }
  0x2e   : > { %286 = vst [vmem:[%s1340_s27 + $0x1c0] sm:$0xff] %v285_v56  ;;  %v289_v58 = vld [vmem:[%s1335_s26 + $0x3a0] sm:$0xff]  ;;  %v291_v59 = vld [vmem:[%s1335_s26 + $0x3a8] sm:$0xff]  ;;  %288 = vst [vmem:[%s1340_s27 + $0x1c8] sm:$0xff] %v287_v57 }
  0x2f   : > { %290 = vst [vmem:[%s1340_s27 + $0x1d0] sm:$0xff] %v289_v58  ;;  %292 = vst [vmem:[%s1340_s27 + $0x1d8] sm:$0xff] %v291_v59  ;;  %v293_v60 = vld [vmem:[%s1335_s26 + $0x3c0] sm:$0xff]  ;;  %v295_v61 = vld [vmem:[%s1335_s26 + $0x3c8] sm:$0xff] }
  0x30   : > { %v297_v62 = vld [vmem:[%s1335_s26 + $0x3e0] sm:$0xff]  ;;  %294 = vst [vmem:[%s1340_s27 + $0x1e0] sm:$0xff] %v293_v60  ;;  %296 = vst [vmem:[%s1340_s27 + $0x1e8] sm:$0xff] %v295_v61  ;;  %v299_v63 = vld [vmem:[%s1335_s26 + $0x3e8] sm:$0xff] }
  0x31   : > { %298 = vst [vmem:[%s1340_s27 + $0x1f0] sm:$0xff] %v297_v62  ;;  %300 = vst [vmem:[%s1340_s27 + $0x1f8] sm:$0xff] %v299_v63 }
  0x32 PF: > { %p1018_p6 = scmp.ge.s32.totalorder %s1267_s16, 1  ;;  %p305_p7 = scmp.lt.s32.totalorder %s1267_s16, 3 }
  0x34   : > { %p306_p8 = pnand %p1018_p6, %p305_p7 }
  0x35   : > { %v356_v0 = vld [vmem:[%s1583_s0] sm:$0x3] (!%p306_p8)  ;;  %v360_v1 = vlaneseq (!%p306_p8)  ;;  %s312_s30 = sand.u32 (!%p306_p8), 1, %s1251_s12   ;;  %vm370_vm0 = vcmask (!%p306_p8), 1040384   ;;  %s1020_s8 = sshll.u32 (!%p306_p8), %s1259_s14, 2 }
  0x36   : > { %309 = sbr.rel (%p306_p8) target bundleno = 454 (0x1c6), region = 51  ;;  %v1473_v2 = vunpack.c.l.bf16 (!%p306_p8), %v356_v0  ;;  %s1019_s4 = sshll.u32 (!%p306_p8), %s312_s30, 9 }
  0x37   : > { %v1476_v3 = vshrl.u32 (!%p306_p8), %v360_v1, 7  ;;  %s1480_s5 = scalar_lea.vmem (!%p306_p8), [#allocation2], %s1019_s4  ;;  %p350_p9 = scmp.lt.s32.totalorder (!%p306_p8), %s1020_s8, 7  ;;  %vm911_vm1 = vcmp.lt.s32.totalorder (!%p306_p8), %v360_v1, 512 }
  0x38   : > { %v358_v4 = vmul.f32 (!%p306_p8), %v1473_v2, %v1473_v2  ;;  %v1131_v5 = vld [vmem:[%s1480_s5 + $0x4] ss:$16 sps:$4 sm:$0xff] (!%p306_p8)   ;;  %v1133_v8 = vld [vmem:[%s1480_s5 + $0xc] ss:$16 sps:$4 sm:$0xff] (!%p306_p8)   ;;  %v1135_v9 = vld [vmem:[%s1480_s5] ss:$16 sps:$4 sm:$0xff] (!%p306_p8)  }
  0x39   : > { %v362_v6 = vsub.s32 (!%p306_p8), 0, %v1476_v3  ;;  %v366_v7 = vsub.s32 (!%p306_p8), 2, %v1476_v3  ;;  %798 = vmatprep.subr.bf16.mxu0 (!%p306_p8), %v1131_v5  ;;  %v1136_v10 = vld [vmem:[%s1480_s5 + $0x8] ss:$16 sps:$4 sm:$0xff] (!%p306_p8)   ;;  %839 = vmatprep.subr.bf16.mxu1 (!%p306_p8), %v1133_v8  ;;  %v1137_v13 = vld [vmem:[%s1480_s5 + $0x24] ss:$16 sps:$4 sm:$0xff] (!%p306_p8)  }
  0x3a   : > { %799 = vmatpush1.bf16.msra.mxu0 (!%p306_p8), %v1135_v9  ;;  %840 = vmatpush1.bf16.msra.mxu1 (!%p306_p8), %v1136_v10  ;;  %v1139_v14 = vld [vmem:[%s1480_s5 + $0x2c] ss:$16 sps:$4 sm:$0xff] (!%p306_p8)   ;;  %v1141_v15 = vld [vmem:[%s1480_s5 + $0x20] ss:$16 sps:$4 sm:$0xff] (!%p306_p8)   ;;  %v1142_v18 = vld [vmem:[%s1480_s5 + $0x28] ss:$16 sps:$4 sm:$0xff] (!%p306_p8)  }
  0x3b   : > { %v363_v11 = vrot.slane (!%p306_p8), %v358_v4, %v362_v6  ;;  %v367_v12 = vrot.slane (!%p306_p8), %v358_v4, %v366_v7  ;;  %800 = vmatprep.subr.bf16.mxu0 (!%p306_p8), %v1137_v13  ;;  %841 = vmatprep.subr.bf16.mxu1 (!%p306_p8), %v1139_v14  ;;  %v1143_v20 = vld [vmem:[%s1480_s5 + $0x44] ss:$16 sps:$4 sm:$0xff] (!%p306_p8)   ;;  %v1145_v21 = vld [vmem:[%s1480_s5 + $0x4c] ss:$16 sps:$4 sm:$0xff] (!%p306_p8)   ;;  %v1147_v22 = vld [vmem:[%s1480_s5 + $0x40] ss:$16 sps:$4 sm:$0xff] (!%p306_p8)  }
  0x3c   : > { %v1148_v23 = vld [vmem:[%s1480_s5 + $0x48] ss:$16 sps:$4 sm:$0xff] (!%p306_p8)   ;;  %v1149_v24 = vld [vmem:[%s1480_s5 + $0x64] ss:$16 sps:$4 sm:$0xff] (!%p306_p8)   ;;  %v1151_v25 = vld [vmem:[%s1480_s5 + $0x6c] ss:$16 sps:$4 sm:$0xff] (!%p306_p8)  }
  0x3d   : > { %v371_v16 = vsel %vm370_vm0, %v363_v11, 0.0  ;;  %v372_v17 = vsel %vm370_vm0, %v367_v12, 0.0  ;;  %v1153_v26 = vld [vmem:[%s1480_s5 + $0x60] ss:$16 sps:$4 sm:$0xff]   ;;  %v1154_v27 = vld [vmem:[%s1480_s5 + $0x68] ss:$16 sps:$4 sm:$0xff]  }
  0x3e   : > { %v373_v19 = vadd.f32 %v372_v17, %v371_v16  ;;  %801 = vmatpush1.bf16.msra.mxu0 %v1141_v15  ;;  %842 = vmatpush1.bf16.msra.mxu1 %v1142_v18  ;;  %v1155_v28 = vld [vmem:[%s1480_s5 + $0x84] ss:$16 sps:$4 sm:$0xff]   ;;  %v1157_v29 = vld [vmem:[%s1480_s5 + $0x8c] ss:$16 sps:$4 sm:$0xff]   ;;  %v1159_v30 = vld [vmem:[%s1480_s5 + $0x80] ss:$16 sps:$4 sm:$0xff]  }
  0x3f   : > { %802 = vmatprep.subr.bf16.mxu0 %v1143_v20  ;;  %843 = vmatprep.subr.bf16.mxu1 %v1145_v21  ;;  %v1160_v31 = vld [vmem:[%s1480_s5 + $0x88] ss:$16 sps:$4 sm:$0xff]   ;;  %v1161_v32 = vld [vmem:[%s1480_s5 + $0xa4] ss:$16 sps:$4 sm:$0xff]   ;;  %v1163_v33 = vld [vmem:[%s1480_s5 + $0xac] ss:$16 sps:$4 sm:$0xff]  }
  0x40   : > { %374 = vadd.xlane.f32.xlu0 %v373_v19  ;;  %v1165_v34 = vld [vmem:[%s1480_s5 + $0xa0] ss:$16 sps:$4 sm:$0xff]   ;;  %v1166_v35 = vld [vmem:[%s1480_s5 + $0xa8] ss:$16 sps:$4 sm:$0xff]   ;;  %v1167_v36 = vld [vmem:[%s1480_s5 + $0xc4] ss:$16 sps:$4 sm:$0xff]  }
  0x41   : > { %v1169_v37 = vld [vmem:[%s1480_s5 + $0xcc] ss:$16 sps:$4 sm:$0xff]   ;;  %v1171_v38 = vld [vmem:[%s1480_s5 + $0xc0] ss:$16 sps:$4 sm:$0xff]   ;;  %v1172_v39 = vld [vmem:[%s1480_s5 + $0xc8] ss:$16 sps:$4 sm:$0xff]  }
  0x42   : > { %803 = vmatpush1.bf16.msra.mxu0 %v1147_v22  ;;  %844 = vmatpush1.bf16.msra.mxu1 %v1148_v23  ;;  %v1173_v40 = vld [vmem:[%s1480_s5 + $0xe4] ss:$16 sps:$4 sm:$0xff]   ;;  %v1175_v41 = vld [vmem:[%s1480_s5 + $0xec] ss:$16 sps:$4 sm:$0xff]   ;;  %v1177_v42 = vld [vmem:[%s1480_s5 + $0xe0] ss:$16 sps:$4 sm:$0xff]  }
  0x43   : > { %804 = vmatprep.subr.bf16.mxu0 %v1149_v24  ;;  %845 = vmatprep.subr.bf16.mxu1 %v1151_v25  ;;  %v1178_v43 = vld [vmem:[%s1480_s5 + $0xe8] ss:$16 sps:$4 sm:$0xff]   ;;  %v1179_v44 = vld [vmem:[%s1480_s5 + $0x104] ss:$16 sps:$4 sm:$0xff]   ;;  %v1181_v45 = vld [vmem:[%s1480_s5 + $0x10c] ss:$16 sps:$4 sm:$0xff]  }
  0x44   : > { %v1183_v46 = vld [vmem:[%s1480_s5 + $0x100] ss:$16 sps:$4 sm:$0xff]   ;;  %v1184_v47 = vld [vmem:[%s1480_s5 + $0x108] ss:$16 sps:$4 sm:$0xff]   ;;  %v1185_v48 = vld [vmem:[%s1480_s5 + $0x124] ss:$16 sps:$4 sm:$0xff]  }
  0x45   : > { %v1187_v49 = vld [vmem:[%s1480_s5 + $0x12c] ss:$16 sps:$4 sm:$0xff]   ;;  %v1189_v50 = vld [vmem:[%s1480_s5 + $0x120] ss:$16 sps:$4 sm:$0xff]   ;;  %v1190_v51 = vld [vmem:[%s1480_s5 + $0x128] ss:$16 sps:$4 sm:$0xff]  }
  0x46   : > { %805 = vmatpush1.bf16.msra.mxu0 %v1153_v26  ;;  %846 = vmatpush1.bf16.msra.mxu1 %v1154_v27  ;;  %v1191_v52 = vld [vmem:[%s1480_s5 + $0x144] ss:$16 sps:$4 sm:$0xff]   ;;  %v1193_v53 = vld [vmem:[%s1480_s5 + $0x14c] ss:$16 sps:$4 sm:$0xff]   ;;  %v1195_v54 = vld [vmem:[%s1480_s5 + $0x140] ss:$16 sps:$4 sm:$0xff]  }
  0x47   : > { %806 = vmatprep.subr.bf16.mxu0 %v1155_v28  ;;  %847 = vmatprep.subr.bf16.mxu1 %v1157_v29  ;;  %v1196_v55 = vld [vmem:[%s1480_s5 + $0x148] ss:$16 sps:$4 sm:$0xff]   ;;  %v1197_v56 = vld [vmem:[%s1480_s5 + $0x164] ss:$16 sps:$4 sm:$0xff]   ;;  %v1199_v57 = vld [vmem:[%s1480_s5 + $0x16c] ss:$16 sps:$4 sm:$0xff]  }
  0x48   : > { %v1201_v58 = vld [vmem:[%s1480_s5 + $0x160] ss:$16 sps:$4 sm:$0xff]   ;;  %v1202_v59 = vld [vmem:[%s1480_s5 + $0x168] ss:$16 sps:$4 sm:$0xff]   ;;  %v1203_v60 = vld [vmem:[%s1480_s5 + $0x184] ss:$16 sps:$4 sm:$0xff]  }
  0x49   : > { %v1205_v61 = vld [vmem:[%s1480_s5 + $0x18c] ss:$16 sps:$4 sm:$0xff]   ;;  %v1207_v62 = vld [vmem:[%s1480_s5 + $0x180] ss:$16 sps:$4 sm:$0xff]   ;;  %v1208_v63 = vld [vmem:[%s1480_s5 + $0x188] ss:$16 sps:$4 sm:$0xff]  }
  0x4a   : > { %807 = vmatpush1.bf16.msra.mxu0 %v1159_v30  ;;  %848 = vmatpush1.bf16.msra.mxu1 %v1160_v31  ;;  %v1209_v0 = vld [vmem:[%s1480_s5 + $0x1a4] ss:$16 sps:$4 sm:$0xff]   ;;  %v1211_v4 = vld [vmem:[%s1480_s5 + $0x1ac] ss:$16 sps:$4 sm:$0xff]   ;;  %v1213_v5 = vld [vmem:[%s1480_s5 + $0x1a0] ss:$16 sps:$4 sm:$0xff]  }
  0x4b   : > { %808 = vmatprep.subr.bf16.mxu0 %v1161_v32  ;;  %849 = vmatprep.subr.bf16.mxu1 %v1163_v33  ;;  %v1214_v8 = vld [vmem:[%s1480_s5 + $0x1a8] ss:$16 sps:$4 sm:$0xff]   ;;  %v1215_v9 = vld [vmem:[%s1480_s5 + $0x1c4] ss:$16 sps:$4 sm:$0xff]   ;;  %v1217_v10 = vld [vmem:[%s1480_s5 + $0x1cc] ss:$16 sps:$4 sm:$0xff]  }
  0x4c   : > { %v1219_v11 = vld [vmem:[%s1480_s5 + $0x1c0] ss:$16 sps:$4 sm:$0xff]   ;;  %v1220_v12 = vld [vmem:[%s1480_s5 + $0x1c8] ss:$16 sps:$4 sm:$0xff]   ;;  %v1221_v13 = vld [vmem:[%s1480_s5 + $0x1e4] ss:$16 sps:$4 sm:$0xff]  }
  0x4d   : > { %v1223_v14 = vld [vmem:[%s1480_s5 + $0x1ec] ss:$16 sps:$4 sm:$0xff]   ;;  %v1225_v15 = vld [vmem:[%s1480_s5 + $0x1e0] ss:$16 sps:$4 sm:$0xff]   ;;  %v1226_v16 = vld [vmem:[%s1480_s5 + $0x1e8] ss:$16 sps:$4 sm:$0xff]  }
  0x4e   : > { %809 = vmatpush1.bf16.msra.mxu0 %v1165_v34  ;;  %850 = vmatpush1.bf16.msra.mxu1 %v1166_v35  ;;  %v1269_v20 = vmov 269488144   ;;  %v1270_v22 = vmov 857870592   ;;  %v390_v28 = vld [vmem:[%s1584_s1] sm:$0x3] }
  0x4f   : > { %810 = vmatprep.subr.bf16.mxu0 %v1167_v36  ;;  %851 = vmatprep.subr.bf16.mxu1 %v1169_v37  ;;  %v382_v21 = vunpack.c.l.s4 %v1269_v20  ;;  %v393_v23 = vunpack.c.l.s4 %v1270_v22  ;;  %s1594_s8 = smov (!%p350_p9, %s1020_s8), 7 }
  0x50   : > { %s354_s11 = scalar_lea.vmem %s1586_s3, %s1594_s8 }
  0x51   : > { %v383_v24 = vunpack.c.0.s8 %v382_v21  ;;  %v394_v25 = vunpack.c.0.s8 %v393_v23 }
  0x52   : > { %811 = vmatpush1.bf16.msra.mxu0 %v1171_v38  ;;  %852 = vmatpush1.bf16.msra.mxu1 %v1172_v39  ;;  %v1271_v38 = vmov 1966171168  }
  0x53   : > { %812 = vmatprep.subr.bf16.mxu0 %v1173_v40  ;;  %853 = vmatprep.subr.bf16.mxu1 %v1175_v41  ;;  %v386_v26 = vsub.s32 %v383_v24, %v1476_v3  ;;  %v397_v27 = vsub.s32 %v394_v25, %v1476_v3  ;;  %v887_v39 = vunpack.c.l.s4 %v1271_v38 }
  0x55   : > { %v398_v31 = vrot.slane %v390_v28, %v397_v27  ;;  %v888_v40 = vunpack.c.0.s8 %v887_v39 }
  0x56   : > { %813 = vmatpush1.bf16.msra.mxu0 %v1177_v42  ;;  %854 = vmatpush1.bf16.msra.mxu1 %v1178_v43 }
  0x57   : > { %814 = vmatprep.subr.bf16.mxu0 %v1179_v44  ;;  %855 = vmatprep.subr.bf16.mxu1 %v1181_v45  ;;  %v891_v42 = vsub.s32 %v888_v40, %v1476_v3 }
  0x5a   : > { %815 = vmatpush1.bf16.msra.mxu0 %v1183_v46  ;;  %856 = vmatpush1.bf16.msra.mxu1 %v1184_v47 }
  0x5b   : > { %816 = vmatprep.subr.bf16.mxu0 %v1185_v48  ;;  %857 = vmatprep.subr.bf16.mxu1 %v1187_v49 }
  0x5e   : > { %817 = vmatpush1.bf16.msra.mxu0 %v1189_v50  ;;  %858 = vmatpush1.bf16.msra.mxu1 %v1190_v51 }
  0x5f   : > { %818 = vmatprep.subr.bf16.mxu0 %v1191_v52  ;;  %859 = vmatprep.subr.bf16.mxu1 %v1193_v53 }
  0x62   : > { %819 = vmatpush1.bf16.msra.mxu0 %v1195_v54  ;;  %860 = vmatpush1.bf16.msra.mxu1 %v1196_v55 }
  0x63   : > { %820 = vmatprep.subr.bf16.mxu0 %v1197_v56  ;;  %861 = vmatprep.subr.bf16.mxu1 %v1199_v57 }
  0x66   : > { %821 = vmatpush1.bf16.msra.mxu0 %v1201_v58  ;;  %862 = vmatpush1.bf16.msra.mxu1 %v1202_v59 }
  0x67   : > { %822 = vmatprep.subr.bf16.mxu0 %v1203_v60  ;;  %863 = vmatprep.subr.bf16.mxu1 %v1205_v61 }
  0x6a   : > { %823 = vmatpush1.bf16.msra.mxu0 %v1207_v62  ;;  %864 = vmatpush1.bf16.msra.mxu1 %v1208_v63 }
  0x6b   : > { %824 = vmatprep.subr.bf16.mxu0 %v1209_v0  ;;  %865 = vmatprep.subr.bf16.mxu1 %v1211_v4 }
  0x6e   : > { %825 = vmatpush1.bf16.msra.mxu0 %v1213_v5  ;;  %866 = vmatpush1.bf16.msra.mxu1 %v1214_v8 }
  0x6f   : > { %826 = vmatprep.subr.bf16.mxu0 %v1215_v9  ;;  %867 = vmatprep.subr.bf16.mxu1 %v1217_v10 }
  0x72   : > { %827 = vmatpush1.bf16.msra.mxu0 %v1219_v11  ;;  %868 = vmatpush1.bf16.msra.mxu1 %v1220_v12 }
  0x73   : > { %828 = vmatprep.subr.bf16.mxu0 %v1221_v13  ;;  %869 = vmatprep.subr.bf16.mxu1 %v1223_v14 }
  0x76   : > { %829 = vmatpush1.bf16.msra.mxu0 %v1225_v15  ;;  %870 = vmatpush1.bf16.msra.mxu1 %v1226_v16 }
  0xcd   : > { %v375_v17 = vpop.xlane.xlu0 %374 }
  0xce   : > { %v377_v18 = vmul.f32 0.00390625, %v375_v17 }
  0xd0   : > { %v378_v19 = vadd.f32 1e-06, %v377_v18 }
  0xd2   : > { %1227 = vrsqrt.f32 %v378_v19 }
  0xdc   : > { %v1228_v29 = vpop.eup %1227 }
  0xdd   : > { %v387_v30 = vrot.slane %v1228_v29, %v386_v26 }
  0xdf   : > { %v389_v32 = vmul.f32 %v387_v30, %v1473_v2 }
  0xe1   : > { %v400_v33 = vmul.f32 %v398_v31, %v389_v32 }
  0xe3   : > { %v409_v34 = vrot.slane %v400_v33, %v366_v7  ;;  %v405_v35 = vrot.slane %v400_v33, %v362_v6 }
  0xe5   : > { %v413_v36 = vpack.c.bf16 %v409_v34, %v409_v34  ;;  %v412_v37 = vpack.c.bf16 %v405_v35, %v405_v35 }
  0xe7   : > { %830 = vmatprep.mubr.bf16.mxu0 %v413_v36  ;;  %871 = vmatprep.mubr.bf16.mxu1 %v413_v36 }
  0xe8   : > { %831 = vmatmul.mubr.bf16.vlgmr.msra.gmra.mrb[0].mxu0 %v412_v37  ;;  %872 = vmatmul.mubr.bf16.vlgmr.msra.gmra.mrb[0].mxu1 %v412_v37 }
 0x1bb   : > { %v832_v41 = vpop.f32.mrb[0].mxu0  ;;  %v873_v2 = vpop.f32.mrb[0].mxu1 }
 0x1bc   : > { %v834_v43 = vpop.f32.mrb[1].mxu0  ;;  %v875_v7 = vpop.f32.mrb[1].mxu1 }
 0x1bd   : > { %v884_v44 = vcombine.low %v832_v41, %v834_v43  ;;  %v885_v45 = vcombine.low %v873_v2, %v875_v7  ;;  %v836_v6 = vpop.f32.mrb[2].mxu0  ;;  %v877_v46 = vpop.f32.mrb[2].mxu1 }
 0x1be   : > { %v837_v47 = vpop.f32.mrb[3].mxu0  ;;  %v878_v48 = vpop.f32.mrb[3].mxu1 }
 0x1bf   : > { %v892_v49 = vrot.slane %v884_v44, %v891_v42  ;;  %v899_v50 = vrot.slane %v885_v45, %v891_v42 }
 0x1c1   : > { %v900_v51 = vcombine.low %v892_v49, %v899_v50 }
 0x1c3   : > { %v907_v52 = vrot.slane %v900_v51, %v891_v42 }
 0x1c5   : > { %913 = vst.msk [vmem:[%s354_s11] sm:$0xf] %vm911_vm1, %v907_v52 }
 0x1c6 PF: > { %s13_s16 = sadd.s32 1, %s1267_s16   ;;  %s1587_s12 = smov %s1255_s13 }
 0x1c7   : > { %p10_p10 = scmp.ge.s32.totalorder %s13_s16, 4   ;;  %s1588_s13 = smov %s1327_s20 }
 0x1c8   : > { %s1589_s14 = smov %s1263_s15  ;;  %s1590_s15 = smov %s1592_s17 }
 0x1c9   :  { %12 = sbr.rel (!%p10_p10) target bundleno = 3 (0x3), region = 93 }

// kernel: baichuan_forward.12
= control target key start
LH: loop header
LB: loop body
LE: loop exit
PB: predicated region body
PF: predicated region fallthrough
CT: control target
= control target key end

     0   :  { %s5359_s0 = inlined_call_operand.vmem [shape: bf16[128,256], index: 0, kind: input, shape index: {}, may-alias: {0,5}]   ;;  %s5360_s2 = inlined_call_operand.vmem [shape: bf16[256,512], index: 2, kind: input, shape index: {}]   ;;  %s5361_s3 = inlined_call_operand.vmem [shape: bf16[256,512], index: 3, kind: input, shape index: {}]   ;;  %s5362_s1 = inlined_call_operand.vmem [shape: f32[1,256], index: 1, kind: input, shape index: {}]   ;;  %s5363_s4 = inlined_call_operand.vmem [shape: bf16[512,256], index: 4, kind: input, shape index: {}]   ;;  %s5364_s5 = inlined_call_operand.vmem [shape: bf16[128,256], index: 5, kind: input, shape index: {}, may-alias: {0,5}]   ;;  %s5365_s6 = inlined_call_operand.vmem [shape: bf16[128,256], index: 6, kind: output, shape index: {}]  }
   0x1   :  { %v27_v0 = vld [vmem:[%s5359_s0] sm:$0xff]  ;;  %v29_v1 = vld [vmem:[%s5359_s0 + $0x10] sm:$0xff]  ;;  %v28_v2 = vld [vmem:[%s5359_s0 + $0x8] sm:$0xff] }
   0x2   :  { %v4001_v3 = vunpack.c.l.bf16 %v27_v0  ;;  %v4003_v4 = vunpack.c.h.bf16 %v27_v0  ;;  %v4005_v5 = vunpack.c.l.bf16 %v29_v1  ;;  %v4007_v6 = vunpack.c.h.bf16 %v29_v1  ;;  %v30_v7 = vld [vmem:[%s5359_s0 + $0x18] sm:$0xff]  ;;  %v32_v12 = vld [vmem:[%s5359_s0 + $0x28] sm:$0xff]  ;;  %v31_v17 = vld [vmem:[%s5359_s0 + $0x20] sm:$0xff] }
   0x3   :  { %v4012_v8 = vunpack.c.l.bf16 %v28_v2  ;;  %v4014_v9 = vunpack.c.h.bf16 %v28_v2  ;;  %v4016_v10 = vunpack.c.l.bf16 %v30_v7  ;;  %v4018_v11 = vunpack.c.h.bf16 %v30_v7  ;;  %v34_v22 = vld [vmem:[%s5359_s0 + $0x38] sm:$0xff]  ;;  %v33_v23 = vld [vmem:[%s5359_s0 + $0x30] sm:$0xff]  ;;  %v36_v28 = vld [vmem:[%s5359_s0 + $0x48] sm:$0xff] }
   0x4   :  { %v75_v13 = vmul.f32 %v4001_v3, %v4001_v3  ;;  %v76_v14 = vmul.f32 %v4003_v4, %v4003_v4  ;;  %v79_v15 = vmul.f32 %v4005_v5, %v4005_v5  ;;  %v80_v16 = vmul.f32 %v4007_v6, %v4007_v6  ;;  %v35_v33 = vld [vmem:[%s5359_s0 + $0x40] sm:$0xff]  ;;  %v38_v46 = vld [vmem:[%s5359_s0 + $0x58] sm:$0xff]  ;;  %v37_v61 = vld [vmem:[%s5359_s0 + $0x50] sm:$0xff] }
   0x5   :  { %v77_v18 = vmul.f32 %v4012_v8, %v4012_v8  ;;  %v78_v19 = vmul.f32 %v4014_v9, %v4014_v9  ;;  %v81_v20 = vmul.f32 %v4016_v10, %v4016_v10  ;;  %v82_v21 = vmul.f32 %v4018_v11, %v4018_v11  ;;  %v3381_v34 = vld [vmem:[%s5360_s2 + $0x4] ss:$16 sps:$4 sm:$0xff]   ;;  %v3383_v35 = vld [vmem:[%s5360_s2] ss:$16 sps:$4 sm:$0xff]   ;;  %v40_v63 = vld [vmem:[%s5359_s0 + $0x68] sm:$0xff] }
   0x6   :  { %v107_v24 = vadd.f32 %v76_v14, %v75_v13  ;;  %v113_v25 = vadd.f32 %v80_v16, %v79_v15  ;;  %v4048_v26 = vunpack.c.l.bf16 %v32_v12  ;;  %v4050_v27 = vunpack.c.h.bf16 %v32_v12  ;;  %v3384_v40 = vld [vmem:[%s5361_s3 + $0x4] ss:$16 sps:$4 sm:$0xff]   ;;  %v3386_v41 = vld [vmem:[%s5361_s3] ss:$16 sps:$4 sm:$0xff]   ;;  %744 = vmatprep.subr.bf16.mxu1 %v3381_v34 }
   0x7   :  { %v110_v29 = vadd.f32 %v78_v19, %v77_v18  ;;  %v116_v30 = vadd.f32 %v82_v21, %v81_v20  ;;  %v4055_v31 = vunpack.c.l.bf16 %v31_v17  ;;  %v4057_v32 = vunpack.c.h.bf16 %v31_v17  ;;  %v3387_v47 = vld [vmem:[%s5360_s2 + $0x24] ss:$16 sps:$4 sm:$0xff]   ;;  %745 = vmatpush1.bf16.msra.mxu1 %v3383_v35  ;;  %1354 = vmatprep.subr.bf16.mxu0 %v3384_v40  ;;  %v3389_v50 = vld [vmem:[%s5360_s2 + $0x20] ss:$16 sps:$4 sm:$0xff]  }
   0x8   :  { %108 = vadd.xlane.f32.xlu0 %v107_v24  ;;  %114 = vadd.xlane.f32.xlu1 %v113_v25  ;;  %v85_v36 = vmul.f32 %v4048_v26, %v4048_v26  ;;  %v86_v37 = vmul.f32 %v4050_v27, %v4050_v27  ;;  %v4072_v38 = vunpack.c.l.bf16 %v34_v22  ;;  %v4074_v39 = vunpack.c.h.bf16 %v34_v22  ;;  %v3390_v55 = vld [vmem:[%s5361_s3 + $0x24] ss:$16 sps:$4 sm:$0xff]   ;;  %v3392_v56 = vld [vmem:[%s5361_s3 + $0x20] ss:$16 sps:$4 sm:$0xff]  }
   0x9   :  { %v83_v42 = vmul.f32 %v4055_v31, %v4055_v31  ;;  %v84_v43 = vmul.f32 %v4057_v32, %v4057_v32  ;;  %v4086_v44 = vunpack.c.l.bf16 %v33_v23  ;;  %v4088_v45 = vunpack.c.h.bf16 %v33_v23  ;;  %1355 = vmatpush1.bf16.msra.mxu0 %v3386_v41  ;;  %746 = vmatprep.subr.bf16.mxu1 %v3387_v47  ;;  %v3393_v62 = vld [vmem:[%s5360_s2 + $0x44] ss:$16 sps:$4 sm:$0xff]   ;;  %v3395_v12 = vld [vmem:[%s5360_s2 + $0x40] ss:$16 sps:$4 sm:$0xff]  }
   0xa   :  { %v89_v48 = vmul.f32 %v4072_v38, %v4072_v38  ;;  %v90_v49 = vmul.f32 %v4074_v39, %v4074_v39  ;;  %v122_v51 = vadd.f32 %v86_v37, %v85_v36  ;;  %v4107_v54 = vunpack.c.l.bf16 %v36_v28  ;;  %1356 = vmatprep.subr.bf16.mxu0 %v3390_v55  ;;  %v3396_v0 = vld [vmem:[%s5361_s3 + $0x44] ss:$16 sps:$4 sm:$0xff]   ;;  %v3398_v17 = vld [vmem:[%s5361_s3 + $0x40] ss:$16 sps:$4 sm:$0xff]  }
   0xb   :  { %v87_v52 = vmul.f32 %v4086_v44, %v4086_v44  ;;  %v88_v53 = vmul.f32 %v4088_v45, %v4088_v45  ;;  %v119_v57 = vadd.f32 %v84_v43, %v83_v42  ;;  %v4115_v58 = vunpack.c.h.bf16 %v36_v28  ;;  %747 = vmatpush1.bf16.msra.mxu1 %v3389_v50  ;;  %v3399_v18 = vld [vmem:[%s5360_s2 + $0x64] ss:$16 sps:$4 sm:$0xff]   ;;  %v3404_v35 = vld [vmem:[%s5361_s3 + $0x60] ss:$16 sps:$4 sm:$0xff]   ;;  %v42_v43 = vld [vmem:[%s5359_s0 + $0x78] sm:$0xff] }
   0xc   :  { %111 = vadd.xlane.f32.xlu0 %v110_v29  ;;  %117 = vadd.xlane.f32.xlu1 %v116_v30  ;;  %v4117_v59 = vunpack.c.l.bf16 %v35_v33  ;;  %v4119_v60 = vunpack.c.h.bf16 %v35_v33  ;;  %v128_v1 = vadd.f32 %v90_v49, %v89_v48  ;;  %v4133_v2 = vunpack.c.l.bf16 %v38_v46  ;;  %v39_v22 = vld [vmem:[%s5359_s0 + $0x60] sm:$0xff] }
   0xd   :  { %v4135_v7 = vunpack.c.h.bf16 %v38_v46  ;;  %v125_v13 = vadd.f32 %v88_v53, %v87_v52  ;;  %v93_v14 = vmul.f32 %v4107_v54, %v4107_v54  ;;  %v4142_v15 = vunpack.c.l.bf16 %v37_v61  ;;  %1357 = vmatpush1.bf16.msra.mxu0 %v3392_v56  ;;  %748 = vmatprep.subr.bf16.mxu1 %v3393_v62  ;;  %v3402_v23 = vld [vmem:[%s5361_s3 + $0x64] ss:$16 sps:$4 sm:$0xff]   ;;  %v3401_v29 = vld [vmem:[%s5360_s2 + $0x60] ss:$16 sps:$4 sm:$0xff]  }
   0xe   :  { %v4144_v16 = vunpack.c.h.bf16 %v37_v61  ;;  %v94_v19 = vmul.f32 %v4115_v58, %v4115_v58  ;;  %v91_v20 = vmul.f32 %v4117_v59, %v4117_v59  ;;  %v92_v21 = vmul.f32 %v4119_v60, %v4119_v60  ;;  %1358 = vmatprep.subr.bf16.mxu0 %v3396_v0  ;;  %v3405_v36 = vld [vmem:[%s5360_s2 + $0x84] ss:$16 sps:$4 sm:$0xff]   ;;  %v3407_v50 = vld [vmem:[%s5360_s2 + $0x80] ss:$16 sps:$4 sm:$0xff]  }
   0xf   :  { %v97_v24 = vmul.f32 %v4133_v2, %v4133_v2  ;;  %v98_v25 = vmul.f32 %v4135_v7, %v4135_v7  ;;  %v4168_v28 = vunpack.c.l.bf16 %v40_v63  ;;  %749 = vmatpush1.bf16.msra.mxu1 %v3395_v12  ;;  %v95_v30 = vmul.f32 %v4142_v15, %v4142_v15  ;;  %v41_v46 = vld [vmem:[%s5359_s0 + $0x70] sm:$0xff] }
  0x10   :  { %123 = vadd.xlane.f32.xlu1 %v122_v51  ;;  %120 = vadd.xlane.f32.xlu0 %v119_v57  ;;  %v96_v33 = vmul.f32 %v4144_v16, %v4144_v16  ;;  %v4177_v34 = vunpack.c.h.bf16 %v40_v63  ;;  %v134_v37 = vadd.f32 %v94_v19, %v93_v14  ;;  %v131_v40 = vadd.f32 %v92_v21, %v91_v20  ;;  %v3408_v47 = vld [vmem:[%s5361_s3 + $0x84] ss:$16 sps:$4 sm:$0xff]   ;;  %v3410_v56 = vld [vmem:[%s5361_s3 + $0x80] ss:$16 sps:$4 sm:$0xff]  }
  0x11   :  { %1359 = vmatpush1.bf16.msra.mxu0 %v3398_v17  ;;  %750 = vmatprep.subr.bf16.mxu1 %v3399_v18  ;;  %v4185_v41 = vunpack.c.l.bf16 %v39_v22  ;;  %v4187_v42 = vunpack.c.h.bf16 %v39_v22  ;;  %v140_v48 = vadd.f32 %v98_v25, %v97_v24  ;;  %v101_v49 = vmul.f32 %v4168_v28, %v4168_v28  ;;  %v3411_v57 = vld [vmem:[%s5360_s2 + $0xa4] ss:$16 sps:$4 sm:$0xff]   ;;  %v3413_v12 = vld [vmem:[%s5360_s2 + $0xa0] ss:$16 sps:$4 sm:$0xff]  }
  0x12   :  { %1360 = vmatprep.subr.bf16.mxu0 %v3402_v23  ;;  %v137_v51 = vadd.f32 %v96_v33, %v95_v30  ;;  %v102_v52 = vmul.f32 %v4177_v34, %v4177_v34  ;;  %v4205_v53 = vunpack.c.l.bf16 %v42_v43  ;;  %v4207_v55 = vunpack.c.h.bf16 %v42_v43  ;;  %v3416_v18 = vld [vmem:[%s5361_s3 + $0xa0] ss:$16 sps:$4 sm:$0xff]   ;;  %v3417_v19 = vld [vmem:[%s5360_s2 + $0xc4] ss:$16 sps:$4 sm:$0xff]  }
  0x13   :  { %751 = vmatpush1.bf16.msra.mxu1 %v3401_v29  ;;  %v99_v61 = vmul.f32 %v4185_v41, %v4185_v41  ;;  %v100_v62 = vmul.f32 %v4187_v42, %v4187_v42  ;;  %v4219_v63 = vunpack.c.l.bf16 %v41_v46  ;;  %v4221_v0 = vunpack.c.h.bf16 %v41_v46  ;;  %v3420_v23 = vld [vmem:[%s5361_s3 + $0xc4] ss:$16 sps:$4 sm:$0xff]   ;;  %v3419_v24 = vld [vmem:[%s5360_s2 + $0xc0] ss:$16 sps:$4 sm:$0xff]  }
  0x14   :  { %129 = vadd.xlane.f32.xlu1 %v128_v1  ;;  %126 = vadd.xlane.f32.xlu0 %v125_v13  ;;  %v3414_v1 = vld [vmem:[%s5361_s3 + $0xa4] ss:$16 sps:$4 sm:$0xff]   ;;  %v146_v13 = vadd.f32 %v102_v52, %v101_v49  ;;  %v105_v14 = vmul.f32 %v4205_v53, %v4205_v53  ;;  %v106_v17 = vmul.f32 %v4207_v55, %v4207_v55  ;;  %v3422_v25 = vld [vmem:[%s5361_s3 + $0xc0] ss:$16 sps:$4 sm:$0xff]  }
  0x15   :  { %1361 = vmatpush1.bf16.msra.mxu0 %v3404_v35  ;;  %752 = vmatprep.subr.bf16.mxu1 %v3405_v36  ;;  %v143_v20 = vadd.f32 %v100_v62, %v99_v61  ;;  %v103_v21 = vmul.f32 %v4219_v63, %v4219_v63  ;;  %v104_v22 = vmul.f32 %v4221_v0, %v4221_v0  ;;  %v3423_v29 = vld [vmem:[%s5360_s2 + $0xe4] ss:$16 sps:$4 sm:$0xff]   ;;  %v3425_v36 = vld [vmem:[%s5360_s2 + $0xe0] ss:$16 sps:$4 sm:$0xff]  }
  0x16   :  { %1362 = vmatprep.subr.bf16.mxu0 %v3408_v47  ;;  %v152_v30 = vadd.f32 %v106_v17, %v105_v14  ;;  %v3426_v35 = vld [vmem:[%s5361_s3 + $0xe4] ss:$16 sps:$4 sm:$0xff]   ;;  %v3431_v46 = vld [vmem:[%s5360_s2 + $0x100] ss:$16 sps:$4 sm:$0xff]  }
  0x17   :  { %753 = vmatpush1.bf16.msra.mxu1 %v3407_v50  ;;  %v149_v33 = vadd.f32 %v104_v22, %v103_v21  ;;  %v3432_v43 = vld [vmem:[%s5361_s3 + $0x104] ss:$16 sps:$4 sm:$0xff]   ;;  %v3434_v47 = vld [vmem:[%s5361_s3 + $0x100] ss:$16 sps:$4 sm:$0xff]  }
  0x18   :  { %135 = vadd.xlane.f32.xlu1 %v134_v37  ;;  %132 = vadd.xlane.f32.xlu0 %v131_v40  ;;  %v3428_v37 = vld [vmem:[%s5361_s3 + $0xe0] ss:$16 sps:$4 sm:$0xff]   ;;  %v3429_v40 = vld [vmem:[%s5360_s2 + $0x104] ss:$16 sps:$4 sm:$0xff]  }
  0x19   :  { %1363 = vmatpush1.bf16.msra.mxu0 %v3410_v56  ;;  %754 = vmatprep.subr.bf16.mxu1 %v3411_v57  ;;  %v3438_v49 = vld [vmem:[%s5361_s3 + $0x124] ss:$16 sps:$4 sm:$0xff]   ;;  %v3437_v50 = vld [vmem:[%s5360_s2 + $0x120] ss:$16 sps:$4 sm:$0xff]  }
  0x1a   :  { %1364 = vmatprep.subr.bf16.mxu0 %v3414_v1  ;;  %v3441_v52 = vld [vmem:[%s5360_s2 + $0x144] ss:$16 sps:$4 sm:$0xff]   ;;  %v3443_v57 = vld [vmem:[%s5360_s2 + $0x140] ss:$16 sps:$4 sm:$0xff]  }
  0x1b   :  { %755 = vmatpush1.bf16.msra.mxu1 %v3413_v12  ;;  %v3444_v56 = vld [vmem:[%s5361_s3 + $0x144] ss:$16 sps:$4 sm:$0xff]   ;;  %v3446_v61 = vld [vmem:[%s5361_s3 + $0x140] ss:$16 sps:$4 sm:$0xff]  }
  0x1c   :  { %141 = vadd.xlane.f32.xlu1 %v140_v48  ;;  %138 = vadd.xlane.f32.xlu0 %v137_v51  ;;  %v3435_v48 = vld [vmem:[%s5360_s2 + $0x124] ss:$16 sps:$4 sm:$0xff]   ;;  %v3440_v51 = vld [vmem:[%s5361_s3 + $0x120] ss:$16 sps:$4 sm:$0xff]  }
  0x1d   :  { %1365 = vmatpush1.bf16.msra.mxu0 %v3416_v18  ;;  %756 = vmatprep.subr.bf16.mxu1 %v3417_v19  ;;  %v3447_v62 = vld [vmem:[%s5360_s2 + $0x164] ss:$16 sps:$4 sm:$0xff]   ;;  %v3449_v12 = vld [vmem:[%s5360_s2 + $0x160] ss:$16 sps:$4 sm:$0xff]  }
  0x1e   :  { %1366 = vmatprep.subr.bf16.mxu0 %v3420_v23  ;;  %v3450_v1 = vld [vmem:[%s5361_s3 + $0x164] ss:$16 sps:$4 sm:$0xff]   ;;  %v3455_v18 = vld [vmem:[%s5360_s2 + $0x180] ss:$16 sps:$4 sm:$0xff]  }
  0x1f   :  { %757 = vmatpush1.bf16.msra.mxu1 %v3419_v24  ;;  %v3453_v14 = vld [vmem:[%s5360_s2 + $0x184] ss:$16 sps:$4 sm:$0xff]   ;;  %v3458_v19 = vld [vmem:[%s5361_s3 + $0x180] ss:$16 sps:$4 sm:$0xff]  }
  0x20   :  { %147 = vadd.xlane.f32.xlu1 %v146_v13  ;;  %144 = vadd.xlane.f32.xlu0 %v143_v20  ;;  %v3452_v13 = vld [vmem:[%s5361_s3 + $0x160] ss:$16 sps:$4 sm:$0xff]   ;;  %v3456_v17 = vld [vmem:[%s5361_s3 + $0x184] ss:$16 sps:$4 sm:$0xff]  }
  0x21   :  { %1367 = vmatpush1.bf16.msra.mxu0 %v3422_v25  ;;  %758 = vmatprep.subr.bf16.mxu1 %v3423_v29  ;;  %v3459_v20 = vld [vmem:[%s5360_s2 + $0x1a4] ss:$16 sps:$4 sm:$0xff]   ;;  %v3461_v22 = vld [vmem:[%s5360_s2 + $0x1a0] ss:$16 sps:$4 sm:$0xff]  }
  0x22   :  { %1368 = vmatprep.subr.bf16.mxu0 %v3426_v35  ;;  %v3462_v21 = vld [vmem:[%s5361_s3 + $0x1a4] ss:$16 sps:$4 sm:$0xff]   ;;  %v3464_v23 = vld [vmem:[%s5361_s3 + $0x1a0] ss:$16 sps:$4 sm:$0xff]  }
  0x23   :  { %759 = vmatpush1.bf16.msra.mxu1 %v3425_v36  ;;  %v3465_v24 = vld [vmem:[%s5360_s2 + $0x1c4] ss:$16 sps:$4 sm:$0xff]   ;;  %v3467_v29 = vld [vmem:[%s5360_s2 + $0x1c0] ss:$16 sps:$4 sm:$0xff]  }
  0x24   :  { %153 = vadd.xlane.f32.xlu1 %v152_v30  ;;  %150 = vadd.xlane.f32.xlu0 %v149_v33  ;;  %v3468_v25 = vld [vmem:[%s5361_s3 + $0x1c4] ss:$16 sps:$4 sm:$0xff]   ;;  %v3470_v30 = vld [vmem:[%s5361_s3 + $0x1c0] ss:$16 sps:$4 sm:$0xff]  }
  0x25   :  { %1369 = vmatpush1.bf16.msra.mxu0 %v3428_v37  ;;  %760 = vmatprep.subr.bf16.mxu1 %v3429_v40  ;;  %v3471_v33 = vld [vmem:[%s5360_s2 + $0x1e4] ss:$16 sps:$4 sm:$0xff]   ;;  %v3473_v36 = vld [vmem:[%s5360_s2 + $0x1e0] ss:$16 sps:$4 sm:$0xff]   ;;  %v3479_v40 = vld [vmem:[%s5360_s2 + $0xc] ss:$16 sps:$4 sm:$0xff]  }
  0x26   :  { %1370 = vmatprep.subr.bf16.mxu0 %v3432_v43  ;;  %v3474_v35 = vld [vmem:[%s5361_s3 + $0x1e4] ss:$16 sps:$4 sm:$0xff]   ;;  %v3476_v37 = vld [vmem:[%s5361_s3 + $0x1e0] ss:$16 sps:$4 sm:$0xff]  }
  0x27   :  { %761 = vmatpush1.bf16.msra.mxu1 %v3431_v46 }
  0x28   :  { %762 = vmatprep.subr.bf16.mxu1 %v3435_v48 }
  0x29   :  { %1371 = vmatpush1.bf16.msra.mxu0 %v3434_v47 }
  0x2a   :  { %1372 = vmatprep.subr.bf16.mxu0 %v3438_v49 }
  0x2b   :  { %763 = vmatpush1.bf16.msra.mxu1 %v3437_v50 }
  0x2c   :  { %764 = vmatprep.subr.bf16.mxu1 %v3441_v52 }
  0x2d   :  { %1373 = vmatpush1.bf16.msra.mxu0 %v3440_v51 }
  0x2e   :  { %1374 = vmatprep.subr.bf16.mxu0 %v3444_v56 }
  0x2f   :  { %765 = vmatpush1.bf16.msra.mxu1 %v3443_v57 }
  0x30   :  { %766 = vmatprep.subr.bf16.mxu1 %v3447_v62 }
  0x31   :  { %1375 = vmatpush1.bf16.msra.mxu0 %v3446_v61  ;;  %v238_v61 = vlaneseq }
  0x32   :  { %1376 = vmatprep.subr.bf16.mxu0 %v3450_v1 }
  0x33   :  { %767 = vmatpush1.bf16.msra.mxu1 %v3449_v12 }
  0x34   :  { %768 = vmatprep.subr.bf16.mxu1 %v3453_v14 }
  0x35   :  { %1377 = vmatpush1.bf16.msra.mxu0 %v3452_v13 }
  0x36   :  { %1378 = vmatprep.subr.bf16.mxu0 %v3456_v17 }
  0x37   :  { %769 = vmatpush1.bf16.msra.mxu1 %v3455_v18  ;;  %v239_v18 = vshrl.u32 %v238_v61, 7 }
  0x38   :  { %770 = vmatprep.subr.bf16.mxu1 %v3459_v20 }
  0x39   :  { %1379 = vmatpush1.bf16.msra.mxu0 %v3458_v19 }
  0x3a   :  { %1380 = vmatprep.subr.bf16.mxu0 %v3462_v21 }
  0x3b   :  { %771 = vmatpush1.bf16.msra.mxu1 %v3461_v22 }
  0x3c   :  { %772 = vmatprep.subr.bf16.mxu1 %v3465_v24 }
  0x3d   :  { %1381 = vmatpush1.bf16.msra.mxu0 %v3464_v23  ;;  %v244_v23 = vsub.s32 1, %v239_v18 }
  0x3e   :  { %1382 = vmatprep.subr.bf16.mxu0 %v3468_v25 }
  0x3f   :  { %773 = vmatpush1.bf16.msra.mxu1 %v3467_v29  ;;  %v236_v29 = vld [vmem:[%s5362_s1] sm:$0x3] }
  0x40   :  { %774 = vmatprep.subr.bf16.mxu1 %v3471_v33 }
  0x41   :  { %1383 = vmatpush1.bf16.msra.mxu0 %v3470_v30  ;;  %v240_v30 = vsub.s32 0, %v239_v18 }
  0x42   :  { %1384 = vmatprep.subr.bf16.mxu0 %v3474_v35 }
  0x43   :  { %775 = vmatpush1.bf16.msra.mxu1 %v3473_v36 }
  0x44   :  { %857 = vmatprep.subr.bf16.mxu1 %v3479_v40 }
  0x45   :  { %1385 = vmatpush1.bf16.msra.mxu0 %v3476_v37 }
  0x95   :  { %v109_v43 = vpop.xlane.xlu0 %108  ;;  %v115_v46 = vpop.xlane.xlu1 %114 }
  0x96   :  { %v156_v47 = vmul.f32 0.00390625, %v109_v43  ;;  %v158_v48 = vmul.f32 0.00390625, %v115_v46 }
  0x98   :  { %v172_v49 = vadd.f32 1e-06, %v156_v47  ;;  %v174_v50 = vadd.f32 1e-06, %v158_v48  ;;  %v4367_v47 = vrot.slane %v236_v29, %v244_v23 }
  0x99   :  { %v112_v51 = vpop.xlane.xlu0 %111  ;;  %v118_v52 = vpop.xlane.xlu1 %117 }
  0x9a   :  { %3669 = vrsqrt.f32 %v172_v49  ;;  %v157_v56 = vmul.f32 0.00390625, %v112_v51  ;;  %v159_v57 = vmul.f32 0.00390625, %v118_v52 }
  0x9b   :  { %3671 = vrsqrt.f32 %v174_v50  ;;  %v4371_v50 = vrot.slane %v236_v29, %v240_v30 }
  0x9c   :  { %v173_v62 = vadd.f32 1e-06, %v157_v56  ;;  %v175_v1 = vadd.f32 1e-06, %v159_v57 }
  0x9d   :  { %v124_v12 = vpop.xlane.xlu1 %123  ;;  %v121_v13 = vpop.xlane.xlu0 %120 }
  0x9e   :  { %3673 = vrsqrt.f32 %v173_v62  ;;  %v161_v14 = vmul.f32 0.00390625, %v124_v12  ;;  %v160_v17 = vmul.f32 0.00390625, %v121_v13 }
  0x9f   :  { %3675 = vrsqrt.f32 %v175_v1 }
  0xa0   :  { %v177_v19 = vadd.f32 1e-06, %v161_v14  ;;  %v176_v20 = vadd.f32 1e-06, %v160_v17 }
  0xa1   :  { %v130_v21 = vpop.xlane.xlu1 %129  ;;  %v127_v22 = vpop.xlane.xlu0 %126 }
  0xa2   :  { %3677 = vrsqrt.f32 %v177_v19  ;;  %v163_v24 = vmul.f32 0.00390625, %v130_v21  ;;  %v162_v25 = vmul.f32 0.00390625, %v127_v22 }
  0xa3   :  { %3679 = vrsqrt.f32 %v176_v20 }
  0xa4   :  { %v3670_v33 = vpop.eup %3669  ;;  %v179_v35 = vadd.f32 1e-06, %v163_v24  ;;  %v178_v36 = vadd.f32 1e-06, %v162_v25  ;;  %v3482_v25 = vld [vmem:[%s5360_s2 + $0x2c] ss:$16 sps:$4 sm:$0xff]  }
  0xa5   :  { %v3672_v37 = vpop.eup %3671  ;;  %v136_v40 = vpop.xlane.xlu1 %135  ;;  %v205_v46 = vmul.f32 %v3670_v33, %v4003_v4  ;;  %v204_v49 = vmul.f32 %v3670_v33, %v4001_v3 }
  0xa6   :  { %v133_v43 = vpop.xlane.xlu0 %132  ;;  %v209_v48 = vmul.f32 %v3672_v37, %v4007_v6  ;;  %3681 = vrsqrt.f32 %v179_v35  ;;  %v165_v51 = vmul.f32 0.00390625, %v136_v40  ;;  %v208_v29 = vmul.f32 %v3672_v37, %v4005_v5  ;;  %v3480_v5 = vld [vmem:[%s5360_s2 + $0x28] ss:$16 sps:$4 sm:$0xff]   ;;  %v3485_v40 = vld [vmem:[%s5360_s2 + $0x4c] ss:$16 sps:$4 sm:$0xff]  }
  0xa7   :  { %3683 = vrsqrt.f32 %v178_v36  ;;  %v164_v56 = vmul.f32 0.00390625, %v133_v43  ;;  %v249_v4 = vmul.f32 %v4367_v47, %v205_v46  ;;  %v248_v12 = vmul.f32 %v4371_v50, %v204_v49 }
  0xa8   :  { %v3674_v52 = vpop.eup %3673  ;;  %v253_v6 = vmul.f32 %v4367_v47, %v209_v48  ;;  %v181_v14 = vadd.f32 1e-06, %v165_v51  ;;  %v252_v43 = vmul.f32 %v4371_v50, %v208_v29  ;;  %v3489_v29 = vld [vmem:[%s5360_s2 + $0x88] ss:$16 sps:$4 sm:$0xff]  }
  0xa9   :  { %v3676_v57 = vpop.eup %3675  ;;  %v207_v61 = vmul.f32 %v3674_v52, %v4014_v9  ;;  %v206_v62 = vmul.f32 %v3674_v52, %v4012_v8  ;;  %v180_v19 = vadd.f32 1e-06, %v164_v56  ;;  %v142_v9 = vpop.xlane.xlu1 %141 }
  0xaa   :  { %v211_v1 = vmul.f32 %v3676_v57, %v4018_v11  ;;  %v3477_v11 = vld [vmem:[%s5360_s2 + $0x8] ss:$16 sps:$4 sm:$0xff]   ;;  %v139_v23 = vpop.xlane.xlu0 %138  ;;  %v210_v30 = vmul.f32 %v3676_v57, %v4016_v10  ;;  %3685 = vrsqrt.f32 %v181_v14  ;;  %v167_v35 = vmul.f32 0.00390625, %v142_v9 }
  0xab   :  { %v251_v3 = vmul.f32 %v4367_v47, %v207_v61  ;;  %v250_v13 = vmul.f32 %v4371_v50, %v206_v62  ;;  %3687 = vrsqrt.f32 %v180_v19  ;;  %v3483_v57 = vld [vmem:[%s5360_s2 + $0x48] ss:$16 sps:$4 sm:$0xff]   ;;  %v3491_v19 = vld [vmem:[%s5360_s2 + $0x8c] ss:$16 sps:$4 sm:$0xff]  }
  0xac   :  { %v3678_v17 = vpop.eup %3677  ;;  %v255_v18 = vmul.f32 %v4367_v47, %v211_v1  ;;  %v254_v46 = vmul.f32 %v4371_v50, %v210_v30  ;;  %v183_v48 = vadd.f32 1e-06, %v167_v35 }
  0xad   :  { %v3680_v20 = vpop.eup %3679  ;;  %v4382_v8 = vpack.c.bf16 %v251_v3, %v249_v4  ;;  %v4387_v21 = vpack.c.bf16 %v250_v13, %v248_v12  ;;  %v215_v22 = vmul.f32 %v3678_v17, %v4050_v27  ;;  %v166_v27 = vmul.f32 0.00390625, %v139_v23  ;;  %v148_v56 = vpop.xlane.xlu1 %147  ;;  %v3486_v13 = vld [vmem:[%s5360_s2 + $0x68] ss:$16 sps:$4 sm:$0xff]  }
  0xae   :  { %v4390_v24 = vpack.c.bf16 %v255_v18, %v253_v6  ;;  %v213_v33 = vmul.f32 %v3680_v20, %v4057_v32  ;;  %v212_v49 = vmul.f32 %v3680_v20, %v4055_v31  ;;  %v214_v51 = vmul.f32 %v3678_v17, %v4048_v26  ;;  %v145_v1 = vpop.xlane.xlu0 %144  ;;  %v3488_v26 = vld [vmem:[%s5360_s2 + $0x6c] ss:$16 sps:$4 sm:$0xff]  }
  0xaf   :  { %776 = vmatprep.mubr.bf16.mxu1 %v4382_v8  ;;  %1386 = vmatprep.mubr.bf16.mxu0 %v4382_v8  ;;  %v259_v32 = vmul.f32 %v4367_v47, %v215_v22  ;;  %v182_v52 = vadd.f32 1e-06, %v166_v27  ;;  %v4423_v6 = vpack.c.bf16 %v254_v46, %v252_v43  ;;  %3689 = vrsqrt.f32 %v183_v48  ;;  %v3497_v43 = vld [vmem:[%s5360_s2 + $0xcc] ss:$16 sps:$4 sm:$0xff]  }
  0xb0   :  { %777 = vmatmul.mubr.bf16.vlgmr.msra.gmra.mrb[0].mxu1 %v4387_v21  ;;  %1387 = vmatmul.mubr.bf16.vlgmr.msra.gmra.mrb[0].mxu0 %v4387_v21  ;;  %v3682_v36 = vpop.eup %3681  ;;  %v257_v10 = vmul.f32 %v4367_v47, %v213_v33  ;;  %v169_v31 = vmul.f32 0.00390625, %v148_v56  ;;  %v256_v3 = vmul.f32 %v4371_v50, %v212_v49  ;;  %v3495_v56 = vld [vmem:[%s5360_s2 + $0xc8] ss:$16 sps:$4 sm:$0xff]  }
  0xb1   :  { %858 = vmatpush1.bf16.msra.mxu1 %v3477_v11  ;;  %786 = vmatprep.mubr.bf16.mxu1 %v4390_v24  ;;  %v3684_v37 = vpop.eup %3683  ;;  %v219_v4 = vmul.f32 %v3682_v36, %v4074_v39  ;;  %3691 = vrsqrt.f32 %v182_v52  ;;  %v168_v39 = vmul.f32 0.00390625, %v145_v1  ;;  %v218_v22 = vmul.f32 %v3682_v36, %v4072_v38  ;;  %v3500_v1 = vld [vmem:[%s5360_s2 + $0xec] ss:$16 sps:$4 sm:$0xff]  }
  0xb2   :  { %859 = vmatprep.subr.bf16.mxu1 %v3482_v25  ;;  %1396 = vmatprep.mubr.bf16.mxu0 %v4390_v24  ;;  %v4419_v61 = vpack.c.bf16 %v259_v32, %v257_v10  ;;  %v217_v62 = vmul.f32 %v3684_v37, %v4088_v45  ;;  %v258_v45 = vmul.f32 %v4371_v50, %v214_v51  ;;  %v185_v9 = vadd.f32 1e-06, %v169_v31  ;;  %v154_v25 = vpop.xlane.xlu1 %153  ;;  %v151_v27 = vpop.xlane.xlu0 %150 }
  0xb3   :  { %v263_v17 = vmul.f32 %v4367_v47, %v219_v4  ;;  %v216_v11 = vmul.f32 %v3684_v37, %v4086_v44  ;;  %v184_v23 = vadd.f32 1e-06, %v168_v39  ;;  %v3494_v44 = vld [vmem:[%s5360_s2 + $0xac] ss:$16 sps:$4 sm:$0xff]   ;;  %v171_v38 = vmul.f32 0.00390625, %v154_v25 }
  0xb4   :  { %v3686_v12 = vpop.eup %3685  ;;  %v261_v14 = vmul.f32 %v4367_v47, %v217_v62  ;;  %v4442_v20 = vpack.c.bf16 %v258_v45, %v256_v3  ;;  %3693 = vrsqrt.f32 %v185_v9  ;;  %v3503_v45 = vld [vmem:[%s5360_s2 + $0x10c] ss:$16 sps:$4 sm:$0xff]  }
  0xb5   :  { %860 = vmatpush1.bf16.msra.mxu1 %v3480_v5  ;;  %v3688_v18 = vpop.eup %3687  ;;  %v223_v35 = vmul.f32 %v3686_v12, %v4115_v58  ;;  %v260_v36 = vmul.f32 %v4371_v50, %v216_v11  ;;  %v262_v5 = vmul.f32 %v4371_v50, %v218_v22  ;;  %3695 = vrsqrt.f32 %v184_v23  ;;  %v3492_v58 = vld [vmem:[%s5360_s2 + $0xa8] ss:$16 sps:$4 sm:$0xff]   ;;  %v3506_v9 = vld [vmem:[%s5360_s2 + $0x12c] ss:$16 sps:$4 sm:$0xff]  }
  0xb6   :  { %861 = vmatprep.subr.bf16.mxu1 %v3485_v40  ;;  %v4449_v30 = vpack.c.bf16 %v263_v17, %v261_v14  ;;  %v221_v33 = vmul.f32 %v3688_v18, %v4119_v60  ;;  %v170_v60 = vmul.f32 0.00390625, %v151_v27  ;;  %v187_v46 = vadd.f32 1e-06, %v171_v38  ;;  %v3501_v14 = vld [vmem:[%s5360_s2 + $0x108] ss:$16 sps:$4 sm:$0xff]  }
  0xb7   :  { %v267_v37 = vmul.f32 %v4367_v47, %v223_v35  ;;  %v4470_v48 = vpack.c.bf16 %v262_v5, %v260_v36  ;;  %v220_v49 = vmul.f32 %v3688_v18, %v4117_v59  ;;  %v222_v51 = vmul.f32 %v3686_v12, %v4107_v54  ;;  %v3509_v25 = vld [vmem:[%s5360_s2 + $0x14c] ss:$16 sps:$4 sm:$0xff]   ;;  %v3507_v27 = vld [vmem:[%s5360_s2 + $0x148] ss:$16 sps:$4 sm:$0xff]  }
  0xb8   :  { %787 = vmatmul.mubr.bf16.gmra.mrb[4].mxu1 %v4423_v6  ;;  %1397 = vmatmul.mubr.bf16.gmra.mrb[4].mxu0 %v4423_v6  ;;  %v265_v32 = vmul.f32 %v4367_v47, %v221_v33  ;;  %v186_v52 = vadd.f32 1e-06, %v170_v60  ;;  %3697 = vrsqrt.f32 %v187_v46  ;;  %v3512_v5 = vld [vmem:[%s5360_s2 + $0x16c] ss:$16 sps:$4 sm:$0xff]   ;;  %v3516_v46 = vld [vmem:[%s5360_s2 + $0x1a8] ss:$16 sps:$4 sm:$0xff]  }
  0xb9   :  { %862 = vmatpush1.bf16.msra.mxu1 %v3483_v57  ;;  %796 = vmatprep.mubr.bf16.mxu1 %v4419_v61  ;;  %v3690_v10 = vpop.eup %3689  ;;  %v264_v54 = vmul.f32 %v4371_v50, %v220_v49  ;;  %v266_v59 = vmul.f32 %v4371_v50, %v222_v51  ;;  %v3521_v49 = vld [vmem:[%s5360_s2 + $0x1cc] ss:$16 sps:$4 sm:$0xff]  }
  0xba   :  { %863 = vmatprep.subr.bf16.mxu1 %v3488_v26  ;;  %1406 = vmatprep.mubr.bf16.mxu0 %v4419_v61  ;;  %v4477_v57 = vpack.c.bf16 %v267_v37, %v265_v32  ;;  %v227_v4 = vmul.f32 %v3690_v10, %v4135_v7  ;;  %3699 = vrsqrt.f32 %v186_v52  ;;  %v3498_v7 = vld [vmem:[%s5360_s2 + $0xe8] ss:$16 sps:$4 sm:$0xff]   ;;  %v3524_v52 = vld [vmem:[%s5360_s2 + $0x1ec] ss:$16 sps:$4 sm:$0xff]  }
  0xbb   :  { %v3692_v40 = vpop.eup %3691  ;;  %v4498_v39 = vpack.c.bf16 %v266_v59, %v264_v54  ;;  %v3527_v54 = vld [vmem:[%s5361_s3 + $0xc] ss:$16 sps:$4 sm:$0xff]   ;;  %v3576_v59 = vld [vmem:[%s5363_s4 + $0x10] ss:$8 sps:$4 sm:$0xff]  }
  0xbc   :  { %v225_v62 = vmul.f32 %v3692_v40, %v4144_v16  ;;  %v271_v31 = vmul.f32 %v4367_v47, %v227_v4  ;;  %v224_v12 = vmul.f32 %v3692_v40, %v4142_v15  ;;  %v3513_v40 = vld [vmem:[%s5360_s2 + $0x188] ss:$16 sps:$4 sm:$0xff]   ;;  %v3578_v4 = vld [vmem:[%s5363_s4 + $0x14] ss:$8 sps:$4 sm:$0xff]  }
  0xbd   :  { %864 = vmatpush1.bf16.msra.mxu1 %v3486_v13  ;;  %v226_v13 = vmul.f32 %v3690_v10, %v4133_v2  ;;  %v3515_v10 = vld [vmem:[%s5360_s2 + $0x18c] ss:$16 sps:$4 sm:$0xff]  }
  0xbe   :  { %865 = vmatprep.subr.bf16.mxu1 %v3491_v19  ;;  %v3694_v26 = vpop.eup %3693  ;;  %v269_v16 = vmul.f32 %v4367_v47, %v225_v62  ;;  %v268_v2 = vmul.f32 %v4371_v50, %v224_v12  ;;  %v3573_v62 = vld [vmem:[%s5363_s4] ss:$8 sps:$4 sm:$0xff]   ;;  %v3533_v12 = vld [vmem:[%s5361_s3 + $0x4c] ss:$16 sps:$4 sm:$0xff]  }
  0xbf   :  { %v3696_v3 = vpop.eup %3695  ;;  %v231_v19 = vmul.f32 %v3694_v26, %v4177_v34  ;;  %v270_v15 = vmul.f32 %v4371_v50, %v226_v13  ;;  %v230_v35 = vmul.f32 %v3694_v26, %v4168_v28  ;;  %v3581_v26 = vld [vmem:[%s5363_s4 + $0x24] ss:$8 sps:$4 sm:$0xff]   ;;  %v3582_v13 = vld [vmem:[%s5363_s4 + $0x30] ss:$8 sps:$4 sm:$0xff]  }
  0xc0   :  { %797 = vmatmul.mubr.bf16.gmra.mrb[8].mxu1 %v4442_v20  ;;  %1407 = vmatmul.mubr.bf16.gmra.mrb[8].mxu0 %v4442_v20  ;;  %v4505_v17 = vpack.c.bf16 %v271_v31, %v269_v16  ;;  %v229_v18 = vmul.f32 %v3696_v3, %v4187_v42  ;;  %v3504_v42 = vld [vmem:[%s5360_s2 + $0x128] ss:$16 sps:$4 sm:$0xff]   ;;  %v228_v33 = vmul.f32 %v3696_v3, %v4185_v41  ;;  %v3530_v16 = vld [vmem:[%s5361_s3 + $0x2c] ss:$16 sps:$4 sm:$0xff]  }
  0xc1   :  { %866 = vmatpush1.bf16.msra.mxu1 %v3489_v29  ;;  %806 = vmatprep.mubr.bf16.mxu1 %v4449_v30  ;;  %v275_v22 = vmul.f32 %v4367_v47, %v231_v19  ;;  %v4526_v29 = vpack.c.bf16 %v270_v15, %v268_v2  ;;  %v274_v41 = vmul.f32 %v4371_v50, %v230_v35  ;;  %v3579_v31 = vld [vmem:[%s5363_s4 + $0x20] ss:$8 sps:$4 sm:$0xff]   ;;  %v3536_v19 = vld [vmem:[%s5361_s3 + $0x6c] ss:$16 sps:$4 sm:$0xff]  }
  0xc2   :  { %867 = vmatprep.subr.bf16.mxu1 %v3494_v44  ;;  %1416 = vmatprep.mubr.bf16.mxu0 %v4449_v30  ;;  %v3698_v11 = vpop.eup %3697  ;;  %v273_v34 = vmul.f32 %v4367_v47, %v229_v18  ;;  %v272_v28 = vmul.f32 %v4371_v50, %v228_v33  ;;  %v3528_v3 = vld [vmem:[%s5361_s3 + $0x28] ss:$16 sps:$4 sm:$0xff]   ;;  %v3590_v2 = vld [vmem:[%s5363_s4 + $0x54] ss:$8 sps:$4 sm:$0xff]  }
  0xc3   :  { %v235_v36 = vmul.f32 %v3698_v11, %v4207_v55  ;;  %v234_v37 = vmul.f32 %v3698_v11, %v4205_v53  ;;  %v3531_v18 = vld [vmem:[%s5361_s3 + $0x48] ss:$16 sps:$4 sm:$0xff]   ;;  %v3539_v11 = vld [vmem:[%s5361_s3 + $0x8c] ss:$16 sps:$4 sm:$0xff]  }
  0xc4   :  { %v3700_v23 = vpop.eup %3699  ;;  %v4533_v44 = vpack.c.bf16 %v275_v22, %v273_v34  ;;  %v3534_v15 = vld [vmem:[%s5361_s3 + $0x68] ss:$16 sps:$4 sm:$0xff]   ;;  %v3593_v34 = vld [vmem:[%s5363_s4 + $0x64] ss:$8 sps:$4 sm:$0xff]  }
  0xc5   :  { %868 = vmatpush1.bf16.msra.mxu1 %v3492_v58  ;;  %v233_v38 = vmul.f32 %v3700_v23, %v4221_v0  ;;  %v3510_v0 = vld [vmem:[%s5360_s2 + $0x168] ss:$16 sps:$4 sm:$0xff]   ;;  %v279_v60 = vmul.f32 %v4367_v47, %v235_v36  ;;  %v4554_v58 = vpack.c.bf16 %v274_v41, %v272_v28  ;;  %v232_v32 = vmul.f32 %v3700_v23, %v4219_v63  ;;  %v3542_v23 = vld [vmem:[%s5361_s3 + $0xac] ss:$16 sps:$4 sm:$0xff]  }
  0xc6   :  { %869 = vmatprep.subr.bf16.mxu1 %v3497_v43  ;;  %v278_v53 = vmul.f32 %v4371_v50, %v234_v37  ;;  %v3537_v22 = vld [vmem:[%s5361_s3 + $0x88] ss:$16 sps:$4 sm:$0xff]   ;;  %v3545_v35 = vld [vmem:[%s5361_s3 + $0xcc] ss:$16 sps:$4 sm:$0xff]  }
  0xc7   :  { %v277_v55 = vmul.f32 %v4367_v47, %v233_v38  ;;  %v3518_v47 = vld [vmem:[%s5360_s2 + $0x1ac] ss:$16 sps:$4 sm:$0xff]   ;;  %v276_v63 = vmul.f32 %v4371_v50, %v232_v32  ;;  %v3519_v50 = vld [vmem:[%s5360_s2 + $0x1c8] ss:$16 sps:$4 sm:$0xff]  }
  0xc8   :  { %807 = vmatmul.mubr.bf16.gmra.mrb[12].mxu1 %v4470_v48  ;;  %1417 = vmatmul.mubr.bf16.gmra.mrb[12].mxu0 %v4470_v48  ;;  %v3540_v33 = vld [vmem:[%s5361_s3 + $0xa8] ss:$16 sps:$4 sm:$0xff]   ;;  %v3599_v28 = vld [vmem:[%s5363_s4 + $0x84] ss:$8 sps:$4 sm:$0xff]  }
  0xc9   :  { %870 = vmatpush1.bf16.msra.mxu1 %v3495_v56  ;;  %816 = vmatprep.mubr.bf16.mxu1 %v4477_v57  ;;  %v4561_v43 = vpack.c.bf16 %v279_v60, %v277_v55  ;;  %v4578_v51 = vpack.c.bf16 %v278_v53, %v276_v63  ;;  %v3575_v56 = vld [vmem:[%s5363_s4 + $0x4] ss:$8 sps:$4 sm:$0xff]   ;;  %v3594_v38 = vld [vmem:[%s5363_s4 + $0x70] ss:$8 sps:$4 sm:$0xff]   ;;  %v3597_v41 = vld [vmem:[%s5363_s4 + $0x80] ss:$8 sps:$4 sm:$0xff]  }
  0xca   :  { %871 = vmatprep.subr.bf16.mxu1 %v3500_v1  ;;  %1426 = vmatprep.mubr.bf16.mxu0 %v4477_v57  ;;  %v3522_v1 = vld [vmem:[%s5360_s2 + $0x1e8] ss:$16 sps:$4 sm:$0xff]   ;;  %v3551_v55 = vld [vmem:[%s5361_s3 + $0x10c] ss:$16 sps:$4 sm:$0xff]  }
  0xcb   :  { %2540 = vmatprep.subr.bf16.mxu0 %v3575_v56  ;;  %v3543_v36 = vld [vmem:[%s5361_s3 + $0xc8] ss:$16 sps:$4 sm:$0xff]   ;;  %v3602_v60 = vld [vmem:[%s5363_s4 + $0x94] ss:$8 sps:$4 sm:$0xff]   ;;  %v3611_v56 = vld [vmem:[%s5363_s4 + $0xc4] ss:$8 sps:$4 sm:$0xff]  }
  0xcc   :  { %2541 = vmatpush1.bf16.msra.mxu0 %v3573_v62  ;;  %v3549_v32 = vld [vmem:[%s5361_s3 + $0x108] ss:$16 sps:$4 sm:$0xff]   ;;  %v3554_v37 = vld [vmem:[%s5361_s3 + $0x12c] ss:$16 sps:$4 sm:$0xff]  }
  0xcd   :  { %872 = vmatpush1.bf16.msra.mxu1 %v3498_v7  ;;  %2542 = vmatprep.subr.bf16.mxu0 %v3578_v4  ;;  %v3525_v7 = vld [vmem:[%s5361_s3 + $0x8] ss:$16 sps:$4 sm:$0xff]   ;;  %v3557_v53 = vld [vmem:[%s5361_s3 + $0x14c] ss:$16 sps:$4 sm:$0xff]  }
  0xce   :  { %873 = vmatprep.subr.bf16.mxu1 %v3503_v45  ;;  %v3584_v45 = vld [vmem:[%s5363_s4 + $0x34] ss:$8 sps:$4 sm:$0xff]   ;;  %v3552_v63 = vld [vmem:[%s5361_s3 + $0x128] ss:$16 sps:$4 sm:$0xff]  }
  0xcf   :  { %v3609_v62 = vld [vmem:[%s5363_s4 + $0xc0] ss:$8 sps:$4 sm:$0xff]  }
  0xd0   :  { %817 = vmatmul.mubr.bf16.gmra.mrb[16].mxu1 %v4498_v39  ;;  %1427 = vmatmul.mubr.bf16.gmra.mrb[16].mxu0 %v4498_v39  ;;  %v3558_v4 = vld [vmem:[%s5361_s3 + $0x168] ss:$16 sps:$4 sm:$0xff]  }
  0xd1   :  { %874 = vmatpush1.bf16.msra.mxu1 %v3501_v14  ;;  %826 = vmatprep.mubr.bf16.mxu1 %v4505_v17  ;;  %v3587_v14 = vld [vmem:[%s5363_s4 + $0x44] ss:$8 sps:$4 sm:$0xff]  }
  0xd2   :  { %875 = vmatprep.subr.bf16.mxu1 %v3506_v9  ;;  %1436 = vmatprep.mubr.bf16.mxu0 %v4505_v17  ;;  %v3585_v9 = vld [vmem:[%s5363_s4 + $0x40] ss:$8 sps:$4 sm:$0xff]  }
  0xd3   :  { %2543 = vmatpush1.bf16.msra.mxu0 %v3576_v59  ;;  %v3612_v59 = vld [vmem:[%s5363_s4 + $0xd0] ss:$8 sps:$4 sm:$0xff]  }
  0xd4   :  { %2544 = vmatprep.subr.bf16.mxu0 %v3581_v26  ;;  %v3561_v26 = vld [vmem:[%s5361_s3 + $0x188] ss:$16 sps:$4 sm:$0xff]  }
  0xd5   :  { %876 = vmatpush1.bf16.msra.mxu1 %v3504_v42  ;;  %v3588_v42 = vld [vmem:[%s5363_s4 + $0x50] ss:$8 sps:$4 sm:$0xff]  }
  0xd6   :  { %877 = vmatprep.subr.bf16.mxu1 %v3509_v25  ;;  %v3591_v25 = vld [vmem:[%s5363_s4 + $0x60] ss:$8 sps:$4 sm:$0xff]  }
  0xd7   :  { %2545 = vmatpush1.bf16.msra.mxu0 %v3579_v31  ;;  %v3615_v31 = vld [vmem:[%s5363_s4 + $0xe0] ss:$8 sps:$4 sm:$0xff]  }
  0xd8   :  { %827 = vmatmul.mubr.bf16.gmra.mrb[20].mxu1 %v4526_v29  ;;  %1437 = vmatmul.mubr.bf16.gmra.mrb[20].mxu0 %v4526_v29 }
  0xd9   :  { %878 = vmatpush1.bf16.msra.mxu1 %v3507_v27  ;;  %836 = vmatprep.mubr.bf16.mxu1 %v4533_v44  ;;  %v3596_v27 = vld [vmem:[%s5363_s4 + $0x74] ss:$8 sps:$4 sm:$0xff]  }
  0xda   :  { %879 = vmatprep.subr.bf16.mxu1 %v3512_v5  ;;  %1446 = vmatprep.mubr.bf16.mxu0 %v4533_v44  ;;  %v3548_v5 = vld [vmem:[%s5361_s3 + $0xec] ss:$16 sps:$4 sm:$0xff]  }
  0xdb   :  { %2546 = vmatprep.subr.bf16.mxu0 %v3584_v45  ;;  %v3569_v45 = vld [vmem:[%s5361_s3 + $0x1cc] ss:$16 sps:$4 sm:$0xff]  }
  0xdc   :  { %2547 = vmatpush1.bf16.msra.mxu0 %v3582_v13  ;;  %v3567_v13 = vld [vmem:[%s5361_s3 + $0x1c8] ss:$16 sps:$4 sm:$0xff]  }
  0xdd   :  { %880 = vmatpush1.bf16.msra.mxu1 %v3510_v0  ;;  %2548 = vmatprep.subr.bf16.mxu0 %v3587_v14  ;;  %v3546_v0 = vld [vmem:[%s5361_s3 + $0xe8] ss:$16 sps:$4 sm:$0xff]  }
  0xde   :  { %881 = vmatprep.subr.bf16.mxu1 %v3515_v10  ;;  %v3600_v10 = vld [vmem:[%s5363_s4 + $0x90] ss:$8 sps:$4 sm:$0xff]  }
  0xdf   :  { %v3618_v14 = vld [vmem:[%s5363_s4 + $0xf0] ss:$8 sps:$4 sm:$0xff]  }
  0xe0   :  { %837 = vmatmul.mubr.bf16.gmra.mrb[24].mxu1 %v4554_v58  ;;  %1447 = vmatmul.mubr.bf16.gmra.mrb[24].mxu0 %v4554_v58 }
  0xe1   :  { %882 = vmatpush1.bf16.msra.mxu1 %v3513_v40  ;;  %846 = vmatprep.mubr.bf16.mxu1 %v4561_v43  ;;  %v3605_v40 = vld [vmem:[%s5363_s4 + $0xa4] ss:$8 sps:$4 sm:$0xff]  }
  0xe2   :  { %883 = vmatprep.subr.bf16.mxu1 %v3518_v47  ;;  %1456 = vmatprep.mubr.bf16.mxu0 %v4561_v43  ;;  %v3603_v47 = vld [vmem:[%s5363_s4 + $0xa0] ss:$8 sps:$4 sm:$0xff]  }
  0xe3   :  { %2549 = vmatpush1.bf16.msra.mxu0 %v3585_v9 }
  0xe4   :  { %2550 = vmatprep.subr.bf16.mxu0 %v3590_v2 }
  0xe5   :  { %884 = vmatpush1.bf16.msra.mxu1 %v3516_v46  ;;  %v3608_v46 = vld [vmem:[%s5363_s4 + $0xb4] ss:$8 sps:$4 sm:$0xff]  }
  0xe6   :  { %885 = vmatprep.subr.bf16.mxu1 %v3521_v49  ;;  %v3606_v49 = vld [vmem:[%s5363_s4 + $0xb0] ss:$8 sps:$4 sm:$0xff]  }
  0xe7   :  { %2551 = vmatpush1.bf16.msra.mxu0 %v3588_v42 }
  0xe8   :  { %847 = vmatmul.mubr.bf16.gmra.mrb[28].mxu1 %v4578_v51  ;;  %1457 = vmatmul.mubr.bf16.gmra.mrb[28].mxu0 %v4578_v51 }
  0xe9   :  { %886 = vmatpush1.bf16.msra.mxu1 %v3519_v50  ;;  %889 = vmatprep.mubr.bf16.mxu1 %v4382_v8  ;;  %v3555_v50 = vld [vmem:[%s5361_s3 + $0x148] ss:$16 sps:$4 sm:$0xff]  }
  0xea   :  { %887 = vmatprep.subr.bf16.mxu1 %v3524_v52  ;;  %2552 = vmatprep.subr.bf16.mxu0 %v3593_v34  ;;  %v3560_v52 = vld [vmem:[%s5361_s3 + $0x16c] ss:$16 sps:$4 sm:$0xff]  }
  0xeb   :  { %2553 = vmatpush1.bf16.msra.mxu0 %v3591_v25 }
  0xec   :  { %2554 = vmatprep.subr.bf16.mxu0 %v3596_v27 }
  0xed   :  { %888 = vmatpush1.bf16.msra.mxu1 %v3522_v1  ;;  %v3563_v1 = vld [vmem:[%s5361_s3 + $0x18c] ss:$16 sps:$4 sm:$0xff]  }
  0xee   :  { %1467 = vmatprep.subr.bf16.mxu1 %v3527_v54  ;;  %v3614_v54 = vld [vmem:[%s5363_s4 + $0xd4] ss:$8 sps:$4 sm:$0xff]  }
  0xef   :  { %2555 = vmatpush1.bf16.msra.mxu0 %v3594_v38 }
  0xf0   :  { %890 = vmatmul.mubr.bf16.vlgmr.msra.gmra.mrb[32].mxu1 %v4387_v21  ;;  %2556 = vmatprep.subr.bf16.mxu0 %v3599_v28 }
  0xf1   :  { %1468 = vmatpush1.bf16.msra.mxu1 %v3525_v7  ;;  %899 = vmatprep.mubr.bf16.mxu1 %v4390_v24  ;;  %v3566_v7 = vld [vmem:[%s5361_s3 + $0x1ac] ss:$16 sps:$4 sm:$0xff]  }
  0xf2   :  { %1469 = vmatprep.subr.bf16.mxu1 %v3530_v16  ;;  %v3617_v16 = vld [vmem:[%s5363_s4 + $0xe4] ss:$8 sps:$4 sm:$0xff]  }
  0xf3   :  { %2557 = vmatpush1.bf16.msra.mxu0 %v3597_v41 }
  0xf4   :  { %2558 = vmatprep.subr.bf16.mxu0 %v3602_v60 }
  0xf5   :  { %1470 = vmatpush1.bf16.msra.mxu1 %v3528_v3  ;;  %v3564_v3 = vld [vmem:[%s5361_s3 + $0x1a8] ss:$16 sps:$4 sm:$0xff]  }
  0xf6   :  { %1471 = vmatprep.subr.bf16.mxu1 %v3533_v12  ;;  %v3620_v12 = vld [vmem:[%s5363_s4 + $0xf4] ss:$8 sps:$4 sm:$0xff]  }
  0xf7   :  { %2559 = vmatpush1.bf16.msra.mxu0 %v3600_v10 }
  0xf8   :  { %900 = vmatmul.mubr.bf16.gmra.mrb[36].mxu1 %v4423_v6  ;;  %2560 = vmatprep.subr.bf16.mxu0 %v3605_v40 }
  0xf9   :  { %1472 = vmatpush1.bf16.msra.mxu1 %v3531_v18  ;;  %909 = vmatprep.mubr.bf16.mxu1 %v4419_v61  ;;  %v3572_v18 = vld [vmem:[%s5361_s3 + $0x1ec] ss:$16 sps:$4 sm:$0xff]  }
  0xfa   :  { %1473 = vmatprep.subr.bf16.mxu1 %v3536_v19  ;;  %v3570_v19 = vld [vmem:[%s5361_s3 + $0x1e8] ss:$16 sps:$4 sm:$0xff]  }
  0xfb   :  { %2561 = vmatpush1.bf16.msra.mxu0 %v3603_v47 }
  0xfc   :  { %2562 = vmatprep.subr.bf16.mxu0 %v3608_v46 }
  0xfd   :  { %1474 = vmatpush1.bf16.msra.mxu1 %v3534_v15 }
  0xfe   :  { %1475 = vmatprep.subr.bf16.mxu1 %v3539_v11 }
  0xff   :  { %2563 = vmatpush1.bf16.msra.mxu0 %v3606_v49 }
 0x100   :  { %910 = vmatmul.mubr.bf16.gmra.mrb[40].mxu1 %v4442_v20  ;;  %2564 = vmatprep.subr.bf16.mxu0 %v3611_v56 }
 0x101   :  { %1476 = vmatpush1.bf16.msra.mxu1 %v3537_v22  ;;  %919 = vmatprep.mubr.bf16.mxu1 %v4449_v30 }
 0x102   :  { %1477 = vmatprep.subr.bf16.mxu1 %v3542_v23 }
 0x103   :  { %2565 = vmatpush1.bf16.msra.mxu0 %v3609_v62 }
 0x104   :  { %2566 = vmatprep.subr.bf16.mxu0 %v3614_v54 }
 0x105   :  { %1478 = vmatpush1.bf16.msra.mxu1 %v3540_v33 }
 0x106   :  { %1479 = vmatprep.subr.bf16.mxu1 %v3545_v35 }
 0x107   :  { %2567 = vmatpush1.bf16.msra.mxu0 %v3612_v59 }
 0x108   :  { %920 = vmatmul.mubr.bf16.gmra.mrb[44].mxu1 %v4470_v48  ;;  %2568 = vmatprep.subr.bf16.mxu0 %v3617_v16 }
 0x109   :  { %1480 = vmatpush1.bf16.msra.mxu1 %v3543_v36  ;;  %929 = vmatprep.mubr.bf16.mxu1 %v4477_v57 }
 0x10a   :  { %1481 = vmatprep.subr.bf16.mxu1 %v3548_v5 }
 0x10b   :  { %2569 = vmatpush1.bf16.msra.mxu0 %v3615_v31 }
 0x10c   :  { %2570 = vmatprep.subr.bf16.mxu0 %v3620_v12 }
 0x10d   :  { %1482 = vmatpush1.bf16.msra.mxu1 %v3546_v0 }
 0x10e   :  { %1483 = vmatprep.subr.bf16.mxu1 %v3551_v55 }
 0x10f   :  { %2571 = vmatpush1.bf16.msra.mxu0 %v3618_v14 }
 0x110   :  { %930 = vmatmul.mubr.bf16.gmra.mrb[48].mxu1 %v4498_v39 }
 0x111   :  { %1484 = vmatpush1.bf16.msra.mxu1 %v3549_v32  ;;  %939 = vmatprep.mubr.bf16.mxu1 %v4505_v17 }
 0x112   :  { %1485 = vmatprep.subr.bf16.mxu1 %v3554_v37 }
 0x115   :  { %1486 = vmatpush1.bf16.msra.mxu1 %v3552_v63 }
 0x116   :  { %1487 = vmatprep.subr.bf16.mxu1 %v3557_v53 }
 0x118   :  { %940 = vmatmul.mubr.bf16.gmra.mrb[52].mxu1 %v4526_v29 }
 0x119   :  { %1488 = vmatpush1.bf16.msra.mxu1 %v3555_v50  ;;  %949 = vmatprep.mubr.bf16.mxu1 %v4533_v44 }
 0x11a   :  { %1489 = vmatprep.subr.bf16.mxu1 %v3560_v52 }
 0x11d   :  { %1490 = vmatpush1.bf16.msra.mxu1 %v3558_v4 }
 0x11e   :  { %1491 = vmatprep.subr.bf16.mxu1 %v3563_v1 }
 0x120   :  { %950 = vmatmul.mubr.bf16.gmra.mrb[56].mxu1 %v4554_v58 }
 0x121   :  { %1492 = vmatpush1.bf16.msra.mxu1 %v3561_v26  ;;  %959 = vmatprep.mubr.bf16.mxu1 %v4561_v43 }
 0x122   :  { %1493 = vmatprep.subr.bf16.mxu1 %v3566_v7 }
 0x125   :  { %1494 = vmatpush1.bf16.msra.mxu1 %v3564_v3 }
 0x126   :  { %1495 = vmatprep.subr.bf16.mxu1 %v3569_v45 }
 0x128   :  { %960 = vmatmul.mubr.bf16.gmra.mrb[60].mxu1 %v4578_v51 }
 0x129   :  { %1496 = vmatpush1.bf16.msra.mxu1 %v3567_v13  ;;  %1499 = vmatprep.mubr.bf16.mxu1 %v4382_v8  ;;  %v3623_v8 = vld [vmem:[%s5363_s4 + $0x104] ss:$8 sps:$4 sm:$0xff]  }
 0x12a   :  { %1497 = vmatprep.subr.bf16.mxu1 %v3572_v18  ;;  %2653 = vmatprep.subr.bf16.mxu0 %v3623_v8 }
 0x12d   :  { %1498 = vmatpush1.bf16.msra.mxu1 %v3570_v19 }
 0x130   :  { %1500 = vmatmul.mubr.bf16.vlgmr.msra.gmra.mrb[64].mxu1 %v4387_v21 }
 0x131   :  { %1509 = vmatprep.mubr.bf16.mxu1 %v4390_v24 }
 0x138   :  { %1510 = vmatmul.mubr.bf16.gmra.mrb[68].mxu1 %v4423_v6 }
 0x139   :  { %1519 = vmatprep.mubr.bf16.mxu1 %v4419_v61 }
 0x140   :  { %1520 = vmatmul.mubr.bf16.gmra.mrb[72].mxu1 %v4442_v20 }
 0x141   :  { %1529 = vmatprep.mubr.bf16.mxu1 %v4449_v30 }
 0x148   :  { %1530 = vmatmul.mubr.bf16.gmra.mrb[76].mxu1 %v4470_v48 }
 0x149   :  { %1539 = vmatprep.mubr.bf16.mxu1 %v4477_v57 }
 0x150   :  { %1540 = vmatmul.mubr.bf16.gmra.mrb[80].mxu1 %v4498_v39 }
 0x151   :  { %1549 = vmatprep.mubr.bf16.mxu1 %v4505_v17 }
 0x158   :  { %1550 = vmatmul.mubr.bf16.gmra.mrb[84].mxu1 %v4526_v29 }
 0x159   :  { %1559 = vmatprep.mubr.bf16.mxu1 %v4533_v44 }
 0x160   :  { %1560 = vmatmul.mubr.bf16.gmra.mrb[88].mxu1 %v4554_v58 }
 0x161   :  { %1569 = vmatprep.mubr.bf16.mxu1 %v4561_v43 }
 0x168   :  { %1570 = vmatmul.mubr.bf16.gmra.mrb[92].mxu1 %v4578_v51 }
 0x183   :  { %v4818_v21 = vpop.f32.mrb[0].mxu1  ;;  %v4820_v24 = vpop.f32.mrb[0].mxu0 }
 0x184   :  { %v3189_v61 = vmul.f32 -1.442695, %v4818_v21  ;;  %v4823_v6 = vpop.f32.mrb[1].mxu1  ;;  %v4825_v20 = vpop.f32.mrb[1].mxu0 }
 0x185   :  { %v3190_v30 = vmul.f32 -1.442695, %v4823_v6  ;;  %v4828_v48 = vpop.f32.mrb[2].mxu1  ;;  %v4830_v57 = vpop.f32.mrb[2].mxu0 }
 0x186   :  { %3701 = vpow2.f32 %v3189_v61  ;;  %v3193_v39 = vmul.f32 -1.442695, %v4828_v48  ;;  %v4833_v17 = vpop.f32.mrb[3].mxu1  ;;  %v4835_v29 = vpop.f32.mrb[3].mxu0 }
 0x187   :  { %3703 = vpow2.f32 %v3190_v30  ;;  %v3194_v44 = vmul.f32 -1.442695, %v4833_v17 }
 0x188   :  { %3705 = vpow2.f32 %v3193_v39 }
 0x189   :  { %3707 = vpow2.f32 %v3194_v44 }
 0x18b   :  { %v4838_v58 = vpop.f32.mrb[4].mxu1  ;;  %v4840_v43 = vpop.f32.mrb[4].mxu0 }
 0x18c   :  { %v3197_v51 = vmul.f32 -1.442695, %v4838_v58  ;;  %v4843_v9 = vpop.f32.mrb[5].mxu1  ;;  %v4845_v2 = vpop.f32.mrb[5].mxu0 }
 0x18d   :  { %v3198_v15 = vmul.f32 -1.442695, %v4843_v9  ;;  %v4848_v11 = vpop.f32.mrb[6].mxu1  ;;  %v4850_v42 = vpop.f32.mrb[6].mxu0 }
 0x18e   :  { %3709 = vpow2.f32 %v3197_v51  ;;  %v3201_v34 = vmul.f32 -1.442695, %v4848_v11  ;;  %v4853_v22 = vpop.f32.mrb[7].mxu1  ;;  %v4855_v23 = vpop.f32.mrb[7].mxu0 }
 0x18f   :  { %3711 = vpow2.f32 %v3198_v15  ;;  %v3202_v25 = vmul.f32 -1.442695, %v4853_v22 }
 0x190   :  { %v3702_v33 = vpop.eup %3701  ;;  %3713 = vpow2.f32 %v3201_v34 }
 0x191   :  { %v3704_v35 = vpop.eup %3703  ;;  %v1772_v27 = vadd.f32 1.0, %v3702_v33  ;;  %3715 = vpow2.f32 %v3202_v25 }
 0x192   :  { %v3706_v38 = vpop.eup %3705  ;;  %v1773_v36 = vadd.f32 1.0, %v3704_v35 }
 0x193   :  { %v3708_v5 = vpop.eup %3707  ;;  %3717 = vrcp.f32 %v1772_v27  ;;  %v1776_v28 = vadd.f32 1.0, %v3706_v38  ;;  %v4858_v41 = vpop.f32.mrb[8].mxu1 }
 0x194   :  { %v4860_v0 = vpop.f32.mrb[8].mxu0  ;;  %3719 = vrcp.f32 %v1773_v36  ;;  %v1777_v55 = vadd.f32 1.0, %v3708_v5  ;;  %v3205_v60 = vmul.f32 -1.442695, %v4858_v41  ;;  %v4863_v10 = vpop.f32.mrb[9].mxu1 }
 0x195   :  { %v4865_v32 = vpop.f32.mrb[9].mxu0  ;;  %3721 = vrcp.f32 %v1776_v28  ;;  %v3206_v37 = vmul.f32 -1.442695, %v4863_v10  ;;  %v4868_v40 = vpop.f32.mrb[10].mxu1 }
 0x196   :  { %v4870_v47 = vpop.f32.mrb[10].mxu0  ;;  %3723 = vrcp.f32 %v1777_v55  ;;  %v3209_v63 = vmul.f32 -1.442695, %v4868_v40  ;;  %v4873_v53 = vpop.f32.mrb[11].mxu1 }
 0x197   :  { %v4875_v46 = vpop.f32.mrb[11].mxu0  ;;  %3725 = vpow2.f32 %v3205_v60  ;;  %v3210_v49 = vmul.f32 -1.442695, %v4873_v53 }
 0x198   :  { %v3710_v50 = vpop.eup %3709  ;;  %3727 = vpow2.f32 %v3206_v37 }
 0x199   :  { %v3712_v52 = vpop.eup %3711  ;;  %v1780_v56 = vadd.f32 1.0, %v3710_v50  ;;  %3729 = vpow2.f32 %v3209_v63 }
 0x19a   :  { %v3714_v62 = vpop.eup %3713  ;;  %v1781_v4 = vadd.f32 1.0, %v3712_v52  ;;  %3731 = vpow2.f32 %v3210_v49 }
 0x19b   :  { %v3716_v1 = vpop.eup %3715  ;;  %3733 = vrcp.f32 %v1780_v56  ;;  %v1784_v54 = vadd.f32 1.0, %v3714_v62  ;;  %v4878_v59 = vpop.f32.mrb[12].mxu1 }
 0x19c   :  { %v4880_v26 = vpop.f32.mrb[12].mxu0  ;;  %3735 = vrcp.f32 %v1781_v4  ;;  %v1785_v7 = vadd.f32 1.0, %v3716_v1  ;;  %v3213_v16 = vmul.f32 -1.442695, %v4878_v59  ;;  %v4883_v31 = vpop.f32.mrb[13].mxu1 }
 0x19d   :  { %v4885_v3 = vpop.f32.mrb[13].mxu0  ;;  %v3718_v45 = vpop.eup %3717  ;;  %3737 = vrcp.f32 %v1784_v54  ;;  %v3214_v12 = vmul.f32 -1.442695, %v4883_v31 }
 0x19e   :  { %v4888_v13 = vpop.f32.mrb[14].mxu1  ;;  %v4890_v14 = vpop.f32.mrb[14].mxu0  ;;  %v1964_v19 = vmul.f32 %v3718_v45, %v4818_v21  ;;  %3739 = vrcp.f32 %v1785_v7  ;;  %v3626_v45 = vld [vmem:[%s5363_s4 + $0x114] ss:$8 sps:$4 sm:$0xff]  }
 0x19f   :  { %v3720_v18 = vpop.eup %3719  ;;  %v3217_v8 = vmul.f32 -1.442695, %v4888_v13  ;;  %v4894_v61 = vpop.f32.mrb[15].mxu1  ;;  %3741 = vpow2.f32 %v3213_v16 }
 0x1a0   :  { %v4896_v30 = vpop.f32.mrb[15].mxu0  ;;  %v3722_v39 = vpop.eup %3721  ;;  %v1965_v44 = vmul.f32 %v3720_v18, %v4823_v6  ;;  %v3218_v51 = vmul.f32 -1.442695, %v4894_v61  ;;  %v2028_v34 = vmul.f32 %v1964_v19, %v4820_v24  ;;  %3743 = vpow2.f32 %v3214_v12 }
 0x1a1   :  { %v3724_v15 = vpop.eup %3723  ;;  %v1968_v25 = vmul.f32 %v3722_v39, %v4828_v48  ;;  %3745 = vpow2.f32 %v3217_v8 }
 0x1a2   :  { %v3726_v21 = vpop.eup %3725  ;;  %v2029_v33 = vmul.f32 %v1965_v44, %v4825_v20  ;;  %v1969_v35 = vmul.f32 %v3724_v15, %v4833_v17  ;;  %3747 = vpow2.f32 %v3218_v51  ;;  %v3621_v20 = vld [vmem:[%s5363_s4 + $0x100] ss:$8 sps:$4 sm:$0xff]  }
 0x1a3   :  { %v3728_v27 = vpop.eup %3727  ;;  %v2032_v38 = vmul.f32 %v1968_v25, %v4830_v57  ;;  %v1788_v36 = vadd.f32 1.0, %v3726_v21  ;;  %v4906_v55 = vpop.f32.mrb[16].mxu1 }
 0x1a4   :  { %v3730_v6 = vpop.eup %3729  ;;  %v2033_v5 = vmul.f32 %v1969_v35, %v4835_v29  ;;  %v1789_v28 = vadd.f32 1.0, %v3728_v27  ;;  %v4908_v24 = vpop.f32.mrb[16].mxu0  ;;  %v3221_v57 = vmul.f32 -1.442695, %v4906_v55 }
 0x1a5   :  { %v3732_v48 = vpop.eup %3731  ;;  %v2124_v17 = vpack.c.bf16 %v2032_v38, %v2028_v34  ;;  %3749 = vrcp.f32 %v1788_v36  ;;  %v1792_v60 = vadd.f32 1.0, %v3730_v6  ;;  %v4914_v37 = vpop.f32.mrb[17].mxu1 }
 0x1a6   :  { %v4916_v63 = vpop.f32.mrb[17].mxu0  ;;  %v3734_v29 = vpop.eup %3733  ;;  %v2125_v49 = vpack.c.bf16 %v2033_v5, %v2029_v33  ;;  %3751 = vrcp.f32 %v1789_v28  ;;  %v1793_v50 = vadd.f32 1.0, %v3732_v48  ;;  %v3222_v52 = vmul.f32 -1.442695, %v4914_v37 }
 0x1a7   :  { %v4919_v56 = vpop.f32.mrb[18].mxu1  ;;  %v4921_v62 = vpop.f32.mrb[18].mxu0  ;;  %v1972_v1 = vmul.f32 %v3734_v29, %v4838_v58  ;;  %3753 = vrcp.f32 %v1792_v60 }
 0x1a8   :  { %v3736_v4 = vpop.eup %3735  ;;  %v3225_v54 = vmul.f32 -1.442695, %v4919_v56  ;;  %v4925_v7 = vpop.f32.mrb[19].mxu1  ;;  %3755 = vrcp.f32 %v1793_v50  ;;  %2572 = vmatprep.mubr.bf16.mxu0 %v2125_v49 }
 0x1a9   :  { %v4927_v16 = vpop.f32.mrb[19].mxu0  ;;  %v3738_v12 = vpop.eup %3737  ;;  %v1973_v18 = vmul.f32 %v3736_v4, %v4843_v9  ;;  %v3226_v19 = vmul.f32 -1.442695, %v4925_v7  ;;  %v2036_v58 = vmul.f32 %v1972_v1, %v4840_v43  ;;  %3757 = vpow2.f32 %v3221_v57  ;;  %2573 = vmatmul.mubr.bf16.vlgmr.msra.gmra.mrb[32].mxu0 %v2124_v17  ;;  %v3624_v9 = vld [vmem:[%s5363_s4 + $0x110] ss:$8 sps:$4 sm:$0xff]  }
 0x1aa   :  { %v3740_v8 = vpop.eup %3739  ;;  %v1976_v39 = vmul.f32 %v3738_v12, %v4848_v11  ;;  %3759 = vpow2.f32 %v3222_v52  ;;  %2654 = vmatpush1.bf16.msra.mxu0 %v3621_v20  ;;  %v3629_v43 = vld [vmem:[%s5363_s4 + $0x124] ss:$8 sps:$4 sm:$0xff]   ;;  %v3632_v52 = vld [vmem:[%s5363_s4 + $0x134] ss:$8 sps:$4 sm:$0xff]  }
 0x1ab   :  { %v3742_v44 = vpop.eup %3741  ;;  %v2037_v51 = vmul.f32 %v1973_v18, %v4845_v2  ;;  %v1977_v15 = vmul.f32 %v3740_v8, %v4853_v22  ;;  %3761 = vpow2.f32 %v3225_v54  ;;  %2655 = vmatprep.subr.bf16.mxu0 %v3626_v45  ;;  %v4946_v33 = vpop.f32.mrb[20].mxu1 }
 0x1ac   :  { %v3744_v34 = vpop.eup %3743  ;;  %v2040_v25 = vmul.f32 %v1976_v39, %v4850_v42  ;;  %v1796_v21 = vadd.f32 1.0, %v3742_v44  ;;  %3763 = vpow2.f32 %v3226_v19  ;;  %v4948_v35 = vpop.f32.mrb[20].mxu0  ;;  %v3627_v42 = vld [vmem:[%s5363_s4 + $0x120] ss:$8 sps:$4 sm:$0xff]   ;;  %v3229_v6 = vmul.f32 -1.442695, %v4946_v33 }
 0x1ad   :  { %v3746_v11 = vpop.eup %3745  ;;  %v2041_v2 = vmul.f32 %v1977_v15, %v4855_v23  ;;  %v1797_v22 = vadd.f32 1.0, %v3744_v34  ;;  %v4954_v5 = vpop.f32.mrb[21].mxu1 }
 0x1ae   :  { %v3748_v27 = vpop.eup %3747  ;;  %v2128_v38 = vpack.c.bf16 %v2040_v25, %v2036_v58  ;;  %3765 = vrcp.f32 %v1796_v21  ;;  %v1800_v36 = vadd.f32 1.0, %v3746_v11  ;;  %v4956_v28 = vpop.f32.mrb[21].mxu0  ;;  %v3230_v48 = vmul.f32 -1.442695, %v4954_v5  ;;  %2656 = vmatpush1.bf16.msra.mxu0 %v3624_v9 }
 0x1af   :  { %v2129_v23 = vpack.c.bf16 %v2041_v2, %v2037_v51  ;;  %3767 = vrcp.f32 %v1797_v22  ;;  %v1801_v20 = vadd.f32 1.0, %v3748_v27  ;;  %v4959_v17 = vpop.f32.mrb[22].mxu1  ;;  %v4961_v60 = vpop.f32.mrb[22].mxu0  ;;  %2657 = vmatprep.subr.bf16.mxu0 %v3629_v43  ;;  %v3633_v43 = vld [vmem:[%s5363_s4 + $0x140] ss:$8 sps:$4 sm:$0xff]  }
 0x1b0   :  { %v3750_v57 = vpop.eup %3749  ;;  %3769 = vrcp.f32 %v1800_v36  ;;  %v3233_v29 = vmul.f32 -1.442695, %v4959_v17  ;;  %v4964_v49 = vpop.f32.mrb[23].mxu1 }
 0x1b1   :  { %v4966_v50 = vpop.f32.mrb[23].mxu0  ;;  %v3752_v4 = vpop.eup %3751  ;;  %v1980_v1 = vmul.f32 %v3750_v57, %v4858_v41  ;;  %3771 = vrcp.f32 %v1801_v20  ;;  %v3234_v54 = vmul.f32 -1.442695, %v4964_v49  ;;  %2582 = vmatprep.mubr.bf16.mxu0 %v2129_v23  ;;  %v3630_v41 = vld [vmem:[%s5363_s4 + $0x130] ss:$8 sps:$4 sm:$0xff]  }
 0x1b2   :  { %v3754_v45 = vpop.eup %3753  ;;  %v1981_v12 = vmul.f32 %v3752_v4, %v4863_v10  ;;  %3773 = vpow2.f32 %v3229_v6  ;;  %2583 = vmatmul.mubr.bf16.gmra.mrb[36].mxu0 %v2128_v38  ;;  %v3635_v10 = vld [vmem:[%s5363_s4 + $0x144] ss:$8 sps:$4 sm:$0xff]  }
 0x1b3   :  { %v3756_v18 = vpop.eup %3755  ;;  %v2044_v19 = vmul.f32 %v1980_v1, %v4860_v0  ;;  %v1984_v8 = vmul.f32 %v3754_v45, %v4868_v40  ;;  %3775 = vpow2.f32 %v3230_v48  ;;  %2658 = vmatpush1.bf16.msra.mxu0 %v3627_v42  ;;  %v4985_v15 = vpop.f32.mrb[24].mxu1 }
 0x1b4   :  { %v3758_v58 = vpop.eup %3757  ;;  %v2045_v39 = vmul.f32 %v1981_v12, %v4865_v32  ;;  %v1985_v44 = vmul.f32 %v3756_v18, %v4873_v53  ;;  %3777 = vpow2.f32 %v3233_v29  ;;  %2659 = vmatprep.subr.bf16.mxu0 %v3632_v52  ;;  %v4987_v9 = vpop.f32.mrb[24].mxu0  ;;  %v3237_v22 = vmul.f32 -1.442695, %v4985_v15  ;;  %v3638_v52 = vld [vmem:[%s5363_s4 + $0x154] ss:$8 sps:$4 sm:$0xff]  }
 0x1b5   :  { %v3760_v0 = vpop.eup %3759  ;;  %v2048_v40 = vmul.f32 %v1984_v8, %v4870_v47  ;;  %v1804_v51 = vadd.f32 1.0, %v3758_v58  ;;  %3779 = vpow2.f32 %v3234_v54  ;;  %v4990_v53 = vpop.f32.mrb[25].mxu1 }
 0x1b6   :  { %v3762_v34 = vpop.eup %3761  ;;  %v2049_v32 = vmul.f32 %v1985_v44, %v4875_v46  ;;  %v1805_v25 = vadd.f32 1.0, %v3760_v0  ;;  %v4992_v21 = vpop.f32.mrb[25].mxu0  ;;  %v3238_v6 = vmul.f32 -1.442695, %v4990_v53 }
 0x1b7   :  { %v3764_v11 = vpop.eup %3763  ;;  %v2132_v47 = vpack.c.bf16 %v2048_v40, %v2044_v19  ;;  %3781 = vrcp.f32 %v1804_v51  ;;  %v1808_v2 = vadd.f32 1.0, %v3762_v34  ;;  %v4998_v42 = vpop.f32.mrb[26].mxu1  ;;  %2660 = vmatpush1.bf16.msra.mxu0 %v3630_v41 }
 0x1b8   :  { %v5000_v27 = vpop.f32.mrb[26].mxu0  ;;  %v3766_v46 = vpop.eup %3765  ;;  %v2133_v38 = vpack.c.bf16 %v2049_v32, %v2045_v39  ;;  %3783 = vrcp.f32 %v1805_v25  ;;  %v1809_v36 = vadd.f32 1.0, %v3764_v11  ;;  %2661 = vmatprep.subr.bf16.mxu0 %v3635_v10  ;;  %v3241_v29 = vmul.f32 -1.442695, %v4998_v42 }
 0x1b9   :  { %v5003_v23 = vpop.f32.mrb[27].mxu1  ;;  %v5005_v20 = vpop.f32.mrb[27].mxu0  ;;  %v1988_v57 = vmul.f32 %v3766_v46, %v4878_v59  ;;  %3785 = vrcp.f32 %v1808_v2 }
 0x1ba   :  { %v3768_v48 = vpop.eup %3767  ;;  %3787 = vrcp.f32 %v1809_v36  ;;  %v3242_v54 = vmul.f32 -1.442695, %v5003_v23  ;;  %2592 = vmatprep.mubr.bf16.mxu0 %v2133_v38 }
 0x1bb   :  { %v3770_v4 = vpop.eup %3769  ;;  %v1989_v1 = vmul.f32 %v3768_v48, %v4883_v31  ;;  %v2052_v12 = vmul.f32 %v1988_v57, %v4880_v26  ;;  %3789 = vpow2.f32 %v3237_v22  ;;  %2593 = vmatmul.mubr.bf16.gmra.mrb[40].mxu0 %v2132_v47  ;;  %v3636_v31 = vld [vmem:[%s5363_s4 + $0x150] ss:$8 sps:$4 sm:$0xff]   ;;  %v5022_v26 = vpop.f32.mrb[28].mxu1 }
 0x1bc   :  { %v3772_v45 = vpop.eup %3771  ;;  %v1992_v18 = vmul.f32 %v3770_v4, %v4888_v13  ;;  %3791 = vpow2.f32 %v3238_v6  ;;  %2662 = vmatpush1.bf16.msra.mxu0 %v3633_v43  ;;  %v5024_v13 = vpop.f32.mrb[28].mxu0  ;;  %v3245_v25 = vmul.f32 -1.442695, %v5022_v26  ;;  %v3644_v6 = vld [vmem:[%s5363_s4 + $0x174] ss:$8 sps:$4 sm:$0xff]  }
 0x1bd   :  { %v3774_v59 = vpop.eup %3773  ;;  %v2053_v19 = vmul.f32 %v1989_v1, %v4885_v3  ;;  %v1993_v8 = vmul.f32 %v3772_v45, %v4894_v61  ;;  %3793 = vpow2.f32 %v3241_v29  ;;  %2663 = vmatprep.subr.bf16.mxu0 %v3638_v52  ;;  %v3641_v3 = vld [vmem:[%s5363_s4 + $0x164] ss:$8 sps:$4 sm:$0xff]   ;;  %v5030_v0 = vpop.f32.mrb[29].mxu1 }
 0x1be   :  { %v3776_v41 = vpop.eup %3775  ;;  %v2056_v58 = vmul.f32 %v1992_v18, %v4890_v14  ;;  %v1812_v39 = vadd.f32 1.0, %v3774_v59  ;;  %3795 = vpow2.f32 %v3242_v54  ;;  %v5032_v40 = vpop.f32.mrb[29].mxu0  ;;  %v3639_v14 = vld [vmem:[%s5363_s4 + $0x160] ss:$8 sps:$4 sm:$0xff]   ;;  %v3246_v2 = vmul.f32 -1.442695, %v5030_v0 }
 0x1bf   :  { %v3778_v61 = vpop.eup %3777  ;;  %v2057_v44 = vmul.f32 %v1993_v8, %v4896_v30  ;;  %v1813_v10 = vadd.f32 1.0, %v3776_v41  ;;  %v5038_v43 = vpop.f32.mrb[30].mxu1 }
 0x1c0   :  { %v3780_v51 = vpop.eup %3779  ;;  %v2136_v34 = vpack.c.bf16 %v2056_v58, %v2052_v12  ;;  %3797 = vrcp.f32 %v1812_v39  ;;  %v1816_v32 = vadd.f32 1.0, %v3778_v61  ;;  %v5040_v11 = vpop.f32.mrb[30].mxu0  ;;  %2664 = vmatpush1.bf16.msra.mxu0 %v3636_v31  ;;  %v3249_v36 = vmul.f32 -1.442695, %v5038_v43 }
 0x1c1   :  { %v2137_v30 = vpack.c.bf16 %v2057_v44, %v2053_v19  ;;  %3799 = vrcp.f32 %v1813_v10  ;;  %v1817_v47 = vadd.f32 1.0, %v3780_v51  ;;  %v5043_v22 = vpop.f32.mrb[31].mxu1  ;;  %v5045_v46 = vpop.f32.mrb[31].mxu0  ;;  %2665 = vmatprep.subr.bf16.mxu0 %v3641_v3  ;;  %v3645_v51 = vld [vmem:[%s5363_s4 + $0x180] ss:$8 sps:$4 sm:$0xff]  }
 0x1c2   :  { %v3782_v38 = vpop.eup %3781  ;;  %3801 = vrcp.f32 %v1816_v32  ;;  %v3250_v29 = vmul.f32 -1.442695, %v5043_v22  ;;  %v3650_v32 = vld [vmem:[%s5363_s4 + $0x194] ss:$8 sps:$4 sm:$0xff]  }
 0x1c3   :  { %v3784_v48 = vpop.eup %3783  ;;  %v1996_v57 = vmul.f32 %v3782_v38, %v4906_v55  ;;  %3803 = vrcp.f32 %v1817_v47  ;;  %2602 = vmatprep.mubr.bf16.mxu0 %v2137_v30  ;;  %v3642_v55 = vld [vmem:[%s5363_s4 + $0x170] ss:$8 sps:$4 sm:$0xff]  }
 0x1c4   :  { %v3786_v52 = vpop.eup %3785  ;;  %v1997_v4 = vmul.f32 %v3784_v48, %v4914_v37  ;;  %3805 = vpow2.f32 %v3245_v25  ;;  %2603 = vmatmul.mubr.bf16.gmra.mrb[44].mxu0 %v2136_v34  ;;  %v5061_v37 = vpop.f32.mrb[32].mxu1 }
 0x1c5   :  { %v3788_v1 = vpop.eup %3787  ;;  %v2060_v54 = vmul.f32 %v1996_v57, %v4908_v24  ;;  %v2000_v45 = vmul.f32 %v3786_v52, %v4919_v56  ;;  %3807 = vpow2.f32 %v3246_v2  ;;  %2666 = vmatpush1.bf16.msra.mxu0 %v3639_v14  ;;  %v3647_v24 = vld [vmem:[%s5363_s4 + $0x184] ss:$8 sps:$4 sm:$0xff]   ;;  %v5067_v31 = vpop.f32.mrb[33].mxu1 }
 0x1c6   :  { %v3790_v12 = vpop.eup %3789  ;;  %v2061_v18 = vmul.f32 %v1997_v4, %v4916_v63  ;;  %v2001_v59 = vmul.f32 %v3788_v1, %v4925_v7  ;;  %3809 = vpow2.f32 %v3249_v36  ;;  %2667 = vmatprep.subr.bf16.mxu0 %v3644_v6  ;;  %v5070_v7 = vpop.f32.mrb[34].mxu1 }
 0x1c7   :  { %v3792_v56 = vpop.eup %3791  ;;  %v2064_v19 = vmul.f32 %v2000_v45, %v4921_v62  ;;  %v1820_v8 = vadd.f32 1.0, %v3790_v12  ;;  %3811 = vpow2.f32 %v3250_v29  ;;  %v5072_v44 = vpop.f32.mrb[35].mxu1 }
 0x1c8   :  { %v3794_v41 = vpop.eup %3793  ;;  %v2065_v63 = vmul.f32 %v2001_v59, %v4927_v16  ;;  %v1821_v58 = vadd.f32 1.0, %v3792_v56  ;;  %v3651_v59 = vld [vmem:[%s5363_s4 + $0x1a0] ss:$8 sps:$4 sm:$0xff]  }
 0x1c9   :  { %v3796_v39 = vpop.eup %3795  ;;  %v2140_v3 = vpack.c.bf16 %v2064_v19, %v2060_v54  ;;  %3813 = vrcp.f32 %v1820_v8  ;;  %v1824_v61 = vadd.f32 1.0, %v3794_v41  ;;  %2668 = vmatpush1.bf16.msra.mxu0 %v3642_v55 }
 0x1ca   :  { %v3798_v10 = vpop.eup %3797  ;;  %v2141_v14 = vpack.c.bf16 %v2065_v63, %v2061_v18  ;;  %3815 = vrcp.f32 %v1821_v58  ;;  %v1825_v62 = vadd.f32 1.0, %v3796_v39  ;;  %2669 = vmatprep.subr.bf16.mxu0 %v3647_v24 }
 0x1cb   :  { %v3800_v16 = vpop.eup %3799  ;;  %v2004_v34 = vmul.f32 %v3798_v10, %v4946_v33  ;;  %3817 = vrcp.f32 %v1824_v61  ;;  %v5086_v48 = vpop.f32.mrb[36].mxu1  ;;  %v3654_v61 = vld [vmem:[%s5363_s4 + $0x1b0] ss:$8 sps:$4 sm:$0xff]  }
 0x1cc   :  { %v3802_v25 = vpop.eup %3801  ;;  %v2005_v30 = vmul.f32 %v3800_v16, %v4954_v5  ;;  %3819 = vrcp.f32 %v1825_v62  ;;  %2612 = vmatprep.mubr.bf16.mxu0 %v2141_v14  ;;  %v3648_v5 = vld [vmem:[%s5363_s4 + $0x190] ss:$8 sps:$4 sm:$0xff]  }
 0x1cd   :  { %v3804_v47 = vpop.eup %3803  ;;  %v2068_v2 = vmul.f32 %v2004_v34, %v4948_v35  ;;  %v2008_v38 = vmul.f32 %v3802_v25, %v4959_v17  ;;  %2613 = vmatmul.mubr.bf16.gmra.mrb[48].mxu0 %v2140_v3  ;;  %v5092_v35 = vpop.f32.mrb[37].mxu1 }
 0x1ce   :  { %v3806_v36 = vpop.eup %3805  ;;  %v2069_v6 = vmul.f32 %v2005_v30, %v4956_v28  ;;  %v2009_v33 = vmul.f32 %v3804_v47, %v4964_v49  ;;  %2670 = vmatpush1.bf16.msra.mxu0 %v3645_v51  ;;  %v3653_v28 = vld [vmem:[%s5363_s4 + $0x1a4] ss:$8 sps:$4 sm:$0xff]   ;;  %v5098_v1 = vpop.f32.mrb[38].mxu1 }
 0x1cf   :  { %v3808_v57 = vpop.eup %3807  ;;  %v2072_v29 = vmul.f32 %v2008_v38, %v4961_v60  ;;  %v1828_v52 = vadd.f32 1.0, %v3806_v36  ;;  %2671 = vmatprep.subr.bf16.mxu0 %v3650_v32  ;;  %v5100_v12 = vpop.f32.mrb[39].mxu1 }
 0x1d0   :  { %v3810_v17 = vpop.eup %3809  ;;  %v2073_v49 = vmul.f32 %v2009_v33, %v4966_v50  ;;  %v1829_v4 = vadd.f32 1.0, %v3808_v57  ;;  %v3656_v50 = vld [vmem:[%s5363_s4 + $0x1b4] ss:$8 sps:$4 sm:$0xff]  }
 0x1d1   :  { %v3812_v54 = vpop.eup %3811  ;;  %v2144_v45 = vpack.c.bf16 %v2072_v29, %v2068_v2  ;;  %3821 = vrcp.f32 %v1828_v52  ;;  %v1832_v55 = vadd.f32 1.0, %v3810_v17  ;;  %v3195_v17 = vmul.f32 -1.442695, %v5070_v7 }
 0x1d2   :  { %v2145_v60 = vpack.c.bf16 %v2073_v49, %v2069_v6  ;;  %3823 = vrcp.f32 %v1829_v4  ;;  %v1833_v18 = vadd.f32 1.0, %v3812_v54  ;;  %2672 = vmatpush1.bf16.msra.mxu0 %v3648_v5  ;;  %v3668_v49 = vld [vmem:[%s5363_s4 + $0x1f4] ss:$8 sps:$4 sm:$0xff]   ;;  %v3199_v54 = vmul.f32 -1.442695, %v5086_v48 }
 0x1d3   :  { %v3814_v24 = vpop.eup %3813  ;;  %3825 = vrcp.f32 %v1832_v55  ;;  %2673 = vmatprep.subr.bf16.mxu0 %v3653_v28  ;;  %v5112_v3 = vpop.f32.mrb[40].mxu1  ;;  %v3666_v55 = vld [vmem:[%s5363_s4 + $0x1f0] ss:$8 sps:$4 sm:$0xff]  }
 0x1d4   :  { %v3816_v56 = vpop.eup %3815  ;;  %v2012_v19 = vmul.f32 %v3814_v24, %v4985_v15  ;;  %3827 = vrcp.f32 %v1833_v18  ;;  %2622 = vmatprep.mubr.bf16.mxu0 %v2145_v60  ;;  %v5119_v14 = vpop.f32.mrb[41].mxu1  ;;  %v3200_v60 = vmul.f32 -1.442695, %v5092_v35 }
 0x1d5   :  { %v3818_v8 = vpop.eup %3817  ;;  %v2013_v41 = vmul.f32 %v3816_v56, %v4990_v53  ;;  %2623 = vmatmul.mubr.bf16.gmra.mrb[52].mxu0 %v2144_v45 }
 0x1d6   :  { %v3820_v63 = vpop.eup %3819  ;;  %v2076_v58 = vmul.f32 %v2012_v19, %v4987_v9  ;;  %v2016_v39 = vmul.f32 %v3818_v8, %v4998_v42  ;;  %2674 = vmatpush1.bf16.msra.mxu0 %v3651_v59  ;;  %v3659_v9 = vld [vmem:[%s5363_s4 + $0x1c4] ss:$8 sps:$4 sm:$0xff]   ;;  %v5125_v42 = vpop.f32.mrb[42].mxu1  ;;  %v3203_v59 = vmul.f32 -1.442695, %v5098_v1 }
 0x1d7   :  { %v2077_v15 = vmul.f32 %v2013_v41, %v4992_v21  ;;  %v2017_v10 = vmul.f32 %v3820_v63, %v5003_v23  ;;  %2675 = vmatprep.subr.bf16.mxu0 %v3656_v50  ;;  %v5128_v51 = vpop.f32.mrb[43].mxu1  ;;  %v3657_v23 = vld [vmem:[%s5363_s4 + $0x1c0] ss:$8 sps:$4 sm:$0xff]   ;;  %v3204_v50 = vmul.f32 -1.442695, %v5100_v12 }
 0x1d8   :  { %v2080_v53 = vmul.f32 %v2016_v39, %v5000_v27  ;;  %v3662_v27 = vld [vmem:[%s5363_s4 + $0x1d4] ss:$8 sps:$4 sm:$0xff]   ;;  %v3207_v41 = vmul.f32 -1.442695, %v5112_v3 }
 0x1d9   :  { %v2081_v62 = vmul.f32 %v2017_v10, %v5005_v20 }
 0x1da   :  { %v2148_v16 = vpack.c.bf16 %v2080_v53, %v2076_v58  ;;  %2676 = vmatpush1.bf16.msra.mxu0 %v3654_v61  ;;  %v3208_v58 = vmul.f32 -1.442695, %v5119_v14 }
 0x1db   :  { %v3822_v21 = vpop.eup %3821  ;;  %v2149_v34 = vpack.c.bf16 %v2081_v62, %v2077_v15  ;;  %2677 = vmatprep.subr.bf16.mxu0 %v3659_v9  ;;  %v5140_v36 = vpop.f32.mrb[44].mxu1  ;;  %v3211_v62 = vmul.f32 -1.442695, %v5125_v42 }
 0x1dc   :  { %v3824_v32 = vpop.eup %3823  ;;  %v2020_v25 = vmul.f32 %v3822_v21, %v5022_v26  ;;  %v5144_v33 = vpop.f32.mrb[45].mxu1 }
 0x1dd   :  { %v3826_v30 = vpop.eup %3825  ;;  %v2021_v20 = vmul.f32 %v3824_v32, %v5030_v0  ;;  %2632 = vmatprep.mubr.bf16.mxu0 %v2149_v34  ;;  %v3660_v0 = vld [vmem:[%s5363_s4 + $0x1d0] ss:$8 sps:$4 sm:$0xff]   ;;  %v5151_v57 = vpop.f32.mrb[46].mxu1 }
 0x1de   :  { %v3828_v47 = vpop.eup %3827  ;;  %v2084_v2 = vmul.f32 %v2020_v25, %v5024_v13  ;;  %v2024_v38 = vmul.f32 %v3826_v30, %v5038_v43  ;;  %2633 = vmatmul.mubr.bf16.gmra.mrb[56].mxu0 %v2148_v16  ;;  %v3191_v13 = vmul.f32 -1.442695, %v5061_v37  ;;  %v5158_v29 = vpop.f32.mrb[47].mxu1  ;;  %v3212_v16 = vmul.f32 -1.442695, %v5128_v51 }
 0x1df   :  { %v2085_v6 = vmul.f32 %v2021_v20, %v5032_v40  ;;  %v2025_v26 = vmul.f32 %v3828_v47, %v5043_v22  ;;  %2678 = vmatpush1.bf16.msra.mxu0 %v3657_v23  ;;  %v3665_v40 = vld [vmem:[%s5363_s4 + $0x1e4] ss:$8 sps:$4 sm:$0xff]   ;;  %v3192_v22 = vmul.f32 -1.442695, %v5067_v31  ;;  %v3215_v30 = vmul.f32 -1.442695, %v5140_v36 }
 0x1e0   :  { %v2088_v5 = vmul.f32 %v2024_v38, %v5040_v11  ;;  %2679 = vmatprep.subr.bf16.mxu0 %v3662_v27  ;;  %v3663_v11 = vld [vmem:[%s5363_s4 + $0x1e0] ss:$8 sps:$4 sm:$0xff]   ;;  %3829 = vpow2.f32 %v3191_v13  ;;  %v3219_v13 = vmul.f32 -1.442695, %v5151_v57 }
 0x1e1   :  { %v2089_v43 = vmul.f32 %v2025_v26, %v5045_v46  ;;  %3831 = vpow2.f32 %v3192_v22  ;;  %v3196_v46 = vmul.f32 -1.442695, %v5072_v44 }
 0x1e2   :  { %v2152_v52 = vpack.c.bf16 %v2088_v5, %v2084_v2  ;;  %3833 = vpow2.f32 %v3195_v17  ;;  %v3216_v5 = vmul.f32 -1.442695, %v5144_v33 }
 0x1e3   :  { %v2153_v28 = vpack.c.bf16 %v2089_v43, %v2085_v6  ;;  %2680 = vmatpush1.bf16.msra.mxu0 %v3660_v0  ;;  %v5168_v4 = vpop.f32.mrb[48].mxu1  ;;  %3835 = vpow2.f32 %v3196_v46 }
 0x1e4   :  { %2681 = vmatprep.subr.bf16.mxu0 %v3665_v40  ;;  %v5171_v45 = vpop.f32.mrb[49].mxu1  ;;  %3837 = vpow2.f32 %v3199_v54  ;;  %v3223_v17 = vmul.f32 -1.442695, %v5168_v4 }
 0x1e5   :  { %2642 = vmatprep.mubr.bf16.mxu0 %v2153_v28  ;;  %v5177_v18 = vpop.f32.mrb[50].mxu1  ;;  %3839 = vpow2.f32 %v3200_v60 }
 0x1e6   :  { %2643 = vmatmul.mubr.bf16.gmra.mrb[60].mxu0 %v2152_v52  ;;  %v5180_v24 = vpop.f32.mrb[51].mxu1  ;;  %3841 = vpow2.f32 %v3203_v59  ;;  %v3220_v52 = vmul.f32 -1.442695, %v5158_v29 }
 0x1e7   :  { %2682 = vmatpush1.bf16.msra.mxu0 %v3663_v11  ;;  %3843 = vpow2.f32 %v3204_v50 }
 0x1e8   :  { %2683 = vmatprep.subr.bf16.mxu0 %v3668_v49  ;;  %3845 = vpow2.f32 %v3207_v41 }
 0x1e9   :  { %3847 = vpow2.f32 %v3208_v58  ;;  %v3227_v58 = vmul.f32 -1.442695, %v5177_v18 }
 0x1ea   :  { %v3830_v56 = vpop.eup %3829 }
 0x1eb   :  { %2684 = vmatpush1.bf16.msra.mxu0 %v3666_v55  ;;  %v5183_v19 = vpop.f32.mrb[52].mxu1  ;;  %v3832_v8 = vpop.eup %3831  ;;  %v1774_v61 = vadd.f32 1.0, %v3830_v56 }
 0x1ec   :  { %v5186_v63 = vpop.f32.mrb[53].mxu1  ;;  %v3834_v10 = vpop.eup %3833  ;;  %v1775_v9 = vadd.f32 1.0, %v3832_v8  ;;  %v3224_v8 = vmul.f32 -1.442695, %v5171_v45 }
 0x1ed   :  { %v5189_v39 = vpop.f32.mrb[54].mxu1  ;;  %v3836_v53 = vpop.eup %3835  ;;  %3849 = vrcp.f32 %v1774_v61  ;;  %v1778_v34 = vadd.f32 1.0, %v3834_v10 }
 0x1ee   :  { %v5191_v15 = vpop.f32.mrb[55].mxu1  ;;  %v3838_v21 = vpop.eup %3837  ;;  %3851 = vrcp.f32 %v1775_v9  ;;  %v1779_v32 = vadd.f32 1.0, %v3836_v53 }
 0x1ef   :  { %v3840_v23 = vpop.eup %3839  ;;  %3853 = vpow2.f32 %v3211_v62  ;;  %v1782_v47 = vadd.f32 1.0, %v3838_v21 }
 0x1f0   :  { %v3842_v27 = vpop.eup %3841  ;;  %3855 = vpow2.f32 %v3212_v16  ;;  %v1783_v38 = vadd.f32 1.0, %v3840_v23 }
 0x1f1   :  { %3857 = vrcp.f32 %v1778_v34  ;;  %v3844_v26 = vpop.eup %3843  ;;  %v1786_v0 = vadd.f32 1.0, %v3842_v27  ;;  %v3228_v34 = vmul.f32 -1.442695, %v5180_v24 }
 0x1f2   :  { %3859 = vrcp.f32 %v1779_v32  ;;  %v3846_v40 = vpop.eup %3845  ;;  %v1787_v43 = vadd.f32 1.0, %v3844_v26 }
 0x1f3   :  { %v5195_v25 = vpop.f32.mrb[56].mxu1  ;;  %3861 = vpow2.f32 %v3215_v30  ;;  %v3848_v22 = vpop.eup %3847  ;;  %v1790_v54 = vadd.f32 1.0, %v3846_v40  ;;  %v3231_v30 = vmul.f32 -1.442695, %v5183_v19 }
 0x1f4   :  { %v5198_v20 = vpop.f32.mrb[57].mxu1  ;;  %3863 = vrcp.f32 %v1782_v47  ;;  %v1791_v59 = vadd.f32 1.0, %v3848_v22 }
 0x1f5   :  { %v5200_v2 = vpop.f32.mrb[58].mxu1  ;;  %3865 = vrcp.f32 %v1783_v38 }
 0x1f6   :  { %v5202_v6 = vpop.f32.mrb[59].mxu1  ;;  %3867 = vrcp.f32 %v1786_v0  ;;  %v3232_v0 = vmul.f32 -1.442695, %v5186_v63 }
 0x1f7   :  { %v3850_v11 = vpop.eup %3849  ;;  %3869 = vpow2.f32 %v3216_v5 }
 0x1f8   :  { %v3852_v46 = vpop.eup %3851  ;;  %3871 = vpow2.f32 %v3219_v13  ;;  %v1966_v53 = vmul.f32 %v3850_v11, %v5061_v37 }
 0x1f9   :  { %v3854_v60 = vpop.eup %3853  ;;  %3873 = vrcp.f32 %v1787_v43  ;;  %v1967_v21 = vmul.f32 %v3852_v46, %v5067_v31 }
 0x1fa   :  { %v3856_v56 = vpop.eup %3855  ;;  %3875 = vpow2.f32 %v3220_v52  ;;  %v1794_v10 = vadd.f32 1.0, %v3854_v60 }
 0x1fb   :  { %v5207_v28 = vpop.f32.mrb[60].mxu1  ;;  %v3858_v41 = vpop.eup %3857  ;;  %3877 = vpow2.f32 %v3223_v17  ;;  %v1795_v62 = vadd.f32 1.0, %v3856_v56  ;;  %v3235_v17 = vmul.f32 -1.442695, %v5189_v39 }
 0x1fc   :  { %v5210_v49 = vpop.f32.mrb[61].mxu1  ;;  %v3860_v61 = vpop.eup %3859  ;;  %3879 = vrcp.f32 %v1790_v54  ;;  %v1970_v27 = vmul.f32 %v3858_v41, %v5070_v7 }
 0x1fd   :  { %v5212_v55 = vpop.f32.mrb[62].mxu1  ;;  %v3862_v9 = vpop.eup %3861  ;;  %3881 = vrcp.f32 %v1791_v59  ;;  %v1971_v37 = vmul.f32 %v3860_v61, %v5072_v44  ;;  %v3236_v61 = vmul.f32 -1.442695, %v5191_v15 }
 0x1fe   :  { %v5214_v50 = vpop.f32.mrb[63].mxu1  ;;  %v3864_v16 = vpop.eup %3863  ;;  %3883 = vpow2.f32 %v3224_v8  ;;  %v1798_v52 = vadd.f32 1.0, %v3862_v9 }
 0x1ff   :  { %v3866_v32 = vpop.eup %3865  ;;  %3885 = vpow2.f32 %v3227_v58  ;;  %v1974_v56 = vmul.f32 %v3864_v16, %v5086_v48 }
 0x200   :  { %v3868_v26 = vpop.eup %3867  ;;  %3887 = vrcp.f32 %v1794_v10  ;;  %v1975_v58 = vmul.f32 %v3866_v32, %v5092_v35 }
 0x201   :  { %v3870_v13 = vpop.eup %3869  ;;  %3889 = vrcp.f32 %v1795_v62 }
 0x202   :  { %v3872_v22 = vpop.eup %3871  ;;  %3891 = vpow2.f32 %v3228_v34  ;;  %v1799_v44 = vadd.f32 1.0, %v3870_v13 }
 0x203   :  { %v1501_v23 = vpop.f32.mrb[64].mxu1  ;;  %v3874_v11 = vpop.eup %3873  ;;  %3893 = vpow2.f32 %v3231_v30  ;;  %v1802_v8 = vadd.f32 1.0, %v3872_v22  ;;  %v3239_v30 = vmul.f32 -1.442695, %v5195_v25 }
 0x204   :  { %v2030_v47 = vmul.f32 %v1966_v53, %v1501_v23  ;;  %v1503_v38 = vpop.f32.mrb[65].mxu1  ;;  %v3876_v54 = vpop.eup %3875  ;;  %3895 = vpow2.f32 %v3232_v0  ;;  %v1978_v53 = vmul.f32 %v3868_v26, %v5098_v1  ;;  %v1979_v48 = vmul.f32 %v3874_v11, %v5100_v12 }
 0x205   :  { %v2031_v5 = vmul.f32 %v1967_v21, %v1503_v38  ;;  %v1505_v31 = vpop.f32.mrb[66].mxu1  ;;  %v3878_v59 = vpop.eup %3877  ;;  %3897 = vrcp.f32 %v1798_v52  ;;  %v1803_v62 = vadd.f32 1.0, %v3876_v54  ;;  %v3240_v1 = vmul.f32 -1.442695, %v5198_v20 }
 0x206   :  { %v2034_v40 = vmul.f32 %v1970_v27, %v1505_v31  ;;  %v1507_v43 = vpop.f32.mrb[67].mxu1  ;;  %v3880_v41 = vpop.eup %3879  ;;  %3899 = vpow2.f32 %v3235_v17  ;;  %v1806_v16 = vadd.f32 1.0, %v3878_v59  ;;  %v3243_v52 = vmul.f32 -1.442695, %v5200_v2 }
 0x207   :  { %v2035_v7 = vmul.f32 %v1971_v37, %v1507_v43  ;;  %v3882_v9 = vpop.eup %3881  ;;  %3901 = vrcp.f32 %v1799_v44  ;;  %v1982_v22 = vmul.f32 %v3880_v41, %v5112_v3  ;;  %v3244_v17 = vmul.f32 -1.442695, %v5202_v6 }
 0x208   :  { %v2126_v46 = vpack.c.bf16 %v2034_v40, %v2030_v47  ;;  %v3884_v23 = vpop.eup %3883  ;;  %3903 = vrcp.f32 %v1802_v8  ;;  %v1983_v11 = vmul.f32 %v3882_v9, %v5119_v14 }
 0x209   :  { %v2127_v60 = vpack.c.bf16 %v2035_v7, %v2031_v5  ;;  %v3886_v32 = vpop.eup %3885  ;;  %3905 = vpow2.f32 %v3236_v61  ;;  %v1807_v5 = vadd.f32 1.0, %v3884_v23 }
 0x20a   :  { %v3888_v37 = vpop.eup %3887  ;;  %3907 = vrcp.f32 %v1803_v62  ;;  %v1810_v13 = vadd.f32 1.0, %v3886_v32  ;;  %v3251_v32 = vmul.f32 -1.442695, %v5212_v55 }
 0x20b   :  { %v1511_v10 = vpop.f32.mrb[68].mxu1  ;;  %2685 = vmatprep.mubr.bf16.mxu0 %v2127_v60  ;;  %v3890_v0 = vpop.eup %3889  ;;  %3909 = vrcp.f32 %v1806_v16  ;;  %v1986_v54 = vmul.f32 %v3888_v37, %v5125_v42  ;;  %v3247_v42 = vmul.f32 -1.442695, %v5207_v28 }
 0x20c   :  { %v2038_v21 = vmul.f32 %v1974_v56, %v1511_v10  ;;  %v1513_v34 = vpop.f32.mrb[69].mxu1  ;;  %2686 = vmatmul.mubr.bf16.vlgmr.msra.gmra.mrb[32].mxu0 %v2126_v46  ;;  %v3892_v12 = vpop.eup %3891  ;;  %3911 = vpow2.f32 %v3239_v30  ;;  %v1987_v3 = vmul.f32 %v3890_v0, %v5128_v51 }
 0x20d   :  { %v2039_v27 = vmul.f32 %v1975_v58, %v1513_v34  ;;  %v1515_v35 = vpop.f32.mrb[70].mxu1  ;;  %v3894_v43 = vpop.eup %3893  ;;  %3913 = vpow2.f32 %v3240_v1  ;;  %v1811_v44 = vadd.f32 1.0, %v3892_v12  ;;  %v3248_v34 = vmul.f32 -1.442695, %v5210_v49 }
 0x20e   :  { %v2042_v47 = vmul.f32 %v1978_v53, %v1515_v35  ;;  %v1517_v38 = vpop.f32.mrb[71].mxu1  ;;  %v3896_v7 = vpop.eup %3895  ;;  %3915 = vrcp.f32 %v1807_v5  ;;  %v1814_v8 = vadd.f32 1.0, %v3894_v43 }
 0x20f   :  { %v2043_v26 = vmul.f32 %v1979_v48, %v1517_v38  ;;  %v3898_v56 = vpop.eup %3897  ;;  %3917 = vrcp.f32 %v1810_v13  ;;  %v1815_v61 = vadd.f32 1.0, %v3896_v7  ;;  %v3252_v38 = vmul.f32 -1.442695, %v5214_v50 }
 0x210   :  { %v2130_v31 = vpack.c.bf16 %v2042_v47, %v2038_v21  ;;  %v3900_v14 = vpop.eup %3899  ;;  %3919 = vpow2.f32 %v3243_v52  ;;  %v1990_v35 = vmul.f32 %v3898_v56, %v5140_v36 }
 0x211   :  { %v2131_v40 = vpack.c.bf16 %v2043_v26, %v2039_v27  ;;  %v3902_v53 = vpop.eup %3901  ;;  %3921 = vpow2.f32 %v3244_v17  ;;  %v1818_v48 = vadd.f32 1.0, %v3900_v14 }
 0x212   :  { %v3904_v21 = vpop.eup %3903  ;;  %3923 = vrcp.f32 %v1811_v44  ;;  %v1991_v47 = vmul.f32 %v3902_v53, %v5144_v33 }
 0x213   :  { %v1521_v46 = vpop.f32.mrb[72].mxu1  ;;  %2695 = vmatprep.mubr.bf16.mxu0 %v2131_v40  ;;  %v3906_v51 = vpop.eup %3905  ;;  %3925 = vrcp.f32 %v1814_v8  ;;  %v1994_v26 = vmul.f32 %v3904_v21, %v5151_v57 }
 0x214   :  { %v2046_v60 = vmul.f32 %v1982_v22, %v1521_v46  ;;  %v1523_v59 = vpop.f32.mrb[73].mxu1  ;;  %2696 = vmatmul.mubr.bf16.gmra.mrb[36].mxu0 %v2130_v31  ;;  %v3908_v27 = vpop.eup %3907  ;;  %3927 = vrcp.f32 %v1815_v61  ;;  %v1819_v0 = vadd.f32 1.0, %v3906_v51 }
 0x215   :  { %v2047_v41 = vmul.f32 %v1983_v11, %v1523_v59  ;;  %v1525_v58 = vpop.f32.mrb[74].mxu1  ;;  %v3910_v30 = vpop.eup %3909  ;;  %3929 = vpow2.f32 %v3247_v42  ;;  %v1995_v12 = vmul.f32 %v3908_v27, %v5158_v29 }
 0x216   :  { %v2050_v10 = vmul.f32 %v1986_v54, %v1525_v58  ;;  %v1527_v9 = vpop.f32.mrb[75].mxu1  ;;  %v3912_v1 = vpop.eup %3911  ;;  %3931 = vpow2.f32 %v3248_v34 }
 0x217   :  { %v2051_v62 = vmul.f32 %v1987_v3, %v1527_v9  ;;  %v3914_v36 = vpop.eup %3913  ;;  %3933 = vrcp.f32 %v1818_v48  ;;  %v1822_v46 = vadd.f32 1.0, %v3912_v1 }
 0x218   :  { %v2134_v23 = vpack.c.bf16 %v2050_v10, %v2046_v60  ;;  %v3916_v33 = vpop.eup %3915  ;;  %3935 = vpow2.f32 %v3251_v32  ;;  %v1998_v60 = vmul.f32 %v3910_v30, %v5168_v4  ;;  %v1823_v29 = vadd.f32 1.0, %v3914_v36 }
 0x219   :  { %v2135_v16 = vpack.c.bf16 %v2051_v62, %v2047_v41  ;;  %v3918_v52 = vpop.eup %3917  ;;  %3937 = vpow2.f32 %v3252_v38  ;;  %v1999_v56 = vmul.f32 %v3916_v33, %v5171_v45 }
 0x21a   :  { %v3920_v11 = vpop.eup %3919  ;;  %3939 = vrcp.f32 %v1819_v0  ;;  %v2002_v58 = vmul.f32 %v3918_v52, %v5177_v18 }
 0x21b   :  { %v1531_v37 = vpop.f32.mrb[76].mxu1  ;;  %2705 = vmatprep.mubr.bf16.mxu0 %v2135_v16  ;;  %v3922_v17 = vpop.eup %3921  ;;  %v1826_v3 = vadd.f32 1.0, %v3920_v11  ;;  %3941 = vrcp.f32 %v1822_v46 }
 0x21c   :  { %v2054_v5 = vmul.f32 %v1990_v35, %v1531_v37  ;;  %v1533_v31 = vpop.f32.mrb[77].mxu1  ;;  %2706 = vmatmul.mubr.bf16.gmra.mrb[40].mxu0 %v2134_v23  ;;  %v3924_v44 = vpop.eup %3923  ;;  %v1827_v14 = vadd.f32 1.0, %v3922_v17  ;;  %3943 = vrcp.f32 %v1823_v29 }
 0x21d   :  { %v2055_v13 = vmul.f32 %v1991_v47, %v1533_v31  ;;  %v1535_v40 = vpop.f32.mrb[78].mxu1  ;;  %v3926_v59 = vpop.eup %3925  ;;  %v2003_v53 = vmul.f32 %v3924_v44, %v5180_v24  ;;  %3945 = vrcp.f32 %v1826_v3 }
 0x21e   :  { %v2058_v43 = vmul.f32 %v1994_v26, %v1535_v40  ;;  %v1537_v22 = vpop.f32.mrb[79].mxu1  ;;  %v3928_v41 = vpop.eup %3927  ;;  %3947 = vrcp.f32 %v1827_v14  ;;  %v2006_v32 = vmul.f32 %v3926_v59, %v5183_v19 }
 0x21f   :  { %v2059_v7 = vmul.f32 %v1995_v12, %v1537_v22  ;;  %v3930_v9 = vpop.eup %3929  ;;  %v2007_v30 = vmul.f32 %v3928_v41, %v5186_v63 }
 0x220   :  { %v2138_v57 = vpack.c.bf16 %v2058_v43, %v2054_v5  ;;  %v3932_v62 = vpop.eup %3931  ;;  %v1830_v16 = vadd.f32 1.0, %v3930_v9 }
 0x221   :  { %v2139_v54 = vpack.c.bf16 %v2059_v7, %v2055_v13  ;;  %v3934_v34 = vpop.eup %3933  ;;  %v1831_v24 = vadd.f32 1.0, %v3932_v62 }
 0x222   :  { %v3936_v51 = vpop.eup %3935  ;;  %v2010_v37 = vmul.f32 %v3934_v34, %v5189_v39  ;;  %3949 = vrcp.f32 %v1830_v16 }
 0x223   :  { %v1541_v8 = vpop.f32.mrb[80].mxu1  ;;  %2715 = vmatprep.mubr.bf16.mxu0 %v2139_v54  ;;  %v3938_v48 = vpop.eup %3937  ;;  %v1834_v47 = vadd.f32 1.0, %v3936_v51  ;;  %3951 = vrcp.f32 %v1831_v24 }
 0x224   :  { %v2062_v61 = vmul.f32 %v1998_v60, %v1541_v8  ;;  %v1543_v10 = vpop.f32.mrb[81].mxu1  ;;  %2716 = vmatmul.mubr.bf16.gmra.mrb[44].mxu0 %v2138_v57  ;;  %v3940_v35 = vpop.eup %3939  ;;  %v1835_v1 = vadd.f32 1.0, %v3938_v48 }
 0x225   :  { %v2063_v42 = vmul.f32 %v1999_v56, %v1543_v10  ;;  %v1545_v4 = vpop.f32.mrb[82].mxu1  ;;  %v2011_v5 = vmul.f32 %v3940_v35, %v5191_v15  ;;  %v3942_v13 = vpop.eup %3941  ;;  %3953 = vrcp.f32 %v1834_v47 }
 0x226   :  { %v2066_v21 = vmul.f32 %v2002_v58, %v1545_v4  ;;  %v1547_v45 = vpop.f32.mrb[83].mxu1  ;;  %v3944_v40 = vpop.eup %3943  ;;  %3955 = vrcp.f32 %v1835_v1  ;;  %v2014_v52 = vmul.f32 %v3942_v13, %v5195_v25 }
 0x227   :  { %v2067_v23 = vmul.f32 %v2003_v53, %v1547_v45  ;;  %v3946_v43 = vpop.eup %3945  ;;  %v2015_v7 = vmul.f32 %v3944_v40, %v5198_v20  ;;  %v2869_v40 = vld [vmem:[%s5364_s5 + $0x20] sm:$0xff] }
 0x228   :  { %v2142_v18 = vpack.c.bf16 %v2066_v21, %v2062_v61  ;;  %v3948_v22 = vpop.eup %3947  ;;  %v2018_v11 = vmul.f32 %v3946_v43, %v5200_v2 }
 0x229   :  { %v2143_v27 = vpack.c.bf16 %v2067_v23, %v2063_v42  ;;  %v2019_v46 = vmul.f32 %v3948_v22, %v5202_v6 }
 0x22b   :  { %v1551_v38 = vpop.f32.mrb[84].mxu1  ;;  %2725 = vmatprep.mubr.bf16.mxu0 %v2143_v27 }
 0x22c   :  { %v2070_v26 = vmul.f32 %v2006_v32, %v1551_v38  ;;  %v1553_v0 = vpop.f32.mrb[85].mxu1  ;;  %2726 = vmatmul.mubr.bf16.gmra.mrb[48].mxu0 %v2142_v18  ;;  %v3950_v59 = vpop.eup %3949  ;;  %v2867_v32 = vld [vmem:[%s5364_s5 + $0x10] sm:$0xff] }
 0x22d   :  { %v2071_v31 = vmul.f32 %v2007_v30, %v1553_v0  ;;  %v1555_v36 = vpop.f32.mrb[86].mxu1  ;;  %v3952_v3 = vpop.eup %3951  ;;  %v2022_v58 = vmul.f32 %v3950_v59, %v5207_v28  ;;  %v2865_v28 = vld [vmem:[%s5364_s5] sm:$0xff]  ;;  %v2885_v1 = vunpack.c.l.bf16 %v2867_v32  ;;  %v2886_v0 = vunpack.c.h.bf16 %v2867_v32  ;;  %v2871_v59 = vld [vmem:[%s5364_s5 + $0x30] sm:$0xff] }
 0x22e   :  { %v2074_v12 = vmul.f32 %v2010_v37, %v1555_v36  ;;  %v1557_v19 = vpop.f32.mrb[87].mxu1  ;;  %v2023_v2 = vmul.f32 %v3952_v3, %v5210_v49  ;;  %v2866_v49 = vld [vmem:[%s5364_s5 + $0x8] sm:$0xff]  ;;  %v2882_v23 = vunpack.c.h.bf16 %v2865_v28  ;;  %v2868_v37 = vld [vmem:[%s5364_s5 + $0x18] sm:$0xff]  ;;  %v2875_v32 = vld [vmem:[%s5364_s5 + $0x50] sm:$0xff] }
 0x22f   :  { %v2075_v63 = vmul.f32 %v2011_v5, %v1557_v19  ;;  %v3954_v25 = vpop.eup %3953  ;;  %v2884_v18 = vunpack.c.h.bf16 %v2866_v49  ;;  %v2887_v5 = vunpack.c.l.bf16 %v2868_v37  ;;  %v2888_v36 = vunpack.c.h.bf16 %v2868_v37  ;;  %v2876_v37 = vld [vmem:[%s5364_s5 + $0x58] sm:$0xff] }
 0x230   :  { %v2146_v33 = vpack.c.bf16 %v2074_v12, %v2070_v26  ;;  %v3956_v20 = vpop.eup %3955  ;;  %v2026_v61 = vmul.f32 %v3954_v25, %v5212_v55  ;;  %v2881_v55 = vunpack.c.l.bf16 %v2865_v28  ;;  %v2874_v28 = vld [vmem:[%s5364_s5 + $0x48] sm:$0xff] }
 0x231   :  { %v2147_v39 = vpack.c.bf16 %v2075_v63, %v2071_v31  ;;  %v2027_v9 = vmul.f32 %v3956_v20, %v5214_v50  ;;  %v2883_v50 = vunpack.c.l.bf16 %v2866_v49  ;;  %v2893_v20 = vunpack.c.l.bf16 %v2871_v59 }
 0x233   :  { %v1561_v15 = vpop.f32.mrb[88].mxu1  ;;  %2735 = vmatprep.mubr.bf16.mxu0 %v2147_v39 }
 0x234   :  { %v2078_v57 = vmul.f32 %v2014_v52, %v1561_v15  ;;  %v1563_v17 = vpop.f32.mrb[89].mxu1  ;;  %2736 = vmatmul.mubr.bf16.gmra.mrb[52].mxu0 %v2146_v33  ;;  %v2870_v52 = vld [vmem:[%s5364_s5 + $0x28] sm:$0xff] }
 0x235   :  { %v2079_v54 = vmul.f32 %v2015_v7, %v1563_v17  ;;  %v1565_v44 = vpop.f32.mrb[90].mxu1  ;;  %v2889_v7 = vunpack.c.l.bf16 %v2869_v40 }
 0x236   :  { %v2082_v60 = vmul.f32 %v2018_v11, %v1565_v44  ;;  %v1567_v29 = vpop.f32.mrb[91].mxu1  ;;  %v2890_v11 = vunpack.c.h.bf16 %v2869_v40  ;;  %v2877_v40 = vld [vmem:[%s5364_s5 + $0x60] sm:$0xff] }
 0x237   :  { %v2083_v56 = vmul.f32 %v2019_v46, %v1567_v29  ;;  %v2892_v46 = vunpack.c.h.bf16 %v2870_v52 }
 0x238   :  { %v2150_v8 = vpack.c.bf16 %v2082_v60, %v2078_v57  ;;  %v2891_v57 = vunpack.c.l.bf16 %v2870_v52  ;;  %v2878_v52 = vld [vmem:[%s5364_s5 + $0x68] sm:$0xff] }
 0x239   :  { %v2151_v41 = vpack.c.bf16 %v2083_v56, %v2079_v54 }
 0x23b   :  { %v1571_v14 = vpop.f32.mrb[92].mxu1  ;;  %2745 = vmatprep.mubr.bf16.mxu0 %v2151_v41  ;;  %v2872_v41 = vld [vmem:[%s5364_s5 + $0x38] sm:$0xff] }
 0x23c   :  { %v2086_v6 = vmul.f32 %v2022_v58, %v1571_v14  ;;  %v1573_v10 = vpop.f32.mrb[93].mxu1  ;;  %2746 = vmatmul.mubr.bf16.gmra.mrb[56].mxu0 %v2150_v8  ;;  %v2895_v14 = vunpack.c.l.bf16 %v2872_v41 }
 0x23d   :  { %v2087_v53 = vmul.f32 %v2023_v2, %v1573_v10  ;;  %v1575_v42 = vpop.f32.mrb[94].mxu1  ;;  %v2894_v2 = vunpack.c.h.bf16 %v2871_v59  ;;  %v2879_v59 = vld [vmem:[%s5364_s5 + $0x70] sm:$0xff] }
 0x23e   :  { %v2090_v4 = vmul.f32 %v2026_v61, %v1575_v42  ;;  %v1577_v62 = vpop.f32.mrb[95].mxu1 }
 0x23f   :  { %v2091_v21 = vmul.f32 %v2027_v9, %v1577_v62 }
 0x240   :  { %v2154_v45 = vpack.c.bf16 %v2090_v4, %v2086_v6  ;;  %v2896_v6 = vunpack.c.h.bf16 %v2872_v41  ;;  %v2873_v4 = vld [vmem:[%s5364_s5 + $0x40] sm:$0xff]  ;;  %v2880_v41 = vld [vmem:[%s5364_s5 + $0x78] sm:$0xff] }
 0x241   :  { %v2155_v34 = vpack.c.bf16 %v2091_v21, %v2087_v53  ;;  %v2897_v49 = vunpack.c.l.bf16 %v2873_v4 }
 0x243   :  { %2755 = vmatprep.mubr.bf16.mxu0 %v2155_v34 }
 0x244   :  { %2756 = vmatmul.mubr.bf16.gmra.mrb[60].mxu0 %v2154_v45 }
 0x2df   :  { %v2687_v51 = vpop.f32.mrb[32].mxu0 }
 0x2e0   :  { %v2913_v48 = vadd.f32 %v2881_v55, %v2687_v51  ;;  %v2689_v16 = vpop.f32.mrb[33].mxu0 }
 0x2e1   :  { %v2914_v27 = vadd.f32 %v2882_v23, %v2689_v16  ;;  %v2691_v35 = vpop.f32.mrb[34].mxu0  ;;  %v2898_v23 = vunpack.c.h.bf16 %v2873_v4 }
 0x2e2   :  { %v2915_v24 = vadd.f32 %v2883_v50, %v2691_v35  ;;  %v2693_v30 = vpop.f32.mrb[35].mxu0  ;;  %v2899_v50 = vunpack.c.l.bf16 %v2874_v28 }
 0x2e3   :  { %v3333_v47 = vpack.c.bf16 %v2914_v27, %v2913_v48  ;;  %v2916_v38 = vadd.f32 %v2884_v18, %v2693_v30  ;;  %v2900_v18 = vunpack.c.h.bf16 %v2874_v28 }
 0x2e5   :  { %3041 = vst [vmem:[%s5365_s6] sm:$0xff] %v3333_v47  ;;  %v3334_v26 = vpack.c.bf16 %v2916_v38, %v2915_v24 }
 0x2e7   :  { %3042 = vst [vmem:[%s5365_s6 + $0x8] sm:$0xff] %v3334_v26  ;;  %v2697_v31 = vpop.f32.mrb[36].mxu0 }
 0x2e8   :  { %v2917_v12 = vadd.f32 %v2885_v1, %v2697_v31  ;;  %v2699_v19 = vpop.f32.mrb[37].mxu0  ;;  %v2901_v1 = vunpack.c.l.bf16 %v2875_v32 }
 0x2e9   :  { %v2918_v13 = vadd.f32 %v2886_v0, %v2699_v19  ;;  %v2701_v63 = vpop.f32.mrb[38].mxu0  ;;  %v2902_v0 = vunpack.c.h.bf16 %v2875_v32 }
 0x2ea   :  { %v2919_v33 = vadd.f32 %v2887_v5, %v2701_v63  ;;  %v2703_v43 = vpop.f32.mrb[39].mxu0  ;;  %v2903_v5 = vunpack.c.l.bf16 %v2876_v37 }
 0x2eb   :  { %v3335_v39 = vpack.c.bf16 %v2918_v13, %v2917_v12  ;;  %v2920_v22 = vadd.f32 %v2888_v36, %v2703_v43  ;;  %v2904_v36 = vunpack.c.h.bf16 %v2876_v37 }
 0x2ed   :  { %3043 = vst [vmem:[%s5365_s6 + $0x10] sm:$0xff] %v3335_v39  ;;  %v3336_v15 = vpack.c.bf16 %v2920_v22, %v2919_v33 }
 0x2ef   :  { %3044 = vst [vmem:[%s5365_s6 + $0x18] sm:$0xff] %v3336_v15  ;;  %v2707_v17 = vpop.f32.mrb[40].mxu0 }
 0x2f0   :  { %v2921_v54 = vadd.f32 %v2889_v7, %v2707_v17  ;;  %v2709_v44 = vpop.f32.mrb[41].mxu0  ;;  %v2905_v7 = vunpack.c.l.bf16 %v2877_v40 }
 0x2f1   :  { %v2922_v60 = vadd.f32 %v2890_v11, %v2709_v44  ;;  %v2711_v29 = vpop.f32.mrb[42].mxu0  ;;  %v2906_v11 = vunpack.c.h.bf16 %v2877_v40 }
 0x2f2   :  { %v2923_v56 = vadd.f32 %v2891_v57, %v2711_v29  ;;  %v2713_v3 = vpop.f32.mrb[43].mxu0  ;;  %v2907_v57 = vunpack.c.l.bf16 %v2878_v52 }
 0x2f3   :  { %v3337_v8 = vpack.c.bf16 %v2922_v60, %v2921_v54  ;;  %v2924_v25 = vadd.f32 %v2892_v46, %v2713_v3  ;;  %v2908_v46 = vunpack.c.h.bf16 %v2878_v52 }
 0x2f5   :  { %3045 = vst [vmem:[%s5365_s6 + $0x20] sm:$0xff] %v3337_v8  ;;  %v3338_v58 = vpack.c.bf16 %v2924_v25, %v2923_v56 }
 0x2f7   :  { %3046 = vst [vmem:[%s5365_s6 + $0x28] sm:$0xff] %v3338_v58  ;;  %v2717_v61 = vpop.f32.mrb[44].mxu0 }
 0x2f8   :  { %v2925_v10 = vadd.f32 %v2893_v20, %v2717_v61  ;;  %v2719_v9 = vpop.f32.mrb[45].mxu0  ;;  %v2909_v20 = vunpack.c.l.bf16 %v2879_v59 }
 0x2f9   :  { %v2926_v53 = vadd.f32 %v2894_v2, %v2719_v9  ;;  %v2721_v42 = vpop.f32.mrb[46].mxu0  ;;  %v2910_v2 = vunpack.c.h.bf16 %v2879_v59 }
 0x2fa   :  { %v2927_v62 = vadd.f32 %v2895_v14, %v2721_v42  ;;  %v2723_v21 = vpop.f32.mrb[47].mxu0  ;;  %v2911_v14 = vunpack.c.l.bf16 %v2880_v41 }
 0x2fb   :  { %v3339_v45 = vpack.c.bf16 %v2926_v53, %v2925_v10  ;;  %v2928_v34 = vadd.f32 %v2896_v6, %v2723_v21  ;;  %v2912_v6 = vunpack.c.h.bf16 %v2880_v41 }
 0x2fd   :  { %3047 = vst [vmem:[%s5365_s6 + $0x30] sm:$0xff] %v3339_v45  ;;  %v3340_v55 = vpack.c.bf16 %v2928_v34, %v2927_v62 }
 0x2ff   :  { %3048 = vst [vmem:[%s5365_s6 + $0x38] sm:$0xff] %v3340_v55  ;;  %v2727_v51 = vpop.f32.mrb[48].mxu0 }
 0x300   :  { %v2929_v48 = vadd.f32 %v2897_v49, %v2727_v51  ;;  %v2729_v16 = vpop.f32.mrb[49].mxu0 }
 0x301   :  { %v2930_v27 = vadd.f32 %v2898_v23, %v2729_v16  ;;  %v2731_v35 = vpop.f32.mrb[50].mxu0 }
 0x302   :  { %v2931_v24 = vadd.f32 %v2899_v50, %v2731_v35  ;;  %v2733_v30 = vpop.f32.mrb[51].mxu0 }
 0x303   :  { %v3341_v47 = vpack.c.bf16 %v2930_v27, %v2929_v48  ;;  %v2932_v38 = vadd.f32 %v2900_v18, %v2733_v30 }
 0x305   :  { %3049 = vst [vmem:[%s5365_s6 + $0x40] sm:$0xff] %v3341_v47  ;;  %v3342_v26 = vpack.c.bf16 %v2932_v38, %v2931_v24 }
 0x307   :  { %3050 = vst [vmem:[%s5365_s6 + $0x48] sm:$0xff] %v3342_v26  ;;  %v2737_v31 = vpop.f32.mrb[52].mxu0 }
 0x308   :  { %v2933_v12 = vadd.f32 %v2901_v1, %v2737_v31  ;;  %v2739_v19 = vpop.f32.mrb[53].mxu0 }
 0x309   :  { %v2934_v13 = vadd.f32 %v2902_v0, %v2739_v19  ;;  %v2741_v63 = vpop.f32.mrb[54].mxu0 }
 0x30a   :  { %v2935_v33 = vadd.f32 %v2903_v5, %v2741_v63  ;;  %v2743_v43 = vpop.f32.mrb[55].mxu0 }
 0x30b   :  { %v3343_v39 = vpack.c.bf16 %v2934_v13, %v2933_v12  ;;  %v2936_v22 = vadd.f32 %v2904_v36, %v2743_v43 }
 0x30d   :  { %3051 = vst [vmem:[%s5365_s6 + $0x50] sm:$0xff] %v3343_v39  ;;  %v3344_v15 = vpack.c.bf16 %v2936_v22, %v2935_v33 }
 0x30f   :  { %3052 = vst [vmem:[%s5365_s6 + $0x58] sm:$0xff] %v3344_v15  ;;  %v2747_v17 = vpop.f32.mrb[56].mxu0 }
 0x310   :  { %v2937_v54 = vadd.f32 %v2905_v7, %v2747_v17  ;;  %v2749_v44 = vpop.f32.mrb[57].mxu0 }
 0x311   :  { %v2938_v60 = vadd.f32 %v2906_v11, %v2749_v44  ;;  %v2751_v29 = vpop.f32.mrb[58].mxu0 }
 0x312   :  { %v2939_v56 = vadd.f32 %v2907_v57, %v2751_v29  ;;  %v2753_v3 = vpop.f32.mrb[59].mxu0 }
 0x313   :  { %v3345_v8 = vpack.c.bf16 %v2938_v60, %v2937_v54  ;;  %v2940_v25 = vadd.f32 %v2908_v46, %v2753_v3 }
 0x315   :  { %3053 = vst [vmem:[%s5365_s6 + $0x60] sm:$0xff] %v3345_v8  ;;  %v3346_v58 = vpack.c.bf16 %v2940_v25, %v2939_v56 }
 0x317   :  { %3054 = vst [vmem:[%s5365_s6 + $0x68] sm:$0xff] %v3346_v58  ;;  %v2757_v61 = vpop.f32.mrb[60].mxu0 }
 0x318   :  { %v2941_v10 = vadd.f32 %v2909_v20, %v2757_v61  ;;  %v2759_v9 = vpop.f32.mrb[61].mxu0 }
 0x319   :  { %v2942_v53 = vadd.f32 %v2910_v2, %v2759_v9  ;;  %v2761_v42 = vpop.f32.mrb[62].mxu0 }
 0x31a   :  { %v2943_v4 = vadd.f32 %v2911_v14, %v2761_v42  ;;  %v2763_v62 = vpop.f32.mrb[63].mxu0 }
 0x31b   :  { %v3347_v21 = vpack.c.bf16 %v2942_v53, %v2941_v10  ;;  %v2944_v45 = vadd.f32 %v2912_v6, %v2763_v62 }
 0x31d   :  { %3055 = vst [vmem:[%s5365_s6 + $0x70] sm:$0xff] %v3347_v21  ;;  %v3348_v34 = vpack.c.bf16 %v2944_v45, %v2943_v4 }
 0x31f   :  { %3056 = vst [vmem:[%s5365_s6 + $0x78] sm:$0xff] %v3348_v34 }

</bundles_post_ra>
